<compile_context>
chip_gen: v6e
topology: v6e:2x2x1
jax: 0.10.0
libtpu: 0.0.40
codegen_flags: <defaults>
</compile_context>

<pallas_src>
import functools

import jax
import jax.numpy as jnp
from jax.experimental import pallas as pl
from jax.experimental.pallas import tpu as pltpu


def _round_up(x, m):
    return ((x + m - 1) // m) * m


# ---------------------------------------------------------------------------
# Pallas kernel:  out = [leaky_relu]( sum_t  x_t @ W_t  + b )
#   x_t : (TM, D_t) bf16    W_t : (D_t, Np) bf16 (VMEM-resident, block index (0,0))
#   b   : (1, Np)   f32     out : (TM, Np)  bf16 or f32   (Np multiple of 128)
# ---------------------------------------------------------------------------
def _taps_mm_kernel(*refs, n_taps, lrelu):
    x_refs = refs[:n_taps]
    w_refs = refs[n_taps:2 * n_taps]
    b_ref = refs[2 * n_taps]
    o_ref = refs[2 * n_taps + 1]

    acc = jnp.dot(x_refs[0][...], w_refs[0][...],
                  preferred_element_type=jnp.float32)
    for t in range(1, n_taps):                      # static unroll over conv taps
        acc = acc + jnp.dot(x_refs[t][...], w_refs[t][...],
                            preferred_element_type=jnp.float32)
    acc = acc + b_ref[...]                          # bias added once, in f32
    if lrelu:
        acc = jnp.where(acc > 0, acc, 0.1 * acc)    # LeakyReLU(negative_slope=0.1)
    o_ref[...] = acc.astype(o_ref.dtype)


def fused_taps_matmul(taps, tap_ws, bias, *, lrelu, out_dtype, tile_m=256):
    """taps: tuple of (M, D_t); tap_ws: tuple of (D_t, Np) bf16; bias: (1, Np) f32."""
    n_taps = len(taps)
    M = taps[0].shape[0]
    Np = tap_ws[0].shape[1]

    TM = min(tile_m, _round_up(M, 16))              # bf16 sublane packing
    Mp = _round_up(M, TM)

    x_in = tuple(jnp.pad(t.astype(jnp.bfloat16), ((0, Mp - M), (0, 0)))
                 for t in taps)

    k_total = sum(int(t.shape[1]) for t in taps)
    cost = pl.CostEstimate(
        flops=2 * Mp * k_total * Np,
        transcendentals=0,
        bytes_accessed=(Mp * k_total * 2 + k_total * Np * 2 + Np * 4
                        + Mp * Np * jnp.dtype(out_dtype).itemsize),
    )

    in_specs = (
        [pl.BlockSpec((TM, int(t.shape[1])), lambda i: (i, 0)) for t in x_in]
        + [pl.BlockSpec(tuple(w.shape), lambda i: (0, 0)) for w in tap_ws]
        + [pl.BlockSpec((1, Np), lambda i: (0, 0))]
    )

    out = pl.pallas_call(
        functools.partial(_taps_mm_kernel, n_taps=n_taps, lrelu=lrelu),
        out_shape=jax.ShapeDtypeStruct((Mp, Np), out_dtype),
        grid=(Mp // TM,),
        in_specs=in_specs,
        out_specs=pl.BlockSpec((TM, Np), lambda i: (i, 0)),
        compiler_params=pltpu.CompilerParams(
            dimension_semantics=("parallel",),
            vmem_limit_bytes=48 * 1024 * 1024),
        cost_estimate=cost,
    )(*x_in, *tap_ws, bias)
    return out[:M]


# ---------------------------------------------------------------------------
# Conv along H: stride 3, kernel 5, padding 2 (the four strided convs).
# Regrouped into two matmuls over a phase-merged slab (no im2col duplication):
#   out[h] = slab[h] @ vstack(w0,w1,w2) + slab[h+1][:, :2C] @ vstack(w3,w4)
# where slab group g = concat(x_pad[3g], x_pad[3g+1], x_pad[3g+2]) on channels.
# ---------------------------------------------------------------------------
def conv_h_s3(y, tap_ws, bias, c_out):
    B, W, H, C = y.shape
    h_out = (H - 1) // 3 + 1                       # == floor((H + 4 - 5)/3) + 1
    need = 3 * (h_out + 1)                         # >= H + 3 always
    xp = jnp.pad(y, ((0, 0), (0, 0), (2, need - H - 2), (0, 0)))
    slab = xp.reshape(B, W, h_out + 1, 3 * C)
    M = B * W * h_out
    tap_a = slab[:, :, :h_out, :].reshape(M, 3 * C)
    tap_b = slab[:, :, 1:, :2 * C].reshape(M, 2 * C)
    out = fused_taps_matmul((tap_a, tap_b), tap_ws, bias,
                            lrelu=True, out_dtype=jnp.bfloat16)
    return out[:, :c_out].reshape(B, W, h_out, c_out)


# ---------------------------------------------------------------------------
# Conv along H: stride 1, kernel k, padding pad (conv_end1 / conv_end2):
#   out[h] = sum_j x_pad[h + j] @ w_j   (k shifted-slice matmuls fused in-kernel)
# ---------------------------------------------------------------------------
def conv_h_s1(y, tap_ws, bias, c_out, *, k, pad, lrelu, out_dtype):
    B, W, H, C = y.shape
    h_out = H + 2 * pad - k + 1
    xp = jnp.pad(y, ((0, 0), (0, 0), (pad, pad), (0, 0)))
    M = B * W * h_out
    taps = tuple(xp[:, :, j:j + h_out, :].reshape(M, C) for j in range(k))
    out = fused_taps_matmul(taps, tap_ws, bias, lrelu=lrelu, out_dtype=out_dtype)
    return out[:, :c_out].reshape(B, W, h_out, c_out)


# ---------------------------------------------------------------------------
# Parameters (deterministic synthetic init; weight_norm at init == raw weights)
# ---------------------------------------------------------------------------
def _init_conv(key, c_in, c_out, k):
    kw, kb = jax.random.split(key)
    bound = 1.0 / jnp.sqrt(float(c_in * k))
    w = jax.random.uniform(kw, (k, c_in, c_out), jnp.float32, -bound, bound)
    b = jax.random.uniform(kb, (c_out,), jnp.float32, -bound, bound)
    return w, b


def init_mpd_params(key):
    keys = jax.random.split(key, 6)
    convs = [
        _init_conv(keys[0], 1, 64, 5),
        _init_conv(keys[1], 64, 128, 5),
        _init_conv(keys[2], 128, 256, 5),
        _init_conv(keys[3], 256, 512, 5),
    ]
    conv_end1 = _init_conv(keys[4], 512, 1024, 5)
    conv_end2 = _init_conv(keys[5], 1024, 1, 3)
    return {"convs": convs, "conv_end1": conv_end1, "conv_end2": conv_end2}


def _pad_n(w2d, n_pad):
    return jnp.pad(w2d, ((0, 0), (0, n_pad - w2d.shape[1])))


def _prep_bias(b, n_pad):
    return jnp.pad(b, (0, n_pad - b.shape[0])).reshape(1, n_pad).astype(jnp.float32)


def _prep_strided(w, b):
    """w: (5, C_in, C_out) -> grouped bf16 weights (3C, Np), (2C, Np) + padded bias."""
    c_out = w.shape[2]
    n_pad = _round_up(c_out, 128)                  # lane-dense kernel output
    wa = jnp.concatenate([w[0], w[1], w[2]], axis=0)
    wb = jnp.concatenate([w[3], w[4]], axis=0)
    return ((_pad_n(wa, n_pad).astype(jnp.bfloat16),
             _pad_n(wb, n_pad).astype(jnp.bfloat16)),
            _prep_bias(b, n_pad))


def _prep_dense(w, b):
    """w: (k, C_in, C_out) -> k per-tap bf16 weights (C_in, Np) + padded bias."""
    k, _, c_out = w.shape
    n_pad = _round_up(c_out, 128)
    taps = tuple(_pad_n(w[j], n_pad).astype(jnp.bfloat16) for j in range(k))
    return taps, _prep_bias(b, n_pad)


def prepare_mpd_params(params):
    return {
        "convs": [_prep_strided(w, b) for (w, b) in params["convs"]],
        "conv_end1": _prep_dense(*params["conv_end1"]),
        "conv_end2": _prep_dense(*params["conv_end2"]),
    }


# ---------------------------------------------------------------------------
# MPDBlock forward
# ---------------------------------------------------------------------------
_CONV_C_OUT = (64, 128, 256, 512)


def mpd_block_forward(x, prepped, p):
    """x: (B, 1, T) f32 (torch NCW input).  Returns (y, fmaps) in NCHW f32."""
    B, _, T = x.shape
    if T % p != 0:
        # matches torch F.pad(x, (0, p - T % p)) with default constant-zero padding
        x = jnp.pad(x, ((0, 0), (0, 0), (0, p - T % p)))
    y = x.reshape(B, 1, -1, p)                                 # NCHW
    y = jnp.transpose(y, (0, 3, 2, 1)).astype(jnp.bfloat16)    # (B, W=p, H, C=1)

    fmaps = []
    for (tap_ws, bias), c_out in zip(prepped["convs"], _CONV_C_OUT):
        y = conv_h_s3(y, tap_ws, bias, c_out)
        fmaps.append(y)

    tap_ws, bias = prepped["conv_end1"]
    y = conv_h_s1(y, tap_ws, bias, 1024, k=5, pad=2, lrelu=True,
                  out_dtype=jnp.bfloat16)
    fmaps.append(y)

    tap_ws, bias = prepped["conv_end2"]
    y = conv_h_s1(y, tap_ws, bias, 1, k=3, pad=2, lrelu=False,
                  out_dtype=jnp.float32)

    def to_nchw(a):  # (B, W, H, C) -> (B, C, H, W), f32 at the API boundary
        return jnp.transpose(a, (0, 3, 2, 1)).astype(jnp.float32)

    return to_nchw(y), [to_nchw(f) for f in fmaps]


# ---------------------------------------------------------------------------
if __name__ == "__main__":
    key = jax.random.PRNGKey(0)
    k_param, k_x = jax.random.split(key)

    period = 4
    B, T = 2, 50                      # T % p != 0 -> exercises the pad branch
    x = jax.random.normal(k_x, (B, 1, T), jnp.float32)
    params = init_mpd_params(k_param)
    prepped = prepare_mpd_params(params)

    fwd = jax.jit(functools.partial(mpd_block_forward, p=period))
    y, fmaps = fwd(x, prepped)

    jax.block_until_ready(y)
    for f in fmaps:
        jax.block_until_ready(f)

    # expected NCHW shapes: input reshaped to (2,1,13,4);
    # strided convs H: 13->5->2->1->1; conv_end1 keeps H=1; conv_end2 (k=3,pad=2) -> 3
    assert y.shape == (2, 1, 3, 4), y.shape
    assert [f.shape for f in fmaps] == [
        (2, 64, 5, 4), (2, 128, 2, 4), (2, 256, 1, 4),
        (2, 512, 1, 4), (2, 1024, 1, 4),
    ], [f.shape for f in fmaps]

    print("KERNEL_OK")
</pallas_src>

<mosaic_0001>
module attributes {stable_mosaic.version = 11 : i64} {
  func.func @_taps_mm_kernel(%arg0: i32, %arg1: memref<48x3xbf16, #tpu.memory_space<vmem>>, %arg2: memref<48x2xbf16, #tpu.memory_space<vmem>>, %arg3: memref<3x128xbf16, #tpu.memory_space<vmem>>, %arg4: memref<2x128xbf16, #tpu.memory_space<vmem>>, %arg5: memref<1x128xf32, #tpu.memory_space<vmem>>, %arg6: memref<48x128xbf16, #tpu.memory_space<vmem>>) attributes {dimension_semantics = [#tpu.dimension_semantics<parallel>], iteration_bounds = array<i64: 1>, scalar_prefetch = 0 : i64, scratch_operands = 0 : i64, tpu.core_type = #tpu.core_type<tc>, window_params = [{transform_indices = @transform_0, window_bounds = array<i64: 48, 3>}, {transform_indices = @transform_1, window_bounds = array<i64: 48, 2>}, {pipeline_mode = #tpu.pipeline_mode<synchronous>, transform_indices = @transform_2, window_bounds = array<i64: 3, 128>}, {pipeline_mode = #tpu.pipeline_mode<synchronous>, transform_indices = @transform_3, window_bounds = array<i64: 2, 128>}, {pipeline_mode = #tpu.pipeline_mode<synchronous>, transform_indices = @transform_4, window_bounds = array<i64: 1, 128>}, {transform_indices = @transform_5, window_bounds = array<i64: 48, 128>}]} {
    %c0 = arith.constant 0 : index
    %c0_0 = arith.constant 0 : index
    %0 = vector.load %arg1[%c0, %c0_0] : memref<48x3xbf16, #tpu.memory_space<vmem>>, vector<48x3xbf16>
    %c0_1 = arith.constant 0 : index
    %c0_2 = arith.constant 0 : index
    %1 = vector.load %arg3[%c0_1, %c0_2] : memref<3x128xbf16, #tpu.memory_space<vmem>>, vector<3x128xbf16>
    %cst = arith.constant dense<0.000000e+00> : vector<48x128xf32>
    %2 = tpu.matmul %0, %1, %cst {dimension_numbers = #tpu.dot_dimension_numbers<[1], [0], [0], [1], [0, 0, 1, 1], [], []>} : vector<48x3xbf16>, vector<3x128xbf16>, vector<48x128xf32> -> vector<48x128xf32>
    %c0_3 = arith.constant 0 : index
    %c0_4 = arith.constant 0 : index
    %3 = vector.load %arg2[%c0_3, %c0_4] : memref<48x2xbf16, #tpu.memory_space<vmem>>, vector<48x2xbf16>
    %c0_5 = arith.constant 0 : index
    %c0_6 = arith.constant 0 : index
    %4 = vector.load %arg4[%c0_5, %c0_6] : memref<2x128xbf16, #tpu.memory_space<vmem>>, vector<2x128xbf16>
    %cst_7 = arith.constant dense<0.000000e+00> : vector<48x128xf32>
    %5 = tpu.matmul %3, %4, %cst_7 {dimension_numbers = #tpu.dot_dimension_numbers<[1], [0], [0], [1], [0, 0, 1, 1], [], []>} : vector<48x2xbf16>, vector<2x128xbf16>, vector<48x128xf32> -> vector<48x128xf32>
    %6 = arith.addf %2, %5 : vector<48x128xf32>
    %c0_8 = arith.constant 0 : index
    %c0_9 = arith.constant 0 : index
    %7 = vector.load %arg5[%c0_8, %c0_9] : memref<1x128xf32, #tpu.memory_space<vmem>>, vector<1x128xf32>
    %8 = vector.broadcast %7 : vector<1x128xf32> to vector<48x128xf32>
    %9 = arith.addf %6, %8 : vector<48x128xf32>
    %cst_10 = arith.constant 0.000000e+00 : f32
    %10 = vector.broadcast %cst_10 : f32 to vector<48x128xf32>
    %11 = arith.cmpf ogt, %9, %10 : vector<48x128xf32>
    %cst_11 = arith.constant 1.000000e-01 : f32
    %12 = vector.broadcast %cst_11 : f32 to vector<48x128xf32>
    %13 = arith.mulf %12, %9 : vector<48x128xf32>
    %14 = arith.select %11, %9, %13 : vector<48x128xi1>, vector<48x128xf32>
    %15 = arith.truncf %14 : vector<48x128xf32> to vector<48x128xbf16>
    %c0_12 = arith.constant 0 : index
    %c0_13 = arith.constant 0 : index
    %16 = vector.load %arg6[%c0_12, %c0_13] : memref<48x128xbf16, #tpu.memory_space<vmem>>, vector<48x128xbf16>
    tpu.vector_store %arg6[%c0_12, %c0_13], %15 {strides = array<i32>} : memref<48x128xbf16, #tpu.memory_space<vmem>>, vector<48x128xbf16>,
    return
  }
  func.func @transform_0(%arg0: i32) -> (i32, i32) {
    %c0_i32 = arith.constant 0 : i32
    %c0_i32_0 = arith.constant 0 : i32
    return %arg0, %c0_i32 : i32, i32
  }
  func.func @transform_1(%arg0: i32) -> (i32, i32) {
    %c0_i32 = arith.constant 0 : i32
    %c0_i32_0 = arith.constant 0 : i32
    return %arg0, %c0_i32 : i32, i32
  }
  func.func @transform_2(%arg0: i32) -> (i32, i32) {
    %c0_i32 = arith.constant 0 : i32
    %c0_i32_0 = arith.constant 0 : i32
    %c0_i32_1 = arith.constant 0 : i32
    return %c0_i32, %c0_i32_0 : i32, i32
  }
  func.func @transform_3(%arg0: i32) -> (i32, i32) {
    %c0_i32 = arith.constant 0 : i32
    %c0_i32_0 = arith.constant 0 : i32
    %c0_i32_1 = arith.constant 0 : i32
    return %c0_i32, %c0_i32_0 : i32, i32
  }
  func.func @transform_4(%arg0: i32) -> (i32, i32) {
    %c0_i32 = arith.constant 0 : i32
    %c0_i32_0 = arith.constant 0 : i32
    %c0_i32_1 = arith.constant 0 : i32
    return %c0_i32, %c0_i32_0 : i32, i32
  }
  func.func @transform_5(%arg0: i32) -> (i32, i32) {
    %c0_i32 = arith.constant 0 : i32
    %c0_i32_0 = arith.constant 0 : i32
    return %arg0, %c0_i32 : i32, i32
  }
}

module attributes {stable_mosaic.version = 11 : i64} {
  func.func @_taps_mm_kernel(%arg0: i32, %arg1: memref<16x192xbf16, #tpu.memory_space<vmem>>, %arg2: memref<16x128xbf16, #tpu.memory_space<vmem>>, %arg3: memref<192x128xbf16, #tpu.memory_space<vmem>>, %arg4: memref<128x128xbf16, #tpu.memory_space<vmem>>, %arg5: memref<1x128xf32, #tpu.memory_space<vmem>>, %arg6: memref<16x128xbf16, #tpu.memory_space<vmem>>) attributes {dimension_semantics = [#tpu.dimension_semantics<parallel>], iteration_bounds = array<i64: 1>, scalar_prefetch = 0 : i64, scratch_operands = 0 : i64, tpu.core_type = #tpu.core_type<tc>, window_params = [{transform_indices = @transform_0, window_bounds = array<i64: 16, 192>}, {transform_indices = @transform_1, window_bounds = array<i64: 16, 128>}, {pipeline_mode = #tpu.pipeline_mode<synchronous>, transform_indices = @transform_2, window_bounds = array<i64: 192, 128>}, {pipeline_mode = #tpu.pipeline_mode<synchronous>, transform_indices = @transform_3, window_bounds = array<i64: 128, 128>}, {pipeline_mode = #tpu.pipeline_mode<synchronous>, transform_indices = @transform_4, window_bounds = array<i64: 1, 128>}, {transform_indices = @transform_5, window_bounds = array<i64: 16, 128>}]} {
    %c0 = arith.constant 0 : index
    %c0_0 = arith.constant 0 : index
    %0 = vector.load %arg1[%c0, %c0_0] : memref<16x192xbf16, #tpu.memory_space<vmem>>, vector<16x192xbf16>
    %c0_1 = arith.constant 0 : index
    %c0_2 = arith.constant 0 : index
    %1 = vector.load %arg3[%c0_1, %c0_2] : memref<192x128xbf16, #tpu.memory_space<vmem>>, vector<192x128xbf16>
    %cst = arith.constant dense<0.000000e+00> : vector<16x128xf32>
    %2 = tpu.matmul %0, %1, %cst {dimension_numbers = #tpu.dot_dimension_numbers<[1], [0], [0], [1], [0, 0, 1, 1], [], []>} : vector<16x192xbf16>, vector<192x128xbf16>, vector<16x128xf32> -> vector<16x128xf32>
    %c0_3 = arith.constant 0 : index
    %c0_4 = arith.constant 0 : index
    %3 = vector.load %arg2[%c0_3, %c0_4] : memref<16x128xbf16, #tpu.memory_space<vmem>>, vector<16x128xbf16>
    %c0_5 = arith.constant 0 : index
    %c0_6 = arith.constant 0 : index
    %4 = vector.load %arg4[%c0_5, %c0_6] : memref<128x128xbf16, #tpu.memory_space<vmem>>, vector<128x128xbf16>
    %cst_7 = arith.constant dense<0.000000e+00> : vector<16x128xf32>
    %5 = tpu.matmul %3, %4, %cst_7 {dimension_numbers = #tpu.dot_dimension_numbers<[1], [0], [0], [1], [0, 0, 1, 1], [], []>} : vector<16x128xbf16>, vector<128x128xbf16>, vector<16x128xf32> -> vector<16x128xf32>
    %6 = arith.addf %2, %5 : vector<16x128xf32>
    %c0_8 = arith.constant 0 : index
    %c0_9 = arith.constant 0 : index
    %7 = vector.load %arg5[%c0_8, %c0_9] : memref<1x128xf32, #tpu.memory_space<vmem>>, vector<1x128xf32>
    %8 = vector.broadcast %7 : vector<1x128xf32> to vector<16x128xf32>
    %9 = arith.addf %6, %8 : vector<16x128xf32>
    %cst_10 = arith.constant 0.000000e+00 : f32
    %10 = vector.broadcast %cst_10 : f32 to vector<16x128xf32>
    %11 = arith.cmpf ogt, %9, %10 : vector<16x128xf32>
    %cst_11 = arith.constant 1.000000e-01 : f32
    %12 = vector.broadcast %cst_11 : f32 to vector<16x128xf32>
    %13 = arith.mulf %12, %9 : vector<16x128xf32>
    %14 = arith.select %11, %9, %13 : vector<16x128xi1>, vector<16x128xf32>
    %15 = arith.truncf %14 : vector<16x128xf32> to vector<16x128xbf16>
    %c0_12 = arith.constant 0 : index
    %c0_13 = arith.constant 0 : index
    %16 = vector.load %arg6[%c0_12, %c0_13] : memref<16x128xbf16, #tpu.memory_space<vmem>>, vector<16x128xbf16>
    tpu.vector_store %arg6[%c0_12, %c0_13], %15 {strides = array<i32>} : memref<16x128xbf16, #tpu.memory_space<vmem>>, vector<16x128xbf16>,
    return
  }
  func.func @transform_0(%arg0: i32) -> (i32, i32) {
    %c0_i32 = arith.constant 0 : i32
    %c0_i32_0 = arith.constant 0 : i32
    return %arg0, %c0_i32 : i32, i32
  }
  func.func @transform_1(%arg0: i32) -> (i32, i32) {
    %c0_i32 = arith.constant 0 : i32
    %c0_i32_0 = arith.constant 0 : i32
    return %arg0, %c0_i32 : i32, i32
  }
  func.func @transform_2(%arg0: i32) -> (i32, i32) {
    %c0_i32 = arith.constant 0 : i32
    %c0_i32_0 = arith.constant 0 : i32
    %c0_i32_1 = arith.constant 0 : i32
    return %c0_i32, %c0_i32_0 : i32, i32
  }
  func.func @transform_3(%arg0: i32) -> (i32, i32) {
    %c0_i32 = arith.constant 0 : i32
    %c0_i32_0 = arith.constant 0 : i32
    %c0_i32_1 = arith.constant 0 : i32
    return %c0_i32, %c0_i32_0 : i32, i32
  }
  func.func @transform_4(%arg0: i32) -> (i32, i32) {
    %c0_i32 = arith.constant 0 : i32
    %c0_i32_0 = arith.constant 0 : i32
    %c0_i32_1 = arith.constant 0 : i32
    return %c0_i32, %c0_i32_0 : i32, i32
  }
  func.func @transform_5(%arg0: i32) -> (i32, i32) {
    %c0_i32 = arith.constant 0 : i32
    %c0_i32_0 = arith.constant 0 : i32
    return %arg0, %c0_i32 : i32, i32
  }
}

module attributes {stable_mosaic.version = 11 : i64} {
  func.func @_taps_mm_kernel(%arg0: i32, %arg1: memref<16x384xbf16, #tpu.memory_space<vmem>>, %arg2: memref<16x256xbf16, #tpu.memory_space<vmem>>, %arg3: memref<384x256xbf16, #tpu.memory_space<vmem>>, %arg4: memref<256x256xbf16, #tpu.memory_space<vmem>>, %arg5: memref<1x256xf32, #tpu.memory_space<vmem>>, %arg6: memref<16x256xbf16, #tpu.memory_space<vmem>>) attributes {dimension_semantics = [#tpu.dimension_semantics<parallel>], iteration_bounds = array<i64: 1>, scalar_prefetch = 0 : i64, scratch_operands = 0 : i64, tpu.core_type = #tpu.core_type<tc>, window_params = [{transform_indices = @transform_0, window_bounds = array<i64: 16, 384>}, {transform_indices = @transform_1, window_bounds = array<i64: 16, 256>}, {pipeline_mode = #tpu.pipeline_mode<synchronous>, transform_indices = @transform_2, window_bounds = array<i64: 384, 256>}, {pipeline_mode = #tpu.pipeline_mode<synchronous>, transform_indices = @transform_3, window_bounds = array<i64: 256, 256>}, {pipeline_mode = #tpu.pipeline_mode<synchronous>, transform_indices = @transform_4, window_bounds = array<i64: 1, 256>}, {transform_indices = @transform_5, window_bounds = array<i64: 16, 256>}]} {
    %c0 = arith.constant 0 : index
    %c0_0 = arith.constant 0 : index
    %0 = vector.load %arg1[%c0, %c0_0] : memref<16x384xbf16, #tpu.memory_space<vmem>>, vector<16x384xbf16>
    %c0_1 = arith.constant 0 : index
    %c0_2 = arith.constant 0 : index
    %1 = vector.load %arg3[%c0_1, %c0_2] : memref<384x256xbf16, #tpu.memory_space<vmem>>, vector<384x256xbf16>
    %cst = arith.constant dense<0.000000e+00> : vector<16x256xf32>
    %2 = tpu.matmul %0, %1, %cst {dimension_numbers = #tpu.dot_dimension_numbers<[1], [0], [0], [1], [0, 0, 1, 1], [], []>} : vector<16x384xbf16>, vector<384x256xbf16>, vector<16x256xf32> -> vector<16x256xf32>
    %c0_3 = arith.constant 0 : index
    %c0_4 = arith.constant 0 : index
    %3 = vector.load %arg2[%c0_3, %c0_4] : memref<16x256xbf16, #tpu.memory_space<vmem>>, vector<16x256xbf16>
    %c0_5 = arith.constant 0 : index
    %c0_6 = arith.constant 0 : index
    %4 = vector.load %arg4[%c0_5, %c0_6] : memref<256x256xbf16, #tpu.memory_space<vmem>>, vector<256x256xbf16>
    %cst_7 = arith.constant dense<0.000000e+00> : vector<16x256xf32>
    %5 = tpu.matmul %3, %4, %cst_7 {dimension_numbers = #tpu.dot_dimension_numbers<[1], [0], [0], [1], [0, 0, 1, 1], [], []>} : vector<16x256xbf16>, vector<256x256xbf16>, vector<16x256xf32> -> vector<16x256xf32>
    %6 = arith.addf %2, %5 : vector<16x256xf32>
    %c0_8 = arith.constant 0 : index
    %c0_9 = arith.constant 0 : index
    %7 = vector.load %arg5[%c0_8, %c0_9] : memref<1x256xf32, #tpu.memory_space<vmem>>, vector<1x256xf32>
    %8 = vector.broadcast %7 : vector<1x256xf32> to vector<16x256xf32>
    %9 = arith.addf %6, %8 : vector<16x256xf32>
    %cst_10 = arith.constant 0.000000e+00 : f32
    %10 = vector.broadcast %cst_10 : f32 to vector<16x256xf32>
    %11 = arith.cmpf ogt, %9, %10 : vector<16x256xf32>
    %cst_11 = arith.constant 1.000000e-01 : f32
    %12 = vector.broadcast %cst_11 : f32 to vector<16x256xf32>
    %13 = arith.mulf %12, %9 : vector<16x256xf32>
    %14 = arith.select %11, %9, %13 : vector<16x256xi1>, vector<16x256xf32>
    %15 = arith.truncf %14 : vector<16x256xf32> to vector<16x256xbf16>
    %c0_12 = arith.constant 0 : index
    %c0_13 = arith.constant 0 : index
    %16 = vector.load %arg6[%c0_12, %c0_13] : memref<16x256xbf16, #tpu.memory_space<vmem>>, vector<16x256xbf16>
    tpu.vector_store %arg6[%c0_12, %c0_13], %15 {strides = array<i32>} : memref<16x256xbf16, #tpu.memory_space<vmem>>, vector<16x256xbf16>,
    return
  }
  func.func @transform_0(%arg0: i32) -> (i32, i32) {
    %c0_i32 = arith.constant 0 : i32
    %c0_i32_0 = arith.constant 0 : i32
    return %arg0, %c0_i32 : i32, i32
  }
  func.func @transform_1(%arg0: i32) -> (i32, i32) {
    %c0_i32 = arith.constant 0 : i32
    %c0_i32_0 = arith.constant 0 : i32
    return %arg0, %c0_i32 : i32, i32
  }
  func.func @transform_2(%arg0: i32) -> (i32, i32) {
    %c0_i32 = arith.constant 0 : i32
    %c0_i32_0 = arith.constant 0 : i32
    %c0_i32_1 = arith.constant 0 : i32
    return %c0_i32, %c0_i32_0 : i32, i32
  }
  func.func @transform_3(%arg0: i32) -> (i32, i32) {
    %c0_i32 = arith.constant 0 : i32
    %c0_i32_0 = arith.constant 0 : i32
    %c0_i32_1 = arith.constant 0 : i32
    return %c0_i32, %c0_i32_0 : i32, i32
  }
  func.func @transform_4(%arg0: i32) -> (i32, i32) {
    %c0_i32 = arith.constant 0 : i32
    %c0_i32_0 = arith.constant 0 : i32
    %c0_i32_1 = arith.constant 0 : i32
    return %c0_i32, %c0_i32_0 : i32, i32
  }
  func.func @transform_5(%arg0: i32) -> (i32, i32) {
    %c0_i32 = arith.constant 0 : i32
    %c0_i32_0 = arith.constant 0 : i32
    return %arg0, %c0_i32 : i32, i32
  }
}

module attributes {stable_mosaic.version = 11 : i64} {
  func.func @_taps_mm_kernel(%arg0: i32, %arg1: memref<16x768xbf16, #tpu.memory_space<vmem>>, %arg2: memref<16x512xbf16, #tpu.memory_space<vmem>>, %arg3: memref<768x512xbf16, #tpu.memory_space<vmem>>, %arg4: memref<512x512xbf16, #tpu.memory_space<vmem>>, %arg5: memref<1x512xf32, #tpu.memory_space<vmem>>, %arg6: memref<16x512xbf16, #tpu.memory_space<vmem>>) attributes {dimension_semantics = [#tpu.dimension_semantics<parallel>], iteration_bounds = array<i64: 1>, scalar_prefetch = 0 : i64, scratch_operands = 0 : i64, tpu.core_type = #tpu.core_type<tc>, window_params = [{transform_indices = @transform_0, window_bounds = array<i64: 16, 768>}, {transform_indices = @transform_1, window_bounds = array<i64: 16, 512>}, {pipeline_mode = #tpu.pipeline_mode<synchronous>, transform_indices = @transform_2, window_bounds = array<i64: 768, 512>}, {pipeline_mode = #tpu.pipeline_mode<synchronous>, transform_indices = @transform_3, window_bounds = array<i64: 512, 512>}, {pipeline_mode = #tpu.pipeline_mode<synchronous>, transform_indices = @transform_4, window_bounds = array<i64: 1, 512>}, {transform_indices = @transform_5, window_bounds = array<i64: 16, 512>}]} {
    %c0 = arith.constant 0 : index
    %c0_0 = arith.constant 0 : index
    %0 = vector.load %arg1[%c0, %c0_0] : memref<16x768xbf16, #tpu.memory_space<vmem>>, vector<16x768xbf16>
    %c0_1 = arith.constant 0 : index
    %c0_2 = arith.constant 0 : index
    %1 = vector.load %arg3[%c0_1, %c0_2] : memref<768x512xbf16, #tpu.memory_space<vmem>>, vector<768x512xbf16>
    %cst = arith.constant dense<0.000000e+00> : vector<16x512xf32>
    %2 = tpu.matmul %0, %1, %cst {dimension_numbers = #tpu.dot_dimension_numbers<[1], [0], [0], [1], [0, 0, 1, 1], [], []>} : vector<16x768xbf16>, vector<768x512xbf16>, vector<16x512xf32> -> vector<16x512xf32>
    %c0_3 = arith.constant 0 : index
    %c0_4 = arith.constant 0 : index
    %3 = vector.load %arg2[%c0_3, %c0_4] : memref<16x512xbf16, #tpu.memory_space<vmem>>, vector<16x512xbf16>
    %c0_5 = arith.constant 0 : index
    %c0_6 = arith.constant 0 : index
    %4 = vector.load %arg4[%c0_5, %c0_6] : memref<512x512xbf16, #tpu.memory_space<vmem>>, vector<512x512xbf16>
    %cst_7 = arith.constant dense<0.000000e+00> : vector<16x512xf32>
    %5 = tpu.matmul %3, %4, %cst_7 {dimension_numbers = #tpu.dot_dimension_numbers<[1], [0], [0], [1], [0, 0, 1, 1], [], []>} : vector<16x512xbf16>, vector<512x512xbf16>, vector<16x512xf32> -> vector<16x512xf32>
    %6 = arith.addf %2, %5 : vector<16x512xf32>
    %c0_8 = arith.constant 0 : index
    %c0_9 = arith.constant 0 : index
    %7 = vector.load %arg5[%c0_8, %c0_9] : memref<1x512xf32, #tpu.memory_space<vmem>>, vector<1x512xf32>
    %8 = vector.broadcast %7 : vector<1x512xf32> to vector<16x512xf32>
    %9 = arith.addf %6, %8 : vector<16x512xf32>
    %cst_10 = arith.constant 0.000000e+00 : f32
    %10 = vector.broadcast %cst_10 : f32 to vector<16x512xf32>
    %11 = arith.cmpf ogt, %9, %10 : vector<16x512xf32>
    %cst_11 = arith.constant 1.000000e-01 : f32
    %12 = vector.broadcast %cst_11 : f32 to vector<16x512xf32>
    %13 = arith.mulf %12, %9 : vector<16x512xf32>
    %14 = arith.select %11, %9, %13 : vector<16x512xi1>, vector<16x512xf32>
    %15 = arith.truncf %14 : vector<16x512xf32> to vector<16x512xbf16>
    %c0_12 = arith.constant 0 : index
    %c0_13 = arith.constant 0 : index
    %16 = vector.load %arg6[%c0_12, %c0_13] : memref<16x512xbf16, #tpu.memory_space<vmem>>, vector<16x512xbf16>
    tpu.vector_store %arg6[%c0_12, %c0_13], %15 {strides = array<i32>} : memref<16x512xbf16, #tpu.memory_space<vmem>>, vector<16x512xbf16>,
    return
  }
  func.func @transform_0(%arg0: i32) -> (i32, i32) {
    %c0_i32 = arith.constant 0 : i32
    %c0_i32_0 = arith.constant 0 : i32
    return %arg0, %c0_i32 : i32, i32
  }
  func.func @transform_1(%arg0: i32) -> (i32, i32) {
    %c0_i32 = arith.constant 0 : i32
    %c0_i32_0 = arith.constant 0 : i32
    return %arg0, %c0_i32 : i32, i32
  }
  func.func @transform_2(%arg0: i32) -> (i32, i32) {
    %c0_i32 = arith.constant 0 : i32
    %c0_i32_0 = arith.constant 0 : i32
    %c0_i32_1 = arith.constant 0 : i32
    return %c0_i32, %c0_i32_0 : i32, i32
  }
  func.func @transform_3(%arg0: i32) -> (i32, i32) {
    %c0_i32 = arith.constant 0 : i32
    %c0_i32_0 = arith.constant 0 : i32
    %c0_i32_1 = arith.constant 0 : i32
    return %c0_i32, %c0_i32_0 : i32, i32
  }
  func.func @transform_4(%arg0: i32) -> (i32, i32) {
    %c0_i32 = arith.constant 0 : i32
    %c0_i32_0 = arith.constant 0 : i32
    %c0_i32_1 = arith.constant 0 : i32
    return %c0_i32, %c0_i32_0 : i32, i32
  }
  func.func @transform_5(%arg0: i32) -> (i32, i32) {
    %c0_i32 = arith.constant 0 : i32
    %c0_i32_0 = arith.constant 0 : i32
    return %arg0, %c0_i32 : i32, i32
  }
}

module attributes {stable_mosaic.version = 11 : i64} {
  func.func @_taps_mm_kernel(%arg0: i32, %arg1: memref<16x512xbf16, #tpu.memory_space<vmem>>, %arg2: memref<16x512xbf16, #tpu.memory_space<vmem>>, %arg3: memref<16x512xbf16, #tpu.memory_space<vmem>>, %arg4: memref<16x512xbf16, #tpu.memory_space<vmem>>, %arg5: memref<16x512xbf16, #tpu.memory_space<vmem>>, %arg6: memref<512x1024xbf16, #tpu.memory_space<vmem>>, %arg7: memref<512x1024xbf16, #tpu.memory_space<vmem>>, %arg8: memref<512x1024xbf16, #tpu.memory_space<vmem>>, %arg9: memref<512x1024xbf16, #tpu.memory_space<vmem>>, %arg10: memref<512x1024xbf16, #tpu.memory_space<vmem>>, %arg11: memref<1x1024xf32, #tpu.memory_space<vmem>>, %arg12: memref<16x1024xbf16, #tpu.memory_space<vmem>>) attributes {dimension_semantics = [#tpu.dimension_semantics<parallel>], iteration_bounds = array<i64: 1>, scalar_prefetch = 0 : i64, scratch_operands = 0 : i64, tpu.core_type = #tpu.core_type<tc>, window_params = [{transform_indices = @transform_0, window_bounds = array<i64: 16, 512>}, {transform_indices = @transform_1, window_bounds = array<i64: 16, 512>}, {transform_indices = @transform_2, window_bounds = array<i64: 16, 512>}, {transform_indices = @transform_3, window_bounds = array<i64: 16, 512>}, {transform_indices = @transform_4, window_bounds = array<i64: 16, 512>}, {pipeline_mode = #tpu.pipeline_mode<synchronous>, transform_indices = @transform_5, window_bounds = array<i64: 512, 1024>}, {pipeline_mode = #tpu.pipeline_mode<synchronous>, transform_indices = @transform_6, window_bounds = array<i64: 512, 1024>}, {pipeline_mode = #tpu.pipeline_mode<synchronous>, transform_indices = @transform_7, window_bounds = array<i64: 512, 1024>}, {pipeline_mode = #tpu.pipeline_mode<synchronous>, transform_indices = @transform_8, window_bounds = array<i64: 512, 1024>}, {pipeline_mode = #tpu.pipeline_mode<synchronous>, transform_indices = @transform_9, window_bounds = array<i64: 512, 1024>}, {pipeline_mode = #tpu.pipeline_mode<synchronous>, transform_indices = @transform_10, window_bounds = array<i64: 1, 1024>}, {transform_indices = @transform_11, window_bounds = array<i64: 16, 1024>}]} {
    %c0 = arith.constant 0 : index
    %c0_0 = arith.constant 0 : index
    %0 = vector.load %arg1[%c0, %c0_0] : memref<16x512xbf16, #tpu.memory_space<vmem>>, vector<16x512xbf16>
    %c0_1 = arith.constant 0 : index
    %c0_2 = arith.constant 0 : index
    %1 = vector.load %arg6[%c0_1, %c0_2] : memref<512x1024xbf16, #tpu.memory_space<vmem>>, vector<512x1024xbf16>
    %cst = arith.constant dense<0.000000e+00> : vector<16x1024xf32>
    %2 = tpu.matmul %0, %1, %cst {dimension_numbers = #tpu.dot_dimension_numbers<[1], [0], [0], [1], [0, 0, 1, 1], [], []>} : vector<16x512xbf16>, vector<512x1024xbf16>, vector<16x1024xf32> -> vector<16x1024xf32>
    %c0_3 = arith.constant 0 : index
    %c0_4 = arith.constant 0 : index
    %3 = vector.load %arg2[%c0_3, %c0_4] : memref<16x512xbf16, #tpu.memory_space<vmem>>, vector<16x512xbf16>
    %c0_5 = arith.constant 0 : index
    %c0_6 = arith.constant 0 : index
    %4 = vector.load %arg7[%c0_5, %c0_6] : memref<512x1024xbf16, #tpu.memory_space<vmem>>, vector<512x1024xbf16>
    %cst_7 = arith.constant dense<0.000000e+00> : vector<16x1024xf32>
    %5 = tpu.matmul %3, %4, %cst_7 {dimension_numbers = #tpu.dot_dimension_numbers<[1], [0], [0], [1], [0, 0, 1, 1], [], []>} : vector<16x512xbf16>, vector<512x1024xbf16>, vector<16x1024xf32> -> vector<16x1024xf32>
    %6 = arith.addf %2, %5 : vector<16x1024xf32>
    %c0_8 = arith.constant 0 : index
    %c0_9 = arith.constant 0 : index
    %7 = vector.load %arg3[%c0_8, %c0_9] : memref<16x512xbf16, #tpu.memory_space<vmem>>, vector<16x512xbf16>
    %c0_10 = arith.constant 0 : index
    %c0_11 = arith.constant 0 : index
    %8 = vector.load %arg8[%c0_10, %c0_11] : memref<512x1024xbf16, #tpu.memory_space<vmem>>, vector<512x1024xbf16>
    %cst_12 = arith.constant dense<0.000000e+00> : vector<16x1024xf32>
    %9 = tpu.matmul %7, %8, %cst_12 {dimension_numbers = #tpu.dot_dimension_numbers<[1], [0], [0], [1], [0, 0, 1, 1], [], []>} : vector<16x512xbf16>, vector<512x1024xbf16>, vector<16x1024xf32> -> vector<16x1024xf32>
    %10 = arith.addf %6, %9 : vector<16x1024xf32>
    %c0_13 = arith.constant 0 : index
    %c0_14 = arith.constant 0 : index
    %11 = vector.load %arg4[%c0_13, %c0_14] : memref<16x512xbf16, #tpu.memory_space<vmem>>, vector<16x512xbf16>
    %c0_15 = arith.constant 0 : index
    %c0_16 = arith.constant 0 : index
    %12 = vector.load %arg9[%c0_15, %c0_16] : memref<512x1024xbf16, #tpu.memory_space<vmem>>, vector<512x1024xbf16>
    %cst_17 = arith.constant dense<0.000000e+00> : vector<16x1024xf32>
    %13 = tpu.matmul %11, %12, %cst_17 {dimension_numbers = #tpu.dot_dimension_numbers<[1], [0], [0], [1], [0, 0, 1, 1], [], []>} : vector<16x512xbf16>, vector<512x1024xbf16>, vector<16x1024xf32> -> vector<16x1024xf32>
    %14 = arith.addf %10, %13 : vector<16x1024xf32>
    %c0_18 = arith.constant 0 : index
    %c0_19 = arith.constant 0 : index
    %15 = vector.load %arg5[%c0_18, %c0_19] : memref<16x512xbf16, #tpu.memory_space<vmem>>, vector<16x512xbf16>
    %c0_20 = arith.constant 0 : index
    %c0_21 = arith.constant 0 : index
    %16 = vector.load %arg10[%c0_20, %c0_21] : memref<512x1024xbf16, #tpu.memory_space<vmem>>, vector<512x1024xbf16>
    %cst_22 = arith.constant dense<0.000000e+00> : vector<16x1024xf32>
    %17 = tpu.matmul %15, %16, %cst_22 {dimension_numbers = #tpu.dot_dimension_numbers<[1], [0], [0], [1], [0, 0, 1, 1], [], []>} : vector<16x512xbf16>, vector<512x1024xbf16>, vector<16x1024xf32> -> vector<16x1024xf32>
    %18 = arith.addf %14, %17 : vector<16x1024xf32>
    %c0_23 = arith.constant 0 : index
    %c0_24 = arith.constant 0 : index
    %19 = vector.load %arg11[%c0_23, %c0_24] : memref<1x1024xf32, #tpu.memory_space<vmem>>, vector<1x1024xf32>
    %20 = vector.broadcast %19 : vector<1x1024xf32> to vector<16x1024xf32>
    %21 = arith.addf %18, %20 : vector<16x1024xf32>
    %cst_25 = arith.constant 0.000000e+00 : f32
    %22 = vector.broadcast %cst_25 : f32 to vector<16x1024xf32>
    %23 = arith.cmpf ogt, %21, %22 : vector<16x1024xf32>
    %cst_26 = arith.constant 1.000000e-01 : f32
    %24 = vector.broadcast %cst_26 : f32 to vector<16x1024xf32>
    %25 = arith.mulf %24, %21 : vector<16x1024xf32>
    %26 = arith.select %23, %21, %25 : vector<16x1024xi1>, vector<16x1024xf32>
    %27 = arith.truncf %26 : vector<16x1024xf32> to vector<16x1024xbf16>
    %c0_27 = arith.constant 0 : index
    %c0_28 = arith.constant 0 : index
    %28 = vector.load %arg12[%c0_27, %c0_28] : memref<16x1024xbf16, #tpu.memory_space<vmem>>, vector<16x1024xbf16>
    tpu.vector_store %arg12[%c0_27, %c0_28], %27 {strides = array<i32>} : memref<16x1024xbf16, #tpu.memory_space<vmem>>, vector<16x1024xbf16>,
    return
  }
  func.func @transform_0(%arg0: i32) -> (i32, i32) {
    %c0_i32 = arith.constant 0 : i32
    %c0_i32_0 = arith.constant 0 : i32
    return %arg0, %c0_i32 : i32, i32
  }
  func.func @transform_1(%arg0: i32) -> (i32, i32) {
    %c0_i32 = arith.constant 0 : i32
    %c0_i32_0 = arith.constant 0 : i32
    return %arg0, %c0_i32 : i32, i32
  }
  func.func @transform_2(%arg0: i32) -> (i32, i32) {
    %c0_i32 = arith.constant 0 : i32
    %c0_i32_0 = arith.constant 0 : i32
    return %arg0, %c0_i32 : i32, i32
  }
  func.func @transform_3(%arg0: i32) -> (i32, i32) {
    %c0_i32 = arith.constant 0 : i32
    %c0_i32_0 = arith.constant 0 : i32
    return %arg0, %c0_i32 : i32, i32
  }
  func.func @transform_4(%arg0: i32) -> (i32, i32) {
    %c0_i32 = arith.constant 0 : i32
    %c0_i32_0 = arith.constant 0 : i32
    return %arg0, %c0_i32 : i32, i32
  }
  func.func @transform_5(%arg0: i32) -> (i32, i32) {
    %c0_i32 = arith.constant 0 : i32
    %c0_i32_0 = arith.constant 0 : i32
    %c0_i32_1 = arith.constant 0 : i32
    return %c0_i32, %c0_i32_0 : i32, i32
  }
  func.func @transform_6(%arg0: i32) -> (i32, i32) {
    %c0_i32 = arith.constant 0 : i32
    %c0_i32_0 = arith.constant 0 : i32
    %c0_i32_1 = arith.constant 0 : i32
    return %c0_i32, %c0_i32_0 : i32, i32
  }
  func.func @transform_7(%arg0: i32) -> (i32, i32) {
    %c0_i32 = arith.constant 0 : i32
    %c0_i32_0 = arith.constant 0 : i32
    %c0_i32_1 = arith.constant 0 : i32
    return %c0_i32, %c0_i32_0 : i32, i32
  }
  func.func @transform_8(%arg0: i32) -> (i32, i32) {
    %c0_i32 = arith.constant 0 : i32
    %c0_i32_0 = arith.constant 0 : i32
    %c0_i32_1 = arith.constant 0 : i32
    return %c0_i32, %c0_i32_0 : i32, i32
  }
  func.func @transform_9(%arg0: i32) -> (i32, i32) {
    %c0_i32 = arith.constant 0 : i32
    %c0_i32_0 = arith.constant 0 : i32
    %c0_i32_1 = arith.constant 0 : i32
    return %c0_i32, %c0_i32_0 : i32, i32
  }
  func.func @transform_10(%arg0: i32) -> (i32, i32) {
    %c0_i32 = arith.constant 0 : i32
    %c0_i32_0 = arith.constant 0 : i32
    %c0_i32_1 = arith.constant 0 : i32
    return %c0_i32, %c0_i32_0 : i32, i32
  }
  func.func @transform_11(%arg0: i32) -> (i32, i32) {
    %c0_i32 = arith.constant 0 : i32
    %c0_i32_0 = arith.constant 0 : i32
    return %arg0, %c0_i32 : i32, i32
  }
}

module attributes {stable_mosaic.version = 11 : i64} {
  func.func @_taps_mm_kernel(%arg0: i32, %arg1: memref<32x1024xbf16, #tpu.memory_space<vmem>>, %arg2: memref<32x1024xbf16, #tpu.memory_space<vmem>>, %arg3: memref<32x1024xbf16, #tpu.memory_space<vmem>>, %arg4: memref<1024x128xbf16, #tpu.memory_space<vmem>>, %arg5: memref<1024x128xbf16, #tpu.memory_space<vmem>>, %arg6: memref<1024x128xbf16, #tpu.memory_space<vmem>>, %arg7: memref<1x128xf32, #tpu.memory_space<vmem>>, %arg8: memref<32x128xf32, #tpu.memory_space<vmem>>) attributes {dimension_semantics = [#tpu.dimension_semantics<parallel>], iteration_bounds = array<i64: 1>, scalar_prefetch = 0 : i64, scratch_operands = 0 : i64, tpu.core_type = #tpu.core_type<tc>, window_params = [{transform_indices = @transform_0, window_bounds = array<i64: 32, 1024>}, {transform_indices = @transform_1, window_bounds = array<i64: 32, 1024>}, {transform_indices = @transform_2, window_bounds = array<i64: 32, 1024>}, {pipeline_mode = #tpu.pipeline_mode<synchronous>, transform_indices = @transform_3, window_bounds = array<i64: 1024, 128>}, {pipeline_mode = #tpu.pipeline_mode<synchronous>, transform_indices = @transform_4, window_bounds = array<i64: 1024, 128>}, {pipeline_mode = #tpu.pipeline_mode<synchronous>, transform_indices = @transform_5, window_bounds = array<i64: 1024, 128>}, {pipeline_mode = #tpu.pipeline_mode<synchronous>, transform_indices = @transform_6, window_bounds = array<i64: 1, 128>}, {transform_indices = @transform_7, window_bounds = array<i64: 32, 128>}]} {
    %c0 = arith.constant 0 : index
    %c0_0 = arith.constant 0 : index
    %0 = vector.load %arg1[%c0, %c0_0] : memref<32x1024xbf16, #tpu.memory_space<vmem>>, vector<32x1024xbf16>
    %c0_1 = arith.constant 0 : index
    %c0_2 = arith.constant 0 : index
    %1 = vector.load %arg4[%c0_1, %c0_2] : memref<1024x128xbf16, #tpu.memory_space<vmem>>, vector<1024x128xbf16>
    %cst = arith.constant dense<0.000000e+00> : vector<32x128xf32>
    %2 = tpu.matmul %0, %1, %cst {dimension_numbers = #tpu.dot_dimension_numbers<[1], [0], [0], [1], [0, 0, 1, 1], [], []>} : vector<32x1024xbf16>, vector<1024x128xbf16>, vector<32x128xf32> -> vector<32x128xf32>
    %c0_3 = arith.constant 0 : index
    %c0_4 = arith.constant 0 : index
    %3 = vector.load %arg2[%c0_3, %c0_4] : memref<32x1024xbf16, #tpu.memory_space<vmem>>, vector<32x1024xbf16>
    %c0_5 = arith.constant 0 : index
    %c0_6 = arith.constant 0 : index
    %4 = vector.load %arg5[%c0_5, %c0_6] : memref<1024x128xbf16, #tpu.memory_space<vmem>>, vector<1024x128xbf16>
    %cst_7 = arith.constant dense<0.000000e+00> : vector<32x128xf32>
    %5 = tpu.matmul %3, %4, %cst_7 {dimension_numbers = #tpu.dot_dimension_numbers<[1], [0], [0], [1], [0, 0, 1, 1], [], []>} : vector<32x1024xbf16>, vector<1024x128xbf16>, vector<32x128xf32> -> vector<32x128xf32>
    %6 = arith.addf %2, %5 : vector<32x128xf32>
    %c0_8 = arith.constant 0 : index
    %c0_9 = arith.constant 0 : index
    %7 = vector.load %arg3[%c0_8, %c0_9] : memref<32x1024xbf16, #tpu.memory_space<vmem>>, vector<32x1024xbf16>
    %c0_10 = arith.constant 0 : index
    %c0_11 = arith.constant 0 : index
    %8 = vector.load %arg6[%c0_10, %c0_11] : memref<1024x128xbf16, #tpu.memory_space<vmem>>, vector<1024x128xbf16>
    %cst_12 = arith.constant dense<0.000000e+00> : vector<32x128xf32>
    %9 = tpu.matmul %7, %8, %cst_12 {dimension_numbers = #tpu.dot_dimension_numbers<[1], [0], [0], [1], [0, 0, 1, 1], [], []>} : vector<32x1024xbf16>, vector<1024x128xbf16>, vector<32x128xf32> -> vector<32x128xf32>
    %10 = arith.addf %6, %9 : vector<32x128xf32>
    %c0_13 = arith.constant 0 : index
    %c0_14 = arith.constant 0 : index
    %11 = vector.load %arg7[%c0_13, %c0_14] : memref<1x128xf32, #tpu.memory_space<vmem>>, vector<1x128xf32>
    %12 = vector.broadcast %11 : vector<1x128xf32> to vector<32x128xf32>
    %13 = arith.addf %10, %12 : vector<32x128xf32>
    %c0_15 = arith.constant 0 : index
    %c0_16 = arith.constant 0 : index
    %14 = vector.load %arg8[%c0_15, %c0_16] : memref<32x128xf32, #tpu.memory_space<vmem>>, vector<32x128xf32>
    tpu.vector_store %arg8[%c0_15, %c0_16], %13 {strides = array<i32>} : memref<32x128xf32, #tpu.memory_space<vmem>>, vector<32x128xf32>,
    return
  }
  func.func @transform_0(%arg0: i32) -> (i32, i32) {
    %c0_i32 = arith.constant 0 : i32
    %c0_i32_0 = arith.constant 0 : i32
    return %arg0, %c0_i32 : i32, i32
  }
  func.func @transform_1(%arg0: i32) -> (i32, i32) {
    %c0_i32 = arith.constant 0 : i32
    %c0_i32_0 = arith.constant 0 : i32
    return %arg0, %c0_i32 : i32, i32
  }
  func.func @transform_2(%arg0: i32) -> (i32, i32) {
    %c0_i32 = arith.constant 0 : i32
    %c0_i32_0 = arith.constant 0 : i32
    return %arg0, %c0_i32 : i32, i32
  }
  func.func @transform_3(%arg0: i32) -> (i32, i32) {
    %c0_i32 = arith.constant 0 : i32
    %c0_i32_0 = arith.constant 0 : i32
    %c0_i32_1 = arith.constant 0 : i32
    return %c0_i32, %c0_i32_0 : i32, i32
  }
  func.func @transform_4(%arg0: i32) -> (i32, i32) {
    %c0_i32 = arith.constant 0 : i32
    %c0_i32_0 = arith.constant 0 : i32
    %c0_i32_1 = arith.constant 0 : i32
    return %c0_i32, %c0_i32_0 : i32, i32
  }
  func.func @transform_5(%arg0: i32) -> (i32, i32) {
    %c0_i32 = arith.constant 0 : i32
    %c0_i32_0 = arith.constant 0 : i32
    %c0_i32_1 = arith.constant 0 : i32
    return %c0_i32, %c0_i32_0 : i32, i32
  }
  func.func @transform_6(%arg0: i32) -> (i32, i32) {
    %c0_i32 = arith.constant 0 : i32
    %c0_i32_0 = arith.constant 0 : i32
    %c0_i32_1 = arith.constant 0 : i32
    return %c0_i32, %c0_i32_0 : i32, i32
  }
  func.func @transform_7(%arg0: i32) -> (i32, i32) {
    %c0_i32 = arith.constant 0 : i32
    %c0_i32_0 = arith.constant 0 : i32
    return %arg0, %c0_i32 : i32, i32
  }
}

</mosaic_0001>

<bundles_post_ra>
// kernel: mpd_block_forward.6
= control target key start
LH: loop header
LB: loop body
LE: loop exit
PB: predicated region body
PF: predicated region fallthrough
CT: control target
= control target key end

     0   :  { %vm60_vm0 = vcmask 1040384   ;;  %v361_v0 = vmov 0.0   ;;  %v362_v2 = vmov 65535   ;;  %vm146_vm1 = vcmask 1041408   ;;  %s439_s3 = inlined_call_operand.vmem [shape: bf16[2,128], index: 3, kind: input, shape index: {}]   ;;  %s440_s2 = inlined_call_operand.vmem [shape: bf16[3,128], index: 2, kind: input, shape index: {}]   ;;  %s441_s1 = inlined_call_operand.vmem [shape: bf16[48,2], index: 1, kind: input, shape index: {}]   ;;  %s442_s0 = inlined_call_operand.vmem [shape: bf16[48,3], index: 0, kind: input, shape index: {}]   ;;  %s443_s4 = inlined_call_operand.vmem [shape: f32[1,128], index: 4, kind: input, shape index: {}]   ;;  %s444_s5 = inlined_call_operand.vmem [shape: bf16[48,128], index: 5, kind: output, shape index: {}]  }
   0x1   :  { %324 = vmatprep.subr.bf16.mxu0 %v361_v0  ;;  %v34_v1 = vld [vmem:[%s439_s3] sm:$0x1]  ;;  %v147_v3 = vsel %vm60_vm0, 4294967295, %v362_v2  ;;  %338 = vmatprep.subr.bf16.mxu1 %v361_v0  ;;  %vm363_vm2 = vmmov 0   ;;  %vm50_vm3 = vcmask 15360   ;;  %vm136_vm4 = vcmask 23552  }
   0x2   :  { %v27_v4 = vld [vmem:[%s440_s2] sm:$0x3]  ;;  %v62_v5 = vsel %vm60_vm0, %v34_v1, 0  ;;  %326 = vmatprep.mubr.msk.bf16.mxu0 %vm363_vm2, %v361_v0  ;;  %v148_v6 = vsel %vm146_vm1, %v147_v3, 0  ;;  %340 = vmatprep.mubr.msk.bf16.mxu1 %vm363_vm2, %v361_v0  ;;  %v357_v10 = vld [vmem:[%s441_s1 + $0x8] sm:$0xff]   ;;  %v359_v12 = vld [vmem:[%s441_s1 + $0x10] sm:$0xff]  }
   0x3   :  { %325 = vmatpush3.bf16.msra.mxu0 %v62_v5  ;;  %v150_v7 = vand.u32 %v148_v6, %v27_v4  ;;  %v355_v8 = vld [vmem:[%s441_s1] sm:$0xff]   ;;  %v358_v11 = vld [vmem:[%s442_s0 + $0x8] sm:$0xff]   ;;  %v360_v13 = vld [vmem:[%s442_s0 + $0x10] sm:$0xff]  }
   0x4   :  { %v356_v9 = vld [vmem:[%s442_s0] sm:$0xff]  }
   0x5   :  { %339 = vmatpush3.bf16.msra.mxu1 %v150_v7  ;;  %v286_v17 = vld [vmem:[%s443_s4] ss:$0 sm:$0xff] }
   0x6   :  { %327 = vmatmul.mubr.msk.bf16.vlgmr.msra.gmra.mxu0 %vm50_vm3, %v355_v8 }
   0x7   :  { %330 = vmatprep.mubr.msk.bf16.mxu0 %vm363_vm2, %v361_v0 }
   0x8   :  { %341 = vmatmul.mubr.msk.bf16.vlgmr.msra.gmra.mxu1 %vm136_vm4, %v356_v9 }
   0x9   :  { %344 = vmatprep.mubr.msk.bf16.mxu1 %vm363_vm2, %v361_v0 }
   0xe   :  { %331 = vmatmul.mubr.msk.bf16.gmra.mxu0 %vm50_vm3, %v357_v10 }
   0xf   :  { %334 = vmatprep.mubr.msk.bf16.mxu0 %vm363_vm2, %v361_v0 }
  0x10   :  { %345 = vmatmul.mubr.msk.bf16.gmra.mxu1 %vm136_vm4, %v358_v11 }
  0x11   :  { %348 = vmatprep.mubr.msk.bf16.mxu1 %vm363_vm2, %v361_v0 }
  0x16   :  { %335 = vmatmul.mubr.msk.bf16.gmra.mxu0 %vm50_vm3, %v359_v12 }
  0x18   :  { %349 = vmatmul.mubr.msk.bf16.gmra.mxu1 %vm136_vm4, %v360_v13 }
  0xc6   :  { %v98_v14 = vpop.f32.mrf.mxu0 }
  0xc8   :  { %v328_v15 = vpop.f32.mrf.mxu0  ;;  %v186_v16 = vpop.f32.mrf.mxu1 }
  0xc9   :  { %v187_v18 = vadd.f32 %v186_v16, %v98_v14 }
  0xca   :  { %v101_v19 = vpop.f32.mrf.mxu0  ;;  %v342_v20 = vpop.f32.mrf.mxu1 }
  0xcb   :  { %v216_v21 = vadd.f32 %v286_v17, %v187_v18 }
  0xcc   :  { %v329_v22 = vpop.f32.mrf.mxu0  ;;  %v189_v23 = vpop.f32.mrf.mxu1 }
  0xcd   :  { %v190_v24 = vadd.f32 %v189_v23, %v101_v19  ;;  %v228_v27 = vmul.f32 0.1, %v216_v21  ;;  %vm222_vm5 = vcmp.gt.f32.partialorder %v216_v21, 0.0 }
  0xce   :  { %v106_v25 = vpop.f32.mrf.mxu0  ;;  %v343_v26 = vpop.f32.mrf.mxu1 }
  0xcf   :  { %v217_v28 = vadd.f32 %v286_v17, %v190_v24  ;;  %v234_v35 = vsel %vm222_vm5, %v216_v21, %v228_v27 }
  0xd0   :  { %v332_v29 = vpop.f32.mrf.mxu0  ;;  %v194_v30 = vpop.f32.mrf.mxu1 }
  0xd1   :  { %vm223_vm6 = vcmp.gt.f32.partialorder %v217_v28, 0.0  ;;  %v229_v31 = vmul.f32 0.1, %v217_v28  ;;  %v195_v32 = vadd.f32 %v194_v30, %v106_v25 }
  0xd2   :  { %v109_v33 = vpop.f32.mrf.mxu0  ;;  %v346_v34 = vpop.f32.mrf.mxu1 }
  0xd3   :  { %v235_v36 = vsel %vm223_vm6, %v217_v28, %v229_v31  ;;  %v218_v37 = vadd.f32 %v286_v17, %v195_v32 }
  0xd4   :  { %v302_v38 = vpack.c.bf16 %v235_v36, %v234_v35  ;;  %v333_v39 = vpop.f32.mrf.mxu0  ;;  %v197_v40 = vpop.f32.mrf.mxu1 }
  0xd5   :  { %v198_v41 = vadd.f32 %v197_v40, %v109_v33  ;;  %v230_v44 = vmul.f32 0.1, %v218_v37  ;;  %vm224_vm7 = vcmp.gt.f32.partialorder %v218_v37, 0.0 }
  0xd6   :  { %303 = vst [vmem:[%s444_s5] sm:$0xff] %v302_v38   ;;  %v114_v42 = vpop.f32.mrf.mxu0  ;;  %v347_v43 = vpop.f32.mrf.mxu1 }
  0xd7   :  { %v219_v45 = vadd.f32 %v286_v17, %v198_v41  ;;  %v236_v52 = vsel %vm224_vm7, %v218_v37, %v230_v44 }
  0xd8   :  { %v336_v46 = vpop.f32.mrf.mxu0  ;;  %v202_v47 = vpop.f32.mrf.mxu1 }
  0xd9   :  { %vm225_vm8 = vcmp.gt.f32.partialorder %v219_v45, 0.0  ;;  %v231_v48 = vmul.f32 0.1, %v219_v45  ;;  %v203_v49 = vadd.f32 %v202_v47, %v114_v42 }
  0xda   :  { %v117_v50 = vpop.f32.mrf.mxu0  ;;  %v350_v51 = vpop.f32.mrf.mxu1 }
  0xdb   :  { %v237_v53 = vsel %vm225_vm8, %v219_v45, %v231_v48  ;;  %v220_v54 = vadd.f32 %v286_v17, %v203_v49 }
  0xdc   :  { %v307_v55 = vpack.c.bf16 %v237_v53, %v236_v52  ;;  %v337_v56 = vpop.f32.mrf.mxu0  ;;  %v205_v57 = vpop.f32.mrf.mxu1 }
  0xdd   :  { %v206_v58 = vadd.f32 %v205_v57, %v117_v50  ;;  %v232_v60 = vmul.f32 0.1, %v220_v54  ;;  %vm226_vm9 = vcmp.gt.f32.partialorder %v220_v54, 0.0 }
  0xde   :  { %314 = vst [vmem:[%s444_s5 + $0x8] sm:$0xff] %v307_v55   ;;  %v351_v59 = vpop.f32.mrf.mxu1 }
  0xdf   :  { %v221_v61 = vadd.f32 %v286_v17, %v206_v58  ;;  %v238_v63 = vsel %vm226_vm9, %v220_v54, %v232_v60 }
  0xe1   :  { %vm227_vm10 = vcmp.gt.f32.partialorder %v221_v61, 0.0  ;;  %v233_v62 = vmul.f32 0.1, %v221_v61 }
  0xe3   :  { %v239_v0 = vsel %vm227_vm10, %v221_v61, %v233_v62 }
  0xe4   :  { %v312_v1 = vpack.c.bf16 %v239_v0, %v238_v63 }
  0xe6   :  { %315 = vst [vmem:[%s444_s5 + $0x10] sm:$0xff] %v312_v1  }

// kernel: mpd_block_forward.7
= control target key start
LH: loop header
LB: loop body
LE: loop exit
PB: predicated region body
PF: predicated region fallthrough
CT: control target
= control target key end

     0   :  { %v405_v0 = vmov 0   ;;  %v406_v2 = vmov 0.0   ;;  %vm407_vm0 = vmmov 0   ;;  %vm241_vm1 = vcmask 523264   ;;  %s525_s2 = inlined_call_operand.vmem [shape: bf16[192,128], index: 2, kind: input, shape index: {}]   ;;  %s526_s3 = inlined_call_operand.vmem [shape: bf16[128,128], index: 3, kind: input, shape index: {}]   ;;  %s527_s1 = inlined_call_operand.vmem [shape: bf16[16,128], index: 1, kind: input, shape index: {}]   ;;  %s528_s0 = inlined_call_operand.vmem [shape: bf16[16,192], index: 0, kind: input, shape index: {}]   ;;  %s529_s4 = inlined_call_operand.vmem [shape: f32[1,128], index: 4, kind: input, shape index: {}]   ;;  %s530_s5 = inlined_call_operand.vmem [shape: bf16[16,128], index: 5, kind: output, shape index: {}]  }
   0x1   :  { %245 = vmatprep.subr.bf16.mxu1 %v405_v0  ;;  %v381_v1 = vld [vmem:[%s525_s2 + $0x38] sm:$0xff]   ;;  %358 = vmatprep.subr.bf16.mxu0 %v406_v2  ;;  %v382_v3 = vld [vmem:[%s525_s2 + $0x30] sm:$0xff]   ;;  %v383_v6 = vld [vmem:[%s525_s2 + $0x28] sm:$0xff]  }
   0x2   :  { %374 = vmatprep.mubr.msk.bf16.mxu0 %vm407_vm0, %v406_v2  ;;  %246 = vmatpush1.bf16.msra.mxu1 %v381_v1  ;;  %v384_v4 = vld [vmem:[%s526_s3 + $0x38] sm:$0xff]   ;;  %v386_v5 = vld [vmem:[%s526_s3 + $0x30] sm:$0xff]   ;;  %v388_v7 = vld [vmem:[%s526_s3 + $0x28] sm:$0xff]  }
   0x3   :  { %247 = vmatprep.subr.bf16.mxu1 %v405_v0  ;;  %359 = vmatpush3.bf16.msra.mxu0 %v384_v4  ;;  %v385_v8 = vld [vmem:[%s525_s2 + $0x20] sm:$0xff]   ;;  %v387_v10 = vld [vmem:[%s525_s2 + $0x18] sm:$0xff]   ;;  %v389_v12 = vld [vmem:[%s525_s2 + $0x10] sm:$0xff]  }
   0x4   :  { %360 = vmatprep.subr.bf16.mxu0 %v406_v2  ;;  %v390_v9 = vld [vmem:[%s526_s3 + $0x20] sm:$0xff]   ;;  %v392_v11 = vld [vmem:[%s526_s3 + $0x18] sm:$0xff]   ;;  %v394_v13 = vld [vmem:[%s526_s3 + $0x10] sm:$0xff]  }
   0x5   :  { %v391_v14 = vld [vmem:[%s525_s2 + $0x8] sm:$0xff]   ;;  %v393_v17 = vld [vmem:[%s525_s2] sm:$0xff]   ;;  %v395_v19 = vld [vmem:[%s525_s2 + $0x58] sm:$0xff]  }
   0x6   :  { %248 = vmatpush1.bf16.msra.mxu1 %v382_v3  ;;  %v404_v15 = vld [vmem:[%s528_s0 + $0x4] ss:$8 sps:$4 sm:$0xff]   ;;  %v397_v21 = vld [vmem:[%s525_s2 + $0x50] sm:$0xff]   ;;  %v402_v24 = vld [vmem:[%s528_s0] ss:$8 sps:$4 sm:$0xff]  }
   0x7   :  { %249 = vmatprep.subr.bf16.mxu1 %v405_v0  ;;  %361 = vmatpush3.bf16.msra.mxu0 %v386_v5  ;;  %v396_v16 = vld [vmem:[%s526_s3 + $0x8] sm:$0xff]   ;;  %v398_v18 = vld [vmem:[%s526_s3] sm:$0xff]  }
   0x8   :  { %362 = vmatprep.subr.bf16.mxu0 %v406_v2  ;;  %338 = vmatprep.mubr.msk.bf16.mxu1 %vm241_vm1, %v404_v15  ;;  %v400_v20 = vld [vmem:[%s527_s1] sm:$0xff]   ;;  %v399_v22 = vld [vmem:[%s525_s2 + $0x48] sm:$0xff]  }
   0x9   :  { %v401_v23 = vld [vmem:[%s525_s2 + $0x40] sm:$0xff]  }
   0xa   :  { %250 = vmatpush1.bf16.msra.mxu1 %v383_v6  ;;  %v339_v30 = vld [vmem:[%s529_s4] ss:$0 sm:$0xff] }
   0xb   :  { %251 = vmatprep.subr.bf16.mxu1 %v405_v0  ;;  %363 = vmatpush3.bf16.msra.mxu0 %v388_v7 }
   0xc   :  { %364 = vmatprep.subr.bf16.mxu0 %v406_v2 }
   0xe   :  { %252 = vmatpush1.bf16.msra.mxu1 %v385_v8 }
   0xf   :  { %253 = vmatprep.subr.bf16.mxu1 %v405_v0  ;;  %365 = vmatpush3.bf16.msra.mxu0 %v390_v9 }
  0x10   :  { %366 = vmatprep.subr.bf16.mxu0 %v406_v2 }
  0x12   :  { %254 = vmatpush1.bf16.msra.mxu1 %v387_v10 }
  0x13   :  { %255 = vmatprep.subr.bf16.mxu1 %v405_v0  ;;  %367 = vmatpush3.bf16.msra.mxu0 %v392_v11 }
  0x14   :  { %368 = vmatprep.subr.bf16.mxu0 %v406_v2 }
  0x16   :  { %256 = vmatpush1.bf16.msra.mxu1 %v389_v12 }
  0x17   :  { %257 = vmatprep.subr.bf16.mxu1 %v405_v0  ;;  %369 = vmatpush3.bf16.msra.mxu0 %v394_v13 }
  0x18   :  { %370 = vmatprep.subr.bf16.mxu0 %v406_v2 }
  0x1a   :  { %258 = vmatpush1.bf16.msra.mxu1 %v391_v14 }
  0x1b   :  { %259 = vmatprep.subr.bf16.mxu1 %v405_v0  ;;  %371 = vmatpush3.bf16.msra.mxu0 %v396_v16 }
  0x1c   :  { %372 = vmatprep.subr.bf16.mxu0 %v406_v2 }
  0x1e   :  { %260 = vmatpush1.bf16.msra.mxu1 %v393_v17 }
  0x1f   :  { %269 = vmatprep.subr.bf16.mxu1 %v405_v0  ;;  %373 = vmatpush3.bf16.msra.mxu0 %v398_v18 }
  0x22   :  { %270 = vmatpush2.bf16.msra.mxu1 %v395_v19  ;;  %375 = vmatmul.mubr.bf16.vlgmr.msra.gmra.mxu0 %v400_v20 }
  0x23   :  { %271 = vmatprep.subr.bf16.mxu1 %v405_v0 }
  0x26   :  { %272 = vmatpush2.bf16.msra.mxu1 %v397_v21 }
  0x27   :  { %273 = vmatprep.subr.bf16.mxu1 %v405_v0 }
  0x2a   :  { %274 = vmatpush2.bf16.msra.mxu1 %v399_v22 }
  0x2b   :  { %275 = vmatprep.subr.bf16.mxu1 %v405_v0 }
  0x2e   :  { %276 = vmatpush2.bf16.msra.mxu1 %v401_v23 }
  0x31   :  { %278 = vmatmul.mubr.bf16.vlgmr.msra.gmra.mxu1 %v402_v24 }
  0xe2   :  { %v153_v25 = vpop.f32.mrf.mxu0 }
  0xe4   :  { %v376_v26 = vpop.f32.mrf.mxu0 }
  0xe6   :  { %v156_v27 = vpop.f32.mrf.mxu0 }
  0xe8   :  { %v377_v28 = vpop.f32.mrf.mxu0 }
  0xf1   :  { %v279_v29 = vpop.f32.mrf.mxu1 }
  0xf2   :  { %v280_v31 = vadd.f32 %v279_v29, %v153_v25 }
  0xf3   :  { %v281_v32 = vpop.f32.mrf.mxu1 }
  0xf4   :  { %v293_v33 = vadd.f32 %v339_v30, %v280_v31 }
  0xf5   :  { %v282_v34 = vpop.f32.mrf.mxu1 }
  0xf6   :  { %v283_v35 = vadd.f32 %v282_v34, %v156_v27  ;;  %v297_v37 = vmul.f32 0.1, %v293_v33  ;;  %vm295_vm2 = vcmp.gt.f32.partialorder %v293_v33, 0.0 }
  0xf7   :  { %v284_v36 = vpop.f32.mrf.mxu1 }
  0xf8   :  { %v294_v38 = vadd.f32 %v339_v30, %v283_v35  ;;  %v299_v40 = vsel %vm295_vm2, %v293_v33, %v297_v37 }
  0xfa   :  { %vm296_vm3 = vcmp.gt.f32.partialorder %v294_v38, 0.0  ;;  %v298_v39 = vmul.f32 0.1, %v294_v38 }
  0xfc   :  { %v300_v41 = vsel %vm296_vm3, %v294_v38, %v298_v39 }
  0xfd   :  { %v347_v42 = vpack.c.bf16 %v300_v41, %v299_v40 }
  0xff   :  { %348 = vst [vmem:[%s530_s5] sm:$0xff] %v347_v42  }

// kernel: mpd_block_forward.8
= control target key start
LH: loop header
LB: loop body
LE: loop exit
PB: predicated region body
PF: predicated region fallthrough
CT: control target
= control target key end

     0   :  { %10 = vsyncpa [#allocation3], 0  ;;  %s1068_s0 = inlined_call_operand.vmem [shape: bf16[16,384], index: 0, kind: input, shape index: {}]   ;;  %s1069_s1 = inlined_call_operand.vmem [shape: bf16[16,256], index: 1, kind: input, shape index: {}]   ;;  %s1070_s2 = inlined_call_operand.hbm [shape: bf16[384,256], index: 2, kind: input, shape index: {}]   ;;  %s1071_s3 = inlined_call_operand.hbm [shape: bf16[256,256], index: 3, kind: input, shape index: {}]   ;;  %s1072_s4 = inlined_call_operand.vmem [shape: f32[1,256], index: 4, kind: input, shape index: {}]   ;;  %s1073_s5 = inlined_call_operand.vmem [shape: bf16[16,256], index: 5, kind: output, shape index: {}]  }
   0x1   :  { %11 = vsyncpa [#allocation5], 0  ;;  %s1003_s18 = smov [#allocation2]  }
   0x2   :  { %s21_s19 = sshll.u32 %s1003_s18, 4  ;;  %s22_s19 = int_to_ptr.vmem [resolvable:$true] %s21_s19 }
   0x3   :  { %s967_s20 = scalar_lea.vmem %s22_s19, 6144  ;;  %p972_p1 = scmp.lt.s32.totalorder %s22_s19, %s22_s19 }
   0x4   :  { %p968_p0 = scmp.ne.s32.totalorder %s22_s19, %s967_s20  ;;  %p973_p2 = scmp.lt.s32.totalorder %s967_s20, %s967_s20 }
   0x6   :  { %p974_p3 = por %p973_p2, %p972_p1 }
   0x8   :  { %p975_p4 = pnand %p974_p3, %p968_p0 }
   0xa   :  { %978 = shalt.err (!%p975_p4)
}
   0xb   :  { %s1004_s21 = smov 128   ;;  %s1005_s22 = smov 8  }
   0xc   :  { %27 = dma.hbm_to_vmem [thread:$0]  %s1070_s2, 6144, %s22_s19, [#allocation3], %s1004_s21, %s1004_s21, %s1005_s22  }
   0xd   :  { %s1006_s25 = smov [#allocation4]  }
   0xe   :  { %s33_s26 = sshll.u32 %s1006_s25, 4  ;;  %s34_s26 = int_to_ptr.vmem [resolvable:$true] %s33_s26 }
   0xf   :  { %s987_s27 = scalar_lea.vmem %s34_s26, 4096  ;;  %p992_p6 = scmp.lt.s32.totalorder %s34_s26, %s34_s26 }
  0x10   :  { %p988_p5 = scmp.ne.s32.totalorder %s34_s26, %s987_s27  ;;  %p993_p7 = scmp.lt.s32.totalorder %s987_s27, %s987_s27 }
  0x12   :  { %p994_p8 = por %p993_p7, %p992_p6 }
  0x14   :  { %p995_p9 = pnand %p994_p8, %p988_p5 }
  0x16   :  { %998 = shalt.err (!%p995_p9)
}
  0x17   :  { %39 = dma.hbm_to_vmem [thread:$0]  %s1071_s3, 4096, %s34_s26, [#allocation5], %s1004_s21, %s1004_s21, %s1005_s22  }
  0x18   :  { %999 = dma.done.wait [#allocation3], 6144  }
  0x19   :  { %1000 = vsyncadd [#allocation3], 4294961152 }
  0x1a   :  { %1001 = dma.done.wait [#allocation5], 4096  }
  0x1b   :  { %1002 = vsyncadd [#allocation5], 4294963200  ;;  %v832_v0 = vld [vmem:[#allocation4 + $0x74] ss:$8 sps:$4 sm:$0xff]   ;;  %v836_v2 = vld [vmem:[#allocation4 + $0x70] ss:$8 sps:$4 sm:$0xff]  }
  0x1c   :  { %v834_v1 = vld [vmem:[#allocation2 + $0x74] ss:$8 sps:$4 sm:$0xff]   ;;  %305 = vmatprep.subr.bf16.mxu0 %v832_v0  ;;  %v837_v3 = vld [vmem:[#allocation2 + $0x70] ss:$8 sps:$4 sm:$0xff]   ;;  %v838_v4 = vld [vmem:[#allocation4 + $0x64] ss:$8 sps:$4 sm:$0xff]  }
  0x1d   :  { %604 = vmatprep.subr.bf16.mxu1 %v834_v1  ;;  %306 = vmatpush1.bf16.msra.mxu0 %v836_v2  ;;  %v840_v5 = vld [vmem:[#allocation2 + $0x64] ss:$8 sps:$4 sm:$0xff]   ;;  %v842_v6 = vld [vmem:[#allocation4 + $0x60] ss:$8 sps:$4 sm:$0xff]   ;;  %v844_v8 = vld [vmem:[#allocation4 + $0x54] ss:$8 sps:$4 sm:$0xff]  }
  0x1e   :  { %605 = vmatpush1.bf16.msra.mxu1 %v837_v3  ;;  %307 = vmatprep.subr.bf16.mxu0 %v838_v4  ;;  %v843_v7 = vld [vmem:[#allocation2 + $0x60] ss:$8 sps:$4 sm:$0xff]   ;;  %v846_v9 = vld [vmem:[#allocation2 + $0x54] ss:$8 sps:$4 sm:$0xff]   ;;  %v848_v10 = vld [vmem:[#allocation4 + $0x50] ss:$8 sps:$4 sm:$0xff]  }
  0x1f   :  { %606 = vmatprep.subr.bf16.mxu1 %v840_v5  ;;  %v849_v11 = vld [vmem:[#allocation2 + $0x50] ss:$8 sps:$4 sm:$0xff]   ;;  %v850_v12 = vld [vmem:[#allocation4 + $0x44] ss:$8 sps:$4 sm:$0xff]   ;;  %v854_v14 = vld [vmem:[#allocation4 + $0x40] ss:$8 sps:$4 sm:$0xff]  }
  0x20   :  { %v852_v13 = vld [vmem:[#allocation2 + $0x44] ss:$8 sps:$4 sm:$0xff]   ;;  %v855_v15 = vld [vmem:[#allocation2 + $0x40] ss:$8 sps:$4 sm:$0xff]   ;;  %v856_v16 = vld [vmem:[#allocation4 + $0x34] ss:$8 sps:$4 sm:$0xff]  }
  0x21   :  { %308 = vmatpush1.bf16.msra.mxu0 %v842_v6  ;;  %v858_v17 = vld [vmem:[#allocation2 + $0x34] ss:$8 sps:$4 sm:$0xff]   ;;  %v860_v18 = vld [vmem:[#allocation4 + $0x30] ss:$8 sps:$4 sm:$0xff]   ;;  %v862_v20 = vld [vmem:[#allocation4 + $0x24] ss:$8 sps:$4 sm:$0xff]  }
  0x22   :  { %607 = vmatpush1.bf16.msra.mxu1 %v843_v7  ;;  %309 = vmatprep.subr.bf16.mxu0 %v844_v8  ;;  %v861_v19 = vld [vmem:[#allocation2 + $0x30] ss:$8 sps:$4 sm:$0xff]   ;;  %v864_v21 = vld [vmem:[#allocation2 + $0x24] ss:$8 sps:$4 sm:$0xff]   ;;  %v866_v22 = vld [vmem:[#allocation4 + $0x20] ss:$8 sps:$4 sm:$0xff]  }
  0x23   :  { %608 = vmatprep.subr.bf16.mxu1 %v846_v9  ;;  %v867_v23 = vld [vmem:[#allocation2 + $0x20] ss:$8 sps:$4 sm:$0xff]   ;;  %v868_v24 = vld [vmem:[#allocation4 + $0x14] ss:$8 sps:$4 sm:$0xff]   ;;  %v872_v26 = vld [vmem:[#allocation4 + $0x10] ss:$8 sps:$4 sm:$0xff]  }
  0x24   :  { %v870_v25 = vld [vmem:[#allocation2 + $0x14] ss:$8 sps:$4 sm:$0xff]   ;;  %v873_v27 = vld [vmem:[#allocation2 + $0x10] ss:$8 sps:$4 sm:$0xff]   ;;  %v874_v28 = vld [vmem:[#allocation4 + $0x4] ss:$8 sps:$4 sm:$0xff]  }
  0x25   :  { %310 = vmatpush1.bf16.msra.mxu0 %v848_v10  ;;  %v876_v29 = vld [vmem:[#allocation2 + $0x4] ss:$8 sps:$4 sm:$0xff]   ;;  %v878_v30 = vld [vmem:[#allocation4] ss:$8 sps:$4 sm:$0xff]   ;;  %v880_v32 = vld [vmem:[#allocation4 + $0xf4] ss:$8 sps:$4 sm:$0xff]  }
  0x26   :  { %609 = vmatpush1.bf16.msra.mxu1 %v849_v11  ;;  %311 = vmatprep.subr.bf16.mxu0 %v850_v12  ;;  %v879_v31 = vld [vmem:[#allocation2] ss:$8 sps:$4 sm:$0xff]   ;;  %v882_v33 = vld [vmem:[#allocation2 + $0xf4] ss:$8 sps:$4 sm:$0xff]   ;;  %v884_v34 = vld [vmem:[#allocation4 + $0xf0] ss:$8 sps:$4 sm:$0xff]  }
  0x27   :  { %610 = vmatprep.subr.bf16.mxu1 %v852_v13  ;;  %v885_v35 = vld [vmem:[#allocation2 + $0xf0] ss:$8 sps:$4 sm:$0xff]   ;;  %v886_v36 = vld [vmem:[#allocation4 + $0xe4] ss:$8 sps:$4 sm:$0xff]   ;;  %v890_v38 = vld [vmem:[#allocation4 + $0xe0] ss:$8 sps:$4 sm:$0xff]  }
  0x28   :  { %v888_v37 = vld [vmem:[#allocation2 + $0xe4] ss:$8 sps:$4 sm:$0xff]   ;;  %v891_v39 = vld [vmem:[#allocation2 + $0xe0] ss:$8 sps:$4 sm:$0xff]   ;;  %v892_v40 = vld [vmem:[#allocation4 + $0xd4] ss:$8 sps:$4 sm:$0xff]  }
  0x29   :  { %312 = vmatpush1.bf16.msra.mxu0 %v854_v14  ;;  %v894_v41 = vld [vmem:[#allocation2 + $0xd4] ss:$8 sps:$4 sm:$0xff]   ;;  %v896_v42 = vld [vmem:[#allocation4 + $0xd0] ss:$8 sps:$4 sm:$0xff]   ;;  %v898_v44 = vld [vmem:[#allocation4 + $0xc4] ss:$8 sps:$4 sm:$0xff]  }
  0x2a   :  { %611 = vmatpush1.bf16.msra.mxu1 %v855_v15  ;;  %313 = vmatprep.subr.bf16.mxu0 %v856_v16  ;;  %v897_v43 = vld [vmem:[#allocation2 + $0xd0] ss:$8 sps:$4 sm:$0xff]   ;;  %v900_v45 = vld [vmem:[#allocation2 + $0xc4] ss:$8 sps:$4 sm:$0xff]   ;;  %v902_v46 = vld [vmem:[#allocation4 + $0xc0] ss:$8 sps:$4 sm:$0xff]  }
  0x2b   :  { %612 = vmatprep.subr.bf16.mxu1 %v858_v17  ;;  %v903_v47 = vld [vmem:[#allocation2 + $0xc0] ss:$8 sps:$4 sm:$0xff]   ;;  %v904_v48 = vld [vmem:[#allocation4 + $0xb4] ss:$8 sps:$4 sm:$0xff]   ;;  %v930_v49 = vld [vmem:[%s1069_s1 + $0x4] ss:$8 sps:$4 sm:$0xff]  }
  0x2c   :  { %v906_v50 = vld [vmem:[#allocation2 + $0xb4] ss:$8 sps:$4 sm:$0xff]   ;;  %v933_v51 = vld [vmem:[%s1068_s0 + $0x4] ss:$12 sps:$4 sm:$0xff]   ;;  %337 = vmatprep.mubr.bf16.mxu0 %v930_v49  ;;  %v914_v56 = vld [vmem:[#allocation4 + $0xa0] ss:$8 sps:$4 sm:$0xff]  }
  0x2d   :  { %314 = vmatpush1.bf16.msra.mxu0 %v860_v18  ;;  %v908_v52 = vld [vmem:[#allocation4 + $0xb0] ss:$8 sps:$4 sm:$0xff]   ;;  %636 = vmatprep.mubr.bf16.mxu1 %v933_v51  ;;  %v910_v54 = vld [vmem:[#allocation4 + $0xa4] ss:$8 sps:$4 sm:$0xff]   ;;  %v915_v57 = vld [vmem:[#allocation2 + $0xa0] ss:$8 sps:$4 sm:$0xff]  }
  0x2e   :  { %613 = vmatpush1.bf16.msra.mxu1 %v861_v19  ;;  %315 = vmatprep.subr.bf16.mxu0 %v862_v20  ;;  %v909_v53 = vld [vmem:[#allocation2 + $0xb0] ss:$8 sps:$4 sm:$0xff]   ;;  %v912_v55 = vld [vmem:[#allocation2 + $0xa4] ss:$8 sps:$4 sm:$0xff]   ;;  %v916_v58 = vld [vmem:[#allocation4 + $0x94] ss:$8 sps:$4 sm:$0xff]  }
  0x2f   :  { %614 = vmatprep.subr.bf16.mxu1 %v864_v21  ;;  %v918_v59 = vld [vmem:[#allocation2 + $0x94] ss:$8 sps:$4 sm:$0xff]   ;;  %v920_v60 = vld [vmem:[#allocation4 + $0x90] ss:$8 sps:$4 sm:$0xff]   ;;  %v922_v62 = vld [vmem:[#allocation4 + $0x84] ss:$8 sps:$4 sm:$0xff]  }
  0x30   :  { %v921_v61 = vld [vmem:[#allocation2 + $0x90] ss:$8 sps:$4 sm:$0xff]   ;;  %v924_v63 = vld [vmem:[#allocation2 + $0x84] ss:$8 sps:$4 sm:$0xff]   ;;  %v926_v0 = vld [vmem:[#allocation4 + $0x80] ss:$8 sps:$4 sm:$0xff]  }
  0x31   :  { %316 = vmatpush1.bf16.msra.mxu0 %v866_v22  ;;  %v927_v1 = vld [vmem:[#allocation2 + $0x80] ss:$8 sps:$4 sm:$0xff]   ;;  %v936_v2 = vld [vmem:[#allocation2 + $0x174] ss:$8 sps:$4 sm:$0xff]   ;;  %v934_v5 = vld [vmem:[#allocation2 + $0x170] ss:$8 sps:$4 sm:$0xff]  }
  0x32   :  { %615 = vmatpush1.bf16.msra.mxu1 %v867_v23  ;;  %317 = vmatprep.subr.bf16.mxu0 %v868_v24  ;;  %v928_v3 = vld [vmem:[%s1069_s1] ss:$8 sps:$4 sm:$0xff]   ;;  %v939_v6 = vld [vmem:[#allocation2 + $0x164] ss:$8 sps:$4 sm:$0xff]   ;;  %v1007_v8 = vmov 0   ;;  %v692_v23 = vlaneseq }
  0x33   :  { %616 = vmatprep.subr.bf16.mxu1 %v870_v25  ;;  %v931_v4 = vld [vmem:[%s1068_s0] ss:$12 sps:$4 sm:$0xff]   ;;  %v942_v9 = vld [vmem:[#allocation2 + $0x154] ss:$8 sps:$4 sm:$0xff]   ;;  %v940_v10 = vld [vmem:[#allocation2 + $0x150] ss:$8 sps:$4 sm:$0xff]  }
  0x34   :  { %v937_v7 = vld [vmem:[#allocation2 + $0x160] ss:$8 sps:$4 sm:$0xff]   ;;  %v945_v11 = vld [vmem:[#allocation2 + $0x144] ss:$8 sps:$4 sm:$0xff]   ;;  %v948_v13 = vld [vmem:[#allocation2 + $0x134] ss:$8 sps:$4 sm:$0xff]  }
  0x35   :  { %318 = vmatpush1.bf16.msra.mxu0 %v872_v26  ;;  %v943_v12 = vld [vmem:[#allocation2 + $0x140] ss:$8 sps:$4 sm:$0xff]   ;;  %v946_v14 = vld [vmem:[#allocation2 + $0x130] ss:$8 sps:$4 sm:$0xff]   ;;  %v951_v15 = vld [vmem:[#allocation2 + $0x124] ss:$8 sps:$4 sm:$0xff]  }
  0x36   :  { %617 = vmatpush1.bf16.msra.mxu1 %v873_v27  ;;  %319 = vmatprep.subr.bf16.mxu0 %v874_v28  ;;  %v949_v16 = vld [vmem:[#allocation2 + $0x120] ss:$8 sps:$4 sm:$0xff]   ;;  %v954_v17 = vld [vmem:[#allocation2 + $0x114] ss:$8 sps:$4 sm:$0xff]   ;;  %v952_v18 = vld [vmem:[#allocation2 + $0x110] ss:$8 sps:$4 sm:$0xff]  }
  0x37   :  { %618 = vmatprep.subr.bf16.mxu1 %v876_v29  ;;  %v957_v19 = vld [vmem:[#allocation2 + $0x104] ss:$8 sps:$4 sm:$0xff]   ;;  %v955_v20 = vld [vmem:[#allocation2 + $0x100] ss:$8 sps:$4 sm:$0xff]   ;;  %v693_v26 = vshrl.u32 %v692_v23, 7 }
  0x38   :  { %v958_v21 = vld [vmem:[%s1068_s0 + $0x8] ss:$12 sps:$4 sm:$0xff]  }
  0x39   :  { %320 = vmatpush1.bf16.msra.mxu0 %v878_v30  ;;  %v694_v29 = vsub.s32 0, %v693_v26  ;;  %v690_v30 = vld [vmem:[%s1072_s4] sm:$0x3] }
  0x3a   :  { %619 = vmatpush1.bf16.msra.mxu1 %v879_v31  ;;  %321 = vmatprep.subr.bf16.mxu0 %v880_v32  ;;  %v698_v31 = vsub.s32 1, %v693_v26 }
  0x3b   :  { %620 = vmatprep.subr.bf16.mxu1 %v882_v33 }
  0x3d   :  { %322 = vmatpush2.bf16.msra.mxu0 %v884_v34 }
  0x3e   :  { %621 = vmatpush2.bf16.msra.mxu1 %v885_v35  ;;  %323 = vmatprep.subr.bf16.mxu0 %v886_v36  ;;  %v695_v35 = vrot.slane %v690_v30, %v694_v29 }
  0x3f   :  { %622 = vmatprep.subr.bf16.mxu1 %v888_v37 }
  0x41   :  { %324 = vmatpush2.bf16.msra.mxu0 %v890_v38 }
  0x42   :  { %623 = vmatpush2.bf16.msra.mxu1 %v891_v39  ;;  %325 = vmatprep.subr.bf16.mxu0 %v892_v40  ;;  %v699_v39 = vrot.slane %v690_v30, %v698_v31 }
  0x43   :  { %624 = vmatprep.subr.bf16.mxu1 %v894_v41 }
  0x45   :  { %326 = vmatpush2.bf16.msra.mxu0 %v896_v42 }
  0x46   :  { %625 = vmatpush2.bf16.msra.mxu1 %v897_v43  ;;  %327 = vmatprep.subr.bf16.mxu0 %v898_v44 }
  0x47   :  { %626 = vmatprep.subr.bf16.mxu1 %v900_v45 }
  0x49   :  { %328 = vmatpush2.bf16.msra.mxu0 %v902_v46 }
  0x4a   :  { %627 = vmatpush2.bf16.msra.mxu1 %v903_v47  ;;  %329 = vmatprep.subr.bf16.mxu0 %v904_v48 }
  0x4b   :  { %628 = vmatprep.subr.bf16.mxu1 %v906_v50 }
  0x4d   :  { %330 = vmatpush2.bf16.msra.mxu0 %v908_v52 }
  0x4e   :  { %629 = vmatpush2.bf16.msra.mxu1 %v909_v53  ;;  %331 = vmatprep.subr.bf16.mxu0 %v910_v54 }
  0x4f   :  { %630 = vmatprep.subr.bf16.mxu1 %v912_v55 }
  0x51   :  { %332 = vmatpush2.bf16.msra.mxu0 %v914_v56 }
  0x52   :  { %631 = vmatpush2.bf16.msra.mxu1 %v915_v57  ;;  %333 = vmatprep.subr.bf16.mxu0 %v916_v58 }
  0x53   :  { %632 = vmatprep.subr.bf16.mxu1 %v918_v59 }
  0x55   :  { %334 = vmatpush2.bf16.msra.mxu0 %v920_v60 }
  0x56   :  { %633 = vmatpush2.bf16.msra.mxu1 %v921_v61  ;;  %335 = vmatprep.subr.bf16.mxu0 %v922_v62 }
  0x57   :  { %634 = vmatprep.subr.bf16.mxu1 %v924_v63 }
  0x59   :  { %336 = vmatpush2.bf16.msra.mxu0 %v926_v0 }
  0x5a   :  { %635 = vmatpush2.bf16.msra.mxu1 %v927_v1  ;;  %647 = vmatprep.subr.bf16.mxu0 %v936_v2 }
  0x5c   :  { %338 = vmatmul.mubr.bf16.vlgmr.msra.gmra.mxu0 %v928_v3 }
  0x5d   :  { %637 = vmatmul.mubr.bf16.vlgmr.msra.gmra.mxu1 %v931_v4  ;;  %648 = vmatpush1.bf16.msra.mxu0 %v934_v5 }
  0x5e   :  { %679 = vmatprep.mubr.bf16.mxu0 %v1007_v8  ;;  %649 = vmatprep.subr.bf16.mxu0 %v939_v6 }
  0x61   :  { %650 = vmatpush1.bf16.msra.mxu0 %v937_v7 }
  0x62   :  { %651 = vmatprep.subr.bf16.mxu0 %v942_v9 }
  0x65   :  { %652 = vmatpush1.bf16.msra.mxu0 %v940_v10 }
  0x66   :  { %653 = vmatprep.subr.bf16.mxu0 %v945_v11 }
  0x69   :  { %654 = vmatpush1.bf16.msra.mxu0 %v943_v12 }
  0x6a   :  { %655 = vmatprep.subr.bf16.mxu0 %v948_v13 }
  0x6d   :  { %656 = vmatpush1.bf16.msra.mxu0 %v946_v14 }
  0x6e   :  { %657 = vmatprep.subr.bf16.mxu0 %v951_v15 }
  0x71   :  { %658 = vmatpush1.bf16.msra.mxu0 %v949_v16 }
  0x72   :  { %659 = vmatprep.subr.bf16.mxu0 %v954_v17 }
  0x75   :  { %660 = vmatpush1.bf16.msra.mxu0 %v952_v18 }
  0x76   :  { %661 = vmatprep.subr.bf16.mxu0 %v957_v19 }
  0x79   :  { %662 = vmatpush1.bf16.msra.mxu0 %v955_v20 }
  0x7c   :  { %680 = vmatmul.mubr.bf16.vlgmr.msra.gmra.mxu0 %v958_v21 }
 0x11c   :  { %v339_v22 = vpop.f32.mrf.mxu0 }
 0x11d   :  { %v638_v25 = vpop.f32.mrf.mxu1 }
 0x11e   :  { %v341_v24 = vpop.f32.mrf.mxu0  ;;  %v639_v33 = vadd.f32 %v638_v25, %v339_v22 }
 0x11f   :  { %v640_v28 = vpop.f32.mrf.mxu1 }
 0x120   :  { %v343_v27 = vpop.f32.mrf.mxu0  ;;  %v641_v37 = vadd.f32 %v640_v28, %v341_v24 }
 0x121   :  { %v642_v34 = vpop.f32.mrf.mxu1 }
 0x122   :  { %v345_v32 = vpop.f32.mrf.mxu0  ;;  %v643_v41 = vadd.f32 %v642_v34, %v343_v27 }
 0x123   :  { %v644_v42 = vpop.f32.mrf.mxu1 }
 0x124   :  { %v645_v49 = vadd.f32 %v644_v42, %v345_v32 }
 0x13c   :  { %v681_v36 = vpop.f32.mrf.mxu0 }
 0x13d   :  { %v682_v38 = vadd.f32 %v681_v36, %v639_v33 }
 0x13e   :  { %v683_v40 = vpop.f32.mrf.mxu0 }
 0x13f   :  { %v702_v43 = vadd.f32 %v695_v35, %v682_v38  ;;  %v684_v44 = vadd.f32 %v683_v40, %v641_v37 }
 0x140   :  { %v685_v45 = vpop.f32.mrf.mxu0 }
 0x141   :  { %v710_v46 = vmul.f32 0.1, %v702_v43  ;;  %v703_v47 = vadd.f32 %v699_v39, %v684_v44  ;;  %v686_v48 = vadd.f32 %v685_v45, %v643_v41  ;;  %vm706_vm0 = vcmp.gt.f32.partialorder %v702_v43, 0.0 }
 0x142   :  { %v687_v50 = vpop.f32.mrf.mxu0 }
 0x143   :  { %vm707_vm1 = vcmp.gt.f32.partialorder %v703_v47, 0.0  ;;  %v711_v51 = vmul.f32 0.1, %v703_v47  ;;  %v704_v52 = vadd.f32 %v695_v35, %v686_v48  ;;  %v688_v53 = vadd.f32 %v687_v50, %v645_v49 }
 0x144   :  { %v714_v54 = vsel %vm706_vm0, %v702_v43, %v710_v46 }
 0x145   :  { %v715_v55 = vsel %vm707_vm1, %v703_v47, %v711_v51  ;;  %v712_v57 = vmul.f32 0.1, %v704_v52  ;;  %v705_v58 = vadd.f32 %v699_v39, %v688_v53  ;;  %vm708_vm2 = vcmp.gt.f32.partialorder %v704_v52, 0.0 }
 0x146   :  { %v825_v56 = vpack.c.bf16 %v715_v55, %v714_v54 }
 0x147   :  { %vm709_vm3 = vcmp.gt.f32.partialorder %v705_v58, 0.0  ;;  %v713_v59 = vmul.f32 0.1, %v705_v58  ;;  %v716_v60 = vsel %vm708_vm2, %v704_v52, %v712_v57 }
 0x148   :  { %730 = vst [vmem:[%s1073_s5] sm:$0xff] %v825_v56 }
 0x149   :  { %v717_v61 = vsel %vm709_vm3, %v705_v58, %v713_v59 }
 0x14a   :  { %v826_v62 = vpack.c.bf16 %v717_v61, %v716_v60 }
 0x14c   :  { %731 = vst [vmem:[%s1073_s5 + $0x8] sm:$0xff] %v826_v62 }
 0x14d   :  { %736 = vsyncpa [#allocation3], 1 }
 0x14e   :  { %737 = vsyncpa [#allocation5], 1 }

// kernel: mpd_block_forward.9
= control target key start
LH: loop header
LB: loop body
LE: loop exit
PB: predicated region body
PF: predicated region fallthrough
CT: control target
= control target key end

     0   :  { %10 = vsyncpa [#allocation3], 0  ;;  %s3389_s18 = smov [#allocation2]   ;;  %s3904_s0 = inlined_call_operand.vmem [shape: bf16[16,768], index: 0, kind: input, shape index: {}]   ;;  %s3905_s1 = inlined_call_operand.vmem [shape: bf16[16,512], index: 1, kind: input, shape index: {}]   ;;  %s3906_s2 = inlined_call_operand.hbm [shape: bf16[768,512], index: 2, kind: input, shape index: {}]   ;;  %s3907_s3 = inlined_call_operand.vmem [shape: bf16[512,512], index: 3, kind: input, shape index: {}]   ;;  %s3908_s4 = inlined_call_operand.vmem [shape: f32[1,512], index: 4, kind: input, shape index: {}]   ;;  %s3909_s5 = inlined_call_operand.vmem [shape: bf16[16,512], index: 5, kind: output, shape index: {}]  }
   0x1   :  { %s20_s19 = sshll.u32 %s3389_s18, 4  ;;  %s21_s19 = int_to_ptr.vmem [resolvable:$true] %s20_s19 }
   0x2   :  { %s3375_s20 = scalar_lea.vmem %s21_s19, 24576  ;;  %p3380_p1 = scmp.lt.s32.totalorder %s21_s19, %s21_s19 }
   0x3   :  { %p3376_p0 = scmp.ne.s32.totalorder %s21_s19, %s3375_s20  ;;  %p3381_p2 = scmp.lt.s32.totalorder %s3375_s20, %s3375_s20 }
   0x5   :  { %p3382_p3 = por %p3381_p2, %p3380_p1 }
   0x7   :  { %p3383_p4 = pnand %p3382_p3, %p3376_p0 }
   0x9   :  { %3386 = shalt.err (!%p3383_p4)
}
   0xa   :  { %s3390_s21 = smov 256   ;;  %s3391_s22 = smov 16  }
   0xb   :  { %26 = dma.hbm_to_vmem [thread:$0]  %s3906_s2, 24576, %s21_s19, [#allocation3], %s3390_s21, %s3390_s21, %s3391_s22  }
   0xc   :  { %3387 = dma.done.wait [#allocation3], 24576  }
   0xd   :  { %3388 = vsyncadd [#allocation3], 4294942720  ;;  %v2872_v0 = vld [vmem:[%s3907_s3 + $0xe4] ss:$16 sps:$4 sm:$0xff]   ;;  %v2876_v2 = vld [vmem:[%s3907_s3 + $0xe0] ss:$16 sps:$4 sm:$0xff]  }
   0xe   :  { %v2874_v1 = vld [vmem:[%s3907_s3 + $0x2e4] ss:$16 sps:$4 sm:$0xff]   ;;  %1024 = vmatprep.subr.bf16.mxu0 %v2872_v0  ;;  %v2877_v3 = vld [vmem:[%s3907_s3 + $0x2e0] ss:$16 sps:$4 sm:$0xff]   ;;  %v2973_v51 = vld [vmem:[%s3905_s1 + $0xc] ss:$16 sps:$4 sm:$0xff]  }
   0xf   :  { %1067 = vmatprep.subr.bf16.mxu1 %v2874_v1  ;;  %v2878_v4 = vld [vmem:[%s3907_s3 + $0xc4] ss:$16 sps:$4 sm:$0xff]   ;;  %1025 = vmatpush1.bf16.msra.mxu0 %v2876_v2  ;;  %v2882_v6 = vld [vmem:[%s3907_s3 + $0xc0] ss:$16 sps:$4 sm:$0xff]   ;;  %v2976_v2 = vld [vmem:[%s3907_s3 + $0xec] ss:$16 sps:$4 sm:$0xff]  }
  0x10   :  { %1068 = vmatpush1.bf16.msra.mxu1 %v2877_v3  ;;  %v2880_v5 = vld [vmem:[%s3907_s3 + $0x2c4] ss:$16 sps:$4 sm:$0xff]   ;;  %1026 = vmatprep.subr.bf16.mxu0 %v2878_v4  ;;  %v2883_v7 = vld [vmem:[%s3907_s3 + $0x2c0] ss:$16 sps:$4 sm:$0xff]   ;;  %v2979_v3 = vld [vmem:[%s3907_s3 + $0x2ec] ss:$16 sps:$4 sm:$0xff]  }
  0x11   :  { %1069 = vmatprep.subr.bf16.mxu1 %v2880_v5  ;;  %v2884_v8 = vld [vmem:[%s3907_s3 + $0xa4] ss:$16 sps:$4 sm:$0xff]   ;;  %v2888_v10 = vld [vmem:[%s3907_s3 + $0xa0] ss:$16 sps:$4 sm:$0xff]   ;;  %1099 = vmatprep.mubr.bf16.mxu1 %v2973_v51  ;;  %v3637_v5 = vld [vmem:[%s3905_s1 + $0x8] ss:$16 sps:$4 sm:$0xff]  }
  0x12   :  { %v2886_v9 = vld [vmem:[%s3907_s3 + $0x2a4] ss:$16 sps:$4 sm:$0xff]   ;;  %v2889_v11 = vld [vmem:[%s3907_s3 + $0x2a0] ss:$16 sps:$4 sm:$0xff]  }
  0x13   :  { %1027 = vmatpush1.bf16.msra.mxu0 %v2882_v6  ;;  %v2890_v12 = vld [vmem:[%s3907_s3 + $0x84] ss:$16 sps:$4 sm:$0xff]   ;;  %v2894_v14 = vld [vmem:[%s3907_s3 + $0x80] ss:$16 sps:$4 sm:$0xff]   ;;  %v2974_v6 = vld [vmem:[%s3907_s3 + $0xe8] ss:$16 sps:$4 sm:$0xff]  }
  0x14   :  { %1070 = vmatpush1.bf16.msra.mxu1 %v2883_v7  ;;  %1028 = vmatprep.subr.bf16.mxu0 %v2884_v8  ;;  %v2892_v13 = vld [vmem:[%s3907_s3 + $0x284] ss:$16 sps:$4 sm:$0xff]   ;;  %v2895_v15 = vld [vmem:[%s3907_s3 + $0x280] ss:$16 sps:$4 sm:$0xff]   ;;  %v2977_v7 = vld [vmem:[%s3907_s3 + $0x2e8] ss:$16 sps:$4 sm:$0xff]  }
  0x15   :  { %1071 = vmatprep.subr.bf16.mxu1 %v2886_v9  ;;  %v2896_v16 = vld [vmem:[%s3907_s3 + $0x64] ss:$16 sps:$4 sm:$0xff]   ;;  %v2900_v18 = vld [vmem:[%s3907_s3 + $0x60] ss:$16 sps:$4 sm:$0xff]   ;;  %v2982_v8 = vld [vmem:[%s3907_s3 + $0xcc] ss:$16 sps:$4 sm:$0xff]  }
  0x16   :  { %v2898_v17 = vld [vmem:[%s3907_s3 + $0x264] ss:$16 sps:$4 sm:$0xff]   ;;  %v2901_v19 = vld [vmem:[%s3907_s3 + $0x260] ss:$16 sps:$4 sm:$0xff]   ;;  %v2985_v9 = vld [vmem:[%s3907_s3 + $0x2cc] ss:$16 sps:$4 sm:$0xff]  }
  0x17   :  { %1029 = vmatpush1.bf16.msra.mxu0 %v2888_v10  ;;  %v2902_v20 = vld [vmem:[%s3907_s3 + $0x44] ss:$16 sps:$4 sm:$0xff]   ;;  %v2906_v22 = vld [vmem:[%s3907_s3 + $0x40] ss:$16 sps:$4 sm:$0xff]   ;;  %v2980_v10 = vld [vmem:[%s3907_s3 + $0xc8] ss:$16 sps:$4 sm:$0xff]  }
  0x18   :  { %1072 = vmatpush1.bf16.msra.mxu1 %v2889_v11  ;;  %1030 = vmatprep.subr.bf16.mxu0 %v2890_v12  ;;  %v2904_v21 = vld [vmem:[%s3907_s3 + $0x244] ss:$16 sps:$4 sm:$0xff]   ;;  %v2907_v23 = vld [vmem:[%s3907_s3 + $0x240] ss:$16 sps:$4 sm:$0xff]   ;;  %v2983_v11 = vld [vmem:[%s3907_s3 + $0x2c8] ss:$16 sps:$4 sm:$0xff]  }
  0x19   :  { %1073 = vmatprep.subr.bf16.mxu1 %v2892_v13  ;;  %v2908_v24 = vld [vmem:[%s3907_s3 + $0x24] ss:$16 sps:$4 sm:$0xff]   ;;  %v2912_v26 = vld [vmem:[%s3907_s3 + $0x20] ss:$16 sps:$4 sm:$0xff]   ;;  %v2988_v12 = vld [vmem:[%s3907_s3 + $0xac] ss:$16 sps:$4 sm:$0xff]  }
  0x1a   :  { %v2910_v25 = vld [vmem:[%s3907_s3 + $0x224] ss:$16 sps:$4 sm:$0xff]   ;;  %v2913_v27 = vld [vmem:[%s3907_s3 + $0x220] ss:$16 sps:$4 sm:$0xff]   ;;  %v2991_v13 = vld [vmem:[%s3907_s3 + $0x2ac] ss:$16 sps:$4 sm:$0xff]  }
  0x1b   :  { %1031 = vmatpush1.bf16.msra.mxu0 %v2894_v14  ;;  %v2914_v28 = vld [vmem:[%s3907_s3 + $0x4] ss:$16 sps:$4 sm:$0xff]   ;;  %v2918_v30 = vld [vmem:[%s3907_s3] ss:$16 sps:$4 sm:$0xff]   ;;  %v2986_v14 = vld [vmem:[%s3907_s3 + $0xa8] ss:$16 sps:$4 sm:$0xff]  }
  0x1c   :  { %1074 = vmatpush1.bf16.msra.mxu1 %v2895_v15  ;;  %1032 = vmatprep.subr.bf16.mxu0 %v2896_v16  ;;  %v2916_v29 = vld [vmem:[%s3907_s3 + $0x204] ss:$16 sps:$4 sm:$0xff]   ;;  %v2919_v31 = vld [vmem:[%s3907_s3 + $0x200] ss:$16 sps:$4 sm:$0xff]   ;;  %v2989_v15 = vld [vmem:[%s3907_s3 + $0x2a8] ss:$16 sps:$4 sm:$0xff]  }
  0x1d   :  { %1075 = vmatprep.subr.bf16.mxu1 %v2898_v17  ;;  %v2920_v32 = vld [vmem:[%s3907_s3 + $0x1e4] ss:$16 sps:$4 sm:$0xff]   ;;  %v2924_v34 = vld [vmem:[%s3907_s3 + $0x1e0] ss:$16 sps:$4 sm:$0xff]   ;;  %v2994_v16 = vld [vmem:[%s3907_s3 + $0x8c] ss:$16 sps:$4 sm:$0xff]  }
  0x1e   :  { %v2922_v33 = vld [vmem:[%s3907_s3 + $0x3e4] ss:$16 sps:$4 sm:$0xff]   ;;  %v2925_v35 = vld [vmem:[%s3907_s3 + $0x3e0] ss:$16 sps:$4 sm:$0xff]   ;;  %v2997_v17 = vld [vmem:[%s3907_s3 + $0x28c] ss:$16 sps:$4 sm:$0xff]  }
  0x1f   :  { %1033 = vmatpush1.bf16.msra.mxu0 %v2900_v18  ;;  %v2926_v36 = vld [vmem:[%s3907_s3 + $0x1c4] ss:$16 sps:$4 sm:$0xff]   ;;  %v2930_v38 = vld [vmem:[%s3907_s3 + $0x1c0] ss:$16 sps:$4 sm:$0xff]   ;;  %v2992_v18 = vld [vmem:[%s3907_s3 + $0x88] ss:$16 sps:$4 sm:$0xff]  }
  0x20   :  { %1076 = vmatpush1.bf16.msra.mxu1 %v2901_v19  ;;  %1034 = vmatprep.subr.bf16.mxu0 %v2902_v20  ;;  %v2928_v37 = vld [vmem:[%s3907_s3 + $0x3c4] ss:$16 sps:$4 sm:$0xff]   ;;  %v2931_v39 = vld [vmem:[%s3907_s3 + $0x3c0] ss:$16 sps:$4 sm:$0xff]   ;;  %v2995_v19 = vld [vmem:[%s3907_s3 + $0x288] ss:$16 sps:$4 sm:$0xff]  }
  0x21   :  { %1077 = vmatprep.subr.bf16.mxu1 %v2904_v21  ;;  %v2932_v40 = vld [vmem:[%s3907_s3 + $0x1a4] ss:$16 sps:$4 sm:$0xff]   ;;  %v2936_v42 = vld [vmem:[%s3907_s3 + $0x1a0] ss:$16 sps:$4 sm:$0xff]   ;;  %v3000_v20 = vld [vmem:[%s3907_s3 + $0x6c] ss:$16 sps:$4 sm:$0xff]  }
  0x22   :  { %v2934_v41 = vld [vmem:[%s3907_s3 + $0x3a4] ss:$16 sps:$4 sm:$0xff]   ;;  %v2937_v43 = vld [vmem:[%s3907_s3 + $0x3a0] ss:$16 sps:$4 sm:$0xff]   ;;  %v3003_v21 = vld [vmem:[%s3907_s3 + $0x26c] ss:$16 sps:$4 sm:$0xff]  }
  0x23   :  { %1035 = vmatpush1.bf16.msra.mxu0 %v2906_v22  ;;  %v2938_v44 = vld [vmem:[%s3907_s3 + $0x184] ss:$16 sps:$4 sm:$0xff]   ;;  %v2942_v46 = vld [vmem:[%s3907_s3 + $0x180] ss:$16 sps:$4 sm:$0xff]   ;;  %v2998_v22 = vld [vmem:[%s3907_s3 + $0x68] ss:$16 sps:$4 sm:$0xff]  }
  0x24   :  { %1078 = vmatpush1.bf16.msra.mxu1 %v2907_v23  ;;  %1036 = vmatprep.subr.bf16.mxu0 %v2908_v24  ;;  %v2940_v45 = vld [vmem:[%s3907_s3 + $0x384] ss:$16 sps:$4 sm:$0xff]   ;;  %v2943_v47 = vld [vmem:[%s3907_s3 + $0x380] ss:$16 sps:$4 sm:$0xff]   ;;  %v3001_v23 = vld [vmem:[%s3907_s3 + $0x268] ss:$16 sps:$4 sm:$0xff]  }
  0x25   :  { %1079 = vmatprep.subr.bf16.mxu1 %v2910_v25  ;;  %v2944_v48 = vld [vmem:[%s3907_s3 + $0x164] ss:$16 sps:$4 sm:$0xff]   ;;  %v2948_v52 = vld [vmem:[%s3907_s3 + $0x160] ss:$16 sps:$4 sm:$0xff]   ;;  %v3006_v24 = vld [vmem:[%s3907_s3 + $0x4c] ss:$16 sps:$4 sm:$0xff]  }
  0x26   :  { %v2970_v49 = vld [vmem:[%s3905_s1 + $0x4] ss:$16 sps:$4 sm:$0xff]   ;;  %v2949_v53 = vld [vmem:[%s3907_s3 + $0x360] ss:$16 sps:$4 sm:$0xff]   ;;  %v3009_v25 = vld [vmem:[%s3907_s3 + $0x24c] ss:$16 sps:$4 sm:$0xff]  }
  0x27   :  { %1037 = vmatpush1.bf16.msra.mxu0 %v2912_v26  ;;  %v2946_v50 = vld [vmem:[%s3907_s3 + $0x364] ss:$16 sps:$4 sm:$0xff]   ;;  %1056 = vmatprep.mubr.bf16.mxu0 %v2970_v49  ;;  %v2954_v56 = vld [vmem:[%s3907_s3 + $0x140] ss:$16 sps:$4 sm:$0xff]   ;;  %v3004_v26 = vld [vmem:[%s3907_s3 + $0x48] ss:$16 sps:$4 sm:$0xff]  }
  0x28   :  { %1080 = vmatpush1.bf16.msra.mxu1 %v2913_v27  ;;  %1038 = vmatprep.subr.bf16.mxu0 %v2914_v28  ;;  %v2950_v54 = vld [vmem:[%s3907_s3 + $0x144] ss:$16 sps:$4 sm:$0xff]   ;;  %v2955_v57 = vld [vmem:[%s3907_s3 + $0x340] ss:$16 sps:$4 sm:$0xff]   ;;  %v3007_v27 = vld [vmem:[%s3907_s3 + $0x248] ss:$16 sps:$4 sm:$0xff]  }
  0x29   :  { %1081 = vmatprep.subr.bf16.mxu1 %v2916_v29  ;;  %v2952_v55 = vld [vmem:[%s3907_s3 + $0x344] ss:$16 sps:$4 sm:$0xff]   ;;  %v2960_v60 = vld [vmem:[%s3907_s3 + $0x120] ss:$16 sps:$4 sm:$0xff]   ;;  %v3012_v28 = vld [vmem:[%s3907_s3 + $0x2c] ss:$16 sps:$4 sm:$0xff]  }
  0x2a   :  { %v2956_v58 = vld [vmem:[%s3907_s3 + $0x124] ss:$16 sps:$4 sm:$0xff]   ;;  %v2961_v61 = vld [vmem:[%s3907_s3 + $0x320] ss:$16 sps:$4 sm:$0xff]   ;;  %v3015_v29 = vld [vmem:[%s3907_s3 + $0x22c] ss:$16 sps:$4 sm:$0xff]  }
  0x2b   :  { %1039 = vmatpush1.bf16.msra.mxu0 %v2918_v30  ;;  %v2958_v59 = vld [vmem:[%s3907_s3 + $0x324] ss:$16 sps:$4 sm:$0xff]   ;;  %v2966_v0 = vld [vmem:[%s3907_s3 + $0x100] ss:$16 sps:$4 sm:$0xff]   ;;  %v3010_v30 = vld [vmem:[%s3907_s3 + $0x28] ss:$16 sps:$4 sm:$0xff]  }
  0x2c   :  { %1082 = vmatpush1.bf16.msra.mxu1 %v2919_v31  ;;  %1040 = vmatprep.subr.bf16.mxu0 %v2920_v32  ;;  %v2962_v62 = vld [vmem:[%s3907_s3 + $0x104] ss:$16 sps:$4 sm:$0xff]   ;;  %v2967_v1 = vld [vmem:[%s3907_s3 + $0x300] ss:$16 sps:$4 sm:$0xff]   ;;  %v3013_v31 = vld [vmem:[%s3907_s3 + $0x228] ss:$16 sps:$4 sm:$0xff]  }
  0x2d   :  { %1083 = vmatprep.subr.bf16.mxu1 %v2922_v33  ;;  %v2964_v63 = vld [vmem:[%s3907_s3 + $0x304] ss:$16 sps:$4 sm:$0xff]   ;;  %v3632_v4 = vld [vmem:[%s3905_s1] ss:$16 sps:$4 sm:$0xff]   ;;  %v3018_v32 = vld [vmem:[%s3907_s3 + $0xc] ss:$16 sps:$4 sm:$0xff]  }
  0x2e   :  { %v3021_v33 = vld [vmem:[%s3907_s3 + $0x20c] ss:$16 sps:$4 sm:$0xff]  }
  0x2f   :  { %1041 = vmatpush2.bf16.msra.mxu0 %v2924_v34  ;;  %v3016_v34 = vld [vmem:[%s3907_s3 + $0x8] ss:$16 sps:$4 sm:$0xff]  }
  0x30   :  { %1084 = vmatpush2.bf16.msra.mxu1 %v2925_v35  ;;  %1042 = vmatprep.subr.bf16.mxu0 %v2926_v36  ;;  %v3019_v35 = vld [vmem:[%s3907_s3 + $0x208] ss:$16 sps:$4 sm:$0xff]   ;;  %v3024_v36 = vld [vmem:[%s3907_s3 + $0x1ec] ss:$16 sps:$4 sm:$0xff]  }
  0x31   :  { %1085 = vmatprep.subr.bf16.mxu1 %v2928_v37  ;;  %v3027_v37 = vld [vmem:[%s3907_s3 + $0x3ec] ss:$16 sps:$4 sm:$0xff]  }
  0x33   :  { %1043 = vmatpush2.bf16.msra.mxu0 %v2930_v38  ;;  %v3022_v38 = vld [vmem:[%s3907_s3 + $0x1e8] ss:$16 sps:$4 sm:$0xff]  }
  0x34   :  { %1086 = vmatpush2.bf16.msra.mxu1 %v2931_v39  ;;  %1044 = vmatprep.subr.bf16.mxu0 %v2932_v40  ;;  %v3025_v39 = vld [vmem:[%s3907_s3 + $0x3e8] ss:$16 sps:$4 sm:$0xff]   ;;  %v3030_v40 = vld [vmem:[%s3907_s3 + $0x1cc] ss:$16 sps:$4 sm:$0xff]  }
  0x35   :  { %1087 = vmatprep.subr.bf16.mxu1 %v2934_v41  ;;  %v3033_v41 = vld [vmem:[%s3907_s3 + $0x3cc] ss:$16 sps:$4 sm:$0xff]  }
  0x37   :  { %1045 = vmatpush2.bf16.msra.mxu0 %v2936_v42  ;;  %v3028_v42 = vld [vmem:[%s3907_s3 + $0x1c8] ss:$16 sps:$4 sm:$0xff]  }
  0x38   :  { %1088 = vmatpush2.bf16.msra.mxu1 %v2937_v43  ;;  %1046 = vmatprep.subr.bf16.mxu0 %v2938_v44  ;;  %v3031_v43 = vld [vmem:[%s3907_s3 + $0x3c8] ss:$16 sps:$4 sm:$0xff]   ;;  %v3036_v44 = vld [vmem:[%s3907_s3 + $0x1ac] ss:$16 sps:$4 sm:$0xff]  }
  0x39   :  { %1089 = vmatprep.subr.bf16.mxu1 %v2940_v45  ;;  %v3039_v45 = vld [vmem:[%s3907_s3 + $0x3ac] ss:$16 sps:$4 sm:$0xff]  }
  0x3b   :  { %1047 = vmatpush2.bf16.msra.mxu0 %v2942_v46  ;;  %v3034_v46 = vld [vmem:[%s3907_s3 + $0x1a8] ss:$16 sps:$4 sm:$0xff]  }
  0x3c   :  { %1090 = vmatpush2.bf16.msra.mxu1 %v2943_v47  ;;  %1048 = vmatprep.subr.bf16.mxu0 %v2944_v48  ;;  %v3037_v47 = vld [vmem:[%s3907_s3 + $0x3a8] ss:$16 sps:$4 sm:$0xff]   ;;  %v3042_v48 = vld [vmem:[%s3907_s3 + $0x18c] ss:$16 sps:$4 sm:$0xff]  }
  0x3d   :  { %1091 = vmatprep.subr.bf16.mxu1 %v2946_v50  ;;  %v3040_v50 = vld [vmem:[%s3907_s3 + $0x188] ss:$16 sps:$4 sm:$0xff]  }
  0x3f   :  { %1049 = vmatpush2.bf16.msra.mxu0 %v2948_v52  ;;  %v3048_v52 = vld [vmem:[%s3907_s3 + $0x16c] ss:$16 sps:$4 sm:$0xff]  }
  0x40   :  { %1092 = vmatpush2.bf16.msra.mxu1 %v2949_v53  ;;  %1050 = vmatprep.subr.bf16.mxu0 %v2950_v54  ;;  %v3051_v53 = vld [vmem:[%s3907_s3 + $0x36c] ss:$16 sps:$4 sm:$0xff]   ;;  %v3046_v54 = vld [vmem:[%s3907_s3 + $0x168] ss:$16 sps:$4 sm:$0xff]  }
  0x41   :  { %1093 = vmatprep.subr.bf16.mxu1 %v2952_v55  ;;  %v3049_v55 = vld [vmem:[%s3907_s3 + $0x368] ss:$16 sps:$4 sm:$0xff]  }
  0x43   :  { %1051 = vmatpush2.bf16.msra.mxu0 %v2954_v56  ;;  %v3054_v56 = vld [vmem:[%s3907_s3 + $0x14c] ss:$16 sps:$4 sm:$0xff]  }
  0x44   :  { %1094 = vmatpush2.bf16.msra.mxu1 %v2955_v57  ;;  %1052 = vmatprep.subr.bf16.mxu0 %v2956_v58  ;;  %v3057_v57 = vld [vmem:[%s3907_s3 + $0x34c] ss:$16 sps:$4 sm:$0xff]   ;;  %v3052_v58 = vld [vmem:[%s3907_s3 + $0x148] ss:$16 sps:$4 sm:$0xff]  }
  0x45   :  { %1095 = vmatprep.subr.bf16.mxu1 %v2958_v59  ;;  %v3055_v59 = vld [vmem:[%s3907_s3 + $0x348] ss:$16 sps:$4 sm:$0xff]  }
  0x47   :  { %1053 = vmatpush2.bf16.msra.mxu0 %v2960_v60  ;;  %v3060_v60 = vld [vmem:[%s3907_s3 + $0x12c] ss:$16 sps:$4 sm:$0xff]  }
  0x48   :  { %1096 = vmatpush2.bf16.msra.mxu1 %v2961_v61  ;;  %1054 = vmatprep.subr.bf16.mxu0 %v2962_v62  ;;  %v3063_v61 = vld [vmem:[%s3907_s3 + $0x32c] ss:$16 sps:$4 sm:$0xff]   ;;  %v3058_v62 = vld [vmem:[%s3907_s3 + $0x128] ss:$16 sps:$4 sm:$0xff]  }
  0x49   :  { %1097 = vmatprep.subr.bf16.mxu1 %v2964_v63  ;;  %v3061_v63 = vld [vmem:[%s3907_s3 + $0x328] ss:$16 sps:$4 sm:$0xff]  }
  0x4b   :  { %1055 = vmatpush2.bf16.msra.mxu0 %v2966_v0  ;;  %v3066_v0 = vld [vmem:[%s3907_s3 + $0x10c] ss:$16 sps:$4 sm:$0xff]  }
  0x4c   :  { %1098 = vmatpush2.bf16.msra.mxu1 %v2967_v1  ;;  %1110 = vmatprep.subr.bf16.mxu0 %v2976_v2  ;;  %v3069_v1 = vld [vmem:[%s3907_s3 + $0x30c] ss:$16 sps:$4 sm:$0xff]   ;;  %v3064_v2 = vld [vmem:[%s3907_s3 + $0x108] ss:$16 sps:$4 sm:$0xff]  }
  0x4d   :  { %1153 = vmatprep.subr.bf16.mxu1 %v2979_v3  ;;  %v3067_v3 = vld [vmem:[%s3907_s3 + $0x308] ss:$16 sps:$4 sm:$0xff]  }
  0x4e   :  { %1057 = vmatmul.mubr.bf16.vlgmr.msra.gmra.mxu0 %v3632_v4 }
  0x4f   :  { %1100 = vmatmul.mubr.bf16.vlgmr.msra.gmra.mxu1 %v3637_v5  ;;  %1111 = vmatpush1.bf16.msra.mxu0 %v2974_v6  ;;  %v3072_v6 = vld [vmem:[#allocation2 + $0xe4] ss:$16 sps:$4 sm:$0xff]  }
  0x50   :  { %1154 = vmatpush1.bf16.msra.mxu1 %v2977_v7  ;;  %1112 = vmatprep.subr.bf16.mxu0 %v2982_v8  ;;  %v3075_v7 = vld [vmem:[#allocation2 + $0x2e4] ss:$16 sps:$4 sm:$0xff]   ;;  %v3070_v8 = vld [vmem:[#allocation2 + $0xe0] ss:$16 sps:$4 sm:$0xff]  }
  0x51   :  { %1155 = vmatprep.subr.bf16.mxu1 %v2985_v9  ;;  %1142 = vmatprep.mubr.bf16.mxu0 %v2970_v49  ;;  %v3045_v49 = vld [vmem:[%s3907_s3 + $0x38c] ss:$16 sps:$4 sm:$0xff]   ;;  %v3073_v9 = vld [vmem:[#allocation2 + $0x2e0] ss:$16 sps:$4 sm:$0xff]  }
  0x52   :  { %1185 = vmatprep.mubr.bf16.mxu1 %v2973_v51  ;;  %v3043_v51 = vld [vmem:[%s3907_s3 + $0x388] ss:$16 sps:$4 sm:$0xff]  }
  0x53   :  { %1113 = vmatpush1.bf16.msra.mxu0 %v2980_v10  ;;  %v3078_v10 = vld [vmem:[#allocation2 + $0xc4] ss:$16 sps:$4 sm:$0xff]  }
  0x54   :  { %1156 = vmatpush1.bf16.msra.mxu1 %v2983_v11  ;;  %1114 = vmatprep.subr.bf16.mxu0 %v2988_v12  ;;  %v3081_v11 = vld [vmem:[#allocation2 + $0x2c4] ss:$16 sps:$4 sm:$0xff]   ;;  %v3076_v12 = vld [vmem:[#allocation2 + $0xc0] ss:$16 sps:$4 sm:$0xff]  }
  0x55   :  { %1157 = vmatprep.subr.bf16.mxu1 %v2991_v13  ;;  %v3079_v13 = vld [vmem:[#allocation2 + $0x2c0] ss:$16 sps:$4 sm:$0xff]  }
  0x57   :  { %1115 = vmatpush1.bf16.msra.mxu0 %v2986_v14  ;;  %v3084_v14 = vld [vmem:[#allocation2 + $0xa4] ss:$16 sps:$4 sm:$0xff]  }
  0x58   :  { %1158 = vmatpush1.bf16.msra.mxu1 %v2989_v15  ;;  %1116 = vmatprep.subr.bf16.mxu0 %v2994_v16  ;;  %v3832_v15 = vld [vmem:[%s3904_s0 + $0x4] ss:$24 sps:$4 sm:$0xff]  }
  0x59   :  { %1159 = vmatprep.subr.bf16.mxu1 %v2997_v17  ;;  %v3087_v16 = vld [vmem:[#allocation2 + $0x2a4] ss:$16 sps:$4 sm:$0xff]  }
  0x5a   :  { %v3837_v17 = vld [vmem:[%s3904_s0 + $0xc] ss:$24 sps:$4 sm:$0xff]  }
  0x5b   :  { %1117 = vmatpush1.bf16.msra.mxu0 %v2992_v18  ;;  %v3090_v18 = vld [vmem:[#allocation2 + $0x84] ss:$16 sps:$4 sm:$0xff]  }
  0x5c   :  { %1160 = vmatpush1.bf16.msra.mxu1 %v2995_v19  ;;  %1118 = vmatprep.subr.bf16.mxu0 %v3000_v20  ;;  %v3093_v19 = vld [vmem:[#allocation2 + $0x284] ss:$16 sps:$4 sm:$0xff]   ;;  %v3088_v20 = vld [vmem:[#allocation2 + $0x80] ss:$16 sps:$4 sm:$0xff]  }
  0x5d   :  { %1161 = vmatprep.subr.bf16.mxu1 %v3003_v21  ;;  %v3091_v21 = vld [vmem:[#allocation2 + $0x280] ss:$16 sps:$4 sm:$0xff]  }
  0x5f   :  { %1119 = vmatpush1.bf16.msra.mxu0 %v2998_v22  ;;  %v3096_v22 = vld [vmem:[#allocation2 + $0x64] ss:$16 sps:$4 sm:$0xff]  }
  0x60   :  { %1162 = vmatpush1.bf16.msra.mxu1 %v3001_v23  ;;  %1120 = vmatprep.subr.bf16.mxu0 %v3006_v24  ;;  %v3099_v23 = vld [vmem:[#allocation2 + $0x264] ss:$16 sps:$4 sm:$0xff]   ;;  %v3094_v24 = vld [vmem:[#allocation2 + $0x60] ss:$16 sps:$4 sm:$0xff]  }
  0x61   :  { %1163 = vmatprep.subr.bf16.mxu1 %v3009_v25  ;;  %v3097_v25 = vld [vmem:[#allocation2 + $0x260] ss:$16 sps:$4 sm:$0xff]  }
  0x63   :  { %1121 = vmatpush1.bf16.msra.mxu0 %v3004_v26  ;;  %v3102_v26 = vld [vmem:[#allocation2 + $0x44] ss:$16 sps:$4 sm:$0xff]  }
  0x64   :  { %1164 = vmatpush1.bf16.msra.mxu1 %v3007_v27  ;;  %1122 = vmatprep.subr.bf16.mxu0 %v3012_v28  ;;  %v3105_v27 = vld [vmem:[#allocation2 + $0x244] ss:$16 sps:$4 sm:$0xff]   ;;  %v3100_v28 = vld [vmem:[#allocation2 + $0x40] ss:$16 sps:$4 sm:$0xff]  }
  0x65   :  { %1165 = vmatprep.subr.bf16.mxu1 %v3015_v29  ;;  %v3103_v29 = vld [vmem:[#allocation2 + $0x240] ss:$16 sps:$4 sm:$0xff]  }
  0x67   :  { %1123 = vmatpush1.bf16.msra.mxu0 %v3010_v30  ;;  %v3108_v30 = vld [vmem:[#allocation2 + $0x24] ss:$16 sps:$4 sm:$0xff]  }
  0x68   :  { %1166 = vmatpush1.bf16.msra.mxu1 %v3013_v31  ;;  %1124 = vmatprep.subr.bf16.mxu0 %v3018_v32  ;;  %v3111_v31 = vld [vmem:[#allocation2 + $0x224] ss:$16 sps:$4 sm:$0xff]   ;;  %v3106_v32 = vld [vmem:[#allocation2 + $0x20] ss:$16 sps:$4 sm:$0xff]  }
  0x69   :  { %1167 = vmatprep.subr.bf16.mxu1 %v3021_v33  ;;  %v3109_v33 = vld [vmem:[#allocation2 + $0x220] ss:$16 sps:$4 sm:$0xff]  }
  0x6b   :  { %1125 = vmatpush1.bf16.msra.mxu0 %v3016_v34  ;;  %v3114_v34 = vld [vmem:[#allocation2 + $0x4] ss:$16 sps:$4 sm:$0xff]  }
  0x6c   :  { %1168 = vmatpush1.bf16.msra.mxu1 %v3019_v35  ;;  %1126 = vmatprep.subr.bf16.mxu0 %v3024_v36  ;;  %v3117_v35 = vld [vmem:[#allocation2 + $0x204] ss:$16 sps:$4 sm:$0xff]   ;;  %v3112_v36 = vld [vmem:[#allocation2] ss:$16 sps:$4 sm:$0xff]  }
  0x6d   :  { %1169 = vmatprep.subr.bf16.mxu1 %v3027_v37  ;;  %v3115_v37 = vld [vmem:[#allocation2 + $0x200] ss:$16 sps:$4 sm:$0xff]  }
  0x6f   :  { %1127 = vmatpush2.bf16.msra.mxu0 %v3022_v38  ;;  %v3120_v38 = vld [vmem:[#allocation2 + $0x1e4] ss:$16 sps:$4 sm:$0xff]  }
  0x70   :  { %1170 = vmatpush2.bf16.msra.mxu1 %v3025_v39  ;;  %1128 = vmatprep.subr.bf16.mxu0 %v3030_v40  ;;  %v3123_v39 = vld [vmem:[#allocation2 + $0x3e4] ss:$16 sps:$4 sm:$0xff]   ;;  %v3118_v40 = vld [vmem:[#allocation2 + $0x1e0] ss:$16 sps:$4 sm:$0xff]  }
  0x71   :  { %1171 = vmatprep.subr.bf16.mxu1 %v3033_v41  ;;  %v3121_v41 = vld [vmem:[#allocation2 + $0x3e0] ss:$16 sps:$4 sm:$0xff]  }
  0x73   :  { %1129 = vmatpush2.bf16.msra.mxu0 %v3028_v42  ;;  %v3126_v42 = vld [vmem:[#allocation2 + $0x1c4] ss:$16 sps:$4 sm:$0xff]  }
  0x74   :  { %1172 = vmatpush2.bf16.msra.mxu1 %v3031_v43  ;;  %1130 = vmatprep.subr.bf16.mxu0 %v3036_v44  ;;  %v3129_v43 = vld [vmem:[#allocation2 + $0x3c4] ss:$16 sps:$4 sm:$0xff]   ;;  %v3124_v44 = vld [vmem:[#allocation2 + $0x1c0] ss:$16 sps:$4 sm:$0xff]  }
  0x75   :  { %1173 = vmatprep.subr.bf16.mxu1 %v3039_v45  ;;  %v3127_v45 = vld [vmem:[#allocation2 + $0x3c0] ss:$16 sps:$4 sm:$0xff]  }
  0x77   :  { %1131 = vmatpush2.bf16.msra.mxu0 %v3034_v46  ;;  %v3132_v46 = vld [vmem:[#allocation2 + $0x1a4] ss:$16 sps:$4 sm:$0xff]  }
  0x78   :  { %1174 = vmatpush2.bf16.msra.mxu1 %v3037_v47  ;;  %1132 = vmatprep.subr.bf16.mxu0 %v3042_v48  ;;  %v3135_v47 = vld [vmem:[#allocation2 + $0x3a4] ss:$16 sps:$4 sm:$0xff]   ;;  %v3130_v48 = vld [vmem:[#allocation2 + $0x1a0] ss:$16 sps:$4 sm:$0xff]  }
  0x79   :  { %1175 = vmatprep.subr.bf16.mxu1 %v3045_v49  ;;  %v3133_v49 = vld [vmem:[#allocation2 + $0x3a0] ss:$16 sps:$4 sm:$0xff]  }
  0x7b   :  { %1133 = vmatpush2.bf16.msra.mxu0 %v3040_v50  ;;  %v3138_v50 = vld [vmem:[#allocation2 + $0x184] ss:$16 sps:$4 sm:$0xff]  }
  0x7c   :  { %1176 = vmatpush2.bf16.msra.mxu1 %v3043_v51  ;;  %1134 = vmatprep.subr.bf16.mxu0 %v3048_v52  ;;  %v3141_v51 = vld [vmem:[#allocation2 + $0x384] ss:$16 sps:$4 sm:$0xff]   ;;  %v3136_v52 = vld [vmem:[#allocation2 + $0x180] ss:$16 sps:$4 sm:$0xff]  }
  0x7d   :  { %1177 = vmatprep.subr.bf16.mxu1 %v3051_v53  ;;  %v3139_v53 = vld [vmem:[#allocation2 + $0x380] ss:$16 sps:$4 sm:$0xff]  }
  0x7f   :  { %1135 = vmatpush2.bf16.msra.mxu0 %v3046_v54  ;;  %v3144_v54 = vld [vmem:[#allocation2 + $0x164] ss:$16 sps:$4 sm:$0xff]  }
  0x80   :  { %1178 = vmatpush2.bf16.msra.mxu1 %v3049_v55  ;;  %1136 = vmatprep.subr.bf16.mxu0 %v3054_v56  ;;  %v3147_v55 = vld [vmem:[#allocation2 + $0x364] ss:$16 sps:$4 sm:$0xff]   ;;  %v3142_v56 = vld [vmem:[#allocation2 + $0x160] ss:$16 sps:$4 sm:$0xff]  }
  0x81   :  { %1179 = vmatprep.subr.bf16.mxu1 %v3057_v57  ;;  %v3145_v57 = vld [vmem:[#allocation2 + $0x360] ss:$16 sps:$4 sm:$0xff]  }
  0x83   :  { %1137 = vmatpush2.bf16.msra.mxu0 %v3052_v58  ;;  %v3150_v58 = vld [vmem:[#allocation2 + $0x144] ss:$16 sps:$4 sm:$0xff]  }
  0x84   :  { %1180 = vmatpush2.bf16.msra.mxu1 %v3055_v59  ;;  %1138 = vmatprep.subr.bf16.mxu0 %v3060_v60  ;;  %v3153_v59 = vld [vmem:[#allocation2 + $0x344] ss:$16 sps:$4 sm:$0xff]   ;;  %v3148_v60 = vld [vmem:[#allocation2 + $0x140] ss:$16 sps:$4 sm:$0xff]  }
  0x85   :  { %1181 = vmatprep.subr.bf16.mxu1 %v3063_v61  ;;  %v3151_v61 = vld [vmem:[#allocation2 + $0x340] ss:$16 sps:$4 sm:$0xff]  }
  0x87   :  { %1139 = vmatpush2.bf16.msra.mxu0 %v3058_v62  ;;  %v3156_v62 = vld [vmem:[#allocation2 + $0x124] ss:$16 sps:$4 sm:$0xff]  }
  0x88   :  { %1182 = vmatpush2.bf16.msra.mxu1 %v3061_v63  ;;  %1140 = vmatprep.subr.bf16.mxu0 %v3066_v0  ;;  %v3159_v63 = vld [vmem:[#allocation2 + $0x324] ss:$16 sps:$4 sm:$0xff]   ;;  %v3154_v0 = vld [vmem:[#allocation2 + $0x120] ss:$16 sps:$4 sm:$0xff]  }
  0x89   :  { %1183 = vmatprep.subr.bf16.mxu1 %v3069_v1  ;;  %v3157_v1 = vld [vmem:[#allocation2 + $0x320] ss:$16 sps:$4 sm:$0xff]  }
  0x8b   :  { %1141 = vmatpush2.bf16.msra.mxu0 %v3064_v2  ;;  %v3162_v2 = vld [vmem:[#allocation2 + $0x104] ss:$16 sps:$4 sm:$0xff]  }
  0x8c   :  { %1184 = vmatpush2.bf16.msra.mxu1 %v3067_v3  ;;  %2186 = vmatprep.subr.bf16.mxu0 %v3072_v6  ;;  %v3165_v3 = vld [vmem:[#allocation2 + $0x304] ss:$16 sps:$4 sm:$0xff]   ;;  %v3160_v6 = vld [vmem:[#allocation2 + $0x100] ss:$16 sps:$4 sm:$0xff]  }
  0x8d   :  { %2229 = vmatprep.subr.bf16.mxu1 %v3075_v7  ;;  %v3163_v7 = vld [vmem:[#allocation2 + $0x300] ss:$16 sps:$4 sm:$0xff]  }
  0x8e   :  { %1143 = vmatmul.mubr.bf16.vlgmr.msra.gmra.mxu0 %v3632_v4  ;;  %v3082_v4 = vld [vmem:[#allocation2 + $0xa0] ss:$16 sps:$4 sm:$0xff]  }
  0x8f   :  { %1186 = vmatmul.mubr.bf16.vlgmr.msra.gmra.mxu1 %v3637_v5  ;;  %2187 = vmatpush1.bf16.msra.mxu0 %v3070_v8  ;;  %v3085_v5 = vld [vmem:[#allocation2 + $0x2a0] ss:$16 sps:$4 sm:$0xff]   ;;  %v3174_v8 = vld [vmem:[#allocation2 + $0x4e4] ss:$16 sps:$4 sm:$0xff]  }
  0x90   :  { %2230 = vmatpush1.bf16.msra.mxu1 %v3073_v9  ;;  %2188 = vmatprep.subr.bf16.mxu0 %v3078_v10  ;;  %v3177_v9 = vld [vmem:[#allocation2 + $0xec] ss:$16 sps:$4 sm:$0xff]   ;;  %v3844_v10 = vld [vmem:[%s3904_s0] ss:$24 sps:$4 sm:$0xff]  }
  0x91   :  { %2231 = vmatprep.subr.bf16.mxu1 %v3081_v11  ;;  %2218 = vmatprep.mubr.bf16.mxu0 %v3832_v15  ;;  %v3849_v11 = vld [vmem:[%s3904_s0 + $0x8] ss:$24 sps:$4 sm:$0xff]  }
  0x92   :  { %2261 = vmatprep.mubr.bf16.mxu1 %v3837_v17 }
  0x93   :  { %2189 = vmatpush1.bf16.msra.mxu0 %v3076_v12  ;;  %v3172_v12 = vld [vmem:[#allocation2 + $0x4e0] ss:$16 sps:$4 sm:$0xff]  }
  0x94   :  { %2232 = vmatpush1.bf16.msra.mxu1 %v3079_v13  ;;  %2190 = vmatprep.subr.bf16.mxu0 %v3084_v14  ;;  %v3175_v13 = vld [vmem:[#allocation2 + $0xe8] ss:$16 sps:$4 sm:$0xff]   ;;  %v3180_v14 = vld [vmem:[#allocation2 + $0x4c4] ss:$16 sps:$4 sm:$0xff]  }
  0x95   :  { %2233 = vmatprep.subr.bf16.mxu1 %v3087_v16  ;;  %v3183_v16 = vld [vmem:[#allocation2 + $0xcc] ss:$16 sps:$4 sm:$0xff]  }
  0x97   :  { %2191 = vmatpush1.bf16.msra.mxu0 %v3082_v4  ;;  %v3854_v4 = vld [vmem:[%s3904_s0 + $0x14] ss:$24 sps:$4 sm:$0xff]  }
  0x98   :  { %2234 = vmatpush1.bf16.msra.mxu1 %v3085_v5  ;;  %2192 = vmatprep.subr.bf16.mxu0 %v3090_v18  ;;  %v3178_v5 = vld [vmem:[#allocation2 + $0x4c0] ss:$16 sps:$4 sm:$0xff]   ;;  %v3181_v18 = vld [vmem:[#allocation2 + $0xc8] ss:$16 sps:$4 sm:$0xff]  }
  0x99   :  { %2235 = vmatprep.subr.bf16.mxu1 %v3093_v19  ;;  %v3186_v19 = vld [vmem:[#allocation2 + $0x4a4] ss:$16 sps:$4 sm:$0xff]  }
  0x9b   :  { %2193 = vmatpush1.bf16.msra.mxu0 %v3088_v20  ;;  %v3189_v20 = vld [vmem:[#allocation2 + $0xac] ss:$16 sps:$4 sm:$0xff]  }
  0x9c   :  { %2236 = vmatpush1.bf16.msra.mxu1 %v3091_v21  ;;  %2194 = vmatprep.subr.bf16.mxu0 %v3096_v22  ;;  %v3184_v21 = vld [vmem:[#allocation2 + $0x4a0] ss:$16 sps:$4 sm:$0xff]   ;;  %v3187_v22 = vld [vmem:[#allocation2 + $0xa8] ss:$16 sps:$4 sm:$0xff]  }
  0x9d   :  { %2237 = vmatprep.subr.bf16.mxu1 %v3099_v23  ;;  %v3192_v23 = vld [vmem:[#allocation2 + $0x484] ss:$16 sps:$4 sm:$0xff]  }
  0x9f   :  { %2195 = vmatpush1.bf16.msra.mxu0 %v3094_v24  ;;  %v3195_v24 = vld [vmem:[#allocation2 + $0x8c] ss:$16 sps:$4 sm:$0xff]  }
  0xa0   :  { %2238 = vmatpush1.bf16.msra.mxu1 %v3097_v25  ;;  %2196 = vmatprep.subr.bf16.mxu0 %v3102_v26  ;;  %v3190_v25 = vld [vmem:[#allocation2 + $0x480] ss:$16 sps:$4 sm:$0xff]   ;;  %v3193_v26 = vld [vmem:[#allocation2 + $0x88] ss:$16 sps:$4 sm:$0xff]  }
  0xa1   :  { %2239 = vmatprep.subr.bf16.mxu1 %v3105_v27  ;;  %v3198_v27 = vld [vmem:[#allocation2 + $0x464] ss:$16 sps:$4 sm:$0xff]  }
  0xa3   :  { %2197 = vmatpush1.bf16.msra.mxu0 %v3100_v28  ;;  %v3201_v28 = vld [vmem:[#allocation2 + $0x6c] ss:$16 sps:$4 sm:$0xff]  }
  0xa4   :  { %2240 = vmatpush1.bf16.msra.mxu1 %v3103_v29  ;;  %2198 = vmatprep.subr.bf16.mxu0 %v3108_v30  ;;  %v3196_v29 = vld [vmem:[#allocation2 + $0x460] ss:$16 sps:$4 sm:$0xff]   ;;  %v3199_v30 = vld [vmem:[#allocation2 + $0x68] ss:$16 sps:$4 sm:$0xff]  }
  0xa5   :  { %2241 = vmatprep.subr.bf16.mxu1 %v3111_v31  ;;  %v3207_v31 = vld [vmem:[#allocation2 + $0x4c] ss:$16 sps:$4 sm:$0xff]  }
  0xa7   :  { %2199 = vmatpush1.bf16.msra.mxu0 %v3106_v32  ;;  %v3202_v32 = vld [vmem:[#allocation2 + $0x440] ss:$16 sps:$4 sm:$0xff]  }
  0xa8   :  { %2242 = vmatpush1.bf16.msra.mxu1 %v3109_v33  ;;  %2200 = vmatprep.subr.bf16.mxu0 %v3114_v34  ;;  %v3205_v33 = vld [vmem:[#allocation2 + $0x48] ss:$16 sps:$4 sm:$0xff]   ;;  %v3210_v34 = vld [vmem:[#allocation2 + $0x424] ss:$16 sps:$4 sm:$0xff]  }
  0xa9   :  { %2243 = vmatprep.subr.bf16.mxu1 %v3117_v35  ;;  %v3213_v35 = vld [vmem:[#allocation2 + $0x2c] ss:$16 sps:$4 sm:$0xff]  }
  0xab   :  { %2201 = vmatpush1.bf16.msra.mxu0 %v3112_v36  ;;  %v3208_v36 = vld [vmem:[#allocation2 + $0x420] ss:$16 sps:$4 sm:$0xff]  }
  0xac   :  { %2244 = vmatpush1.bf16.msra.mxu1 %v3115_v37  ;;  %2202 = vmatprep.subr.bf16.mxu0 %v3120_v38  ;;  %v3211_v37 = vld [vmem:[#allocation2 + $0x28] ss:$16 sps:$4 sm:$0xff]   ;;  %v3216_v38 = vld [vmem:[#allocation2 + $0x404] ss:$16 sps:$4 sm:$0xff]  }
  0xad   :  { %2245 = vmatprep.subr.bf16.mxu1 %v3123_v39  ;;  %v3219_v39 = vld [vmem:[#allocation2 + $0xc] ss:$16 sps:$4 sm:$0xff]  }
  0xaf   :  { %2203 = vmatpush2.bf16.msra.mxu0 %v3118_v40  ;;  %v3214_v40 = vld [vmem:[#allocation2 + $0x400] ss:$16 sps:$4 sm:$0xff]  }
  0xb0   :  { %2246 = vmatpush2.bf16.msra.mxu1 %v3121_v41  ;;  %2204 = vmatprep.subr.bf16.mxu0 %v3126_v42  ;;  %v3217_v41 = vld [vmem:[#allocation2 + $0x8] ss:$16 sps:$4 sm:$0xff]   ;;  %v3222_v42 = vld [vmem:[#allocation2 + $0x5e4] ss:$16 sps:$4 sm:$0xff]  }
  0xb1   :  { %2247 = vmatprep.subr.bf16.mxu1 %v3129_v43  ;;  %v3225_v43 = vld [vmem:[#allocation2 + $0x1ec] ss:$16 sps:$4 sm:$0xff]  }
  0xb3   :  { %2205 = vmatpush2.bf16.msra.mxu0 %v3124_v44  ;;  %v3220_v44 = vld [vmem:[#allocation2 + $0x5e0] ss:$16 sps:$4 sm:$0xff]  }
  0xb4   :  { %2248 = vmatpush2.bf16.msra.mxu1 %v3127_v45  ;;  %2206 = vmatprep.subr.bf16.mxu0 %v3132_v46  ;;  %v3223_v45 = vld [vmem:[#allocation2 + $0x1e8] ss:$16 sps:$4 sm:$0xff]   ;;  %v3228_v46 = vld [vmem:[#allocation2 + $0x5c4] ss:$16 sps:$4 sm:$0xff]  }
  0xb5   :  { %2249 = vmatprep.subr.bf16.mxu1 %v3135_v47  ;;  %v3231_v47 = vld [vmem:[#allocation2 + $0x1cc] ss:$16 sps:$4 sm:$0xff]  }
  0xb7   :  { %2207 = vmatpush2.bf16.msra.mxu0 %v3130_v48  ;;  %v3226_v48 = vld [vmem:[#allocation2 + $0x5c0] ss:$16 sps:$4 sm:$0xff]  }
  0xb8   :  { %2250 = vmatpush2.bf16.msra.mxu1 %v3133_v49  ;;  %2208 = vmatprep.subr.bf16.mxu0 %v3138_v50  ;;  %v3229_v49 = vld [vmem:[#allocation2 + $0x1c8] ss:$16 sps:$4 sm:$0xff]   ;;  %v3234_v50 = vld [vmem:[#allocation2 + $0x5a4] ss:$16 sps:$4 sm:$0xff]  }
  0xb9   :  { %2251 = vmatprep.subr.bf16.mxu1 %v3141_v51  ;;  %v3237_v51 = vld [vmem:[#allocation2 + $0x1ac] ss:$16 sps:$4 sm:$0xff]  }
  0xbb   :  { %2209 = vmatpush2.bf16.msra.mxu0 %v3136_v52  ;;  %v3232_v52 = vld [vmem:[#allocation2 + $0x5a0] ss:$16 sps:$4 sm:$0xff]  }
  0xbc   :  { %2252 = vmatpush2.bf16.msra.mxu1 %v3139_v53  ;;  %2210 = vmatprep.subr.bf16.mxu0 %v3144_v54  ;;  %v3235_v53 = vld [vmem:[#allocation2 + $0x1a8] ss:$16 sps:$4 sm:$0xff]   ;;  %v3240_v54 = vld [vmem:[#allocation2 + $0x584] ss:$16 sps:$4 sm:$0xff]  }
  0xbd   :  { %2253 = vmatprep.subr.bf16.mxu1 %v3147_v55  ;;  %v3243_v55 = vld [vmem:[#allocation2 + $0x18c] ss:$16 sps:$4 sm:$0xff]  }
  0xbf   :  { %2211 = vmatpush2.bf16.msra.mxu0 %v3142_v56  ;;  %v3238_v56 = vld [vmem:[#allocation2 + $0x580] ss:$16 sps:$4 sm:$0xff]  }
  0xc0   :  { %2254 = vmatpush2.bf16.msra.mxu1 %v3145_v57  ;;  %2212 = vmatprep.subr.bf16.mxu0 %v3150_v58  ;;  %v3241_v57 = vld [vmem:[#allocation2 + $0x188] ss:$16 sps:$4 sm:$0xff]   ;;  %v3246_v58 = vld [vmem:[#allocation2 + $0x564] ss:$16 sps:$4 sm:$0xff]  }
  0xc1   :  { %2255 = vmatprep.subr.bf16.mxu1 %v3153_v59  ;;  %v3249_v59 = vld [vmem:[#allocation2 + $0x16c] ss:$16 sps:$4 sm:$0xff]  }
  0xc3   :  { %2213 = vmatpush2.bf16.msra.mxu0 %v3148_v60  ;;  %v3244_v60 = vld [vmem:[#allocation2 + $0x560] ss:$16 sps:$4 sm:$0xff]  }
  0xc4   :  { %2256 = vmatpush2.bf16.msra.mxu1 %v3151_v61  ;;  %2214 = vmatprep.subr.bf16.mxu0 %v3156_v62  ;;  %v3247_v61 = vld [vmem:[#allocation2 + $0x168] ss:$16 sps:$4 sm:$0xff]   ;;  %v3252_v62 = vld [vmem:[#allocation2 + $0x544] ss:$16 sps:$4 sm:$0xff]  }
  0xc5   :  { %2257 = vmatprep.subr.bf16.mxu1 %v3159_v63  ;;  %v3255_v63 = vld [vmem:[#allocation2 + $0x14c] ss:$16 sps:$4 sm:$0xff]  }
  0xc7   :  { %2215 = vmatpush2.bf16.msra.mxu0 %v3154_v0  ;;  %v3250_v0 = vld [vmem:[#allocation2 + $0x540] ss:$16 sps:$4 sm:$0xff]  }
  0xc8   :  { %2258 = vmatpush2.bf16.msra.mxu1 %v3157_v1  ;;  %2216 = vmatprep.subr.bf16.mxu0 %v3162_v2  ;;  %v3253_v1 = vld [vmem:[#allocation2 + $0x148] ss:$16 sps:$4 sm:$0xff]   ;;  %v3258_v2 = vld [vmem:[#allocation2 + $0x524] ss:$16 sps:$4 sm:$0xff]  }
  0xc9   :  { %2259 = vmatprep.subr.bf16.mxu1 %v3165_v3  ;;  %v3261_v3 = vld [vmem:[#allocation2 + $0x12c] ss:$16 sps:$4 sm:$0xff]  }
  0xcb   :  { %2217 = vmatpush2.bf16.msra.mxu0 %v3160_v6  ;;  %v3256_v6 = vld [vmem:[#allocation2 + $0x520] ss:$16 sps:$4 sm:$0xff]  }
  0xcc   :  { %2260 = vmatpush2.bf16.msra.mxu1 %v3163_v7  ;;  %2272 = vmatprep.subr.bf16.mxu0 %v3174_v8  ;;  %v3259_v7 = vld [vmem:[#allocation2 + $0x128] ss:$16 sps:$4 sm:$0xff]   ;;  %v3264_v8 = vld [vmem:[#allocation2 + $0x504] ss:$16 sps:$4 sm:$0xff]  }
  0xcd   :  { %2315 = vmatprep.subr.bf16.mxu1 %v3177_v9  ;;  %v3267_v9 = vld [vmem:[#allocation2 + $0x10c] ss:$16 sps:$4 sm:$0xff]  }
  0xce   :  { %2219 = vmatmul.mubr.bf16.vlgmr.msra.gmra.mxu0 %v3844_v10 }
  0xcf   :  { %2262 = vmatmul.mubr.bf16.vlgmr.msra.gmra.mxu1 %v3849_v11  ;;  %2273 = vmatpush1.bf16.msra.mxu0 %v3172_v12  ;;  %v3262_v12 = vld [vmem:[#allocation2 + $0x500] ss:$16 sps:$4 sm:$0xff]  }
  0xd0   :  { %2316 = vmatpush1.bf16.msra.mxu1 %v3175_v13  ;;  %2274 = vmatprep.subr.bf16.mxu0 %v3180_v14  ;;  %v3265_v13 = vld [vmem:[#allocation2 + $0x108] ss:$16 sps:$4 sm:$0xff]   ;;  %v3273_v14 = vld [vmem:[#allocation2 + $0x2ec] ss:$16 sps:$4 sm:$0xff]  }
  0xd1   :  { %2317 = vmatprep.subr.bf16.mxu1 %v3183_v16  ;;  %2304 = vmatprep.mubr.bf16.mxu0 %v3854_v4  ;;  %v3276_v16 = vld [vmem:[#allocation2 + $0x4ec] ss:$16 sps:$4 sm:$0xff]  }
  0xd2   :  { %2347 = vmatprep.mubr.bf16.mxu1 %v3832_v15  ;;  %v3204_v15 = vld [vmem:[#allocation2 + $0x444] ss:$16 sps:$4 sm:$0xff]  }
  0xd3   :  { %2275 = vmatpush1.bf16.msra.mxu0 %v3178_v5  ;;  %v3863_v5 = vld [vmem:[%s3904_s0 + $0x10] ss:$24 sps:$4 sm:$0xff]  }
  0xd4   :  { %2318 = vmatpush1.bf16.msra.mxu1 %v3181_v18  ;;  %2276 = vmatprep.subr.bf16.mxu0 %v3186_v19  ;;  %v3271_v18 = vld [vmem:[#allocation2 + $0x2e8] ss:$16 sps:$4 sm:$0xff]  }
  0xd5   :  { %2319 = vmatprep.subr.bf16.mxu1 %v3189_v20  ;;  %v3274_v19 = vld [vmem:[#allocation2 + $0x4e8] ss:$16 sps:$4 sm:$0xff]   ;;  %v3279_v20 = vld [vmem:[#allocation2 + $0x2cc] ss:$16 sps:$4 sm:$0xff]  }
  0xd7   :  { %2277 = vmatpush1.bf16.msra.mxu0 %v3184_v21  ;;  %v3282_v21 = vld [vmem:[#allocation2 + $0x4cc] ss:$16 sps:$4 sm:$0xff]  }
  0xd8   :  { %2320 = vmatpush1.bf16.msra.mxu1 %v3187_v22  ;;  %2278 = vmatprep.subr.bf16.mxu0 %v3192_v23  ;;  %v3277_v22 = vld [vmem:[#allocation2 + $0x2c8] ss:$16 sps:$4 sm:$0xff]  }
  0xd9   :  { %2321 = vmatprep.subr.bf16.mxu1 %v3195_v24  ;;  %v3280_v23 = vld [vmem:[#allocation2 + $0x4c8] ss:$16 sps:$4 sm:$0xff]   ;;  %v3285_v24 = vld [vmem:[#allocation2 + $0x2ac] ss:$16 sps:$4 sm:$0xff]  }
  0xdb   :  { %2279 = vmatpush1.bf16.msra.mxu0 %v3190_v25  ;;  %v3288_v25 = vld [vmem:[#allocation2 + $0x4ac] ss:$16 sps:$4 sm:$0xff]  }
  0xdc   :  { %2322 = vmatpush1.bf16.msra.mxu1 %v3193_v26  ;;  %2280 = vmatprep.subr.bf16.mxu0 %v3198_v27  ;;  %v3283_v26 = vld [vmem:[#allocation2 + $0x2a8] ss:$16 sps:$4 sm:$0xff]  }
  0xdd   :  { %2323 = vmatprep.subr.bf16.mxu1 %v3201_v28  ;;  %v3286_v27 = vld [vmem:[#allocation2 + $0x4a8] ss:$16 sps:$4 sm:$0xff]   ;;  %v3291_v28 = vld [vmem:[#allocation2 + $0x28c] ss:$16 sps:$4 sm:$0xff]  }
  0xdf   :  { %2281 = vmatpush1.bf16.msra.mxu0 %v3196_v29  ;;  %v3289_v29 = vld [vmem:[#allocation2 + $0x288] ss:$16 sps:$4 sm:$0xff]  }
  0xe0   :  { %2324 = vmatpush1.bf16.msra.mxu1 %v3199_v30  ;;  %2282 = vmatprep.subr.bf16.mxu0 %v3204_v15  ;;  %v3292_v30 = vld [vmem:[#allocation2 + $0x488] ss:$16 sps:$4 sm:$0xff]   ;;  %v3297_v15 = vld [vmem:[#allocation2 + $0x26c] ss:$16 sps:$4 sm:$0xff]  }
  0xe1   :  { %2325 = vmatprep.subr.bf16.mxu1 %v3207_v31  ;;  %v3300_v31 = vld [vmem:[#allocation2 + $0x46c] ss:$16 sps:$4 sm:$0xff]  }
  0xe3   :  { %2283 = vmatpush1.bf16.msra.mxu0 %v3202_v32  ;;  %v3303_v32 = vld [vmem:[#allocation2 + $0x24c] ss:$16 sps:$4 sm:$0xff]  }
  0xe4   :  { %2326 = vmatpush1.bf16.msra.mxu1 %v3205_v33  ;;  %2284 = vmatprep.subr.bf16.mxu0 %v3210_v34  ;;  %v3306_v33 = vld [vmem:[#allocation2 + $0x44c] ss:$16 sps:$4 sm:$0xff]   ;;  %v3301_v34 = vld [vmem:[#allocation2 + $0x248] ss:$16 sps:$4 sm:$0xff]  }
  0xe5   :  { %2327 = vmatprep.subr.bf16.mxu1 %v3213_v35  ;;  %v3304_v35 = vld [vmem:[#allocation2 + $0x448] ss:$16 sps:$4 sm:$0xff]  }
  0xe7   :  { %2285 = vmatpush1.bf16.msra.mxu0 %v3208_v36  ;;  %v3309_v36 = vld [vmem:[#allocation2 + $0x22c] ss:$16 sps:$4 sm:$0xff]  }
  0xe8   :  { %2328 = vmatpush1.bf16.msra.mxu1 %v3211_v37  ;;  %2286 = vmatprep.subr.bf16.mxu0 %v3216_v38  ;;  %v3312_v37 = vld [vmem:[#allocation2 + $0x42c] ss:$16 sps:$4 sm:$0xff]   ;;  %v3307_v38 = vld [vmem:[#allocation2 + $0x228] ss:$16 sps:$4 sm:$0xff]  }
  0xe9   :  { %2329 = vmatprep.subr.bf16.mxu1 %v3219_v39  ;;  %v3310_v39 = vld [vmem:[#allocation2 + $0x428] ss:$16 sps:$4 sm:$0xff]  }
  0xeb   :  { %2287 = vmatpush1.bf16.msra.mxu0 %v3214_v40  ;;  %v3315_v40 = vld [vmem:[#allocation2 + $0x20c] ss:$16 sps:$4 sm:$0xff]  }
  0xec   :  { %2330 = vmatpush1.bf16.msra.mxu1 %v3217_v41  ;;  %2288 = vmatprep.subr.bf16.mxu0 %v3222_v42  ;;  %v3318_v41 = vld [vmem:[#allocation2 + $0x40c] ss:$16 sps:$4 sm:$0xff]   ;;  %v3313_v42 = vld [vmem:[#allocation2 + $0x208] ss:$16 sps:$4 sm:$0xff]  }
  0xed   :  { %2331 = vmatprep.subr.bf16.mxu1 %v3225_v43  ;;  %v3316_v43 = vld [vmem:[#allocation2 + $0x408] ss:$16 sps:$4 sm:$0xff]  }
  0xef   :  { %2289 = vmatpush2.bf16.msra.mxu0 %v3220_v44  ;;  %v3321_v44 = vld [vmem:[#allocation2 + $0x3ec] ss:$16 sps:$4 sm:$0xff]  }
  0xf0   :  { %2332 = vmatpush2.bf16.msra.mxu1 %v3223_v45  ;;  %2290 = vmatprep.subr.bf16.mxu0 %v3228_v46  ;;  %v3324_v45 = vld [vmem:[#allocation2 + $0x5ec] ss:$16 sps:$4 sm:$0xff]   ;;  %v3319_v46 = vld [vmem:[#allocation2 + $0x3e8] ss:$16 sps:$4 sm:$0xff]  }
  0xf1   :  { %2333 = vmatprep.subr.bf16.mxu1 %v3231_v47  ;;  %v3322_v47 = vld [vmem:[#allocation2 + $0x5e8] ss:$16 sps:$4 sm:$0xff]  }
  0xf3   :  { %2291 = vmatpush2.bf16.msra.mxu0 %v3226_v48  ;;  %v3327_v48 = vld [vmem:[#allocation2 + $0x3cc] ss:$16 sps:$4 sm:$0xff]  }
  0xf4   :  { %2334 = vmatpush2.bf16.msra.mxu1 %v3229_v49  ;;  %2292 = vmatprep.subr.bf16.mxu0 %v3234_v50  ;;  %v3330_v49 = vld [vmem:[#allocation2 + $0x5cc] ss:$16 sps:$4 sm:$0xff]   ;;  %v3325_v50 = vld [vmem:[#allocation2 + $0x3c8] ss:$16 sps:$4 sm:$0xff]  }
  0xf5   :  { %2335 = vmatprep.subr.bf16.mxu1 %v3237_v51  ;;  %v3328_v51 = vld [vmem:[#allocation2 + $0x5c8] ss:$16 sps:$4 sm:$0xff]  }
  0xf7   :  { %2293 = vmatpush2.bf16.msra.mxu0 %v3232_v52  ;;  %v3333_v52 = vld [vmem:[#allocation2 + $0x3ac] ss:$16 sps:$4 sm:$0xff]  }
  0xf8   :  { %2336 = vmatpush2.bf16.msra.mxu1 %v3235_v53  ;;  %2294 = vmatprep.subr.bf16.mxu0 %v3240_v54  ;;  %v3336_v53 = vld [vmem:[#allocation2 + $0x5ac] ss:$16 sps:$4 sm:$0xff]   ;;  %v3331_v54 = vld [vmem:[#allocation2 + $0x3a8] ss:$16 sps:$4 sm:$0xff]  }
  0xf9   :  { %2337 = vmatprep.subr.bf16.mxu1 %v3243_v55  ;;  %v3334_v55 = vld [vmem:[#allocation2 + $0x5a8] ss:$16 sps:$4 sm:$0xff]  }
  0xfb   :  { %2295 = vmatpush2.bf16.msra.mxu0 %v3238_v56  ;;  %v3339_v56 = vld [vmem:[#allocation2 + $0x38c] ss:$16 sps:$4 sm:$0xff]  }
  0xfc   :  { %2338 = vmatpush2.bf16.msra.mxu1 %v3241_v57  ;;  %2296 = vmatprep.subr.bf16.mxu0 %v3246_v58  ;;  %v3342_v57 = vld [vmem:[#allocation2 + $0x58c] ss:$16 sps:$4 sm:$0xff]   ;;  %v3337_v58 = vld [vmem:[#allocation2 + $0x388] ss:$16 sps:$4 sm:$0xff]  }
  0xfd   :  { %2339 = vmatprep.subr.bf16.mxu1 %v3249_v59  ;;  %v3340_v59 = vld [vmem:[#allocation2 + $0x588] ss:$16 sps:$4 sm:$0xff]  }
  0xff   :  { %2297 = vmatpush2.bf16.msra.mxu0 %v3244_v60  ;;  %v3345_v60 = vld [vmem:[#allocation2 + $0x36c] ss:$16 sps:$4 sm:$0xff]  }
 0x100   :  { %2340 = vmatpush2.bf16.msra.mxu1 %v3247_v61  ;;  %2298 = vmatprep.subr.bf16.mxu0 %v3252_v62  ;;  %v3348_v61 = vld [vmem:[#allocation2 + $0x56c] ss:$16 sps:$4 sm:$0xff]   ;;  %v3343_v62 = vld [vmem:[#allocation2 + $0x368] ss:$16 sps:$4 sm:$0xff]  }
 0x101   :  { %2341 = vmatprep.subr.bf16.mxu1 %v3255_v63  ;;  %v3346_v63 = vld [vmem:[#allocation2 + $0x568] ss:$16 sps:$4 sm:$0xff]  }
 0x103   :  { %2299 = vmatpush2.bf16.msra.mxu0 %v3250_v0  ;;  %v3351_v0 = vld [vmem:[#allocation2 + $0x34c] ss:$16 sps:$4 sm:$0xff]  }
 0x104   :  { %2342 = vmatpush2.bf16.msra.mxu1 %v3253_v1  ;;  %2300 = vmatprep.subr.bf16.mxu0 %v3258_v2  ;;  %v3354_v1 = vld [vmem:[#allocation2 + $0x54c] ss:$16 sps:$4 sm:$0xff]   ;;  %v3349_v2 = vld [vmem:[#allocation2 + $0x348] ss:$16 sps:$4 sm:$0xff]  }
 0x105   :  { %2343 = vmatprep.subr.bf16.mxu1 %v3261_v3  ;;  %v3352_v3 = vld [vmem:[#allocation2 + $0x548] ss:$16 sps:$4 sm:$0xff]  }
 0x107   :  { %2301 = vmatpush2.bf16.msra.mxu0 %v3256_v6 }
 0x108   :  { %2344 = vmatpush2.bf16.msra.mxu1 %v3259_v7  ;;  %2302 = vmatprep.subr.bf16.mxu0 %v3264_v8  ;;  %v3357_v8 = vld [vmem:[#allocation2 + $0x32c] ss:$16 sps:$4 sm:$0xff]  }
 0x109   :  { %2345 = vmatprep.subr.bf16.mxu1 %v3267_v9  ;;  %v3360_v9 = vld [vmem:[#allocation2 + $0x52c] ss:$16 sps:$4 sm:$0xff]  }
 0x10b   :  { %2303 = vmatpush2.bf16.msra.mxu0 %v3262_v12  ;;  %v3355_v12 = vld [vmem:[#allocation2 + $0x328] ss:$16 sps:$4 sm:$0xff]  }
 0x10c   :  { %2346 = vmatpush2.bf16.msra.mxu1 %v3265_v13  ;;  %2358 = vmatprep.subr.bf16.mxu0 %v3273_v14  ;;  %v3358_v13 = vld [vmem:[#allocation2 + $0x528] ss:$16 sps:$4 sm:$0xff]  }
 0x10d   :  { %2401 = vmatprep.subr.bf16.mxu1 %v3276_v16 }
 0x10e   :  { %2305 = vmatmul.mubr.bf16.vlgmr.msra.gmra.mxu0 %v3863_v5  ;;  %v1058_v6 = vpop.f32.mrf.mxu0 }
 0x10f   :  { %2348 = vmatmul.mubr.bf16.vlgmr.msra.gmra.mxu1 %v3844_v10  ;;  %2359 = vmatpush1.bf16.msra.mxu0 %v3271_v18  ;;  %v3294_v10 = vld [vmem:[#allocation2 + $0x48c] ss:$16 sps:$4 sm:$0xff]   ;;  %v1101_v7 = vpop.f32.mrf.mxu1 }
 0x110   :  { %2402 = vmatpush1.bf16.msra.mxu1 %v3274_v19  ;;  %2360 = vmatprep.subr.bf16.mxu0 %v3279_v20  ;;  %v1060_v14 = vpop.f32.mrf.mxu0  ;;  %v3363_v18 = vld [vmem:[#allocation2 + $0x30c] ss:$16 sps:$4 sm:$0xff]   ;;  %v3361_v20 = vld [vmem:[#allocation2 + $0x308] ss:$16 sps:$4 sm:$0xff]  }
 0x111   :  { %2403 = vmatprep.subr.bf16.mxu1 %v3282_v21  ;;  %2390 = vmatprep.mubr.bf16.mxu0 %v3837_v17  ;;  %v3295_v17 = vld [vmem:[#allocation2 + $0x268] ss:$16 sps:$4 sm:$0xff]   ;;  %v1103_v16 = vpop.f32.mrf.mxu1  ;;  %v3366_v19 = vld [vmem:[#allocation2 + $0x50c] ss:$16 sps:$4 sm:$0xff]  }
 0x112   :  { %2433 = vmatprep.mubr.bf16.mxu1 %v3854_v4  ;;  %v3298_v4 = vld [vmem:[#allocation2 + $0x468] ss:$16 sps:$4 sm:$0xff]  }
 0x113   :  { %2361 = vmatpush1.bf16.msra.mxu0 %v3277_v22  ;;  %v3364_v21 = vld [vmem:[#allocation2 + $0x508] ss:$16 sps:$4 sm:$0xff]   ;;  %v1062_v22 = vpop.f32.mrf.mxu0 }
 0x114   :  { %2404 = vmatpush1.bf16.msra.mxu1 %v3280_v23  ;;  %2362 = vmatprep.subr.bf16.mxu0 %v3285_v24  ;;  %v1105_v23 = vpop.f32.mrf.mxu1 }
 0x115   :  { %2405 = vmatprep.subr.bf16.mxu1 %v3288_v25  ;;  %v1064_v24 = vpop.f32.mrf.mxu0 }
 0x116   :  { %v1107_v25 = vpop.f32.mrf.mxu1 }
 0x117   :  { %2363 = vmatpush1.bf16.msra.mxu0 %v3283_v26 }
 0x118   :  { %2406 = vmatpush1.bf16.msra.mxu1 %v3286_v27  ;;  %2364 = vmatprep.subr.bf16.mxu0 %v3291_v28 }
 0x119   :  { %2407 = vmatprep.subr.bf16.mxu1 %v3294_v10 }
 0x11b   :  { %2365 = vmatpush1.bf16.msra.mxu0 %v3289_v29 }
 0x11c   :  { %2408 = vmatpush1.bf16.msra.mxu1 %v3292_v30  ;;  %2366 = vmatprep.subr.bf16.mxu0 %v3297_v15 }
 0x11d   :  { %2409 = vmatprep.subr.bf16.mxu1 %v3300_v31 }
 0x11f   :  { %2367 = vmatpush1.bf16.msra.mxu0 %v3295_v17 }
 0x120   :  { %2410 = vmatpush1.bf16.msra.mxu1 %v3298_v4  ;;  %2368 = vmatprep.subr.bf16.mxu0 %v3303_v32 }
 0x121   :  { %2411 = vmatprep.subr.bf16.mxu1 %v3306_v33 }
 0x123   :  { %2369 = vmatpush1.bf16.msra.mxu0 %v3301_v34 }
 0x124   :  { %2412 = vmatpush1.bf16.msra.mxu1 %v3304_v35  ;;  %2370 = vmatprep.subr.bf16.mxu0 %v3309_v36  ;;  %v2446_v35 = vlaneseq }
 0x125   :  { %2413 = vmatprep.subr.bf16.mxu1 %v3312_v37 }
 0x127   :  { %2371 = vmatpush1.bf16.msra.mxu0 %v3307_v38 }
 0x128   :  { %2414 = vmatpush1.bf16.msra.mxu1 %v3310_v39  ;;  %2372 = vmatprep.subr.bf16.mxu0 %v3315_v40  ;;  %v1104_v39 = vadd.f32 %v1103_v16, %v1060_v14 }
 0x129   :  { %2415 = vmatprep.subr.bf16.mxu1 %v3318_v41 }
 0x12b   :  { %2373 = vmatpush1.bf16.msra.mxu0 %v3313_v42  ;;  %v2444_v42 = vld [vmem:[%s3908_s4] sm:$0xf] }
 0x12c   :  { %2416 = vmatpush1.bf16.msra.mxu1 %v3316_v43  ;;  %2374 = vmatprep.subr.bf16.mxu0 %v3321_v44  ;;  %v1106_v43 = vadd.f32 %v1105_v23, %v1062_v22 }
 0x12d   :  { %2417 = vmatprep.subr.bf16.mxu1 %v3324_v45 }
 0x12f   :  { %2375 = vmatpush2.bf16.msra.mxu0 %v3319_v46 }
 0x130   :  { %2418 = vmatpush2.bf16.msra.mxu1 %v3322_v47  ;;  %2376 = vmatprep.subr.bf16.mxu0 %v3327_v48 }
 0x131   :  { %2419 = vmatprep.subr.bf16.mxu1 %v3330_v49 }
 0x133   :  { %2377 = vmatpush2.bf16.msra.mxu0 %v3325_v50 }
 0x134   :  { %2420 = vmatpush2.bf16.msra.mxu1 %v3328_v51  ;;  %2378 = vmatprep.subr.bf16.mxu0 %v3333_v52  ;;  %v1108_v51 = vadd.f32 %v1107_v25, %v1064_v24 }
 0x135   :  { %2421 = vmatprep.subr.bf16.mxu1 %v3336_v53 }
 0x137   :  { %2379 = vmatpush2.bf16.msra.mxu0 %v3331_v54 }
 0x138   :  { %2422 = vmatpush2.bf16.msra.mxu1 %v3334_v55  ;;  %2380 = vmatprep.subr.bf16.mxu0 %v3339_v56 }
 0x139   :  { %2423 = vmatprep.subr.bf16.mxu1 %v3342_v57 }
 0x13b   :  { %2381 = vmatpush2.bf16.msra.mxu0 %v3337_v58 }
 0x13c   :  { %2424 = vmatpush2.bf16.msra.mxu1 %v3340_v59  ;;  %2382 = vmatprep.subr.bf16.mxu0 %v3345_v60 }
 0x13d   :  { %2425 = vmatprep.subr.bf16.mxu1 %v3348_v61 }
 0x13f   :  { %2383 = vmatpush2.bf16.msra.mxu0 %v3343_v62 }
 0x140   :  { %2426 = vmatpush2.bf16.msra.mxu1 %v3346_v63  ;;  %2384 = vmatprep.subr.bf16.mxu0 %v3351_v0 }
 0x141   :  { %2427 = vmatprep.subr.bf16.mxu1 %v3354_v1 }
 0x143   :  { %2385 = vmatpush2.bf16.msra.mxu0 %v3349_v2 }
 0x144   :  { %2428 = vmatpush2.bf16.msra.mxu1 %v3352_v3  ;;  %2386 = vmatprep.subr.bf16.mxu0 %v3357_v8 }
 0x145   :  { %2429 = vmatprep.subr.bf16.mxu1 %v3360_v9 }
 0x147   :  { %2387 = vmatpush2.bf16.msra.mxu0 %v3355_v12 }
 0x148   :  { %2430 = vmatpush2.bf16.msra.mxu1 %v3358_v13  ;;  %2388 = vmatprep.subr.bf16.mxu0 %v3363_v18 }
 0x149   :  { %2431 = vmatprep.subr.bf16.mxu1 %v3366_v19 }
 0x14b   :  { %2389 = vmatpush2.bf16.msra.mxu0 %v3361_v20 }
 0x14c   :  { %2432 = vmatpush2.bf16.msra.mxu1 %v3364_v21 }
 0x14e   :  { %v1144_v26 = vpop.f32.mrf.mxu0  ;;  %2391 = vmatmul.mubr.bf16.vlgmr.msra.gmra.mxu0 %v3849_v11  ;;  %v3879_v11 = vshrl.u32 %v2446_v35, 7 }
 0x14f   :  { %v1187_v27 = vpop.f32.mrf.mxu1  ;;  %2434 = vmatmul.mubr.bf16.vlgmr.msra.gmra.mxu1 %v3863_v5  ;;  %v1102_v5 = vadd.f32 %v1101_v7, %v1058_v6 }
 0x150   :  { %v3871_v28 = vadd.f32 %v1187_v27, %v1144_v26  ;;  %v1146_v10 = vpop.f32.mrf.mxu0  ;;  %v2448_v41 = vsub.s32 0, %v3879_v11  ;;  %v2452_v46 = vsub.s32 1, %v3879_v11  ;;  %v2456_v26 = vsub.s32 2, %v3879_v11 }
 0x151   :  { %v1189_v29 = vpop.f32.mrf.mxu1 }
 0x152   :  { %v3873_v30 = vadd.f32 %v1189_v29, %v1146_v10  ;;  %v1148_v15 = vpop.f32.mrf.mxu0  ;;  %v2449_v50 = vrot.slane %v2444_v42, %v2448_v41  ;;  %v2453_v56 = vrot.slane %v2444_v42, %v2452_v46  ;;  %v2460_v29 = vsub.s32 3, %v3879_v11 }
 0x153   :  { %v1191_v31 = vpop.f32.mrf.mxu1 }
 0x154   :  { %v3875_v17 = vadd.f32 %v1191_v31, %v1148_v15  ;;  %v1150_v4 = vpop.f32.mrf.mxu0 }
 0x155   :  { %v1193_v32 = vpop.f32.mrf.mxu1 }
 0x156   :  { %v3877_v33 = vadd.f32 %v1193_v32, %v1150_v4 }
 0x18e   :  { %v2220_v34 = vpop.f32.mrf.mxu0 }
 0x18f   :  { %v2263_v37 = vpop.f32.mrf.mxu1  ;;  %v2221_v40 = vadd.f32 %v2220_v34, %v1102_v5  ;;  %v2457_v34 = vrot.slane %v2444_v42, %v2456_v26 }
 0x190   :  { %v2222_v36 = vpop.f32.mrf.mxu0 }
 0x191   :  { %v2223_v44 = vadd.f32 %v2222_v36, %v1104_v39  ;;  %v2265_v45 = vpop.f32.mrf.mxu1  ;;  %v2264_v48 = vadd.f32 %v2263_v37, %v2221_v40  ;;  %v2461_v39 = vrot.slane %v2444_v42, %v2460_v29 }
 0x192   :  { %v2224_v38 = vpop.f32.mrf.mxu0 }
 0x193   :  { %v2225_v49 = vadd.f32 %v2224_v38, %v1106_v43  ;;  %v2266_v53 = vadd.f32 %v2265_v45, %v2223_v44  ;;  %v2267_v54 = vpop.f32.mrf.mxu1 }
 0x194   :  { %v2226_v47 = vpop.f32.mrf.mxu0 }
 0x195   :  { %v2227_v57 = vadd.f32 %v2226_v47, %v1108_v51  ;;  %v2268_v59 = vadd.f32 %v2267_v54, %v2225_v49  ;;  %v2269_v63 = vpop.f32.mrf.mxu1 }
 0x197   :  { %v2270_v3 = vadd.f32 %v2269_v63, %v2227_v57 }
 0x1ce   :  { %v2306_v52 = vpop.f32.mrf.mxu0 }
 0x1cf   :  { %v2307_v55 = vadd.f32 %v2306_v52, %v2264_v48  ;;  %v2349_v23 = vpop.f32.mrf.mxu1 }
 0x1d0   :  { %v2308_v58 = vpop.f32.mrf.mxu0  ;;  %v2350_v10 = vadd.f32 %v2349_v23, %v3871_v28 }
 0x1d1   :  { %v2466_v60 = vadd.f32 %v2449_v50, %v2307_v55  ;;  %v2309_v61 = vadd.f32 %v2308_v58, %v2266_v53  ;;  %v2351_v24 = vpop.f32.mrf.mxu1 }
 0x1d2   :  { %v2310_v62 = vpop.f32.mrf.mxu0  ;;  %v2352_v4 = vadd.f32 %v2351_v24, %v3873_v30 }
 0x1d3   :  { %v2482_v0 = vmul.f32 0.1, %v2466_v60  ;;  %v2467_v1 = vadd.f32 %v2453_v56, %v2309_v61  ;;  %v2311_v2 = vadd.f32 %v2310_v62, %v2268_v59  ;;  %vm2474_vm0 = vcmp.gt.f32.partialorder %v2466_v60, 0.0  ;;  %v2353_v25 = vpop.f32.mrf.mxu1 }
 0x1d4   :  { %v2312_v6 = vpop.f32.mrf.mxu0  ;;  %v2354_v5 = vadd.f32 %v2353_v25, %v3875_v17 }
 0x1d5   :  { %vm2475_vm1 = vcmp.gt.f32.partialorder %v2467_v1, 0.0  ;;  %v2483_v7 = vmul.f32 0.1, %v2467_v1  ;;  %v2470_v8 = vadd.f32 %v2449_v50, %v2311_v2  ;;  %v2313_v9 = vadd.f32 %v2312_v6, %v2270_v3  ;;  %v2355_v27 = vpop.f32.mrf.mxu1 }
 0x1d6   :  { %v2490_v12 = vsel %vm2474_vm0, %v2466_v60, %v2482_v0  ;;  %v2356_v11 = vadd.f32 %v2355_v27, %v3877_v33 }
 0x1d7   :  { %v2491_v13 = vsel %vm2475_vm1, %v2467_v1, %v2483_v7  ;;  %v2486_v16 = vmul.f32 0.1, %v2470_v8  ;;  %v2471_v18 = vadd.f32 %v2453_v56, %v2313_v9  ;;  %vm2478_vm2 = vcmp.gt.f32.partialorder %v2470_v8, 0.0 }
 0x1d8   :  { %v2865_v14 = vpack.c.bf16 %v2491_v13, %v2490_v12 }
 0x1d9   :  { %vm2479_vm3 = vcmp.gt.f32.partialorder %v2471_v18, 0.0  ;;  %v2487_v19 = vmul.f32 0.1, %v2471_v18  ;;  %v2494_v20 = vsel %vm2478_vm2, %v2470_v8, %v2486_v16 }
 0x1da   :  { %2522 = vst [vmem:[%s3909_s5] sm:$0xff] %v2865_v14 }
 0x1db   :  { %v2495_v21 = vsel %vm2479_vm3, %v2471_v18, %v2487_v19 }
 0x1dc   :  { %v2867_v22 = vpack.c.bf16 %v2495_v21, %v2494_v20 }
 0x1de   :  { %2524 = vst [vmem:[%s3909_s5 + $0x10] sm:$0xff] %v2867_v22 }
 0x20e   :  { %v2392_v15 = vpop.f32.mrf.mxu0 }
 0x20f   :  { %v2435_v31 = vpop.f32.mrf.mxu1  ;;  %v2393_v32 = vadd.f32 %v2392_v15, %v2350_v10 }
 0x210   :  { %v2394_v35 = vpop.f32.mrf.mxu0 }
 0x211   :  { %v2437_v36 = vpop.f32.mrf.mxu1  ;;  %v2436_v37 = vadd.f32 %v2435_v31, %v2393_v32  ;;  %v2395_v38 = vadd.f32 %v2394_v35, %v2352_v4 }
 0x212   :  { %v2396_v40 = vpop.f32.mrf.mxu0 }
 0x213   :  { %v2468_v41 = vadd.f32 %v2457_v34, %v2436_v37  ;;  %v2438_v43 = vadd.f32 %v2437_v36, %v2395_v38  ;;  %v2397_v44 = vadd.f32 %v2396_v40, %v2354_v5  ;;  %v2439_v28 = vpop.f32.mrf.mxu1 }
 0x214   :  { %v2398_v45 = vpop.f32.mrf.mxu0 }
 0x215   :  { %v2484_v46 = vmul.f32 0.1, %v2468_v41  ;;  %v2469_v47 = vadd.f32 %v2461_v39, %v2438_v43  ;;  %v2440_v30 = vadd.f32 %v2439_v28, %v2397_v44  ;;  %vm2476_vm4 = vcmp.gt.f32.partialorder %v2468_v41, 0.0  ;;  %v2441_v17 = vpop.f32.mrf.mxu1 }
 0x216   :  { %v2399_v48 = vadd.f32 %v2398_v45, %v2356_v11 }
 0x217   :  { %vm2477_vm5 = vcmp.gt.f32.partialorder %v2469_v47, 0.0  ;;  %v2485_v49 = vmul.f32 0.1, %v2469_v47  ;;  %v2472_v50 = vadd.f32 %v2457_v34, %v2440_v30  ;;  %v2492_v52 = vsel %vm2476_vm4, %v2468_v41, %v2484_v46 }
 0x218   :  { %v2442_v51 = vadd.f32 %v2441_v17, %v2399_v48 }
 0x219   :  { %v2493_v42 = vsel %vm2477_vm5, %v2469_v47, %v2485_v49  ;;  %v2488_v54 = vmul.f32 0.1, %v2472_v50  ;;  %vm2480_vm6 = vcmp.gt.f32.partialorder %v2472_v50, 0.0 }
 0x21a   :  { %v2866_v53 = vpack.c.bf16 %v2493_v42, %v2492_v52  ;;  %v2473_v55 = vadd.f32 %v2461_v39, %v2442_v51 }
 0x21b   :  { %v2496_v56 = vsel %vm2480_vm6, %v2472_v50, %v2488_v54 }
 0x21c   :  { %2523 = vst [vmem:[%s3909_s5 + $0x8] sm:$0xff] %v2866_v53  ;;  %vm2481_vm7 = vcmp.gt.f32.partialorder %v2473_v55, 0.0  ;;  %v2489_v33 = vmul.f32 0.1, %v2473_v55 }
 0x21e   :  { %v2497_v57 = vsel %vm2481_vm7, %v2473_v55, %v2489_v33 }
 0x21f   :  { %v2868_v58 = vpack.c.bf16 %v2497_v57, %v2496_v56 }
 0x221   :  { %2525 = vst [vmem:[%s3909_s5 + $0x18] sm:$0xff] %v2868_v58 }
 0x222   :  { %2530 = vsyncpa [#allocation3], 1 }

// kernel: mpd_block_forward.11
= control target key start
LH: loop header
LB: loop body
LE: loop exit
PB: predicated region body
PF: predicated region fallthrough
CT: control target
= control target key end

     0   :  { %s4090_s4 = inlined_call_operand.vmem [shape: bf16[1024,128], index: 4, kind: input, shape index: {}]   ;;  %s4091_s1 = inlined_call_operand.vmem [shape: bf16[32,1024], index: 1, kind: input, shape index: {}]   ;;  %s4092_s3 = inlined_call_operand.vmem [shape: bf16[1024,128], index: 3, kind: input, shape index: {}]   ;;  %s4093_s0 = inlined_call_operand.vmem [shape: bf16[32,1024], index: 0, kind: input, shape index: {}]   ;;  %s4094_s5 = inlined_call_operand.vmem [shape: bf16[1024,128], index: 5, kind: input, shape index: {}]   ;;  %s4095_s2 = inlined_call_operand.vmem [shape: bf16[32,1024], index: 2, kind: input, shape index: {}]   ;;  %s4096_s6 = inlined_call_operand.vmem [shape: f32[1,128], index: 6, kind: input, shape index: {}]   ;;  %s4097_s7 = inlined_call_operand.vmem [shape: f32[32,128], index: 7, kind: output, shape index: {}]  }
   0x1   :  { %v3039_v0 = vld [vmem:[%s4090_s4 + $0x78] sm:$0xff]   ;;  %v3043_v4 = vld [vmem:[%s4090_s4 + $0x70] sm:$0xff]   ;;  %v3047_v8 = vld [vmem:[%s4090_s4 + $0x68] sm:$0xff]  }
   0x2   :  { %v3040_v1 = vld [vmem:[%s4090_s4 + $0xf8] sm:$0xff]   ;;  %2703 = vmatprep.subr.bf16.mxu0 %v3039_v0  ;;  %v3044_v5 = vld [vmem:[%s4090_s4 + $0xf0] sm:$0xff]   ;;  %v3048_v9 = vld [vmem:[%s4090_s4 + $0xe8] sm:$0xff]  }
   0x3   :  { %v3041_v2 = vld [vmem:[%s4090_s4 + $0x38] sm:$0xff]   ;;  %2731 = vmatprep.subr.bf16.mxu1 %v3040_v1  ;;  %v3045_v6 = vld [vmem:[%s4090_s4 + $0x30] sm:$0xff]   ;;  %v3049_v10 = vld [vmem:[%s4090_s4 + $0x28] sm:$0xff]  }
   0x4   :  { %v3042_v3 = vld [vmem:[%s4090_s4 + $0xb8] sm:$0xff]   ;;  %2704 = vmatpush3.bf16.msra.mxu0 %v3041_v2  ;;  %v3046_v7 = vld [vmem:[%s4090_s4 + $0xb0] sm:$0xff]   ;;  %v3050_v11 = vld [vmem:[%s4090_s4 + $0xa8] sm:$0xff]  }
   0x5   :  { %2732 = vmatpush3.bf16.msra.mxu1 %v3042_v3  ;;  %2705 = vmatprep.subr.bf16.mxu0 %v3043_v4  ;;  %v3051_v12 = vld [vmem:[%s4090_s4 + $0x60] sm:$0xff]   ;;  %v3055_v16 = vld [vmem:[%s4090_s4 + $0x58] sm:$0xff]   ;;  %v3059_v20 = vld [vmem:[%s4090_s4 + $0x50] sm:$0xff]  }
   0x6   :  { %2733 = vmatprep.subr.bf16.mxu1 %v3044_v5  ;;  %v3052_v13 = vld [vmem:[%s4090_s4 + $0xe0] sm:$0xff]   ;;  %v3056_v17 = vld [vmem:[%s4090_s4 + $0xd8] sm:$0xff]   ;;  %v3060_v21 = vld [vmem:[%s4090_s4 + $0xd0] sm:$0xff]  }
   0x7   :  { %v3053_v14 = vld [vmem:[%s4090_s4 + $0x20] sm:$0xff]   ;;  %v3057_v18 = vld [vmem:[%s4090_s4 + $0x18] sm:$0xff]   ;;  %v3061_v22 = vld [vmem:[%s4090_s4 + $0x10] sm:$0xff]  }
   0x8   :  { %2706 = vmatpush3.bf16.msra.mxu0 %v3045_v6  ;;  %v3054_v15 = vld [vmem:[%s4090_s4 + $0xa0] sm:$0xff]   ;;  %v3058_v19 = vld [vmem:[%s4090_s4 + $0x98] sm:$0xff]   ;;  %v3062_v23 = vld [vmem:[%s4090_s4 + $0x90] sm:$0xff]  }
   0x9   :  { %2734 = vmatpush3.bf16.msra.mxu1 %v3046_v7  ;;  %2707 = vmatprep.subr.bf16.mxu0 %v3047_v8  ;;  %v3063_v24 = vld [vmem:[%s4090_s4 + $0x48] sm:$0xff]   ;;  %v3067_v28 = vld [vmem:[%s4090_s4 + $0x40] sm:$0xff]   ;;  %v3071_v40 = vld [vmem:[%s4090_s4 + $0x178] sm:$0xff]  }
   0xa   :  { %2735 = vmatprep.subr.bf16.mxu1 %v3048_v9  ;;  %v3064_v25 = vld [vmem:[%s4090_s4 + $0xc8] sm:$0xff]   ;;  %v3068_v29 = vld [vmem:[%s4090_s4 + $0xc0] sm:$0xff]   ;;  %v3072_v41 = vld [vmem:[%s4090_s4 + $0x1f8] sm:$0xff]  }
   0xb   :  { %v3065_v26 = vld [vmem:[%s4090_s4 + $0x8] sm:$0xff]   ;;  %v3069_v30 = vld [vmem:[%s4090_s4] sm:$0xff]   ;;  %v3073_v42 = vld [vmem:[%s4090_s4 + $0x138] sm:$0xff]  }
   0xc   :  { %2708 = vmatpush3.bf16.msra.mxu0 %v3049_v10  ;;  %v3066_v27 = vld [vmem:[%s4090_s4 + $0x88] sm:$0xff]   ;;  %v3070_v31 = vld [vmem:[%s4090_s4 + $0x80] sm:$0xff]   ;;  %v3074_v43 = vld [vmem:[%s4090_s4 + $0x1b8] sm:$0xff]  }
   0xd   :  { %2736 = vmatpush3.bf16.msra.mxu1 %v3050_v11  ;;  %2709 = vmatprep.subr.bf16.mxu0 %v3051_v12  ;;  %v171_v32 = vld [vmem:[%s4091_s1] sm:$0xff]  ;;  %v172_v34 = vld [vmem:[%s4091_s1 + $0x8] sm:$0xff]  ;;  %v3075_v44 = vld [vmem:[%s4090_s4 + $0x170] sm:$0xff]  }
   0xe   :  { %2737 = vmatprep.subr.bf16.mxu1 %v3052_v13  ;;  %v175_v33 = vld [vmem:[%s4091_s1 + $0x20] sm:$0xff]  ;;  %v176_v37 = vld [vmem:[%s4091_s1 + $0x28] sm:$0xff]  ;;  %v3076_v45 = vld [vmem:[%s4090_s4 + $0x1f0] sm:$0xff]  }
   0xf   :  { %v2462_v35 = vcombine.low %v171_v32, %v175_v33  ;;  %v2463_v36 = vcombine.high %v171_v32, %v175_v33  ;;  %v2464_v38 = vcombine.low %v172_v34, %v176_v37  ;;  %v2465_v39 = vcombine.high %v172_v34, %v176_v37  ;;  %v3077_v46 = vld [vmem:[%s4090_s4 + $0x130] sm:$0xff]   ;;  %v3079_v48 = vld [vmem:[%s4090_s4 + $0x168] sm:$0xff]   ;;  %v3083_v52 = vld [vmem:[%s4090_s4 + $0x160] sm:$0xff]  }
  0x10   :  { %2710 = vmatpush3.bf16.msra.mxu0 %v3053_v14  ;;  %v3078_v47 = vld [vmem:[%s4090_s4 + $0x1b0] sm:$0xff]   ;;  %v3080_v49 = vld [vmem:[%s4090_s4 + $0x1e8] sm:$0xff]   ;;  %v3084_v53 = vld [vmem:[%s4090_s4 + $0x1e0] sm:$0xff]  }
  0x11   :  { %2738 = vmatpush3.bf16.msra.mxu1 %v3054_v15  ;;  %2711 = vmatprep.subr.bf16.mxu0 %v3055_v16  ;;  %v3081_v50 = vld [vmem:[%s4090_s4 + $0x128] sm:$0xff]   ;;  %v3085_v54 = vld [vmem:[%s4090_s4 + $0x120] sm:$0xff]   ;;  %v3087_v56 = vld [vmem:[%s4090_s4 + $0x158] sm:$0xff]  }
  0x12   :  { %2739 = vmatprep.subr.bf16.mxu1 %v3056_v17  ;;  %811 = vmatprep.mubr.bf16.mxu0 %v2463_v36  ;;  %v3082_v51 = vld [vmem:[%s4090_s4 + $0x1a8] sm:$0xff]   ;;  %v3086_v55 = vld [vmem:[%s4090_s4 + $0x1a0] sm:$0xff]   ;;  %v3088_v57 = vld [vmem:[%s4090_s4 + $0x1d8] sm:$0xff]  }
  0x13   :  { %860 = vmatprep.mubr.bf16.mxu1 %v2465_v39  ;;  %v3089_v58 = vld [vmem:[%s4090_s4 + $0x118] sm:$0xff]   ;;  %v179_v60 = vld [vmem:[%s4091_s1 + $0x40] sm:$0xff]  ;;  %v180_v63 = vld [vmem:[%s4091_s1 + $0x48] sm:$0xff] }
  0x14   :  { %2712 = vmatpush3.bf16.msra.mxu0 %v3057_v18  ;;  %v3090_v59 = vld [vmem:[%s4090_s4 + $0x198] sm:$0xff]   ;;  %v183_v61 = vld [vmem:[%s4091_s1 + $0x60] sm:$0xff]  ;;  %v184_v0 = vld [vmem:[%s4091_s1 + $0x68] sm:$0xff] }
  0x15   :  { %2740 = vmatpush3.bf16.msra.mxu1 %v3058_v19  ;;  %2713 = vmatprep.subr.bf16.mxu0 %v3059_v20  ;;  %v2471_v62 = vcombine.high %v179_v60, %v183_v61  ;;  %v2470_v1 = vcombine.low %v179_v60, %v183_v61  ;;  %v2473_v2 = vcombine.high %v180_v63, %v184_v0  ;;  %v3091_v4 = vld [vmem:[%s4090_s4 + $0x150] sm:$0xff]   ;;  %v3095_v8 = vld [vmem:[%s4090_s4 + $0x148] sm:$0xff]   ;;  %v3099_v12 = vld [vmem:[%s4090_s4 + $0x140] sm:$0xff]  }
  0x16   :  { %2741 = vmatprep.subr.bf16.mxu1 %v3060_v21  ;;  %v2472_v3 = vcombine.low %v180_v63, %v184_v0  ;;  %v3092_v5 = vld [vmem:[%s4090_s4 + $0x1d0] sm:$0xff]   ;;  %v3096_v9 = vld [vmem:[%s4090_s4 + $0x1c8] sm:$0xff]   ;;  %v3100_v13 = vld [vmem:[%s4090_s4 + $0x1c0] sm:$0xff]  }
  0x17   :  { %v3093_v6 = vld [vmem:[%s4090_s4 + $0x110] sm:$0xff]   ;;  %v3097_v10 = vld [vmem:[%s4090_s4 + $0x108] sm:$0xff]   ;;  %v3101_v14 = vld [vmem:[%s4090_s4 + $0x100] sm:$0xff]  }
  0x18   :  { %2714 = vmatpush3.bf16.msra.mxu0 %v3061_v22  ;;  %v3094_v7 = vld [vmem:[%s4090_s4 + $0x190] sm:$0xff]   ;;  %v3098_v11 = vld [vmem:[%s4090_s4 + $0x188] sm:$0xff]   ;;  %v3102_v15 = vld [vmem:[%s4090_s4 + $0x180] sm:$0xff]  }
  0x19   :  { %2742 = vmatpush3.bf16.msra.mxu1 %v3062_v23  ;;  %2715 = vmatprep.subr.bf16.mxu0 %v3063_v24  ;;  %v173_v16 = vld [vmem:[%s4091_s1 + $0x10] sm:$0xff]  ;;  %v174_v18 = vld [vmem:[%s4091_s1 + $0x18] sm:$0xff]  ;;  %v3111_v36 = vld [vmem:[%s4092_s3 + $0x68] sm:$0xff]  }
  0x1a   :  { %2743 = vmatprep.subr.bf16.mxu1 %v3064_v25  ;;  %v177_v17 = vld [vmem:[%s4091_s1 + $0x30] sm:$0xff]  ;;  %v178_v19 = vld [vmem:[%s4091_s1 + $0x38] sm:$0xff]  ;;  %v3112_v37 = vld [vmem:[%s4092_s3 + $0xe8] sm:$0xff]  }
  0x1b   :  { %v2466_v20 = vcombine.low %v173_v16, %v177_v17  ;;  %v2467_v21 = vcombine.high %v173_v16, %v177_v17  ;;  %v2468_v22 = vcombine.low %v174_v18, %v178_v19  ;;  %v2469_v23 = vcombine.high %v174_v18, %v178_v19  ;;  %v3103_v24 = vld [vmem:[%s4092_s3 + $0x78] sm:$0xff]   ;;  %v181_v32 = vld [vmem:[%s4091_s1 + $0x50] sm:$0xff]  ;;  %v3131_v60 = vld [vmem:[%s4092_s3 + $0x40] sm:$0xff]  }
  0x1c   :  { %2716 = vmatpush3.bf16.msra.mxu0 %v3065_v26  ;;  %v3104_v25 = vld [vmem:[%s4092_s3 + $0xf8] sm:$0xff]   ;;  %v185_v33 = vld [vmem:[%s4091_s1 + $0x70] sm:$0xff]  ;;  %v3132_v61 = vld [vmem:[%s4092_s3 + $0xc0] sm:$0xff]  }
  0x1d   :  { %2744 = vmatpush3.bf16.msra.mxu1 %v3066_v27  ;;  %2717 = vmatprep.subr.bf16.mxu0 %v3067_v28  ;;  %v3105_v26 = vld [vmem:[%s4092_s3 + $0x38] sm:$0xff]   ;;  %v3107_v28 = vld [vmem:[%s4092_s3 + $0x70] sm:$0xff]   ;;  %v2475_v34 = vcombine.high %v181_v32, %v185_v33  ;;  %v3134_v63 = vld [vmem:[%s4092_s3 + $0x80] sm:$0xff]  }
  0x1e   :  { %2745 = vmatprep.subr.bf16.mxu1 %v3068_v29  ;;  %v3106_v27 = vld [vmem:[%s4092_s3 + $0xb8] sm:$0xff]   ;;  %v3108_v29 = vld [vmem:[%s4092_s3 + $0xf0] sm:$0xff]   ;;  %v27_v0 = vld [vmem:[%s4093_s0] sm:$0xff] }
  0x1f   :  { %v186_v39 = vld [vmem:[%s4091_s1 + $0x78] sm:$0xff]  ;;  %v35_v16 = vld [vmem:[%s4093_s0 + $0x40] sm:$0xff] }
  0x20   :  { %2718 = vmatpush3.bf16.msra.mxu0 %v3069_v30  ;;  %v3109_v30 = vld [vmem:[%s4092_s3 + $0x30] sm:$0xff]   ;;  %v39_v17 = vld [vmem:[%s4093_s0 + $0x60] sm:$0xff] }
  0x21   :  { %2746 = vmatpush3.bf16.msra.mxu1 %v3070_v31  ;;  %2759 = vmatprep.subr.bf16.mxu0 %v3071_v40  ;;  %v3110_v31 = vld [vmem:[%s4092_s3 + $0xb0] sm:$0xff]   ;;  %v2551_v18 = vcombine.high %v35_v16, %v39_v17  ;;  %v2550_v19 = vcombine.low %v35_v16, %v39_v17  ;;  %v3183_v16 = vld [vmem:[%s4094_s5 + $0x58] sm:$0xff]  }
  0x22   :  { %2787 = vmatprep.subr.bf16.mxu1 %v3072_v41  ;;  %v3113_v41 = vld [vmem:[%s4092_s3 + $0x28] sm:$0xff]   ;;  %v3184_v17 = vld [vmem:[%s4094_s5 + $0xd8] sm:$0xff]  }
  0x23   :  { %812 = vmatmul.mubr.bf16.vlgmr.msra.gmra.mxu0 %v2462_v35  ;;  %v2474_v35 = vcombine.low %v181_v32, %v185_v33  ;;  %v3151_v32 = vld [vmem:[%s4092_s3 + $0x158] sm:$0xff]  }
  0x24   :  { %861 = vmatmul.mubr.bf16.vlgmr.msra.gmra.mxu1 %v2464_v38  ;;  %2760 = vmatpush3.bf16.msra.mxu0 %v3073_v42  ;;  %v182_v38 = vld [vmem:[%s4091_s1 + $0x58] sm:$0xff] }
  0x25   :  { %2788 = vmatpush3.bf16.msra.mxu1 %v3074_v43  ;;  %2761 = vmatprep.subr.bf16.mxu0 %v3075_v44  ;;  %v2477_v40 = vcombine.high %v182_v38, %v186_v39  ;;  %v2476_v42 = vcombine.low %v182_v38, %v186_v39  ;;  %v3114_v43 = vld [vmem:[%s4092_s3 + $0xa8] sm:$0xff]   ;;  %v3115_v44 = vld [vmem:[%s4092_s3 + $0x60] sm:$0xff]   ;;  %v3152_v33 = vld [vmem:[%s4092_s3 + $0x1d8] sm:$0xff]  }
  0x26   :  { %2789 = vmatprep.subr.bf16.mxu1 %v3076_v45  ;;  %819 = vmatprep.mubr.bf16.mxu0 %v2471_v62  ;;  %v3116_v45 = vld [vmem:[%s4092_s3 + $0xe0] sm:$0xff]   ;;  %v3157_v38 = vld [vmem:[%s4092_s3 + $0x110] sm:$0xff]  }
  0x27   :  { %868 = vmatprep.mubr.bf16.mxu1 %v2473_v2  ;;  %v3133_v62 = vld [vmem:[%s4092_s3] sm:$0xff]   ;;  %v3158_v39 = vld [vmem:[%s4092_s3 + $0x190] sm:$0xff]  }
  0x28   :  { %2762 = vmatpush3.bf16.msra.mxu0 %v3077_v46  ;;  %v3117_v46 = vld [vmem:[%s4092_s3 + $0x20] sm:$0xff]  }
  0x29   :  { %2790 = vmatpush3.bf16.msra.mxu1 %v3078_v47  ;;  %2763 = vmatprep.subr.bf16.mxu0 %v3079_v48  ;;  %v3118_v47 = vld [vmem:[%s4092_s3 + $0xa0] sm:$0xff]   ;;  %v3119_v48 = vld [vmem:[%s4092_s3 + $0x58] sm:$0xff]  }
  0x2a   :  { %2791 = vmatprep.subr.bf16.mxu1 %v3080_v49  ;;  %v3120_v49 = vld [vmem:[%s4092_s3 + $0xd8] sm:$0xff]  }
  0x2b   :  { %820 = vmatmul.mubr.bf16.gmra.mxu0 %v2470_v1  ;;  %v31_v1 = vld [vmem:[%s4093_s0 + $0x20] sm:$0xff] }
  0x2c   :  { %2764 = vmatpush3.bf16.msra.mxu0 %v3081_v50  ;;  %869 = vmatmul.mubr.bf16.gmra.mxu1 %v2472_v3  ;;  %v3121_v50 = vld [vmem:[%s4092_s3 + $0x18] sm:$0xff]   ;;  %v2542_v2 = vcombine.low %v27_v0, %v31_v1  ;;  %v2543_v3 = vcombine.high %v27_v0, %v31_v1  ;;  %v37_v0 = vld [vmem:[%s4093_s0 + $0x50] sm:$0xff] }
  0x2d   :  { %2792 = vmatpush3.bf16.msra.mxu1 %v3082_v51  ;;  %2765 = vmatprep.subr.bf16.mxu0 %v3083_v52  ;;  %v3122_v51 = vld [vmem:[%s4092_s3 + $0x98] sm:$0xff]   ;;  %v3123_v52 = vld [vmem:[%s4092_s3 + $0x50] sm:$0xff]  }
  0x2e   :  { %2793 = vmatprep.subr.bf16.mxu1 %v3084_v53  ;;  %909 = vmatprep.mubr.bf16.mxu0 %v2467_v21  ;;  %v3124_v53 = vld [vmem:[%s4092_s3 + $0xd0] sm:$0xff]   ;;  %v3144_v21 = vld [vmem:[%s4092_s3 + $0x1e8] sm:$0xff]  }
  0x2f   :  { %958 = vmatprep.mubr.bf16.mxu1 %v2469_v23  ;;  %v40_v23 = vld [vmem:[%s4093_s0 + $0x68] sm:$0xff]  ;;  %v41_v1 = vld [vmem:[%s4093_s0 + $0x70] sm:$0xff] }
  0x30   :  { %2766 = vmatpush3.bf16.msra.mxu0 %v3085_v54  ;;  %v3125_v54 = vld [vmem:[%s4092_s3 + $0x10] sm:$0xff]  }
  0x31   :  { %2794 = vmatpush3.bf16.msra.mxu1 %v3086_v55  ;;  %2767 = vmatprep.subr.bf16.mxu0 %v3087_v56  ;;  %v3126_v55 = vld [vmem:[%s4092_s3 + $0x90] sm:$0xff]   ;;  %v3127_v56 = vld [vmem:[%s4092_s3 + $0x48] sm:$0xff]  }
  0x32   :  { %2795 = vmatprep.subr.bf16.mxu1 %v3088_v57  ;;  %v3128_v57 = vld [vmem:[%s4092_s3 + $0xc8] sm:$0xff]  }
  0x34   :  { %2768 = vmatpush3.bf16.msra.mxu0 %v3089_v58  ;;  %v3129_v58 = vld [vmem:[%s4092_s3 + $0x8] sm:$0xff]  }
  0x35   :  { %2796 = vmatpush3.bf16.msra.mxu1 %v3090_v59  ;;  %2769 = vmatprep.subr.bf16.mxu0 %v3091_v4  ;;  %v3130_v59 = vld [vmem:[%s4092_s3 + $0x88] sm:$0xff]  }
  0x36   :  { %2797 = vmatprep.subr.bf16.mxu1 %v3092_v5  ;;  %v28_v4 = vld [vmem:[%s4093_s0 + $0x8] sm:$0xff] }
  0x37   :  { %v32_v5 = vld [vmem:[%s4093_s0 + $0x28] sm:$0xff] }
  0x38   :  { %2770 = vmatpush3.bf16.msra.mxu0 %v3093_v6  ;;  %v2544_v6 = vcombine.low %v28_v4, %v32_v5 }
  0x39   :  { %2798 = vmatpush3.bf16.msra.mxu1 %v3094_v7  ;;  %2771 = vmatprep.subr.bf16.mxu0 %v3095_v8  ;;  %v2545_v7 = vcombine.high %v28_v4, %v32_v5  ;;  %v3135_v8 = vld [vmem:[%s4092_s3 + $0x178] sm:$0xff]   ;;  %v3175_v4 = vld [vmem:[%s4094_s5 + $0x68] sm:$0xff]  }
  0x3a   :  { %2799 = vmatprep.subr.bf16.mxu1 %v3096_v9  ;;  %v3136_v9 = vld [vmem:[%s4092_s3 + $0x1f8] sm:$0xff]   ;;  %v3176_v5 = vld [vmem:[%s4094_s5 + $0xe8] sm:$0xff]  }
  0x3c   :  { %2772 = vmatpush3.bf16.msra.mxu0 %v3097_v10  ;;  %v3137_v10 = vld [vmem:[%s4092_s3 + $0x138] sm:$0xff]  }
  0x3d   :  { %2800 = vmatpush3.bf16.msra.mxu1 %v3098_v11  ;;  %2773 = vmatprep.subr.bf16.mxu0 %v3099_v12  ;;  %v3138_v11 = vld [vmem:[%s4092_s3 + $0x1b8] sm:$0xff]   ;;  %v3139_v12 = vld [vmem:[%s4092_s3 + $0x170] sm:$0xff]  }
  0x3e   :  { %2801 = vmatprep.subr.bf16.mxu1 %v3100_v13  ;;  %v3140_v13 = vld [vmem:[%s4092_s3 + $0x1f0] sm:$0xff]  }
  0x40   :  { %2774 = vmatpush3.bf16.msra.mxu0 %v3101_v14  ;;  %v3141_v14 = vld [vmem:[%s4092_s3 + $0x130] sm:$0xff]  }
  0x41   :  { %2802 = vmatpush3.bf16.msra.mxu1 %v3102_v15  ;;  %2815 = vmatprep.subr.bf16.mxu0 %v3103_v24  ;;  %v3142_v15 = vld [vmem:[%s4092_s3 + $0x1b0] sm:$0xff]  }
  0x42   :  { %2843 = vmatprep.subr.bf16.mxu1 %v3104_v25  ;;  %v3145_v25 = vld [vmem:[%s4092_s3 + $0x128] sm:$0xff]  }
  0x43   :  { %910 = vmatmul.mubr.bf16.vlgmr.msra.gmra.mxu0 %v2466_v20  ;;  %v3143_v20 = vld [vmem:[%s4092_s3 + $0x168] sm:$0xff]  }
  0x44   :  { %959 = vmatmul.mubr.bf16.vlgmr.msra.gmra.mxu1 %v2468_v22  ;;  %2816 = vmatpush3.bf16.msra.mxu0 %v3105_v26  ;;  %v36_v22 = vld [vmem:[%s4093_s0 + $0x48] sm:$0xff] }
  0x45   :  { %2844 = vmatpush3.bf16.msra.mxu1 %v3106_v27  ;;  %2817 = vmatprep.subr.bf16.mxu0 %v3107_v28  ;;  %v2553_v24 = vcombine.high %v36_v22, %v40_v23  ;;  %v2552_v26 = vcombine.low %v36_v22, %v40_v23  ;;  %v3146_v27 = vld [vmem:[%s4092_s3 + $0x1a8] sm:$0xff]   ;;  %v3147_v28 = vld [vmem:[%s4092_s3 + $0x160] sm:$0xff]   ;;  %v3189_v22 = vld [vmem:[%s4094_s5 + $0x10] sm:$0xff]  }
  0x46   :  { %2845 = vmatprep.subr.bf16.mxu1 %v3108_v29  ;;  %917 = vmatprep.mubr.bf16.mxu0 %v2475_v34  ;;  %v3148_v29 = vld [vmem:[%s4092_s3 + $0x1e0] sm:$0xff]   ;;  %v3153_v34 = vld [vmem:[%s4092_s3 + $0x118] sm:$0xff]   ;;  %v3190_v23 = vld [vmem:[%s4094_s5 + $0x90] sm:$0xff]  }
  0x47   :  { %966 = vmatprep.mubr.bf16.mxu1 %v2477_v40  ;;  %v3159_v40 = vld [vmem:[%s4092_s3 + $0x148] sm:$0xff]  }
  0x48   :  { %2818 = vmatpush3.bf16.msra.mxu0 %v3109_v30  ;;  %v3149_v30 = vld [vmem:[%s4092_s3 + $0x120] sm:$0xff]  }
  0x49   :  { %2846 = vmatpush3.bf16.msra.mxu1 %v3110_v31  ;;  %2819 = vmatprep.subr.bf16.mxu0 %v3111_v36  ;;  %v3150_v31 = vld [vmem:[%s4092_s3 + $0x1a0] sm:$0xff]   ;;  %v3155_v36 = vld [vmem:[%s4092_s3 + $0x150] sm:$0xff]  }
  0x4a   :  { %2847 = vmatprep.subr.bf16.mxu1 %v3112_v37  ;;  %v3156_v37 = vld [vmem:[%s4092_s3 + $0x1d0] sm:$0xff]  }
  0x4b   :  { %918 = vmatmul.mubr.bf16.gmra.mxu0 %v2474_v35  ;;  %v3154_v35 = vld [vmem:[%s4092_s3 + $0x198] sm:$0xff]  }
  0x4c   :  { %2820 = vmatpush3.bf16.msra.mxu0 %v3113_v41  ;;  %967 = vmatmul.mubr.bf16.gmra.mxu1 %v2476_v42  ;;  %v3160_v41 = vld [vmem:[%s4092_s3 + $0x1c8] sm:$0xff]  }
  0x4d   :  { %2848 = vmatpush3.bf16.msra.mxu1 %v3114_v43  ;;  %2821 = vmatprep.subr.bf16.mxu0 %v3115_v44  ;;  %v3161_v42 = vld [vmem:[%s4092_s3 + $0x108] sm:$0xff]   ;;  %v3163_v44 = vld [vmem:[%s4092_s3 + $0x140] sm:$0xff]  }
  0x4e   :  { %2849 = vmatprep.subr.bf16.mxu1 %v3116_v45  ;;  %1471 = vmatprep.mubr.bf16.mxu0 %v2543_v3  ;;  %v3162_v43 = vld [vmem:[%s4092_s3 + $0x188] sm:$0xff]   ;;  %v3164_v45 = vld [vmem:[%s4092_s3 + $0x1c0] sm:$0xff]   ;;  %v2554_v3 = vcombine.low %v37_v0, %v41_v1 }
  0x4f   :  { %1520 = vmatprep.mubr.bf16.mxu1 %v2545_v7  ;;  %v42_v7 = vld [vmem:[%s4093_s0 + $0x78] sm:$0xff] }
  0x50   :  { %2822 = vmatpush3.bf16.msra.mxu0 %v3117_v46  ;;  %v3165_v46 = vld [vmem:[%s4092_s3 + $0x100] sm:$0xff]  }
  0x51   :  { %2850 = vmatpush3.bf16.msra.mxu1 %v3118_v47  ;;  %2823 = vmatprep.subr.bf16.mxu0 %v3119_v48  ;;  %v3166_v47 = vld [vmem:[%s4092_s3 + $0x180] sm:$0xff]   ;;  %v29_v48 = vld [vmem:[%s4093_s0 + $0x10] sm:$0xff] }
  0x52   :  { %2851 = vmatprep.subr.bf16.mxu1 %v3120_v49  ;;  %v33_v49 = vld [vmem:[%s4093_s0 + $0x30] sm:$0xff] }
  0x54   :  { %2824 = vmatpush3.bf16.msra.mxu0 %v3121_v50  ;;  %v30_v50 = vld [vmem:[%s4093_s0 + $0x18] sm:$0xff] }
  0x55   :  { %2852 = vmatpush3.bf16.msra.mxu1 %v3122_v51  ;;  %2825 = vmatprep.subr.bf16.mxu0 %v3123_v52  ;;  %v2546_v51 = vcombine.low %v29_v48, %v33_v49  ;;  %v2547_v52 = vcombine.high %v29_v48, %v33_v49  ;;  %v3207_v48 = vld [vmem:[%s4094_s5 + $0x168] sm:$0xff]  }
  0x56   :  { %2853 = vmatprep.subr.bf16.mxu1 %v3124_v53  ;;  %v34_v53 = vld [vmem:[%s4093_s0 + $0x38] sm:$0xff]  ;;  %v3208_v49 = vld [vmem:[%s4094_s5 + $0x1e8] sm:$0xff]  }
  0x58   :  { %2826 = vmatpush3.bf16.msra.mxu0 %v3125_v54  ;;  %v2548_v54 = vcombine.low %v30_v50, %v34_v53 }
  0x59   :  { %2854 = vmatpush3.bf16.msra.mxu1 %v3126_v55  ;;  %2827 = vmatprep.subr.bf16.mxu0 %v3127_v56  ;;  %v2549_v55 = vcombine.high %v30_v50, %v34_v53  ;;  %v3167_v56 = vld [vmem:[%s4094_s5 + $0x78] sm:$0xff]   ;;  %v3209_v50 = vld [vmem:[%s4094_s5 + $0x128] sm:$0xff]   ;;  %v3212_v53 = vld [vmem:[%s4094_s5 + $0x1e0] sm:$0xff]  }
  0x5a   :  { %2855 = vmatprep.subr.bf16.mxu1 %v3128_v57  ;;  %v3168_v57 = vld [vmem:[%s4094_s5 + $0xf8] sm:$0xff]  }
  0x5c   :  { %2828 = vmatpush3.bf16.msra.mxu0 %v3129_v58  ;;  %v3169_v58 = vld [vmem:[%s4094_s5 + $0x38] sm:$0xff]  }
  0x5d   :  { %2856 = vmatpush3.bf16.msra.mxu1 %v3130_v59  ;;  %2829 = vmatprep.subr.bf16.mxu0 %v3131_v60  ;;  %v3170_v59 = vld [vmem:[%s4094_s5 + $0xb8] sm:$0xff]   ;;  %v3171_v60 = vld [vmem:[%s4094_s5 + $0x70] sm:$0xff]  }
  0x5e   :  { %2857 = vmatprep.subr.bf16.mxu1 %v3132_v61  ;;  %v3172_v61 = vld [vmem:[%s4094_s5 + $0xf0] sm:$0xff]  }
  0x60   :  { %2830 = vmatpush3.bf16.msra.mxu0 %v3133_v62  ;;  %v3173_v62 = vld [vmem:[%s4094_s5 + $0x30] sm:$0xff]  }
  0x61   :  { %2858 = vmatpush3.bf16.msra.mxu1 %v3134_v63  ;;  %2871 = vmatprep.subr.bf16.mxu0 %v3135_v8  ;;  %v3174_v63 = vld [vmem:[%s4094_s5 + $0xb0] sm:$0xff]  }
  0x62   :  { %2899 = vmatprep.subr.bf16.mxu1 %v3136_v9  ;;  %v3177_v9 = vld [vmem:[%s4094_s5 + $0x28] sm:$0xff]  }
  0x63   :  { %1472 = vmatmul.mubr.bf16.vlgmr.msra.gmra.mxu0 %v2542_v2  ;;  %v2555_v2 = vcombine.high %v37_v0, %v41_v1  ;;  %v3217_v1 = vld [vmem:[%s4094_s5 + $0x118] sm:$0xff]  }
  0x64   :  { %1521 = vmatmul.mubr.bf16.vlgmr.msra.gmra.mxu1 %v2544_v6  ;;  %2872 = vmatpush3.bf16.msra.mxu0 %v3137_v10  ;;  %v38_v6 = vld [vmem:[%s4093_s0 + $0x58] sm:$0xff] }
  0x65   :  { %2900 = vmatpush3.bf16.msra.mxu1 %v3138_v11  ;;  %2873 = vmatprep.subr.bf16.mxu0 %v3139_v12  ;;  %v2557_v8 = vcombine.high %v38_v6, %v42_v7  ;;  %v2556_v10 = vcombine.low %v38_v6, %v42_v7  ;;  %v3178_v11 = vld [vmem:[%s4094_s5 + $0xa8] sm:$0xff]   ;;  %v3179_v12 = vld [vmem:[%s4094_s5 + $0x60] sm:$0xff]   ;;  %v3221_v6 = vld [vmem:[%s4094_s5 + $0x110] sm:$0xff]  }
  0x66   :  { %2901 = vmatprep.subr.bf16.mxu1 %v3140_v13  ;;  %1479 = vmatprep.mubr.bf16.mxu0 %v2551_v18  ;;  %v3180_v13 = vld [vmem:[%s4094_s5 + $0xe0] sm:$0xff]   ;;  %v3185_v18 = vld [vmem:[%s4094_s5 + $0x18] sm:$0xff]   ;;  %v3222_v7 = vld [vmem:[%s4094_s5 + $0x190] sm:$0xff]  }
  0x67   :  { %1528 = vmatprep.mubr.bf16.mxu1 %v2553_v24  ;;  %v3191_v24 = vld [vmem:[%s4094_s5 + $0x48] sm:$0xff]  }
  0x68   :  { %2874 = vmatpush3.bf16.msra.mxu0 %v3141_v14  ;;  %v3181_v14 = vld [vmem:[%s4094_s5 + $0x20] sm:$0xff]  }
  0x69   :  { %2902 = vmatpush3.bf16.msra.mxu1 %v3142_v15  ;;  %2875 = vmatprep.subr.bf16.mxu0 %v3143_v20  ;;  %v3182_v15 = vld [vmem:[%s4094_s5 + $0xa0] sm:$0xff]   ;;  %v3187_v20 = vld [vmem:[%s4094_s5 + $0x50] sm:$0xff]  }
  0x6a   :  { %2903 = vmatprep.subr.bf16.mxu1 %v3144_v21  ;;  %v3188_v21 = vld [vmem:[%s4094_s5 + $0xd0] sm:$0xff]  }
  0x6b   :  { %1480 = vmatmul.mubr.bf16.gmra.mxu0 %v2550_v19  ;;  %v3186_v19 = vld [vmem:[%s4094_s5 + $0x98] sm:$0xff]  }
  0x6c   :  { %2876 = vmatpush3.bf16.msra.mxu0 %v3145_v25  ;;  %1529 = vmatmul.mubr.bf16.gmra.mxu1 %v2552_v26  ;;  %v3192_v25 = vld [vmem:[%s4094_s5 + $0xc8] sm:$0xff]  }
  0x6d   :  { %2904 = vmatpush3.bf16.msra.mxu1 %v3146_v27  ;;  %2877 = vmatprep.subr.bf16.mxu0 %v3147_v28  ;;  %v3193_v26 = vld [vmem:[%s4094_s5 + $0x8] sm:$0xff]   ;;  %v3195_v28 = vld [vmem:[%s4094_s5 + $0x40] sm:$0xff]  }
  0x6e   :  { %2905 = vmatprep.subr.bf16.mxu1 %v3148_v29  ;;  %1569 = vmatprep.mubr.bf16.mxu0 %v2547_v52  ;;  %v3194_v27 = vld [vmem:[%s4094_s5 + $0x88] sm:$0xff]   ;;  %v3196_v29 = vld [vmem:[%s4094_s5 + $0xc0] sm:$0xff]  }
  0x6f   :  { %1618 = vmatprep.mubr.bf16.mxu1 %v2549_v55  ;;  %v3211_v52 = vld [vmem:[%s4094_s5 + $0x160] sm:$0xff]  }
  0x70   :  { %2878 = vmatpush3.bf16.msra.mxu0 %v3149_v30  ;;  %v3197_v30 = vld [vmem:[%s4094_s5] sm:$0xff]  }
  0x71   :  { %2906 = vmatpush3.bf16.msra.mxu1 %v3150_v31  ;;  %2879 = vmatprep.subr.bf16.mxu0 %v3151_v32  ;;  %v3198_v31 = vld [vmem:[%s4094_s5 + $0x80] sm:$0xff]  }
  0x72   :  { %2907 = vmatprep.subr.bf16.mxu1 %v3152_v33  ;;  %v1635_v32 = vld [vmem:[%s4095_s2] sm:$0xff] }
  0x73   :  { %v1639_v33 = vld [vmem:[%s4095_s2 + $0x20] sm:$0xff] }
  0x74   :  { %2880 = vmatpush3.bf16.msra.mxu0 %v3153_v34  ;;  %v1636_v34 = vld [vmem:[%s4095_s2 + $0x8] sm:$0xff]  ;;  %v3214_v55 = vld [vmem:[%s4094_s5 + $0x1a0] sm:$0xff]  }
  0x75   :  { %2908 = vmatpush3.bf16.msra.mxu1 %v3154_v35  ;;  %2881 = vmatprep.subr.bf16.mxu0 %v3155_v36  ;;  %v1640_v35 = vld [vmem:[%s4095_s2 + $0x28] sm:$0xff]  ;;  %v2622_v36 = vcombine.low %v1635_v32, %v1639_v33 }
  0x76   :  { %2909 = vmatprep.subr.bf16.mxu1 %v3156_v37  ;;  %v2623_v37 = vcombine.high %v1635_v32, %v1639_v33 }
  0x78   :  { %2882 = vmatpush3.bf16.msra.mxu0 %v3157_v38  ;;  %v2624_v38 = vcombine.low %v1636_v34, %v1640_v35 }
  0x79   :  { %2910 = vmatpush3.bf16.msra.mxu1 %v3158_v39  ;;  %2883 = vmatprep.subr.bf16.mxu0 %v3159_v40  ;;  %v2625_v39 = vcombine.high %v1636_v34, %v1640_v35  ;;  %v3199_v40 = vld [vmem:[%s4094_s5 + $0x178] sm:$0xff]  }
  0x7a   :  { %2911 = vmatprep.subr.bf16.mxu1 %v3160_v41  ;;  %v3200_v41 = vld [vmem:[%s4094_s5 + $0x1f8] sm:$0xff]  }
  0x7c   :  { %2884 = vmatpush3.bf16.msra.mxu0 %v3161_v42  ;;  %v3201_v42 = vld [vmem:[%s4094_s5 + $0x138] sm:$0xff]  }
  0x7d   :  { %2912 = vmatpush3.bf16.msra.mxu1 %v3162_v43  ;;  %2885 = vmatprep.subr.bf16.mxu0 %v3163_v44  ;;  %v3202_v43 = vld [vmem:[%s4094_s5 + $0x1b8] sm:$0xff]   ;;  %v3203_v44 = vld [vmem:[%s4094_s5 + $0x170] sm:$0xff]  }
  0x7e   :  { %2913 = vmatprep.subr.bf16.mxu1 %v3164_v45  ;;  %v3204_v45 = vld [vmem:[%s4094_s5 + $0x1f0] sm:$0xff]  }
  0x80   :  { %2886 = vmatpush3.bf16.msra.mxu0 %v3165_v46  ;;  %v3205_v46 = vld [vmem:[%s4094_s5 + $0x130] sm:$0xff]  }
  0x81   :  { %2914 = vmatpush3.bf16.msra.mxu1 %v3166_v47  ;;  %2927 = vmatprep.subr.bf16.mxu0 %v3167_v56  ;;  %v3206_v47 = vld [vmem:[%s4094_s5 + $0x1b0] sm:$0xff]   ;;  %v3215_v56 = vld [vmem:[%s4094_s5 + $0x158] sm:$0xff]  }
  0x82   :  { %2955 = vmatprep.subr.bf16.mxu1 %v3168_v57  ;;  %v3216_v57 = vld [vmem:[%s4094_s5 + $0x1d8] sm:$0xff]  }
  0x83   :  { %1570 = vmatmul.mubr.bf16.vlgmr.msra.gmra.mxu0 %v2546_v51  ;;  %v3210_v51 = vld [vmem:[%s4094_s5 + $0x1a8] sm:$0xff]  }
  0x84   :  { %1619 = vmatmul.mubr.bf16.vlgmr.msra.gmra.mxu1 %v2548_v54  ;;  %2928 = vmatpush3.bf16.msra.mxu0 %v3169_v58  ;;  %v3213_v54 = vld [vmem:[%s4094_s5 + $0x120] sm:$0xff]  }
  0x85   :  { %2956 = vmatpush3.bf16.msra.mxu1 %v3170_v59  ;;  %2929 = vmatprep.subr.bf16.mxu0 %v3171_v60  ;;  %v1643_v58 = vld [vmem:[%s4095_s2 + $0x40] sm:$0xff]  ;;  %v1644_v60 = vld [vmem:[%s4095_s2 + $0x48] sm:$0xff] }
  0x86   :  { %2957 = vmatprep.subr.bf16.mxu1 %v3172_v61  ;;  %1577 = vmatprep.mubr.bf16.mxu0 %v2555_v2  ;;  %v1647_v59 = vld [vmem:[%s4095_s2 + $0x60] sm:$0xff] }
  0x87   :  { %1626 = vmatprep.mubr.bf16.mxu1 %v2557_v8  ;;  %v2631_v61 = vcombine.high %v1643_v58, %v1647_v59  ;;  %v3223_v8 = vld [vmem:[%s4094_s5 + $0x148] sm:$0xff]  }
  0x88   :  { %2930 = vmatpush3.bf16.msra.mxu0 %v3173_v62  ;;  %v1648_v62 = vld [vmem:[%s4095_s2 + $0x68] sm:$0xff] }
  0x89   :  { %2958 = vmatpush3.bf16.msra.mxu1 %v3174_v63  ;;  %2931 = vmatprep.subr.bf16.mxu0 %v3175_v4  ;;  %v2630_v63 = vcombine.low %v1643_v58, %v1647_v59  ;;  %v2633_v0 = vcombine.high %v1644_v60, %v1648_v62  ;;  %v2632_v2 = vcombine.low %v1644_v60, %v1648_v62  ;;  %v3219_v4 = vld [vmem:[%s4094_s5 + $0x150] sm:$0xff]  }
  0x8a   :  { %2959 = vmatprep.subr.bf16.mxu1 %v3176_v5  ;;  %v3220_v5 = vld [vmem:[%s4094_s5 + $0x1d0] sm:$0xff]  }
  0x8b   :  { %1578 = vmatmul.mubr.bf16.gmra.mxu0 %v2554_v3  ;;  %v3218_v3 = vld [vmem:[%s4094_s5 + $0x198] sm:$0xff]  }
  0x8c   :  { %2932 = vmatpush3.bf16.msra.mxu0 %v3177_v9  ;;  %1627 = vmatmul.mubr.bf16.gmra.mxu1 %v2556_v10  ;;  %v3224_v9 = vld [vmem:[%s4094_s5 + $0x1c8] sm:$0xff]  }
  0x8d   :  { %2960 = vmatpush3.bf16.msra.mxu1 %v3178_v11  ;;  %2933 = vmatprep.subr.bf16.mxu0 %v3179_v12  ;;  %v3225_v10 = vld [vmem:[%s4094_s5 + $0x108] sm:$0xff]   ;;  %v3227_v12 = vld [vmem:[%s4094_s5 + $0x140] sm:$0xff]  }
  0x8e   :  { %2961 = vmatprep.subr.bf16.mxu1 %v3180_v13  ;;  %2275 = vmatprep.mubr.bf16.mxu0 %v2623_v37  ;;  %v3226_v11 = vld [vmem:[%s4094_s5 + $0x188] sm:$0xff]   ;;  %v3228_v13 = vld [vmem:[%s4094_s5 + $0x1c0] sm:$0xff]  }
  0x8f   :  { %2324 = vmatprep.mubr.bf16.mxu1 %v2625_v39 }
  0x90   :  { %2934 = vmatpush3.bf16.msra.mxu0 %v3181_v14  ;;  %v3229_v14 = vld [vmem:[%s4094_s5 + $0x100] sm:$0xff]  }
  0x91   :  { %2962 = vmatpush3.bf16.msra.mxu1 %v3182_v15  ;;  %2935 = vmatprep.subr.bf16.mxu0 %v3183_v16  ;;  %v3230_v15 = vld [vmem:[%s4094_s5 + $0x180] sm:$0xff]   ;;  %v1637_v16 = vld [vmem:[%s4095_s2 + $0x10] sm:$0xff] }
  0x92   :  { %2963 = vmatprep.subr.bf16.mxu1 %v3184_v17  ;;  %v1641_v17 = vld [vmem:[%s4095_s2 + $0x30] sm:$0xff] }
  0x94   :  { %2936 = vmatpush3.bf16.msra.mxu0 %v3185_v18  ;;  %v2626_v18 = vcombine.low %v1637_v16, %v1641_v17 }
  0x95   :  { %2964 = vmatpush3.bf16.msra.mxu1 %v3186_v19  ;;  %2937 = vmatprep.subr.bf16.mxu0 %v3187_v20  ;;  %v2627_v19 = vcombine.high %v1637_v16, %v1641_v17  ;;  %v1638_v20 = vld [vmem:[%s4095_s2 + $0x18] sm:$0xff] }
  0x96   :  { %2965 = vmatprep.subr.bf16.mxu1 %v3188_v21  ;;  %v1642_v21 = vld [vmem:[%s4095_s2 + $0x38] sm:$0xff] }
  0x98   :  { %2938 = vmatpush3.bf16.msra.mxu0 %v3189_v22  ;;  %v1645_v22 = vld [vmem:[%s4095_s2 + $0x50] sm:$0xff] }
  0x99   :  { %2966 = vmatpush3.bf16.msra.mxu1 %v3190_v23  ;;  %2939 = vmatprep.subr.bf16.mxu0 %v3191_v24  ;;  %v2628_v23 = vcombine.low %v1638_v20, %v1642_v21  ;;  %v2629_v24 = vcombine.high %v1638_v20, %v1642_v21 }
  0x9a   :  { %2967 = vmatprep.subr.bf16.mxu1 %v3192_v25  ;;  %v1649_v25 = vld [vmem:[%s4095_s2 + $0x70] sm:$0xff] }
  0x9c   :  { %2940 = vmatpush3.bf16.msra.mxu0 %v3193_v26  ;;  %v1646_v26 = vld [vmem:[%s4095_s2 + $0x58] sm:$0xff] }
  0x9d   :  { %2968 = vmatpush3.bf16.msra.mxu1 %v3194_v27  ;;  %2941 = vmatprep.subr.bf16.mxu0 %v3195_v28  ;;  %v1650_v27 = vld [vmem:[%s4095_s2 + $0x78] sm:$0xff]  ;;  %v2635_v28 = vcombine.high %v1645_v22, %v1649_v25 }
  0x9e   :  { %2969 = vmatprep.subr.bf16.mxu1 %v3196_v29  ;;  %v2637_v29 = vcombine.high %v1646_v26, %v1650_v27 }
  0xa0   :  { %2942 = vmatpush3.bf16.msra.mxu0 %v3197_v30  ;;  %v2634_v30 = vcombine.low %v1645_v22, %v1649_v25 }
  0xa1   :  { %2970 = vmatpush3.bf16.msra.mxu1 %v3198_v31  ;;  %2983 = vmatprep.subr.bf16.mxu0 %v3199_v40  ;;  %v2636_v31 = vcombine.low %v1646_v26, %v1650_v27 }
  0xa2   :  { %3011 = vmatprep.subr.bf16.mxu1 %v3200_v41 }
  0xa3   :  { %2276 = vmatmul.mubr.bf16.vlgmr.msra.gmra.mxu0 %v2622_v36 }
  0xa4   :  { %2325 = vmatmul.mubr.bf16.vlgmr.msra.gmra.mxu1 %v2624_v38  ;;  %2984 = vmatpush3.bf16.msra.mxu0 %v3201_v42 }
  0xa5   :  { %3012 = vmatpush3.bf16.msra.mxu1 %v3202_v43  ;;  %2985 = vmatprep.subr.bf16.mxu0 %v3203_v44 }
  0xa6   :  { %3013 = vmatprep.subr.bf16.mxu1 %v3204_v45  ;;  %2283 = vmatprep.mubr.bf16.mxu0 %v2631_v61 }
  0xa7   :  { %2332 = vmatprep.mubr.bf16.mxu1 %v2633_v0 }
  0xa8   :  { %2986 = vmatpush3.bf16.msra.mxu0 %v3205_v46 }
  0xa9   :  { %3014 = vmatpush3.bf16.msra.mxu1 %v3206_v47  ;;  %2987 = vmatprep.subr.bf16.mxu0 %v3207_v48 }
  0xaa   :  { %3015 = vmatprep.subr.bf16.mxu1 %v3208_v49 }
  0xab   :  { %2284 = vmatmul.mubr.bf16.gmra.mxu0 %v2630_v63 }
  0xac   :  { %2988 = vmatpush3.bf16.msra.mxu0 %v3209_v50  ;;  %2333 = vmatmul.mubr.bf16.gmra.mxu1 %v2632_v2 }
  0xad   :  { %3016 = vmatpush3.bf16.msra.mxu1 %v3210_v51  ;;  %2989 = vmatprep.subr.bf16.mxu0 %v3211_v52 }
  0xae   :  { %3017 = vmatprep.subr.bf16.mxu1 %v3212_v53  ;;  %2373 = vmatprep.mubr.bf16.mxu0 %v2627_v19 }
  0xaf   :  { %2422 = vmatprep.mubr.bf16.mxu1 %v2629_v24 }
  0xb0   :  { %2990 = vmatpush3.bf16.msra.mxu0 %v3213_v54 }
  0xb1   :  { %3018 = vmatpush3.bf16.msra.mxu1 %v3214_v55  ;;  %2991 = vmatprep.subr.bf16.mxu0 %v3215_v56 }
  0xb2   :  { %3019 = vmatprep.subr.bf16.mxu1 %v3216_v57 }
  0xb4   :  { %2992 = vmatpush3.bf16.msra.mxu0 %v3217_v1 }
  0xb5   :  { %3020 = vmatpush3.bf16.msra.mxu1 %v3218_v3  ;;  %2993 = vmatprep.subr.bf16.mxu0 %v3219_v4 }
  0xb6   :  { %3021 = vmatprep.subr.bf16.mxu1 %v3220_v5 }
  0xb8   :  { %2994 = vmatpush3.bf16.msra.mxu0 %v3221_v6 }
  0xb9   :  { %3022 = vmatpush3.bf16.msra.mxu1 %v3222_v7  ;;  %2995 = vmatprep.subr.bf16.mxu0 %v3223_v8 }
  0xba   :  { %3023 = vmatprep.subr.bf16.mxu1 %v3224_v9 }
  0xbc   :  { %2996 = vmatpush3.bf16.msra.mxu0 %v3225_v10 }
  0xbd   :  { %3024 = vmatpush3.bf16.msra.mxu1 %v3226_v11  ;;  %2997 = vmatprep.subr.bf16.mxu0 %v3227_v12 }
  0xbe   :  { %3025 = vmatprep.subr.bf16.mxu1 %v3228_v13 }
  0xc0   :  { %2998 = vmatpush3.bf16.msra.mxu0 %v3229_v14 }
  0xc1   :  { %3026 = vmatpush3.bf16.msra.mxu1 %v3230_v15 }
  0xc3   :  { %2374 = vmatmul.mubr.bf16.vlgmr.msra.gmra.mxu0 %v2626_v18 }
  0xc4   :  { %2423 = vmatmul.mubr.bf16.vlgmr.msra.gmra.mxu1 %v2628_v23  ;;  %2381 = vmatprep.mubr.bf16.mxu0 %v2635_v28 }
  0xc5   :  { %2430 = vmatprep.mubr.bf16.mxu1 %v2637_v29 }
  0xcb   :  { %2382 = vmatmul.mubr.bf16.gmra.mxu0 %v2634_v30 }
  0xcc   :  { %2431 = vmatmul.mubr.bf16.gmra.mxu1 %v2636_v31 }
  0xe3   :  { %v2719_v32 = vpop.f32.mrf.mxu0 }
  0xe4   :  { %v2747_v33 = vpop.f32.mrf.mxu1 }
  0xe5   :  { %v2720_v34 = vpop.f32.mrf.mxu0 }
  0xe6   :  { %v2721_v35 = vadd.f32 %v2720_v34, %v2719_v32  ;;  %v2748_v36 = vpop.f32.mrf.mxu1 }
  0xe7   :  { %v2749_v37 = vadd.f32 %v2748_v36, %v2747_v33  ;;  %v2722_v38 = vpop.f32.mrf.mxu0 }
  0xe8   :  { %v2750_v39 = vpop.f32.mrf.mxu1 }
  0xe9   :  { %v3991_v40 = vadd.f32 %v2749_v37, %v2721_v35  ;;  %v2723_v41 = vpop.f32.mrf.mxu0 }
  0xea   :  { %v2724_v42 = vadd.f32 %v2723_v41, %v2722_v38  ;;  %v2751_v43 = vpop.f32.mrf.mxu1 }
  0xeb   :  { %v2752_v44 = vadd.f32 %v2751_v43, %v2750_v39  ;;  %v2725_v46 = vpop.f32.mrf.mxu0 }
  0xec   :  { %v2753_v47 = vpop.f32.mrf.mxu1 }
  0xed   :  { %v3993_v45 = vadd.f32 %v2752_v44, %v2724_v42  ;;  %v2726_v48 = vpop.f32.mrf.mxu0 }
  0xee   :  { %v2727_v49 = vadd.f32 %v2726_v48, %v2725_v46  ;;  %v2754_v50 = vpop.f32.mrf.mxu1 }
  0xef   :  { %v2755_v51 = vadd.f32 %v2754_v50, %v2753_v47  ;;  %v2728_v52 = vpop.f32.mrf.mxu0 }
  0xf0   :  { %v2756_v53 = vpop.f32.mrf.mxu1 }
  0xf1   :  { %v3995_v54 = vadd.f32 %v2755_v51, %v2727_v49  ;;  %v2729_v55 = vpop.f32.mrf.mxu0 }
  0xf2   :  { %v2730_v56 = vadd.f32 %v2729_v55, %v2728_v52  ;;  %v2757_v57 = vpop.f32.mrf.mxu1 }
  0xf3   :  { %v2758_v58 = vadd.f32 %v2757_v57, %v2756_v53 }
  0xf5   :  { %v3997_v59 = vadd.f32 %v2758_v58, %v2730_v56 }
 0x103   :  { %v2775_v60 = vpop.f32.mrf.mxu0 }
 0x104   :  { %v2803_v62 = vpop.f32.mrf.mxu1 }
 0x105   :  { %v2776_v61 = vpop.f32.mrf.mxu0 }
 0x106   :  { %v2804_v0 = vpop.f32.mrf.mxu1  ;;  %v2777_v55 = vadd.f32 %v2776_v61, %v2775_v60 }
 0x107   :  { %v2778_v63 = vpop.f32.mrf.mxu0 }
 0x108   :  { %v2806_v2 = vpop.f32.mrf.mxu1 }
 0x109   :  { %v2779_v1 = vpop.f32.mrf.mxu0 }
 0x10a   :  { %v2807_v4 = vpop.f32.mrf.mxu1  ;;  %v2780_v57 = vadd.f32 %v2779_v1, %v2778_v63 }
 0x10b   :  { %v2781_v3 = vpop.f32.mrf.mxu0 }
 0x10c   :  { %v3999_v6 = vpop.f32.mrf.mxu1 }
 0x10d   :  { %v2782_v5 = vpop.f32.mrf.mxu0 }
 0x10e   :  { %v2810_v8 = vpop.f32.mrf.mxu1 }
 0x10f   :  { %v4001_v7 = vpop.f32.mrf.mxu0  ;;  %v2811_v61 = vadd.f32 %v2810_v8, %v3999_v6 }
 0x110   :  { %v4005_v10 = vpop.f32.mrf.mxu1 }
 0x111   :  { %v4003_v9 = vpop.f32.mrf.mxu0 }
 0x112   :  { %v4007_v12 = vpop.f32.mrf.mxu1 }
 0x113   :  { %v2814_v6 = vadd.f32 %v4007_v12, %v4005_v10 }
 0x123   :  { %v2831_v11 = vpop.f32.mrf.mxu0 }
 0x124   :  { %v2859_v14 = vpop.f32.mrf.mxu1 }
 0x125   :  { %v2832_v13 = vpop.f32.mrf.mxu0 }
 0x126   :  { %v2860_v16 = vpop.f32.mrf.mxu1 }
 0x127   :  { %v2834_v15 = vpop.f32.mrf.mxu0 }
 0x128   :  { %v2862_v18 = vpop.f32.mrf.mxu1 }
 0x129   :  { %v2835_v17 = vpop.f32.mrf.mxu0 }
 0x12a   :  { %v2863_v20 = vpop.f32.mrf.mxu1 }
 0x12b   :  { %v2837_v19 = vpop.f32.mrf.mxu0 }
 0x12c   :  { %v4009_v21 = vpop.f32.mrf.mxu1 }
 0x12d   :  { %v2838_v22 = vpop.f32.mrf.mxu0 }
 0x12e   :  { %v4011_v23 = vpop.f32.mrf.mxu1 }
 0x12f   :  { %v4013_v24 = vpop.f32.mrf.mxu0 }
 0x130   :  { %v4015_v25 = vpop.f32.mrf.mxu1 }
 0x131   :  { %4098 = vst [vmem:[#allocation2_spill] sm:$0xff] %v4015_v25  ;;  %v4017_v26 = vpop.f32.mrf.mxu0  ;;  %v2808_v25 = vadd.f32 %v2807_v4, %v2806_v2 }
 0x132   :  { %4099 = vst [vmem:[#allocation3_spill] sm:$0xff] %v4017_v26  ;;  %v4019_v28 = vpop.f32.mrf.mxu1 }
 0x133   :  { %4100 = vst [vmem:[#allocation4_spill] sm:$0xff] %v4019_v28  ;;  %v2833_v28 = vadd.f32 %v2832_v13, %v2831_v11 }
 0x143   :  { %v2887_v27 = vpop.f32.mrf.mxu0 }
 0x144   :  { %v4021_v29 = vpop.f32.mrf.mxu1 }
 0x145   :  { %v2888_v30 = vpop.f32.mrf.mxu0 }
 0x146   :  { %v2916_v31 = vpop.f32.mrf.mxu1  ;;  %v2889_v1 = vadd.f32 %v2888_v30, %v2887_v27 }
 0x147   :  { %v2890_v32 = vpop.f32.mrf.mxu0 }
 0x148   :  { %v4023_v33 = vpop.f32.mrf.mxu1 }
 0x149   :  { %4101 = vst [vmem:[#allocation5_spill] sm:$0xff] %v4023_v33  ;;  %v2891_v34 = vpop.f32.mrf.mxu0 }
 0x14a   :  { %v4025_v35 = vpop.f32.mrf.mxu1 }
 0x14b   :  { %4102 = vst [vmem:[#allocation6_spill] sm:$0xff] %v4025_v35  ;;  %v4027_v36 = vpop.f32.mrf.mxu0  ;;  %v2836_v35 = vadd.f32 %v2835_v17, %v2834_v15  ;;  %v2892_v17 = vadd.f32 %v2891_v34, %v2890_v32 }
 0x14c   :  { %4103 = vst [vmem:[#allocation7_spill] sm:$0xff] %v4027_v36  ;;  %v4029_v37 = vpop.f32.mrf.mxu1 }
 0x14d   :  { %4104 = vst [vmem:[#allocation8_spill] sm:$0xff] %v4029_v37  ;;  %v4031_v38 = vpop.f32.mrf.mxu0 }
 0x14e   :  { %4105 = vst [vmem:[#allocation9_spill] sm:$0xff] %v4031_v38  ;;  %v4033_v39 = vpop.f32.mrf.mxu1 }
 0x14f   :  { %4106 = vst [vmem:[#allocation10_spill] sm:$0xff] %v4033_v39  ;;  %v4035_v41 = vpop.f32.mrf.mxu0  ;;  %v2805_v39 = vadd.f32 %v2804_v0, %v2803_v62  ;;  %v2861_v62 = vadd.f32 %v2860_v16, %v2859_v14  ;;  %v2839_v0 = vadd.f32 %v2838_v22, %v2837_v19 }
 0x150   :  { %4107 = vst [vmem:[#allocation11_spill] sm:$0xff] %v4035_v41  ;;  %v4037_v42 = vpop.f32.mrf.mxu1  ;;  %v912_v41 = vadd.f32 %v2777_v55, %v3991_v40  ;;  %v4117_v55 = vld [vmem:[#allocation4_spill] sm:$0xff] }
 0x151   :  { %4108 = vst [vmem:[#allocation12_spill] sm:$0xff] %v4037_v42  ;;  %v4039_v43 = vpop.f32.mrf.mxu0 }
 0x152   :  { %4109 = vst [vmem:[#allocation13_spill] sm:$0xff] %v4039_v43  ;;  %v4041_v44 = vpop.f32.mrf.mxu1  ;;  %v915_v43 = vadd.f32 %v2780_v57, %v3993_v45  ;;  %v961_v33 = vadd.f32 %v2805_v39, %v912_v41  ;;  %v2786_v45 = vadd.f32 %v4003_v9, %v4001_v7  ;;  %v2867_v9 = vadd.f32 %v4011_v23, %v4009_v21 }
 0x153   :  { %4110 = vst [vmem:[#allocation14_spill] sm:$0xff] %v4041_v44  ;;  %v2783_v44 = vadd.f32 %v2782_v5, %v2781_v3  ;;  %v2864_v3 = vadd.f32 %v2863_v20, %v2862_v18  ;;  %v2917_v18 = vadd.f32 %v2916_v31, %v4021_v29  ;;  %v4112_v34 = vld [vmem:[#allocation7_spill] sm:$0xff]  ;;  %v4114_v29 = vld [vmem:[#allocation5_spill] sm:$0xff]  ;;  %v4115_v31 = vld [vmem:[#allocation6_spill] sm:$0xff] }
 0x154   :  { %v964_v36 = vadd.f32 %v2808_v25, %v915_v43  ;;  %v1474_v40 = vadd.f32 %v2833_v28, %v961_v33  ;;  %v2920_v43 = vadd.f32 %v4115_v31, %v4114_v29 }
 0x155   :  { %v920_v60 = vadd.f32 %v2783_v44, %v3995_v54  ;;  %v923_v54 = vadd.f32 %v2786_v45, %v3997_v59  ;;  %v4111_v59 = vld [vmem:[#allocation3_spill] sm:$0xff] }
 0x156   :  { %v1477_v63 = vadd.f32 %v2836_v35, %v964_v36  ;;  %v1523_v15 = vadd.f32 %v2861_v62, %v1474_v40  ;;  %v2842_v32 = vadd.f32 %v4111_v59, %v4013_v24  ;;  %v4113_v35 = vld [vmem:[#allocation9_spill] sm:$0xff] }
 0x157   :  { %v969_v13 = vadd.f32 %v2811_v61, %v920_v60  ;;  %v972_v12 = vadd.f32 %v2814_v6, %v923_v54  ;;  %v2895_v36 = vadd.f32 %v4113_v35, %v4112_v34  ;;  %v2702_v61 = vld [vmem:[%s4096_s6] ss:$0 sm:$0xff] }
 0x158   :  { %v1526_v8 = vadd.f32 %v2864_v3, %v1477_v63  ;;  %v1572_v16 = vadd.f32 %v2889_v1, %v1523_v15  ;;  %v4119_v63 = vld [vmem:[#allocation10_spill] sm:$0xff]  ;;  %v4120_v1 = vld [vmem:[#allocation11_spill] sm:$0xff] }
 0x159   :  { %v1482_v7 = vadd.f32 %v2839_v0, %v969_v13  ;;  %v4121_v3 = vld [vmem:[#allocation13_spill] sm:$0xff] }
 0x15a   :  { %v1575_v33 = vadd.f32 %v2892_v17, %v1526_v8 }
 0x15b   :  { %v1531_v41 = vadd.f32 %v2867_v9, %v1482_v7 }
 0x15c   :  { %v1624_v60 = vadd.f32 %v2920_v43, %v1575_v33 }
 0x15d   :  { %v1580_v62 = vadd.f32 %v2895_v36, %v1531_v41 }
 0x163   :  { %v2943_v46 = vpop.f32.mrf.mxu0 }
 0x164   :  { %v2971_v47 = vpop.f32.mrf.mxu1 }
 0x165   :  { %v2944_v48 = vpop.f32.mrf.mxu0 }
 0x166   :  { %v2972_v49 = vpop.f32.mrf.mxu1  ;;  %v2945_v4 = vadd.f32 %v2944_v48, %v2943_v46  ;;  %v1621_v48 = vadd.f32 %v2917_v18, %v1572_v16 }
 0x167   :  { %v2946_v50 = vpop.f32.mrf.mxu0  ;;  %v2973_v5 = vadd.f32 %v2972_v49, %v2971_v47 }
 0x168   :  { %v2974_v51 = vpop.f32.mrf.mxu1 }
 0x169   :  { %v2947_v52 = vpop.f32.mrf.mxu0  ;;  %v2327_v20 = vadd.f32 %v2973_v5, %v2945_v4  ;;  %v2898_v4 = vadd.f32 %v4121_v3, %v4120_v1 }
 0x16a   :  { %v2975_v53 = vpop.f32.mrf.mxu1  ;;  %v2948_v22 = vadd.f32 %v2947_v52, %v2946_v50  ;;  %v1485_v52 = vadd.f32 %v2842_v32, %v972_v12 }
 0x16b   :  { %v2949_v56 = vpop.f32.mrf.mxu0  ;;  %v2976_v27 = vadd.f32 %v2975_v53, %v2974_v51  ;;  %v4116_v53 = vld [vmem:[#allocation2_spill] sm:$0xff] }
 0x16c   :  { %v2977_v58 = vpop.f32.mrf.mxu1  ;;  %v2870_v57 = vadd.f32 %v4117_v55, %v4116_v53 }
 0x16d   :  { %v2950_v42 = vpop.f32.mrf.mxu0  ;;  %v2330_v49 = vadd.f32 %v2976_v27, %v2948_v22 }
 0x16e   :  { %v2978_v37 = vpop.f32.mrf.mxu1  ;;  %v2951_v44 = vadd.f32 %v2950_v42, %v2949_v56 }
 0x16f   :  { %v4045_v38 = vpop.f32.mrf.mxu0  ;;  %v2979_v46 = vadd.f32 %v2978_v37, %v2977_v58  ;;  %v4118_v58 = vld [vmem:[#allocation8_spill] sm:$0xff] }
 0x170   :  { %v4047_v26 = vpop.f32.mrf.mxu1  ;;  %v2923_v0 = vadd.f32 %v4119_v63, %v4118_v58 }
 0x171   :  { %v2953_v2 = vpop.f32.mrf.mxu0  ;;  %v2335_v5 = vadd.f32 %v2979_v46, %v2951_v44 }
 0x172   :  { %v2981_v11 = vpop.f32.mrf.mxu1  ;;  %v2954_v13 = vadd.f32 %v2953_v2, %v4045_v38  ;;  %v4122_v38 = vld [vmem:[#allocation12_spill] sm:$0xff]  ;;  %v4123_v2 = vld [vmem:[#allocation14_spill] sm:$0xff] }
 0x173   :  { %v2982_v17 = vadd.f32 %v2981_v11, %v4047_v26  ;;  %v2926_v27 = vadd.f32 %v4123_v2, %v4122_v38 }
 0x175   :  { %v2338_v11 = vadd.f32 %v2982_v17, %v2954_v13 }
 0x183   :  { %v2999_v25 = vpop.f32.mrf.mxu0 }
 0x184   :  { %v3027_v14 = vpop.f32.mrf.mxu1 }
 0x185   :  { %v3000_v19 = vpop.f32.mrf.mxu0 }
 0x186   :  { %v3001_v28 = vadd.f32 %v3000_v19, %v2999_v25  ;;  %v3028_v30 = vpop.f32.mrf.mxu1 }
 0x187   :  { %v3002_v10 = vpop.f32.mrf.mxu0  ;;  %v3029_v21 = vadd.f32 %v3028_v30, %v3027_v14  ;;  %v1534_v14 = vadd.f32 %v2870_v57, %v1485_v52 }
 0x188   :  { %v2376_v39 = vadd.f32 %v3001_v28, %v2327_v20  ;;  %v3030_v23 = vpop.f32.mrf.mxu1  ;;  %v1629_v20 = vadd.f32 %v2923_v0, %v1580_v62 }
 0x189   :  { %v3003_v47 = vpop.f32.mrf.mxu0  ;;  %v1583_v22 = vadd.f32 %v2898_v4, %v1534_v14 }
 0x18a   :  { %v2425_v50 = vadd.f32 %v3029_v21, %v2376_v39  ;;  %v3004_v24 = vadd.f32 %v3003_v47, %v3002_v10  ;;  %v3031_v51 = vpop.f32.mrf.mxu1 }
 0x18b   :  { %v3005_v40 = vpop.f32.mrf.mxu0  ;;  %v3032_v37 = vadd.f32 %v3031_v51, %v3030_v23  ;;  %v1632_v34 = vadd.f32 %v2926_v27, %v1583_v22 }
 0x18c   :  { %v2439_v45 = vadd.f32 %v2425_v50, %v1621_v48  ;;  %v2379_v42 = vadd.f32 %v3004_v24, %v2330_v49  ;;  %v3033_v56 = vpop.f32.mrf.mxu1 }
 0x18d   :  { %v3006_v15 = vpop.f32.mrf.mxu0 }
 0x18e   :  { %v2450_v25 = vadd.f32 %v2702_v61, %v2439_v45  ;;  %v2428_v54 = vadd.f32 %v3032_v37, %v2379_v42  ;;  %v3007_v6 = vadd.f32 %v3006_v15, %v3005_v40  ;;  %v3034_v8 = vpop.f32.mrf.mxu1 }
 0x18f   :  { %v3008_v7 = vpop.f32.mrf.mxu0  ;;  %v3035_v18 = vadd.f32 %v3034_v8, %v3033_v56 }
 0x190   :  { %2454 = vst [vmem:[%s4097_s7] sm:$0xff] %v2450_v25  ;;  %v2440_v9 = vadd.f32 %v2428_v54, %v1624_v60  ;;  %v2384_v16 = vadd.f32 %v3007_v6, %v2335_v5  ;;  %v3036_v19 = vpop.f32.mrf.mxu1 }
 0x191   :  { %v3009_v26 = vpop.f32.mrf.mxu0 }
 0x192   :  { %v2451_v28 = vadd.f32 %v2702_v61, %v2440_v9  ;;  %v2433_v30 = vadd.f32 %v3035_v18, %v2384_v16  ;;  %v3010_v59 = vadd.f32 %v3009_v26, %v3008_v7  ;;  %v3037_v32 = vpop.f32.mrf.mxu1 }
 0x193   :  { %v3038_v12 = vadd.f32 %v3037_v32, %v3036_v19 }
 0x194   :  { %2455 = vst [vmem:[%s4097_s7 + $0x8] sm:$0xff] %v2451_v28  ;;  %v2441_v33 = vadd.f32 %v2433_v30, %v1629_v20  ;;  %v2387_v10 = vadd.f32 %v3010_v59, %v2338_v11 }
 0x196   :  { %v2452_v35 = vadd.f32 %v2702_v61, %v2441_v33  ;;  %v2436_v36 = vadd.f32 %v3038_v12, %v2387_v10 }
 0x198   :  { %2456 = vst [vmem:[%s4097_s7 + $0x10] sm:$0xff] %v2452_v35  ;;  %v2442_v39 = vadd.f32 %v2436_v36, %v1632_v34 }
 0x19a   :  { %v2453_v21 = vadd.f32 %v2702_v61, %v2442_v39 }
 0x19c   :  { %2457 = vst [vmem:[%s4097_s7 + $0x18] sm:$0xff] %v2453_v21 }

// kernel: mpd_block_forward.10
= control target key start
LH: loop header
LB: loop body
LE: loop exit
PB: predicated region body
PF: predicated region fallthrough
CT: control target
= control target key end

     0   :  { %16 = vsyncpa [#allocation3], 0  ;;  %s13343_s0 = inlined_call_operand.vmem [shape: bf16[16,512], index: 0, kind: input, shape index: {}, may-alias: {0,1,3,4}]   ;;  %s13344_s1 = inlined_call_operand.vmem [shape: bf16[16,512], index: 1, kind: input, shape index: {}, may-alias: {0,1,3,4}]   ;;  %s13345_s2 = inlined_call_operand.vmem [shape: bf16[16,512], index: 2, kind: input, shape index: {}]   ;;  %s13346_s3 = inlined_call_operand.vmem [shape: bf16[16,512], index: 3, kind: input, shape index: {}, may-alias: {0,1,3,4}]   ;;  %s13347_s4 = inlined_call_operand.vmem [shape: bf16[16,512], index: 4, kind: input, shape index: {}, may-alias: {0,1,3,4}]   ;;  %s13348_s5 = inlined_call_operand.vmem [shape: bf16[512,1024], index: 5, kind: input, shape index: {}]   ;;  %s13349_s6 = inlined_call_operand.vmem [shape: bf16[512,1024], index: 6, kind: input, shape index: {}]   ;;  %s13350_s7 = inlined_call_operand.hbm [shape: bf16[512,1024], index: 7, kind: input, shape index: {}]   ;;  %s13351_s8 = inlined_call_operand.hbm [shape: bf16[512,1024], index: 8, kind: input, shape index: {}]   ;;  %s13352_s9 = inlined_call_operand.hbm [shape: bf16[512,1024], index: 9, kind: input, shape index: {}]   ;;  %s13353_s10 = inlined_call_operand.vmem [shape: f32[1,1024], index: 10, kind: input, shape index: {}]   ;;  %s13354_s11 = inlined_call_operand.vmem [shape: bf16[16,1024], index: 11, kind: output, shape index: {}]  }
   0x1   :  { %17 = vsyncpa [#allocation5], 0  ;;  %s11250_s17 = smov [#allocation4]   ;;  %s11251_s19 = smov [#allocation2]  }
   0x2   :  { %s49_s18 = sshll.u32 %s11250_s17, 4  ;;  %s37_s20 = sshll.u32 %s11251_s19, 4  ;;  %s50_s18 = int_to_ptr.vmem [resolvable:$true] %s49_s18  ;;  %s38_s20 = int_to_ptr.vmem [resolvable:$true] %s37_s20 }
   0x3   :  { %s11194_s21 = scalar_lea.vmem %s50_s18, 32768  ;;  %p11199_p1 = scmp.lt.s32.totalorder %s50_s18, %s50_s18 }
   0x4   :  { %p11195_p0 = scmp.ne.s32.totalorder %s50_s18, %s11194_s21  ;;  %p11200_p2 = scmp.lt.s32.totalorder %s11194_s21, %s11194_s21 }
   0x6   :  { %p11201_p3 = por %p11200_p2, %p11199_p1 }
   0x8   :  { %p11202_p4 = pnand %p11201_p3, %p11195_p0 }
   0xa   :  { %11205 = shalt.err (!%p11202_p4)
}
   0xb   :  { %s11252_s22 = smov 512   ;;  %s11253_s23 = smov 32  }
   0xc   :  { %55 = dma.hbm_to_vmem [thread:$0]  %s13351_s8, 32768, %s50_s18, [#allocation5], %s11252_s22, %s11252_s22, %s11253_s23  }
   0xd   :  { %s11214_s26 = scalar_lea.vmem %s38_s20, 32768  ;;  %p11219_p6 = scmp.lt.s32.totalorder %s38_s20, %s38_s20 }
   0xe   :  { %p11215_p5 = scmp.ne.s32.totalorder %s38_s20, %s11214_s26  ;;  %p11220_p7 = scmp.lt.s32.totalorder %s11214_s26, %s11214_s26 }
  0x10   :  { %p11221_p8 = por %p11220_p7, %p11219_p6 }
  0x12   :  { %p11222_p9 = pnand %p11221_p8, %p11215_p5 }
  0x14   :  { %11225 = shalt.err (!%p11222_p9)
}
  0x15   :  { %43 = dma.hbm_to_vmem [thread:$0]  %s13350_s7, 32768, %s38_s20, [#allocation3], %s11252_s22, %s11252_s22, %s11253_s23  }
  0x16   :  { %s11254_s29 = smov [#allocation6]  }
  0x17   :  { %s61_s30 = sshll.u32 %s11254_s29, 4  ;;  %s62_s30 = int_to_ptr.vmem [resolvable:$true] %s61_s30 }
  0x18   :  { %s11234_s12 = scalar_lea.vmem %s62_s30, 32768  ;;  %p11239_p11 = scmp.lt.s32.totalorder %s62_s30, %s62_s30 }
  0x19   :  { %p11235_p10 = scmp.ne.s32.totalorder %s62_s30, %s11234_s12  ;;  %p11240_p12 = scmp.lt.s32.totalorder %s11234_s12, %s11234_s12 }
  0x1b   :  { %p11241_p13 = por %p11240_p12, %p11239_p11 }
  0x1d   :  { %p11242_p0 = pnand %p11241_p13, %p11235_p10 }
  0x1f   :  { %11245 = shalt.err (!%p11242_p0)
}
  0x20   :  { %67 = dma.hbm_to_vmem [thread:$0]  %s13352_s9, 32768, %s62_s30, [#allocation5], %s11252_s22, %s11252_s22, %s11253_s23  }
  0x21   :  { %11246 = dma.done.wait [#allocation3], 32768  }
  0x22   :  { %11247 = vsyncadd [#allocation3], 4294934528 }
  0x23   :  { %11248 = dma.done.wait [#allocation5], 65536  }
  0x24   :  { %11249 = vsyncadd [#allocation5], 4294901760  ;;  %v399_v0 = vld [vmem:[%s13349_s6 + $0x1c0] sm:$0xff]  ;;  %v11428_v59 = vld [vmem:[%s13344_s1 + $0xc] ss:$16 sps:$4 sm:$0xff]  }
  0x25   :  { %v403_v1 = vld [vmem:[%s13349_s6 + $0x1e0] sm:$0xff]  ;;  %1974 = vmatprep.mubr.bf16.mxu1 %v11428_v59 }
  0x26   :  { %v527_v2 = vld [vmem:[%s13349_s6 + $0x5c0] sm:$0xff]  ;;  %v9876_v3 = vcombine.high %v399_v0, %v403_v1  ;;  %v9875_v5 = vcombine.low %v399_v0, %v403_v1 }
  0x27   :  { %v531_v4 = vld [vmem:[%s13349_s6 + $0x5e0] sm:$0xff] }
  0x28   :  { %v391_v6 = vld [vmem:[%s13349_s6 + $0x180] sm:$0xff]  ;;  %v10004_v8 = vcombine.high %v527_v2, %v531_v4  ;;  %v10003_v9 = vcombine.low %v527_v2, %v531_v4  ;;  %1899 = vmatprep.subr.bf16.mxu0 %v9876_v3 }
  0x29   :  { %v395_v7 = vld [vmem:[%s13349_s6 + $0x1a0] sm:$0xff]  ;;  %1900 = vmatpush1.bf16.msra.mxu0 %v9875_v5 }
  0x2a   :  { %v9868_v10 = vcombine.high %v391_v6, %v395_v7  ;;  %v519_v11 = vld [vmem:[%s13349_s6 + $0x580] sm:$0xff]  ;;  %1942 = vmatprep.subr.bf16.mxu1 %v10004_v8  ;;  %v9867_v18 = vcombine.low %v391_v6, %v395_v7 }
  0x2b   :  { %v523_v12 = vld [vmem:[%s13349_s6 + $0x5a0] sm:$0xff]  ;;  %1943 = vmatpush1.bf16.msra.mxu1 %v10003_v9 }
  0x2c   :  { %v383_v13 = vld [vmem:[%s13349_s6 + $0x140] sm:$0xff]  ;;  %v9996_v14 = vcombine.high %v519_v11, %v523_v12  ;;  %1901 = vmatprep.subr.bf16.mxu0 %v9868_v10  ;;  %v9995_v19 = vcombine.low %v519_v11, %v523_v12 }
  0x2d   :  { %v387_v15 = vld [vmem:[%s13349_s6 + $0x160] sm:$0xff]  ;;  %1902 = vmatpush1.bf16.msra.mxu0 %v9867_v18 }
  0x2e   :  { %v511_v16 = vld [vmem:[%s13349_s6 + $0x540] sm:$0xff]  ;;  %v9860_v20 = vcombine.high %v383_v13, %v387_v15  ;;  %1944 = vmatprep.subr.bf16.mxu1 %v9996_v14  ;;  %v9859_v26 = vcombine.low %v383_v13, %v387_v15 }
  0x2f   :  { %v515_v17 = vld [vmem:[%s13349_s6 + $0x560] sm:$0xff]  ;;  %1945 = vmatpush1.bf16.msra.mxu1 %v9995_v19 }
  0x30   :  { %v9988_v21 = vcombine.high %v511_v16, %v515_v17  ;;  %v375_v22 = vld [vmem:[%s13349_s6 + $0x100] sm:$0xff]  ;;  %1903 = vmatprep.subr.bf16.mxu0 %v9860_v20  ;;  %v9987_v27 = vcombine.low %v511_v16, %v515_v17 }
  0x31   :  { %v379_v23 = vld [vmem:[%s13349_s6 + $0x120] sm:$0xff]  ;;  %1904 = vmatpush1.bf16.msra.mxu0 %v9859_v26 }
  0x32   :  { %v503_v24 = vld [vmem:[%s13349_s6 + $0x500] sm:$0xff]  ;;  %v9852_v28 = vcombine.high %v375_v22, %v379_v23  ;;  %1946 = vmatprep.subr.bf16.mxu1 %v9988_v21  ;;  %v9851_v34 = vcombine.low %v375_v22, %v379_v23 }
  0x33   :  { %v507_v25 = vld [vmem:[%s13349_s6 + $0x520] sm:$0xff]  ;;  %1947 = vmatpush1.bf16.msra.mxu1 %v9987_v27 }
  0x34   :  { %v9980_v29 = vcombine.high %v503_v24, %v507_v25  ;;  %v367_v30 = vld [vmem:[%s13349_s6 + $0xc0] sm:$0xff]  ;;  %1905 = vmatprep.subr.bf16.mxu0 %v9852_v28  ;;  %v9979_v35 = vcombine.low %v503_v24, %v507_v25 }
  0x35   :  { %v371_v31 = vld [vmem:[%s13349_s6 + $0xe0] sm:$0xff]  ;;  %1906 = vmatpush1.bf16.msra.mxu0 %v9851_v34 }
  0x36   :  { %v495_v32 = vld [vmem:[%s13349_s6 + $0x4c0] sm:$0xff]  ;;  %v9844_v36 = vcombine.high %v367_v30, %v371_v31  ;;  %1948 = vmatprep.subr.bf16.mxu1 %v9980_v29  ;;  %v9843_v42 = vcombine.low %v367_v30, %v371_v31 }
  0x37   :  { %v499_v33 = vld [vmem:[%s13349_s6 + $0x4e0] sm:$0xff]  ;;  %1949 = vmatpush1.bf16.msra.mxu1 %v9979_v35 }
  0x38   :  { %v9972_v37 = vcombine.high %v495_v32, %v499_v33  ;;  %v359_v38 = vld [vmem:[%s13349_s6 + $0x80] sm:$0xff]  ;;  %1907 = vmatprep.subr.bf16.mxu0 %v9844_v36  ;;  %v9971_v43 = vcombine.low %v495_v32, %v499_v33 }
  0x39   :  { %v363_v39 = vld [vmem:[%s13349_s6 + $0xa0] sm:$0xff]  ;;  %1908 = vmatpush1.bf16.msra.mxu0 %v9843_v42 }
  0x3a   :  { %v487_v40 = vld [vmem:[%s13349_s6 + $0x480] sm:$0xff]  ;;  %v9836_v44 = vcombine.high %v359_v38, %v363_v39  ;;  %1950 = vmatprep.subr.bf16.mxu1 %v9972_v37  ;;  %v9835_v50 = vcombine.low %v359_v38, %v363_v39 }
  0x3b   :  { %v491_v41 = vld [vmem:[%s13349_s6 + $0x4a0] sm:$0xff]  ;;  %1951 = vmatpush1.bf16.msra.mxu1 %v9971_v43 }
  0x3c   :  { %v9964_v45 = vcombine.high %v487_v40, %v491_v41  ;;  %v351_v46 = vld [vmem:[%s13349_s6 + $0x40] sm:$0xff]  ;;  %1909 = vmatprep.subr.bf16.mxu0 %v9836_v44  ;;  %v9963_v52 = vcombine.low %v487_v40, %v491_v41 }
  0x3d   :  { %v355_v47 = vld [vmem:[%s13349_s6 + $0x60] sm:$0xff]  ;;  %1910 = vmatpush1.bf16.msra.mxu0 %v9835_v50 }
  0x3e   :  { %v479_v48 = vld [vmem:[%s13349_s6 + $0x440] sm:$0xff]  ;;  %v9828_v53 = vcombine.high %v351_v46, %v355_v47  ;;  %1952 = vmatprep.subr.bf16.mxu1 %v9964_v45  ;;  %v9827_v60 = vcombine.low %v351_v46, %v355_v47 }
  0x3f   :  { %v483_v49 = vld [vmem:[%s13349_s6 + $0x460] sm:$0xff]  ;;  %1953 = vmatpush1.bf16.msra.mxu1 %v9963_v52 }
  0x40   :  { %v343_v51 = vld [vmem:[%s13349_s6] sm:$0xff]  ;;  %v9956_v55 = vcombine.high %v479_v48, %v483_v49  ;;  %1911 = vmatprep.subr.bf16.mxu0 %v9828_v53  ;;  %v9955_v61 = vcombine.low %v479_v48, %v483_v49 }
  0x41   :  { %v347_v54 = vld [vmem:[%s13349_s6 + $0x20] sm:$0xff]  ;;  %1912 = vmatpush1.bf16.msra.mxu0 %v9827_v60 }
  0x42   :  { %v11417_v56 = vld [vmem:[%s13344_s1 + $0x4] ss:$16 sps:$4 sm:$0xff]   ;;  %v9820_v62 = vcombine.high %v343_v51, %v347_v54  ;;  %1954 = vmatprep.subr.bf16.mxu1 %v9956_v55  ;;  %v9819_v4 = vcombine.low %v343_v51, %v347_v54 }
  0x43   :  { %v471_v57 = vld [vmem:[%s13349_s6 + $0x400] sm:$0xff]  ;;  %1931 = vmatprep.mubr.bf16.mxu0 %v11417_v56  ;;  %1955 = vmatpush1.bf16.msra.mxu1 %v9955_v61 }
  0x44   :  { %v475_v58 = vld [vmem:[%s13349_s6 + $0x420] sm:$0xff]  ;;  %1913 = vmatprep.subr.bf16.mxu0 %v9820_v62 }
  0x45   :  { %v9948_v63 = vcombine.high %v471_v57, %v475_v58  ;;  %v463_v0 = vld [vmem:[%s13349_s6 + $0x3c0] sm:$0xff]  ;;  %v9947_v5 = vcombine.low %v471_v57, %v475_v58  ;;  %1914 = vmatpush1.bf16.msra.mxu0 %v9819_v4  ;;  %v528_v4 = vld [vmem:[%s13349_s6 + $0x5c8] sm:$0xff] }
  0x46   :  { %v467_v1 = vld [vmem:[%s13349_s6 + $0x3e0] sm:$0xff] }
  0x47   :  { %v591_v2 = vld [vmem:[%s13349_s6 + $0x7c0] sm:$0xff]  ;;  %v9940_v6 = vcombine.high %v463_v0, %v467_v1  ;;  %1956 = vmatprep.subr.bf16.mxu1 %v9948_v63  ;;  %v9939_v12 = vcombine.low %v463_v0, %v467_v1 }
  0x48   :  { %v595_v3 = vld [vmem:[%s13349_s6 + $0x7e0] sm:$0xff]  ;;  %1957 = vmatpush1.bf16.msra.mxu1 %v9947_v5  ;;  %v532_v5 = vld [vmem:[%s13349_s6 + $0x5e8] sm:$0xff] }
  0x49   :  { %v10068_v7 = vcombine.high %v591_v2, %v595_v3  ;;  %v455_v8 = vld [vmem:[%s13349_s6 + $0x380] sm:$0xff]  ;;  %1915 = vmatprep.subr.bf16.mxu0 %v9940_v6  ;;  %v10067_v13 = vcombine.low %v591_v2, %v595_v3  ;;  %v400_v2 = vld [vmem:[%s13349_s6 + $0x1c8] sm:$0xff] }
  0x4a   :  { %v459_v9 = vld [vmem:[%s13349_s6 + $0x3a0] sm:$0xff]  ;;  %1916 = vmatpush2.bf16.msra.mxu0 %v9939_v12  ;;  %v404_v3 = vld [vmem:[%s13349_s6 + $0x1e8] sm:$0xff] }
  0x4b   :  { %v583_v10 = vld [vmem:[%s13349_s6 + $0x780] sm:$0xff]  ;;  %v9932_v14 = vcombine.high %v455_v8, %v459_v9  ;;  %1958 = vmatprep.subr.bf16.mxu1 %v10068_v7  ;;  %v9931_v20 = vcombine.low %v455_v8, %v459_v9  ;;  %v9878_v8 = vcombine.high %v400_v2, %v404_v3  ;;  %v10006_v9 = vcombine.high %v528_v4, %v532_v5 }
  0x4c   :  { %v587_v11 = vld [vmem:[%s13349_s6 + $0x7a0] sm:$0xff]  ;;  %1959 = vmatpush2.bf16.msra.mxu1 %v10067_v13  ;;  %v520_v13 = vld [vmem:[%s13349_s6 + $0x588] sm:$0xff] }
  0x4d   :  { %v10060_v15 = vcombine.high %v583_v10, %v587_v11  ;;  %v447_v16 = vld [vmem:[%s13349_s6 + $0x340] sm:$0xff]  ;;  %1917 = vmatprep.subr.bf16.mxu0 %v9932_v14  ;;  %v10059_v21 = vcombine.low %v583_v10, %v587_v11  ;;  %v392_v10 = vld [vmem:[%s13349_s6 + $0x188] sm:$0xff] }
  0x4e   :  { %v451_v17 = vld [vmem:[%s13349_s6 + $0x360] sm:$0xff]  ;;  %1918 = vmatpush2.bf16.msra.mxu0 %v9931_v20  ;;  %v396_v11 = vld [vmem:[%s13349_s6 + $0x1a8] sm:$0xff] }
  0x4f   :  { %v575_v18 = vld [vmem:[%s13349_s6 + $0x740] sm:$0xff]  ;;  %v9924_v22 = vcombine.high %v447_v16, %v451_v17  ;;  %1960 = vmatprep.subr.bf16.mxu1 %v10060_v15  ;;  %v9923_v28 = vcombine.low %v447_v16, %v451_v17  ;;  %v524_v14 = vld [vmem:[%s13349_s6 + $0x5a8] sm:$0xff]  ;;  %v9877_v16 = vcombine.low %v400_v2, %v404_v3  ;;  %v10005_v17 = vcombine.low %v528_v4, %v532_v5 }
  0x50   :  { %v579_v19 = vld [vmem:[%s13349_s6 + $0x760] sm:$0xff]  ;;  %1961 = vmatpush2.bf16.msra.mxu1 %v10059_v21  ;;  %v11560_v15 = vld [vmem:[%s13344_s1 + $0x8] ss:$16 sps:$4 sm:$0xff]  }
  0x51   :  { %v10052_v23 = vcombine.high %v575_v18, %v579_v19  ;;  %v439_v24 = vld [vmem:[%s13349_s6 + $0x300] sm:$0xff]  ;;  %1919 = vmatprep.subr.bf16.mxu0 %v9924_v22  ;;  %v10051_v29 = vcombine.low %v575_v18, %v579_v19  ;;  %v9870_v18 = vcombine.high %v392_v10, %v396_v11  ;;  %v9998_v19 = vcombine.high %v520_v13, %v524_v14  ;;  %v384_v20 = vld [vmem:[%s13349_s6 + $0x148] sm:$0xff] }
  0x52   :  { %v443_v25 = vld [vmem:[%s13349_s6 + $0x320] sm:$0xff]  ;;  %1920 = vmatpush2.bf16.msra.mxu0 %v9923_v28  ;;  %v388_v21 = vld [vmem:[%s13349_s6 + $0x168] sm:$0xff] }
  0x53   :  { %v567_v26 = vld [vmem:[%s13349_s6 + $0x700] sm:$0xff]  ;;  %v9916_v30 = vcombine.high %v439_v24, %v443_v25  ;;  %1962 = vmatprep.subr.bf16.mxu1 %v10052_v23  ;;  %v9915_v36 = vcombine.low %v439_v24, %v443_v25  ;;  %v512_v22 = vld [vmem:[%s13349_s6 + $0x548] sm:$0xff]  ;;  %v9869_v24 = vcombine.low %v392_v10, %v396_v11  ;;  %v9997_v25 = vcombine.low %v520_v13, %v524_v14 }
  0x54   :  { %v571_v27 = vld [vmem:[%s13349_s6 + $0x720] sm:$0xff]  ;;  %1963 = vmatpush2.bf16.msra.mxu1 %v10051_v29  ;;  %v516_v23 = vld [vmem:[%s13349_s6 + $0x568] sm:$0xff] }
  0x55   :  { %v10044_v31 = vcombine.high %v567_v26, %v571_v27  ;;  %v431_v32 = vld [vmem:[%s13349_s6 + $0x2c0] sm:$0xff]  ;;  %1921 = vmatprep.subr.bf16.mxu0 %v9916_v30  ;;  %v10043_v37 = vcombine.low %v567_v26, %v571_v27  ;;  %v9862_v26 = vcombine.high %v384_v20, %v388_v21  ;;  %v376_v27 = vld [vmem:[%s13349_s6 + $0x108] sm:$0xff]  ;;  %v9990_v30 = vcombine.high %v512_v22, %v516_v23 }
  0x56   :  { %v435_v33 = vld [vmem:[%s13349_s6 + $0x2e0] sm:$0xff]  ;;  %1922 = vmatpush2.bf16.msra.mxu0 %v9915_v36  ;;  %v380_v28 = vld [vmem:[%s13349_s6 + $0x128] sm:$0xff] }
  0x57   :  { %v559_v34 = vld [vmem:[%s13349_s6 + $0x6c0] sm:$0xff]  ;;  %v9908_v38 = vcombine.high %v431_v32, %v435_v33  ;;  %1964 = vmatprep.subr.bf16.mxu1 %v10044_v31  ;;  %v9907_v44 = vcombine.low %v431_v32, %v435_v33  ;;  %v504_v29 = vld [vmem:[%s13349_s6 + $0x508] sm:$0xff]  ;;  %v9861_v32 = vcombine.low %v384_v20, %v388_v21  ;;  %v9989_v33 = vcombine.low %v512_v22, %v516_v23 }
  0x58   :  { %v563_v35 = vld [vmem:[%s13349_s6 + $0x6e0] sm:$0xff]  ;;  %1965 = vmatpush2.bf16.msra.mxu1 %v10043_v37  ;;  %v508_v31 = vld [vmem:[%s13349_s6 + $0x528] sm:$0xff] }
  0x59   :  { %v10036_v39 = vcombine.high %v559_v34, %v563_v35  ;;  %v423_v40 = vld [vmem:[%s13349_s6 + $0x280] sm:$0xff]  ;;  %1923 = vmatprep.subr.bf16.mxu0 %v9908_v38  ;;  %v10035_v45 = vcombine.low %v559_v34, %v563_v35  ;;  %v9854_v34 = vcombine.high %v376_v27, %v380_v28  ;;  %v368_v35 = vld [vmem:[%s13349_s6 + $0xc8] sm:$0xff]  ;;  %v9982_v38 = vcombine.high %v504_v29, %v508_v31 }
  0x5a   :  { %v427_v41 = vld [vmem:[%s13349_s6 + $0x2a0] sm:$0xff]  ;;  %1924 = vmatpush2.bf16.msra.mxu0 %v9907_v44  ;;  %v372_v36 = vld [vmem:[%s13349_s6 + $0xe8] sm:$0xff] }
  0x5b   :  { %v551_v42 = vld [vmem:[%s13349_s6 + $0x680] sm:$0xff]  ;;  %v9900_v46 = vcombine.high %v423_v40, %v427_v41  ;;  %1966 = vmatprep.subr.bf16.mxu1 %v10036_v39  ;;  %v9899_v52 = vcombine.low %v423_v40, %v427_v41  ;;  %v496_v37 = vld [vmem:[%s13349_s6 + $0x4c8] sm:$0xff]  ;;  %v9853_v40 = vcombine.low %v376_v27, %v380_v28  ;;  %v9981_v41 = vcombine.low %v504_v29, %v508_v31 }
  0x5c   :  { %v555_v43 = vld [vmem:[%s13349_s6 + $0x6a0] sm:$0xff]  ;;  %1967 = vmatpush2.bf16.msra.mxu1 %v10035_v45  ;;  %v500_v39 = vld [vmem:[%s13349_s6 + $0x4e8] sm:$0xff] }
  0x5d   :  { %v10028_v47 = vcombine.high %v551_v42, %v555_v43  ;;  %v415_v48 = vld [vmem:[%s13349_s6 + $0x240] sm:$0xff]  ;;  %1925 = vmatprep.subr.bf16.mxu0 %v9900_v46  ;;  %v10027_v53 = vcombine.low %v551_v42, %v555_v43  ;;  %v9846_v42 = vcombine.high %v368_v35, %v372_v36  ;;  %v9974_v43 = vcombine.high %v496_v37, %v500_v39  ;;  %v360_v44 = vld [vmem:[%s13349_s6 + $0x88] sm:$0xff] }
  0x5e   :  { %v419_v49 = vld [vmem:[%s13349_s6 + $0x260] sm:$0xff]  ;;  %1926 = vmatpush2.bf16.msra.mxu0 %v9899_v52  ;;  %v364_v45 = vld [vmem:[%s13349_s6 + $0xa8] sm:$0xff] }
  0x5f   :  { %v543_v50 = vld [vmem:[%s13349_s6 + $0x640] sm:$0xff]  ;;  %v9892_v54 = vcombine.high %v415_v48, %v419_v49  ;;  %1968 = vmatprep.subr.bf16.mxu1 %v10028_v47  ;;  %v9891_v62 = vcombine.low %v415_v48, %v419_v49  ;;  %v488_v46 = vld [vmem:[%s13349_s6 + $0x488] sm:$0xff]  ;;  %v9845_v48 = vcombine.low %v368_v35, %v372_v36  ;;  %v9973_v49 = vcombine.low %v496_v37, %v500_v39 }
  0x60   :  { %v547_v51 = vld [vmem:[%s13349_s6 + $0x660] sm:$0xff]  ;;  %1969 = vmatpush2.bf16.msra.mxu1 %v10027_v53  ;;  %v492_v47 = vld [vmem:[%s13349_s6 + $0x4a8] sm:$0xff] }
  0x61   :  { %v10020_v55 = vcombine.high %v543_v50, %v547_v51  ;;  %v407_v57 = vld [vmem:[%s13349_s6 + $0x200] sm:$0xff]  ;;  %1927 = vmatprep.subr.bf16.mxu0 %v9892_v54  ;;  %v10019_v63 = vcombine.low %v543_v50, %v547_v51  ;;  %v9838_v50 = vcombine.high %v360_v44, %v364_v45  ;;  %v9966_v51 = vcombine.high %v488_v46, %v492_v47  ;;  %v352_v52 = vld [vmem:[%s13349_s6 + $0x48] sm:$0xff] }
  0x62   :  { %v411_v58 = vld [vmem:[%s13349_s6 + $0x220] sm:$0xff]  ;;  %1928 = vmatpush2.bf16.msra.mxu0 %v9891_v62  ;;  %v356_v53 = vld [vmem:[%s13349_s6 + $0x68] sm:$0xff] }
  0x63   :  { %v535_v60 = vld [vmem:[%s13349_s6 + $0x600] sm:$0xff]  ;;  %v9884_v0 = vcombine.high %v407_v57, %v411_v58  ;;  %1970 = vmatprep.subr.bf16.mxu1 %v10020_v55  ;;  %v9883_v6 = vcombine.low %v407_v57, %v411_v58  ;;  %v480_v54 = vld [vmem:[%s13349_s6 + $0x448] sm:$0xff]  ;;  %v9837_v57 = vcombine.low %v360_v44, %v364_v45  ;;  %v9965_v58 = vcombine.low %v488_v46, %v492_v47 }
  0x64   :  { %v539_v61 = vld [vmem:[%s13349_s6 + $0x620] sm:$0xff]  ;;  %1971 = vmatpush2.bf16.msra.mxu1 %v10019_v63  ;;  %v484_v55 = vld [vmem:[%s13349_s6 + $0x468] sm:$0xff]  ;;  %v9829_v2 = vcombine.low %v352_v52, %v356_v53 }
  0x65   :  { %v10012_v1 = vcombine.high %v535_v60, %v539_v61  ;;  %1929 = vmatprep.subr.bf16.mxu0 %v9884_v0  ;;  %v10011_v7 = vcombine.low %v535_v60, %v539_v61  ;;  %v11549_v12 = vld [vmem:[%s13344_s1] ss:$16 sps:$4 sm:$0xff]   ;;  %v9830_v60 = vcombine.high %v352_v52, %v356_v53  ;;  %v9958_v61 = vcombine.high %v480_v54, %v484_v55  ;;  %v344_v62 = vld [vmem:[%s13349_s6 + $0x8] sm:$0xff] }
  0x66   :  { %1930 = vmatpush2.bf16.msra.mxu0 %v9883_v6  ;;  %v348_v63 = vld [vmem:[%s13349_s6 + $0x28] sm:$0xff]  ;;  %v9957_v3 = vcombine.low %v480_v54, %v484_v55 }
  0x67   :  { %1972 = vmatprep.subr.bf16.mxu1 %v10012_v1  ;;  %1985 = vmatprep.subr.bf16.mxu0 %v9878_v8  ;;  %v472_v0 = vld [vmem:[%s13349_s6 + $0x408] sm:$0xff]  ;;  %v9822_v4 = vcombine.high %v344_v62, %v348_v63  ;;  %v9821_v10 = vcombine.low %v344_v62, %v348_v63 }
  0x68   :  { %1973 = vmatpush2.bf16.msra.mxu1 %v10011_v7  ;;  %v476_v1 = vld [vmem:[%s13349_s6 + $0x428] sm:$0xff] }
  0x69   :  { %2028 = vmatprep.subr.bf16.mxu1 %v10006_v9  ;;  %1932 = vmatmul.mubr.bf16.vlgmr.msra.gmra.mxu0 %v11549_v12  ;;  %v9950_v5 = vcombine.high %v472_v0, %v476_v1  ;;  %v464_v6 = vld [vmem:[%s13349_s6 + $0x3c8] sm:$0xff]  ;;  %v9949_v11 = vcombine.low %v472_v0, %v476_v1 }
  0x6a   :  { %1986 = vmatpush1.bf16.msra.mxu0 %v9877_v16  ;;  %2017 = vmatprep.mubr.bf16.mxu0 %v11417_v56  ;;  %v468_v7 = vld [vmem:[%s13349_s6 + $0x3e8] sm:$0xff] }
  0x6b   :  { %1975 = vmatmul.mubr.bf16.vlgmr.msra.gmra.mxu1 %v11560_v15  ;;  %1987 = vmatprep.subr.bf16.mxu0 %v9870_v18  ;;  %v592_v8 = vld [vmem:[%s13349_s6 + $0x7c8] sm:$0xff]  ;;  %v9942_v13 = vcombine.high %v464_v6, %v468_v7  ;;  %v9941_v20 = vcombine.low %v464_v6, %v468_v7 }
  0x6c   :  { %2029 = vmatpush1.bf16.msra.mxu1 %v10005_v17  ;;  %2060 = vmatprep.mubr.bf16.mxu1 %v11428_v59  ;;  %v596_v9 = vld [vmem:[%s13349_s6 + $0x7e8] sm:$0xff] }
  0x6d   :  { %2030 = vmatprep.subr.bf16.mxu1 %v9998_v19  ;;  %v10070_v14 = vcombine.high %v592_v8, %v596_v9  ;;  %v456_v16 = vld [vmem:[%s13349_s6 + $0x388] sm:$0xff]  ;;  %v10069_v21 = vcombine.low %v592_v8, %v596_v9 }
  0x6e   :  { %1988 = vmatpush1.bf16.msra.mxu0 %v9869_v24  ;;  %v460_v17 = vld [vmem:[%s13349_s6 + $0x3a8] sm:$0xff] }
  0x6f   :  { %1989 = vmatprep.subr.bf16.mxu0 %v9862_v26  ;;  %v584_v18 = vld [vmem:[%s13349_s6 + $0x788] sm:$0xff]  ;;  %v9934_v22 = vcombine.high %v456_v16, %v460_v17  ;;  %v9933_v28 = vcombine.low %v456_v16, %v460_v17 }
  0x70   :  { %2031 = vmatpush1.bf16.msra.mxu1 %v9997_v25  ;;  %v588_v19 = vld [vmem:[%s13349_s6 + $0x7a8] sm:$0xff] }
  0x71   :  { %2032 = vmatprep.subr.bf16.mxu1 %v9990_v30  ;;  %v10062_v23 = vcombine.high %v584_v18, %v588_v19  ;;  %v448_v24 = vld [vmem:[%s13349_s6 + $0x348] sm:$0xff]  ;;  %v10061_v29 = vcombine.low %v584_v18, %v588_v19 }
  0x72   :  { %1990 = vmatpush1.bf16.msra.mxu0 %v9861_v32  ;;  %v452_v25 = vld [vmem:[%s13349_s6 + $0x368] sm:$0xff] }
  0x73   :  { %1991 = vmatprep.subr.bf16.mxu0 %v9854_v34  ;;  %v576_v26 = vld [vmem:[%s13349_s6 + $0x748] sm:$0xff]  ;;  %v9926_v30 = vcombine.high %v448_v24, %v452_v25  ;;  %v9925_v36 = vcombine.low %v448_v24, %v452_v25 }
  0x74   :  { %2033 = vmatpush1.bf16.msra.mxu1 %v9989_v33  ;;  %v580_v27 = vld [vmem:[%s13349_s6 + $0x768] sm:$0xff] }
  0x75   :  { %2034 = vmatprep.subr.bf16.mxu1 %v9982_v38  ;;  %v10054_v31 = vcombine.high %v576_v26, %v580_v27  ;;  %v440_v32 = vld [vmem:[%s13349_s6 + $0x308] sm:$0xff]  ;;  %v10053_v37 = vcombine.low %v576_v26, %v580_v27 }
  0x76   :  { %1992 = vmatpush1.bf16.msra.mxu0 %v9853_v40  ;;  %v444_v33 = vld [vmem:[%s13349_s6 + $0x328] sm:$0xff] }
  0x77   :  { %1993 = vmatprep.subr.bf16.mxu0 %v9846_v42  ;;  %v568_v34 = vld [vmem:[%s13349_s6 + $0x708] sm:$0xff]  ;;  %v9918_v38 = vcombine.high %v440_v32, %v444_v33  ;;  %v9917_v44 = vcombine.low %v440_v32, %v444_v33 }
  0x78   :  { %2035 = vmatpush1.bf16.msra.mxu1 %v9981_v41  ;;  %v572_v35 = vld [vmem:[%s13349_s6 + $0x728] sm:$0xff] }
  0x79   :  { %2036 = vmatprep.subr.bf16.mxu1 %v9974_v43  ;;  %v10046_v39 = vcombine.high %v568_v34, %v572_v35  ;;  %v432_v40 = vld [vmem:[%s13349_s6 + $0x2c8] sm:$0xff]  ;;  %v10045_v45 = vcombine.low %v568_v34, %v572_v35 }
  0x7a   :  { %1994 = vmatpush1.bf16.msra.mxu0 %v9845_v48  ;;  %v436_v41 = vld [vmem:[%s13349_s6 + $0x2e8] sm:$0xff] }
  0x7b   :  { %1995 = vmatprep.subr.bf16.mxu0 %v9838_v50  ;;  %v560_v42 = vld [vmem:[%s13349_s6 + $0x6c8] sm:$0xff]  ;;  %v9910_v46 = vcombine.high %v432_v40, %v436_v41  ;;  %v9909_v52 = vcombine.low %v432_v40, %v436_v41 }
  0x7c   :  { %2037 = vmatpush1.bf16.msra.mxu1 %v9973_v49  ;;  %v564_v43 = vld [vmem:[%s13349_s6 + $0x6e8] sm:$0xff] }
  0x7d   :  { %2038 = vmatprep.subr.bf16.mxu1 %v9966_v51  ;;  %v10038_v47 = vcombine.high %v560_v42, %v564_v43  ;;  %v424_v48 = vld [vmem:[%s13349_s6 + $0x288] sm:$0xff]  ;;  %v10037_v53 = vcombine.low %v560_v42, %v564_v43 }
  0x7e   :  { %1996 = vmatpush1.bf16.msra.mxu0 %v9837_v57  ;;  %v428_v49 = vld [vmem:[%s13349_s6 + $0x2a8] sm:$0xff] }
  0x7f   :  { %1997 = vmatprep.subr.bf16.mxu0 %v9830_v60  ;;  %v552_v50 = vld [vmem:[%s13349_s6 + $0x688] sm:$0xff]  ;;  %v9902_v54 = vcombine.high %v424_v48, %v428_v49  ;;  %v9901_v62 = vcombine.low %v424_v48, %v428_v49 }
  0x80   :  { %2039 = vmatpush1.bf16.msra.mxu1 %v9965_v58  ;;  %v556_v51 = vld [vmem:[%s13349_s6 + $0x6a8] sm:$0xff] }
  0x81   :  { %2040 = vmatprep.subr.bf16.mxu1 %v9958_v61  ;;  %v10030_v55 = vcombine.high %v552_v50, %v556_v51  ;;  %v416_v57 = vld [vmem:[%s13349_s6 + $0x248] sm:$0xff]  ;;  %v10029_v63 = vcombine.low %v552_v50, %v556_v51  ;;  %v361_v50 = vld [vmem:[%s13349_s6 + $0x90] sm:$0xff] }
  0x82   :  { %1998 = vmatpush1.bf16.msra.mxu0 %v9829_v2  ;;  %v420_v58 = vld [vmem:[%s13349_s6 + $0x268] sm:$0xff]  ;;  %v365_v51 = vld [vmem:[%s13349_s6 + $0xb0] sm:$0xff] }
  0x83   :  { %1999 = vmatprep.subr.bf16.mxu0 %v9822_v4  ;;  %v544_v60 = vld [vmem:[%s13349_s6 + $0x648] sm:$0xff]  ;;  %v9894_v0 = vcombine.high %v416_v57, %v420_v58  ;;  %v9893_v6 = vcombine.low %v416_v57, %v420_v58  ;;  %v9840_v57 = vcombine.high %v361_v50, %v365_v51 }
  0x84   :  { %2041 = vmatpush1.bf16.msra.mxu1 %v9957_v3  ;;  %v548_v61 = vld [vmem:[%s13349_s6 + $0x668] sm:$0xff] }
  0x85   :  { %2042 = vmatprep.subr.bf16.mxu1 %v9950_v5  ;;  %v10022_v1 = vcombine.high %v544_v60, %v548_v61  ;;  %v408_v2 = vld [vmem:[%s13349_s6 + $0x208] sm:$0xff]  ;;  %v10021_v7 = vcombine.low %v544_v60, %v548_v61  ;;  %v353_v60 = vld [vmem:[%s13349_s6 + $0x50] sm:$0xff] }
  0x86   :  { %2000 = vmatpush1.bf16.msra.mxu0 %v9821_v10  ;;  %v412_v3 = vld [vmem:[%s13349_s6 + $0x228] sm:$0xff]  ;;  %v401_v10 = vld [vmem:[%s13349_s6 + $0x1d0] sm:$0xff] }
  0x87   :  { %2001 = vmatprep.subr.bf16.mxu0 %v9942_v13  ;;  %v536_v4 = vld [vmem:[%s13349_s6 + $0x608] sm:$0xff]  ;;  %v9886_v8 = vcombine.high %v408_v2, %v412_v3  ;;  %v529_v13 = vld [vmem:[%s13349_s6 + $0x5d0] sm:$0xff]  ;;  %v9885_v16 = vcombine.low %v408_v2, %v412_v3 }
  0x88   :  { %2043 = vmatpush1.bf16.msra.mxu1 %v9949_v11  ;;  %v540_v5 = vld [vmem:[%s13349_s6 + $0x628] sm:$0xff]  ;;  %v405_v11 = vld [vmem:[%s13349_s6 + $0x1f0] sm:$0xff] }
  0x89   :  { %2044 = vmatprep.subr.bf16.mxu1 %v10070_v14  ;;  %v10014_v9 = vcombine.high %v536_v4, %v540_v5  ;;  %v533_v14 = vld [vmem:[%s13349_s6 + $0x5f0] sm:$0xff]  ;;  %v10013_v17 = vcombine.low %v536_v4, %v540_v5  ;;  %v9880_v18 = vcombine.high %v401_v10, %v405_v11  ;;  %v9879_v24 = vcombine.low %v401_v10, %v405_v11 }
  0x8a   :  { %2002 = vmatpush2.bf16.msra.mxu0 %v9941_v20  ;;  %v10008_v19 = vcombine.high %v529_v13, %v533_v14  ;;  %v393_v20 = vld [vmem:[%s13349_s6 + $0x190] sm:$0xff]  ;;  %v10007_v25 = vcombine.low %v529_v13, %v533_v14 }
  0x8b   :  { %2003 = vmatprep.subr.bf16.mxu0 %v9934_v22  ;;  %v521_v22 = vld [vmem:[%s13349_s6 + $0x590] sm:$0xff] }
  0x8c   :  { %2045 = vmatpush2.bf16.msra.mxu1 %v10069_v21  ;;  %v397_v21 = vld [vmem:[%s13349_s6 + $0x1b0] sm:$0xff] }
  0x8d   :  { %2046 = vmatprep.subr.bf16.mxu1 %v10062_v23  ;;  %v525_v23 = vld [vmem:[%s13349_s6 + $0x5b0] sm:$0xff]  ;;  %v9872_v26 = vcombine.high %v393_v20, %v397_v21  ;;  %v9871_v32 = vcombine.low %v393_v20, %v397_v21 }
  0x8e   :  { %2004 = vmatpush2.bf16.msra.mxu0 %v9933_v28  ;;  %v10000_v27 = vcombine.high %v521_v22, %v525_v23  ;;  %v385_v28 = vld [vmem:[%s13349_s6 + $0x150] sm:$0xff]  ;;  %v9999_v33 = vcombine.low %v521_v22, %v525_v23 }
  0x8f   :  { %2005 = vmatprep.subr.bf16.mxu0 %v9926_v30  ;;  %v513_v30 = vld [vmem:[%s13349_s6 + $0x550] sm:$0xff] }
  0x90   :  { %2047 = vmatpush2.bf16.msra.mxu1 %v10061_v29  ;;  %v389_v29 = vld [vmem:[%s13349_s6 + $0x170] sm:$0xff] }
  0x91   :  { %2048 = vmatprep.subr.bf16.mxu1 %v10054_v31  ;;  %v517_v31 = vld [vmem:[%s13349_s6 + $0x570] sm:$0xff]  ;;  %v9864_v34 = vcombine.high %v385_v28, %v389_v29  ;;  %v9863_v40 = vcombine.low %v385_v28, %v389_v29 }
  0x92   :  { %2006 = vmatpush2.bf16.msra.mxu0 %v9925_v36  ;;  %v9992_v35 = vcombine.high %v513_v30, %v517_v31  ;;  %v377_v36 = vld [vmem:[%s13349_s6 + $0x110] sm:$0xff]  ;;  %v9991_v41 = vcombine.low %v513_v30, %v517_v31 }
  0x93   :  { %2007 = vmatprep.subr.bf16.mxu0 %v9918_v38  ;;  %v505_v38 = vld [vmem:[%s13349_s6 + $0x510] sm:$0xff] }
  0x94   :  { %2049 = vmatpush2.bf16.msra.mxu1 %v10053_v37  ;;  %v381_v37 = vld [vmem:[%s13349_s6 + $0x130] sm:$0xff] }
  0x95   :  { %2050 = vmatprep.subr.bf16.mxu1 %v10046_v39  ;;  %v509_v39 = vld [vmem:[%s13349_s6 + $0x530] sm:$0xff]  ;;  %v9856_v42 = vcombine.high %v377_v36, %v381_v37 }
  0x96   :  { %2008 = vmatpush2.bf16.msra.mxu0 %v9917_v44  ;;  %v9984_v43 = vcombine.high %v505_v38, %v509_v39  ;;  %v373_v44 = vld [vmem:[%s13349_s6 + $0xf0] sm:$0xff] }
  0x97   :  { %2009 = vmatprep.subr.bf16.mxu0 %v9910_v46  ;;  %v9855_v46 = vcombine.low %v377_v36, %v381_v37  ;;  %v357_v61 = vld [vmem:[%s13349_s6 + $0x70] sm:$0xff] }
  0x98   :  { %2051 = vmatpush2.bf16.msra.mxu1 %v10045_v45  ;;  %v501_v45 = vld [vmem:[%s13349_s6 + $0x4f0] sm:$0xff]  ;;  %v9832_v2 = vcombine.high %v353_v60, %v357_v61 }
  0x99   :  { %2052 = vmatprep.subr.bf16.mxu1 %v10038_v47  ;;  %v9983_v47 = vcombine.low %v505_v38, %v509_v39  ;;  %v345_v4 = vld [vmem:[%s13349_s6 + $0x10] sm:$0xff] }
  0x9a   :  { %2010 = vmatpush2.bf16.msra.mxu0 %v9909_v52  ;;  %v489_v52 = vld [vmem:[%s13349_s6 + $0x490] sm:$0xff] }
  0x9b   :  { %2011 = vmatprep.subr.bf16.mxu0 %v9902_v54  ;;  %v349_v5 = vld [vmem:[%s13349_s6 + $0x30] sm:$0xff] }
  0x9c   :  { %2053 = vmatpush2.bf16.msra.mxu1 %v10037_v53  ;;  %v493_v53 = vld [vmem:[%s13349_s6 + $0x4b0] sm:$0xff]  ;;  %v9824_v10 = vcombine.high %v345_v4, %v349_v5 }
  0x9d   :  { %2054 = vmatprep.subr.bf16.mxu1 %v10030_v55  ;;  %v9968_v58 = vcombine.high %v489_v52, %v493_v53  ;;  %v465_v13 = vld [vmem:[%s13349_s6 + $0x3d0] sm:$0xff] }
  0x9e   :  { %2012 = vmatpush2.bf16.msra.mxu0 %v9901_v62  ;;  %v481_v62 = vld [vmem:[%s13349_s6 + $0x450] sm:$0xff] }
  0x9f   :  { %2013 = vmatprep.subr.bf16.mxu0 %v9894_v0  ;;  %v9839_v0 = vcombine.low %v361_v50, %v365_v51  ;;  %v469_v14 = vld [vmem:[%s13349_s6 + $0x3f0] sm:$0xff] }
  0xa0   :  { %2055 = vmatpush2.bf16.msra.mxu1 %v10029_v63  ;;  %v485_v63 = vld [vmem:[%s13349_s6 + $0x470] sm:$0xff]  ;;  %v9944_v20 = vcombine.high %v465_v13, %v469_v14 }
  0xa1   :  { %2056 = vmatprep.subr.bf16.mxu1 %v10022_v1  ;;  %v9967_v1 = vcombine.low %v489_v52, %v493_v53  ;;  %v9960_v3 = vcombine.high %v481_v62, %v485_v63  ;;  %v457_v22 = vld [vmem:[%s13349_s6 + $0x390] sm:$0xff] }
  0xa2   :  { %2014 = vmatpush2.bf16.msra.mxu0 %v9893_v6  ;;  %v473_v6 = vld [vmem:[%s13349_s6 + $0x410] sm:$0xff] }
  0xa3   :  { %2015 = vmatprep.subr.bf16.mxu0 %v9886_v8  ;;  %v9831_v8 = vcombine.low %v353_v60, %v357_v61  ;;  %v461_v23 = vld [vmem:[%s13349_s6 + $0x3b0] sm:$0xff] }
  0xa4   :  { %2057 = vmatpush2.bf16.msra.mxu1 %v10021_v7  ;;  %v477_v7 = vld [vmem:[%s13349_s6 + $0x430] sm:$0xff]  ;;  %v9936_v28 = vcombine.high %v457_v22, %v461_v23 }
  0xa5   :  { %2058 = vmatprep.subr.bf16.mxu1 %v10014_v9  ;;  %v9959_v9 = vcombine.low %v481_v62, %v485_v63  ;;  %v9952_v11 = vcombine.high %v473_v6, %v477_v7  ;;  %v449_v30 = vld [vmem:[%s13349_s6 + $0x350] sm:$0xff] }
  0xa6   :  { %2016 = vmatpush2.bf16.msra.mxu0 %v9885_v16  ;;  %v593_v16 = vld [vmem:[%s13349_s6 + $0x7d0] sm:$0xff] }
  0xa7   :  { %2071 = vmatprep.subr.bf16.mxu0 %v9880_v18  ;;  %v9823_v18 = vcombine.low %v345_v4, %v349_v5  ;;  %v453_v31 = vld [vmem:[%s13349_s6 + $0x370] sm:$0xff] }
  0xa8   :  { %2059 = vmatpush2.bf16.msra.mxu1 %v10013_v17  ;;  %v597_v17 = vld [vmem:[%s13349_s6 + $0x7f0] sm:$0xff]  ;;  %v9928_v36 = vcombine.high %v449_v30, %v453_v31 }
  0xa9   :  { %2114 = vmatprep.subr.bf16.mxu1 %v10008_v19  ;;  %2018 = vmatmul.mubr.bf16.vlgmr.msra.gmra.mxu0 %v11549_v12  ;;  %v9951_v19 = vcombine.low %v473_v6, %v477_v7  ;;  %v10072_v21 = vcombine.high %v593_v16, %v597_v17  ;;  %v441_v38 = vld [vmem:[%s13349_s6 + $0x310] sm:$0xff] }
  0xaa   :  { %2072 = vmatpush1.bf16.msra.mxu0 %v9879_v24  ;;  %2103 = vmatprep.mubr.bf16.mxu0 %v11417_v56  ;;  %v369_v56 = vld [vmem:[%s13349_s6 + $0xd0] sm:$0xff] }
  0xab   :  { %2061 = vmatmul.mubr.bf16.vlgmr.msra.gmra.mxu1 %v11560_v15  ;;  %2073 = vmatprep.subr.bf16.mxu0 %v9872_v26  ;;  %v9848_v48 = vcombine.high %v369_v56, %v373_v44  ;;  %v9847_v54 = vcombine.low %v369_v56, %v373_v44  ;;  %v585_v24 = vld [vmem:[%s13349_s6 + $0x790] sm:$0xff]  ;;  %v9943_v26 = vcombine.low %v465_v13, %v469_v14 }
  0xac   :  { %2115 = vmatpush1.bf16.msra.mxu1 %v10007_v25  ;;  %2146 = vmatprep.mubr.bf16.mxu1 %v11428_v59  ;;  %v497_v59 = vld [vmem:[%s13349_s6 + $0x4d0] sm:$0xff] }
  0xad   :  { %2116 = vmatprep.subr.bf16.mxu1 %v10000_v27  ;;  %v9976_v49 = vcombine.high %v497_v59, %v501_v45  ;;  %v9975_v55 = vcombine.low %v497_v59, %v501_v45  ;;  %v589_v25 = vld [vmem:[%s13349_s6 + $0x7b0] sm:$0xff]  ;;  %v10071_v27 = vcombine.low %v593_v16, %v597_v17  ;;  %v402_v16 = vld [vmem:[%s13349_s6 + $0x1d8] sm:$0xff] }
  0xae   :  { %2074 = vmatpush1.bf16.msra.mxu0 %v9871_v32  ;;  %v10064_v29 = vcombine.high %v585_v24, %v589_v25  ;;  %v577_v32 = vld [vmem:[%s13349_s6 + $0x750] sm:$0xff]  ;;  %v406_v17 = vld [vmem:[%s13349_s6 + $0x1f8] sm:$0xff] }
  0xaf   :  { %2075 = vmatprep.subr.bf16.mxu0 %v9864_v34  ;;  %v9935_v34 = vcombine.low %v457_v22, %v461_v23  ;;  %v445_v39 = vld [vmem:[%s13349_s6 + $0x330] sm:$0xff]  ;;  %v9882_v22 = vcombine.high %v402_v16, %v406_v17 }
  0xb0   :  { %2117 = vmatpush1.bf16.msra.mxu1 %v9999_v33  ;;  %v581_v33 = vld [vmem:[%s13349_s6 + $0x770] sm:$0xff]  ;;  %v9920_v56 = vcombine.high %v441_v38, %v445_v39 }
  0xb1   :  { %2118 = vmatprep.subr.bf16.mxu1 %v9992_v35  ;;  %v10063_v35 = vcombine.low %v585_v24, %v589_v25  ;;  %v10056_v37 = vcombine.high %v577_v32, %v581_v33  ;;  %v433_v59 = vld [vmem:[%s13349_s6 + $0x2d0] sm:$0xff]  ;;  %v394_v24 = vld [vmem:[%s13349_s6 + $0x198] sm:$0xff] }
  0xb2   :  { %2076 = vmatpush1.bf16.msra.mxu0 %v9863_v40  ;;  %v569_v40 = vld [vmem:[%s13349_s6 + $0x710] sm:$0xff]  ;;  %v398_v25 = vld [vmem:[%s13349_s6 + $0x1b8] sm:$0xff] }
  0xb3   :  { %2077 = vmatprep.subr.bf16.mxu0 %v9856_v42  ;;  %v9927_v42 = vcombine.low %v449_v30, %v453_v31  ;;  %v437_v45 = vld [vmem:[%s13349_s6 + $0x2f0] sm:$0xff]  ;;  %v9874_v30 = vcombine.high %v394_v24, %v398_v25 }
  0xb4   :  { %2119 = vmatpush1.bf16.msra.mxu1 %v9991_v41  ;;  %v573_v41 = vld [vmem:[%s13349_s6 + $0x730] sm:$0xff]  ;;  %v9912_v50 = vcombine.high %v433_v59, %v437_v45 }
  0xb5   :  { %2120 = vmatprep.subr.bf16.mxu1 %v9984_v43  ;;  %v10055_v43 = vcombine.low %v577_v32, %v581_v33  ;;  %v10048_v44 = vcombine.high %v569_v40, %v573_v41  ;;  %v425_v52 = vld [vmem:[%s13349_s6 + $0x290] sm:$0xff]  ;;  %v386_v32 = vld [vmem:[%s13349_s6 + $0x158] sm:$0xff] }
  0xb6   :  { %2078 = vmatpush1.bf16.msra.mxu0 %v9855_v46  ;;  %v561_v46 = vld [vmem:[%s13349_s6 + $0x6d0] sm:$0xff]  ;;  %v390_v33 = vld [vmem:[%s13349_s6 + $0x178] sm:$0xff] }
  0xb7   :  { %2079 = vmatprep.subr.bf16.mxu0 %v9848_v48  ;;  %v9919_v48 = vcombine.low %v441_v38, %v445_v39  ;;  %v429_v53 = vld [vmem:[%s13349_s6 + $0x2b0] sm:$0xff]  ;;  %v9866_v38 = vcombine.high %v386_v32, %v390_v33 }
  0xb8   :  { %2121 = vmatpush1.bf16.msra.mxu1 %v9983_v47  ;;  %v565_v47 = vld [vmem:[%s13349_s6 + $0x6f0] sm:$0xff]  ;;  %v9904_v60 = vcombine.high %v425_v52, %v429_v53 }
  0xb9   :  { %2122 = vmatprep.subr.bf16.mxu1 %v9976_v49  ;;  %v10047_v49 = vcombine.low %v569_v40, %v573_v41  ;;  %v10040_v51 = vcombine.high %v561_v46, %v565_v47  ;;  %v417_v62 = vld [vmem:[%s13349_s6 + $0x250] sm:$0xff]  ;;  %v382_v40 = vld [vmem:[%s13349_s6 + $0x138] sm:$0xff] }
  0xba   :  { %2080 = vmatpush1.bf16.msra.mxu0 %v9847_v54  ;;  %v553_v54 = vld [vmem:[%s13349_s6 + $0x690] sm:$0xff]  ;;  %v506_v41 = vld [vmem:[%s13349_s6 + $0x518] sm:$0xff] }
  0xbb   :  { %2081 = vmatprep.subr.bf16.mxu0 %v9840_v57  ;;  %v9911_v57 = vcombine.low %v433_v59, %v437_v45  ;;  %v421_v63 = vld [vmem:[%s13349_s6 + $0x270] sm:$0xff] }
  0xbc   :  { %2123 = vmatpush1.bf16.msra.mxu1 %v9975_v55  ;;  %v557_v55 = vld [vmem:[%s13349_s6 + $0x6b0] sm:$0xff]  ;;  %v9896_v4 = vcombine.high %v417_v62, %v421_v63 }
  0xbd   :  { %2124 = vmatprep.subr.bf16.mxu1 %v9968_v58  ;;  %v10039_v58 = vcombine.low %v561_v46, %v565_v47  ;;  %v10032_v61 = vcombine.high %v553_v54, %v557_v55  ;;  %v409_v6 = vld [vmem:[%s13349_s6 + $0x210] sm:$0xff]  ;;  %v370_v46 = vld [vmem:[%s13349_s6 + $0xd8] sm:$0xff] }
  0xbe   :  { %2082 = vmatpush1.bf16.msra.mxu0 %v9839_v0  ;;  %v545_v0 = vld [vmem:[%s13349_s6 + $0x650] sm:$0xff]  ;;  %v374_v47 = vld [vmem:[%s13349_s6 + $0xf8] sm:$0xff] }
  0xbf   :  { %2083 = vmatprep.subr.bf16.mxu0 %v9832_v2  ;;  %v9903_v2 = vcombine.low %v425_v52, %v429_v53  ;;  %v413_v7 = vld [vmem:[%s13349_s6 + $0x230] sm:$0xff]  ;;  %v9850_v52 = vcombine.high %v370_v46, %v374_v47 }
  0xc0   :  { %2125 = vmatpush1.bf16.msra.mxu1 %v9967_v1  ;;  %v549_v1 = vld [vmem:[%s13349_s6 + $0x670] sm:$0xff]  ;;  %v9888_v13 = vcombine.high %v409_v6, %v413_v7 }
  0xc1   :  { %2126 = vmatprep.subr.bf16.mxu1 %v9960_v3  ;;  %v10031_v3 = vcombine.low %v553_v54, %v557_v55  ;;  %v10024_v5 = vcombine.high %v545_v0, %v549_v1  ;;  %v362_v54 = vld [vmem:[%s13349_s6 + $0x98] sm:$0xff] }
  0xc2   :  { %2084 = vmatpush1.bf16.msra.mxu0 %v9831_v8  ;;  %v537_v8 = vld [vmem:[%s13349_s6 + $0x610] sm:$0xff]  ;;  %v366_v55 = vld [vmem:[%s13349_s6 + $0xb8] sm:$0xff] }
  0xc3   :  { %2085 = vmatprep.subr.bf16.mxu0 %v9824_v10  ;;  %v9895_v10 = vcombine.low %v417_v62, %v421_v63  ;;  %v9842_v62 = vcombine.high %v362_v54, %v366_v55 }
  0xc4   :  { %2127 = vmatpush1.bf16.msra.mxu1 %v9959_v9  ;;  %v541_v9 = vld [vmem:[%s13349_s6 + $0x630] sm:$0xff] }
  0xc5   :  { %2128 = vmatprep.subr.bf16.mxu1 %v9952_v11  ;;  %v10023_v11 = vcombine.low %v545_v0, %v549_v1  ;;  %v10016_v14 = vcombine.high %v537_v8, %v541_v9  ;;  %v354_v0 = vld [vmem:[%s13349_s6 + $0x58] sm:$0xff] }
  0xc6   :  { %2086 = vmatpush1.bf16.msra.mxu0 %v9823_v18  ;;  %v530_v18 = vld [vmem:[%s13349_s6 + $0x5d8] sm:$0xff] }
  0xc7   :  { %2087 = vmatprep.subr.bf16.mxu0 %v9944_v20  ;;  %v9887_v20 = vcombine.low %v409_v6, %v413_v7  ;;  %v358_v1 = vld [vmem:[%s13349_s6 + $0x78] sm:$0xff] }
  0xc8   :  { %2129 = vmatpush1.bf16.msra.mxu1 %v9951_v19  ;;  %v534_v19 = vld [vmem:[%s13349_s6 + $0x5f8] sm:$0xff]  ;;  %v9834_v6 = vcombine.high %v354_v0, %v358_v1 }
  0xc9   :  { %2130 = vmatprep.subr.bf16.mxu1 %v10072_v21  ;;  %v10015_v21 = vcombine.low %v537_v8, %v541_v9  ;;  %v10010_v23 = vcombine.high %v530_v18, %v534_v19  ;;  %v346_v8 = vld [vmem:[%s13349_s6 + $0x18] sm:$0xff] }
  0xca   :  { %2088 = vmatpush2.bf16.msra.mxu0 %v9943_v26  ;;  %v522_v26 = vld [vmem:[%s13349_s6 + $0x598] sm:$0xff] }
  0xcb   :  { %2089 = vmatprep.subr.bf16.mxu0 %v9936_v28  ;;  %v9881_v28 = vcombine.low %v402_v16, %v406_v17  ;;  %v350_v9 = vld [vmem:[%s13349_s6 + $0x38] sm:$0xff] }
  0xcc   :  { %2131 = vmatpush2.bf16.msra.mxu1 %v10071_v27  ;;  %v526_v27 = vld [vmem:[%s13349_s6 + $0x5b8] sm:$0xff]  ;;  %v9826_v16 = vcombine.high %v346_v8, %v350_v9 }
  0xcd   :  { %2132 = vmatprep.subr.bf16.mxu1 %v10064_v29  ;;  %v10009_v29 = vcombine.low %v530_v18, %v534_v19  ;;  %v10002_v31 = vcombine.high %v522_v26, %v526_v27  ;;  %v466_v18 = vld [vmem:[%s13349_s6 + $0x3d8] sm:$0xff] }
  0xce   :  { %2090 = vmatpush2.bf16.msra.mxu0 %v9935_v34  ;;  %v514_v34 = vld [vmem:[%s13349_s6 + $0x558] sm:$0xff] }
  0xcf   :  { %2091 = vmatprep.subr.bf16.mxu0 %v9928_v36  ;;  %v9873_v36 = vcombine.low %v394_v24, %v398_v25  ;;  %v470_v19 = vld [vmem:[%s13349_s6 + $0x3f8] sm:$0xff] }
  0xd0   :  { %2133 = vmatpush2.bf16.msra.mxu1 %v10063_v35  ;;  %v518_v35 = vld [vmem:[%s13349_s6 + $0x578] sm:$0xff]  ;;  %v9946_v24 = vcombine.high %v466_v18, %v470_v19 }
  0xd1   :  { %2134 = vmatprep.subr.bf16.mxu1 %v10056_v37  ;;  %v10001_v37 = vcombine.low %v522_v26, %v526_v27  ;;  %v9994_v39 = vcombine.high %v514_v34, %v518_v35  ;;  %v458_v26 = vld [vmem:[%s13349_s6 + $0x398] sm:$0xff] }
  0xd2   :  { %2092 = vmatpush2.bf16.msra.mxu0 %v9927_v42  ;;  %v510_v42 = vld [vmem:[%s13349_s6 + $0x538] sm:$0xff] }
  0xd3   :  { %2093 = vmatprep.subr.bf16.mxu0 %v9920_v56  ;;  %v9865_v56 = vcombine.low %v386_v32, %v390_v33  ;;  %v9986_v45 = vcombine.high %v506_v41, %v510_v42  ;;  %v462_v27 = vld [vmem:[%s13349_s6 + $0x3b8] sm:$0xff] }
  0xd4   :  { %2135 = vmatpush2.bf16.msra.mxu1 %v10055_v43  ;;  %v11167_v43 = vld [vmem:[%s13344_s1 + $0xc] ss:$16 sps:$4 sm:$0xff]   ;;  %v9938_v32 = vcombine.high %v458_v26, %v462_v27 }
  0xd5   :  { %2136 = vmatprep.subr.bf16.mxu1 %v10048_v44  ;;  %v9993_v44 = vcombine.low %v514_v34, %v518_v35  ;;  %v450_v34 = vld [vmem:[%s13349_s6 + $0x358] sm:$0xff] }
  0xd6   :  { %2094 = vmatpush2.bf16.msra.mxu0 %v9919_v48  ;;  %v498_v48 = vld [vmem:[%s13349_s6 + $0x4d8] sm:$0xff] }
  0xd7   :  { %2095 = vmatprep.subr.bf16.mxu0 %v9912_v50  ;;  %v454_v35 = vld [vmem:[%s13349_s6 + $0x378] sm:$0xff] }
  0xd8   :  { %2137 = vmatpush2.bf16.msra.mxu1 %v10047_v49  ;;  %v502_v49 = vld [vmem:[%s13349_s6 + $0x4f8] sm:$0xff] }
  0xd9   :  { %2138 = vmatprep.subr.bf16.mxu1 %v10040_v51  ;;  %v9985_v51 = vcombine.low %v506_v41, %v510_v42  ;;  %v9978_v53 = vcombine.high %v498_v48, %v502_v49  ;;  %v446_v41 = vld [vmem:[%s13349_s6 + $0x338] sm:$0xff] }
  0xda   :  { %2096 = vmatpush2.bf16.msra.mxu0 %v9911_v57  ;;  %v490_v57 = vld [vmem:[%s13349_s6 + $0x498] sm:$0xff] }
  0xdb   :  { %2097 = vmatprep.subr.bf16.mxu0 %v9904_v60  ;;  %v9849_v60 = vcombine.low %v370_v46, %v374_v47  ;;  %v570_v42 = vld [vmem:[%s13349_s6 + $0x718] sm:$0xff] }
  0xdc   :  { %2139 = vmatpush2.bf16.msra.mxu1 %v10039_v58  ;;  %v494_v58 = vld [vmem:[%s13349_s6 + $0x4b8] sm:$0xff] }
  0xdd   :  { %2140 = vmatprep.subr.bf16.mxu1 %v10032_v61  ;;  %v9977_v61 = vcombine.low %v498_v48, %v502_v49  ;;  %v9970_v63 = vcombine.high %v490_v57, %v494_v58  ;;  %v434_v46 = vld [vmem:[%s13349_s6 + $0x2d8] sm:$0xff] }
  0xde   :  { %2098 = vmatpush2.bf16.msra.mxu0 %v9903_v2  ;;  %v482_v2 = vld [vmem:[%s13349_s6 + $0x458] sm:$0xff] }
  0xdf   :  { %2099 = vmatprep.subr.bf16.mxu0 %v9896_v4  ;;  %v9841_v4 = vcombine.low %v362_v54, %v366_v55  ;;  %v438_v47 = vld [vmem:[%s13349_s6 + $0x2f8] sm:$0xff] }
  0xe0   :  { %2141 = vmatpush2.bf16.msra.mxu1 %v10031_v3  ;;  %v486_v3 = vld [vmem:[%s13349_s6 + $0x478] sm:$0xff] }
  0xe1   :  { %2142 = vmatprep.subr.bf16.mxu1 %v10024_v5  ;;  %v9969_v5 = vcombine.low %v490_v57, %v494_v58  ;;  %v9962_v7 = vcombine.high %v482_v2, %v486_v3  ;;  %v562_v48 = vld [vmem:[%s13349_s6 + $0x6d8] sm:$0xff] }
  0xe2   :  { %2100 = vmatpush2.bf16.msra.mxu0 %v9895_v10  ;;  %v474_v10 = vld [vmem:[%s13349_s6 + $0x418] sm:$0xff] }
  0xe3   :  { %2101 = vmatprep.subr.bf16.mxu0 %v9888_v13  ;;  %v9833_v13 = vcombine.low %v354_v0, %v358_v1  ;;  %v566_v49 = vld [vmem:[%s13349_s6 + $0x6f8] sm:$0xff] }
  0xe4   :  { %2143 = vmatpush2.bf16.msra.mxu1 %v10023_v11  ;;  %v478_v11 = vld [vmem:[%s13349_s6 + $0x438] sm:$0xff] }
  0xe5   :  { %2144 = vmatprep.subr.bf16.mxu1 %v10016_v14  ;;  %v9961_v14 = vcombine.low %v482_v2, %v486_v3  ;;  %v9954_v17 = vcombine.high %v474_v10, %v478_v11  ;;  %v426_v54 = vld [vmem:[%s13349_s6 + $0x298] sm:$0xff] }
  0xe6   :  { %2102 = vmatpush2.bf16.msra.mxu0 %v9887_v20  ;;  %v594_v20 = vld [vmem:[%s13349_s6 + $0x7d8] sm:$0xff] }
  0xe7   :  { %2157 = vmatprep.subr.bf16.mxu0 %v9882_v22  ;;  %v9825_v22 = vcombine.low %v346_v8, %v350_v9  ;;  %v430_v55 = vld [vmem:[%s13349_s6 + $0x2b8] sm:$0xff] }
  0xe8   :  { %2145 = vmatpush2.bf16.msra.mxu1 %v10015_v21  ;;  %v598_v21 = vld [vmem:[%s13349_s6 + $0x7f8] sm:$0xff] }
  0xe9   :  { %2200 = vmatprep.subr.bf16.mxu1 %v10010_v23  ;;  %2104 = vmatmul.mubr.bf16.vlgmr.msra.gmra.mxu0 %v11549_v12  ;;  %v378_v12 = vld [vmem:[%s13349_s6 + $0x118] sm:$0xff]  ;;  %v9953_v23 = vcombine.low %v474_v10, %v478_v11  ;;  %v10074_v25 = vcombine.high %v594_v20, %v598_v21 }
  0xea   :  { %2158 = vmatpush1.bf16.msra.mxu0 %v9881_v28  ;;  %v9858_v59 = vcombine.high %v378_v12, %v382_v40  ;;  %v9857_v50 = vcombine.low %v378_v12, %v382_v40  ;;  %v586_v28 = vld [vmem:[%s13349_s6 + $0x798] sm:$0xff]  ;;  %v9930_v12 = vcombine.high %v450_v34, %v454_v35 }
  0xeb   :  { %2147 = vmatmul.mubr.bf16.vlgmr.msra.gmra.mxu1 %v11560_v15  ;;  %2159 = vmatprep.subr.bf16.mxu0 %v9874_v30  ;;  %v11166_v15 = vld [vmem:[%s13344_s1 + $0x4] ss:$16 sps:$4 sm:$0xff]   ;;  %v9945_v30 = vcombine.low %v466_v18, %v470_v19  ;;  %v554_v57 = vld [vmem:[%s13349_s6 + $0x698] sm:$0xff] }
  0xec   :  { %2201 = vmatpush1.bf16.msra.mxu1 %v10009_v29  ;;  %2189 = vmatprep.mubr.bf16.mxu0 %v11166_v15  ;;  %v590_v29 = vld [vmem:[%s13349_s6 + $0x7b8] sm:$0xff]  ;;  %v139_v18 = vld [vmem:[%s13348_s5 + $0x1c0] sm:$0xff] }
  0xed   :  { %2202 = vmatprep.subr.bf16.mxu1 %v10002_v31  ;;  %2232 = vmatprep.mubr.bf16.mxu1 %v11167_v43  ;;  %v10073_v31 = vcombine.low %v594_v20, %v598_v21  ;;  %v10066_v33 = vcombine.high %v586_v28, %v590_v29  ;;  %v442_v15 = vld [vmem:[%s13349_s6 + $0x318] sm:$0xff]  ;;  %v143_v19 = vld [vmem:[%s13348_s5 + $0x1e0] sm:$0xff] }
  0xee   :  { %2160 = vmatpush1.bf16.msra.mxu0 %v9873_v36  ;;  %v578_v36 = vld [vmem:[%s13349_s6 + $0x758] sm:$0xff]  ;;  %v267_v20 = vld [vmem:[%s13348_s5 + $0x5c0] sm:$0xff] }
  0xef   :  { %2161 = vmatprep.subr.bf16.mxu0 %v9866_v38  ;;  %v9937_v38 = vcombine.low %v458_v26, %v462_v27  ;;  %v574_v43 = vld [vmem:[%s13349_s6 + $0x738] sm:$0xff]  ;;  %v271_v21 = vld [vmem:[%s13348_s5 + $0x5e0] sm:$0xff] }
  0xf0   :  { %2203 = vmatpush1.bf16.msra.mxu1 %v10001_v37  ;;  %v582_v37 = vld [vmem:[%s13349_s6 + $0x778] sm:$0xff]  ;;  %v131_v26 = vld [vmem:[%s13348_s5 + $0x180] sm:$0xff] }
  0xf1   :  { %2204 = vmatprep.subr.bf16.mxu1 %v9994_v39  ;;  %v10065_v39 = vcombine.low %v586_v28, %v590_v29  ;;  %v10058_v40 = vcombine.high %v578_v36, %v582_v37  ;;  %v558_v58 = vld [vmem:[%s13349_s6 + $0x6b8] sm:$0xff]  ;;  %v135_v27 = vld [vmem:[%s13348_s5 + $0x1a0] sm:$0xff] }
  0xf2   :  { %2162 = vmatpush1.bf16.msra.mxu0 %v9865_v56  ;;  %v9929_v56 = vcombine.low %v450_v34, %v454_v35  ;;  %v418_v0 = vld [vmem:[%s13349_s6 + $0x258] sm:$0xff]  ;;  %v259_v28 = vld [vmem:[%s13348_s5 + $0x580] sm:$0xff] }
  0xf3   :  { %2163 = vmatprep.subr.bf16.mxu0 %v9858_v59  ;;  %v9922_v59 = vcombine.high %v442_v15, %v446_v41  ;;  %v422_v1 = vld [vmem:[%s13349_s6 + $0x278] sm:$0xff]  ;;  %v263_v29 = vld [vmem:[%s13348_s5 + $0x5a0] sm:$0xff] }
  0xf4   :  { %2205 = vmatpush1.bf16.msra.mxu1 %v9993_v44  ;;  %v10057_v44 = vcombine.low %v578_v36, %v582_v37  ;;  %v546_v2 = vld [vmem:[%s13349_s6 + $0x658] sm:$0xff]  ;;  %v123_v34 = vld [vmem:[%s13348_s5 + $0x140] sm:$0xff] }
  0xf5   :  { %2206 = vmatprep.subr.bf16.mxu1 %v9986_v45  ;;  %v10050_v45 = vcombine.high %v570_v42, %v574_v43  ;;  %v550_v3 = vld [vmem:[%s13349_s6 + $0x678] sm:$0xff]  ;;  %v127_v35 = vld [vmem:[%s13348_s5 + $0x160] sm:$0xff] }
  0xf6   :  { %2164 = vmatpush1.bf16.msra.mxu0 %v9857_v50  ;;  %v9921_v50 = vcombine.low %v442_v15, %v446_v41  ;;  %v410_v8 = vld [vmem:[%s13349_s6 + $0x218] sm:$0xff]  ;;  %v12163_v36 = vld [vmem:[%s13343_s0 + $0x4] ss:$16 sps:$4 sm:$0xff]  }
  0xf7   :  { %2165 = vmatprep.subr.bf16.mxu0 %v9850_v52  ;;  %v9914_v52 = vcombine.high %v434_v46, %v438_v47  ;;  %v414_v9 = vld [vmem:[%s13349_s6 + $0x238] sm:$0xff] }
  0xf8   :  { %2207 = vmatpush1.bf16.msra.mxu1 %v9985_v51  ;;  %v10049_v51 = vcombine.low %v570_v42, %v574_v43  ;;  %v538_v10 = vld [vmem:[%s13349_s6 + $0x618] sm:$0xff]  ;;  %v10127_v42 = vcombine.low %v131_v26, %v135_v27 }
  0xf9   :  { %2208 = vmatprep.subr.bf16.mxu1 %v9978_v53  ;;  %v10042_v53 = vcombine.high %v562_v48, %v566_v49  ;;  %v542_v11 = vld [vmem:[%s13349_s6 + $0x638] sm:$0xff] }
  0xfa   :  { %2166 = vmatpush1.bf16.msra.mxu0 %v9849_v60  ;;  %v9913_v60 = vcombine.low %v434_v46, %v438_v47  ;;  %v11169_v41 = vld [vmem:[%s13344_s1 + $0x8] ss:$16 sps:$4 sm:$0xff]   ;;  %v115_v47 = vld [vmem:[%s13348_s5 + $0x100] sm:$0xff] }
  0xfb   :  { %2167 = vmatprep.subr.bf16.mxu0 %v9842_v62  ;;  %v9906_v62 = vcombine.high %v426_v54, %v430_v55 }
  0xfc   :  { %2209 = vmatpush1.bf16.msra.mxu1 %v9977_v61  ;;  %v10041_v61 = vcombine.low %v562_v48, %v566_v49  ;;  %v119_v48 = vld [vmem:[%s13348_s5 + $0x120] sm:$0xff] }
  0xfd   :  { %2210 = vmatprep.subr.bf16.mxu1 %v9970_v63  ;;  %v10034_v63 = vcombine.high %v554_v57, %v558_v58 }
  0xfe   :  { %2168 = vmatpush1.bf16.msra.mxu0 %v9841_v4  ;;  %v9905_v4 = vcombine.low %v426_v54, %v430_v55  ;;  %v10119_v54 = vcombine.low %v123_v34, %v127_v35 }
  0xff   :  { %2169 = vmatprep.subr.bf16.mxu0 %v9834_v6  ;;  %v9898_v6 = vcombine.high %v418_v0, %v422_v1 }
 0x100   :  { %2211 = vmatpush1.bf16.msra.mxu1 %v9969_v5  ;;  %v10033_v5 = vcombine.low %v554_v57, %v558_v58 }
 0x101   :  { %2212 = vmatprep.subr.bf16.mxu1 %v9962_v7  ;;  %v10026_v7 = vcombine.high %v546_v2, %v550_v3 }
 0x102   :  { %2170 = vmatpush1.bf16.msra.mxu0 %v9833_v13  ;;  %v9897_v13 = vcombine.low %v418_v0, %v422_v1  ;;  %v111_v0 = vld [vmem:[%s13348_s5 + $0xe0] sm:$0xff] }
 0x103   :  { %2171 = vmatprep.subr.bf16.mxu0 %v9826_v16  ;;  %v9890_v16 = vcombine.high %v410_v8, %v414_v9 }
 0x104   :  { %2213 = vmatpush1.bf16.msra.mxu1 %v9961_v14  ;;  %v10025_v14 = vcombine.low %v546_v2, %v550_v3  ;;  %v235_v2 = vld [vmem:[%s13348_s5 + $0x4c0] sm:$0xff] }
 0x105   :  { %2214 = vmatprep.subr.bf16.mxu1 %v9954_v17  ;;  %v10018_v17 = vcombine.high %v538_v10, %v542_v11  ;;  %v239_v3 = vld [vmem:[%s13348_s5 + $0x4e0] sm:$0xff] }
 0x106   :  { %2172 = vmatpush1.bf16.msra.mxu0 %v9825_v22  ;;  %v9889_v22 = vcombine.low %v410_v8, %v414_v9  ;;  %v99_v8 = vld [vmem:[%s13348_s5 + $0x80] sm:$0xff] }
 0x107   :  { %2173 = vmatprep.subr.bf16.mxu0 %v9946_v24  ;;  %v10136_v24 = vcombine.high %v139_v18, %v143_v19  ;;  %v103_v9 = vld [vmem:[%s13348_s5 + $0xa0] sm:$0xff] }
 0x108   :  { %2215 = vmatpush1.bf16.msra.mxu1 %v9953_v23  ;;  %v10017_v23 = vcombine.low %v538_v10, %v542_v11  ;;  %v227_v10 = vld [vmem:[%s13348_s5 + $0x480] sm:$0xff] }
 0x109   :  { %2216 = vmatprep.subr.bf16.mxu1 %v10074_v25  ;;  %v10264_v25 = vcombine.high %v267_v20, %v271_v21  ;;  %v231_v11 = vld [vmem:[%s13348_s5 + $0x4a0] sm:$0xff] }
 0x10a   :  { %2174 = vmatpush2.bf16.msra.mxu0 %v9945_v30  ;;  %v10135_v30 = vcombine.low %v139_v18, %v143_v19  ;;  %v91_v18 = vld [vmem:[%s13348_s5 + $0x40] sm:$0xff] }
 0x10b   :  { %2175 = vmatprep.subr.bf16.mxu0 %v9938_v32  ;;  %v10128_v32 = vcombine.high %v131_v26, %v135_v27  ;;  %v95_v19 = vld [vmem:[%s13348_s5 + $0x60] sm:$0xff] }
 0x10c   :  { %2217 = vmatpush2.bf16.msra.mxu1 %v10073_v31  ;;  %v10263_v31 = vcombine.low %v267_v20, %v271_v21  ;;  %v219_v20 = vld [vmem:[%s13348_s5 + $0x440] sm:$0xff] }
 0x10d   :  { %2218 = vmatprep.subr.bf16.mxu1 %v10066_v33  ;;  %v10256_v33 = vcombine.high %v259_v28, %v263_v29  ;;  %v223_v21 = vld [vmem:[%s13348_s5 + $0x460] sm:$0xff] }
 0x10e   :  { %2176 = vmatpush2.bf16.msra.mxu0 %v9937_v38  ;;  %v11168_v38 = vld [vmem:[%s13344_s1] ss:$16 sps:$4 sm:$0xff]  }
 0x10f   :  { %2177 = vmatprep.subr.bf16.mxu0 %v9930_v12  ;;  %v255_v12 = vld [vmem:[%s13348_s5 + $0x560] sm:$0xff] }
 0x110   :  { %2219 = vmatpush2.bf16.msra.mxu1 %v10065_v39  ;;  %v251_v39 = vld [vmem:[%s13348_s5 + $0x540] sm:$0xff] }
 0x111   :  { %2220 = vmatprep.subr.bf16.mxu1 %v10058_v40  ;;  %v12177_v40 = vld [vmem:[%s13343_s0 + $0xc] ss:$16 sps:$4 sm:$0xff]   ;;  %v10248_v46 = vcombine.high %v251_v39, %v255_v12  ;;  %v10247_v58 = vcombine.low %v251_v39, %v255_v12  ;;  %v83_v26 = vld [vmem:[%s13348_s5] sm:$0xff] }
 0x112   :  { %2178 = vmatpush2.bf16.msra.mxu0 %v9929_v56  ;;  %v87_v27 = vld [vmem:[%s13348_s5 + $0x20] sm:$0xff] }
 0x113   :  { %2179 = vmatprep.subr.bf16.mxu0 %v9922_v59  ;;  %v10120_v59 = vcombine.high %v123_v34, %v127_v35  ;;  %v203_v34 = vld [vmem:[%s13348_s5 + $0x3c0] sm:$0xff]  ;;  %v10079_v39 = vcombine.low %v83_v26, %v87_v27 }
 0x114   :  { %2221 = vmatpush2.bf16.msra.mxu1 %v10057_v44  ;;  %v10255_v44 = vcombine.low %v259_v28, %v263_v29  ;;  %v211_v28 = vld [vmem:[%s13348_s5 + $0x400] sm:$0xff] }
 0x115   :  { %2222 = vmatprep.subr.bf16.mxu1 %v10050_v45  ;;  %v215_v29 = vld [vmem:[%s13348_s5 + $0x420] sm:$0xff] }
 0x116   :  { %2180 = vmatpush2.bf16.msra.mxu0 %v9921_v50  ;;  %v207_v35 = vld [vmem:[%s13348_s5 + $0x3e0] sm:$0xff]  ;;  %v10207_v12 = vcombine.low %v211_v28, %v215_v29 }
 0x117   :  { %2181 = vmatprep.subr.bf16.mxu0 %v9914_v52  ;;  %v247_v52 = vld [vmem:[%s13348_s5 + $0x520] sm:$0xff] }
 0x118   :  { %2223 = vmatpush2.bf16.msra.mxu1 %v10049_v51  ;;  %v243_v51 = vld [vmem:[%s13348_s5 + $0x500] sm:$0xff] }
 0x119   :  { %2224 = vmatprep.subr.bf16.mxu1 %v10042_v53 }
 0x11a   :  { %2182 = vmatpush2.bf16.msra.mxu0 %v9913_v60  ;;  %v10112_v60 = vcombine.high %v115_v47, %v119_v48 }
 0x11b   :  { %2183 = vmatprep.subr.bf16.mxu0 %v9906_v62  ;;  %v10240_v62 = vcombine.high %v243_v51, %v247_v52 }
 0x11c   :  { %2225 = vmatpush2.bf16.msra.mxu1 %v10041_v61 }
 0x11d   :  { %2226 = vmatprep.subr.bf16.mxu1 %v10034_v63  ;;  %v107_v63 = vld [vmem:[%s13348_s5 + $0xc0] sm:$0xff] }
 0x11e   :  { %2184 = vmatpush2.bf16.msra.mxu0 %v9905_v4  ;;  %v10111_v4 = vcombine.low %v115_v47, %v119_v48 }
 0x11f   :  { %2185 = vmatprep.subr.bf16.mxu0 %v9898_v6  ;;  %v10104_v6 = vcombine.high %v107_v63, %v111_v0 }
 0x120   :  { %2227 = vmatpush2.bf16.msra.mxu1 %v10033_v5  ;;  %v10239_v5 = vcombine.low %v243_v51, %v247_v52  ;;  %v191_v51 = vld [vmem:[%s13348_s5 + $0x360] sm:$0xff] }
 0x121   :  { %2228 = vmatprep.subr.bf16.mxu1 %v10026_v7  ;;  %v10232_v7 = vcombine.high %v235_v2, %v239_v3  ;;  %v315_v52 = vld [vmem:[%s13348_s5 + $0x740] sm:$0xff] }
 0x122   :  { %2186 = vmatpush2.bf16.msra.mxu0 %v9897_v13  ;;  %v10103_v13 = vcombine.low %v107_v63, %v111_v0  ;;  %v307_v63 = vld [vmem:[%s13348_s5 + $0x700] sm:$0xff] }
 0x123   :  { %2187 = vmatprep.subr.bf16.mxu0 %v9890_v16  ;;  %v10096_v16 = vcombine.high %v99_v8, %v103_v9  ;;  %v311_v0 = vld [vmem:[%s13348_s5 + $0x720] sm:$0xff] }
 0x124   :  { %2229 = vmatpush2.bf16.msra.mxu1 %v10025_v14  ;;  %v10231_v14 = vcombine.low %v235_v2, %v239_v3 }
 0x125   :  { %2230 = vmatprep.subr.bf16.mxu1 %v10018_v17  ;;  %v10224_v17 = vcombine.high %v227_v10, %v231_v11 }
 0x126   :  { %2188 = vmatpush2.bf16.msra.mxu0 %v9889_v22  ;;  %v10095_v22 = vcombine.low %v99_v8, %v103_v9  ;;  %v299_v8 = vld [vmem:[%s13348_s5 + $0x6c0] sm:$0xff] }
 0x127   :  { %3543 = vmatprep.subr.bf16.mxu0 %v10136_v24  ;;  %v10088_v24 = vcombine.high %v91_v18, %v95_v19  ;;  %v303_v9 = vld [vmem:[%s13348_s5 + $0x6e0] sm:$0xff] }
 0x128   :  { %2231 = vmatpush2.bf16.msra.mxu1 %v10017_v23  ;;  %v10223_v23 = vcombine.low %v227_v10, %v231_v11  ;;  %v10303_v11 = vcombine.low %v307_v63, %v311_v0 }
 0x129   :  { %3586 = vmatprep.subr.bf16.mxu1 %v10264_v25  ;;  %v1933_v37 = vpop.f32.mrf.mxu0  ;;  %2190 = vmatmul.mubr.bf16.vlgmr.msra.gmra.mxu0 %v11168_v38  ;;  %v10216_v25 = vcombine.high %v219_v20, %v223_v21  ;;  %v335_v38 = vld [vmem:[%s13348_s5 + $0x7e0] sm:$0xff] }
 0x12a   :  { %3544 = vmatpush1.bf16.msra.mxu0 %v10135_v30  ;;  %3575 = vmatprep.mubr.bf16.mxu0 %v12163_v36  ;;  %v10087_v30 = vcombine.low %v91_v18, %v95_v19  ;;  %v291_v18 = vld [vmem:[%s13348_s5 + $0x680] sm:$0xff] }
 0x12b   :  { %v1976_v15 = vpop.f32.mrf.mxu1  ;;  %2233 = vmatmul.mubr.bf16.vlgmr.msra.gmra.mxu1 %v11169_v41  ;;  %v1935_v56 = vpop.f32.mrf.mxu0  ;;  %3545 = vmatprep.subr.bf16.mxu0 %v10128_v32  ;;  %v10080_v32 = vcombine.high %v83_v26, %v87_v27  ;;  %v295_v19 = vld [vmem:[%s13348_s5 + $0x6a0] sm:$0xff] }
 0x12c   :  { %v12182_v43 = vadd.f32 %v1976_v15, %v1933_v37  ;;  %3587 = vmatpush1.bf16.msra.mxu1 %v10263_v31  ;;  %3618 = vmatprep.mubr.bf16.mxu1 %v12177_v40  ;;  %v10215_v31 = vcombine.low %v219_v20, %v223_v21  ;;  %v331_v37 = vld [vmem:[%s13348_s5 + $0x7c0] sm:$0xff]  ;;  %v10200_v15 = vcombine.high %v203_v34, %v207_v35 }
 0x12d   :  { %v1978_v45 = vpop.f32.mrf.mxu1  ;;  %3588 = vmatprep.subr.bf16.mxu1 %v10256_v33  ;;  %v1937_v50 = vpop.f32.mrf.mxu0  ;;  %v10208_v33 = vcombine.high %v211_v28, %v215_v29  ;;  %v10328_v41 = vcombine.high %v331_v37, %v335_v38  ;;  %v10295_v21 = vcombine.low %v299_v8, %v303_v9  ;;  %v283_v26 = vld [vmem:[%s13348_s5 + $0x640] sm:$0xff]  ;;  %v10287_v29 = vcombine.low %v291_v18, %v295_v19 }
 0x12e   :  { %v12191_v49 = vadd.f32 %v1978_v45, %v1935_v56  ;;  %3546 = vmatpush1.bf16.msra.mxu0 %v10127_v42  ;;  %v195_v42 = vld [vmem:[%s13348_s5 + $0x380] sm:$0xff]  ;;  %v10199_v45 = vcombine.low %v203_v34, %v207_v35 }
 0x12f   :  { %v1980_v53 = vpop.f32.mrf.mxu1  ;;  %v1939_v57 = vpop.f32.mrf.mxu0  ;;  %3547 = vmatprep.subr.bf16.mxu0 %v10120_v59  ;;  %v199_v56 = vld [vmem:[%s13348_s5 + $0x3a0] sm:$0xff] }
 0x130   :  { %v12200_v55 = vadd.f32 %v1980_v53, %v1937_v50  ;;  %3589 = vmatpush1.bf16.msra.mxu1 %v10255_v44  ;;  %v323_v44 = vld [vmem:[%s13348_s5 + $0x780] sm:$0xff]  ;;  %v10192_v47 = vcombine.high %v195_v42, %v199_v56 }
 0x131   :  { %v1982_v61 = vpop.f32.mrf.mxu1  ;;  %3590 = vmatprep.subr.bf16.mxu1 %v10248_v46  ;;  %v327_v59 = vld [vmem:[%s13348_s5 + $0x7a0] sm:$0xff]  ;;  %v10327_v46 = vcombine.low %v331_v37, %v335_v38 }
 0x132   :  { %v12208_v1 = vadd.f32 %v1982_v61, %v1939_v57  ;;  %3548 = vmatpush1.bf16.msra.mxu0 %v10119_v54  ;;  %v10320_v48 = vcombine.high %v323_v44, %v327_v59  ;;  %v187_v50 = vld [vmem:[%s13348_s5 + $0x340] sm:$0xff]  ;;  %v10191_v54 = vcombine.low %v195_v42, %v199_v56  ;;  %v10319_v57 = vcombine.low %v323_v44, %v327_v59  ;;  %v268_v42 = vld [vmem:[%s13348_s5 + $0x5c8] sm:$0xff] }
 0x133   :  { %3549 = vmatprep.subr.bf16.mxu0 %v10112_v60  ;;  %v319_v53 = vld [vmem:[%s13348_s5 + $0x760] sm:$0xff]  ;;  %v10183_v2 = vcombine.low %v187_v50, %v191_v51  ;;  %v272_v56 = vld [vmem:[%s13348_s5 + $0x5e8] sm:$0xff] }
 0x134   :  { %3591 = vmatpush1.bf16.msra.mxu1 %v10247_v58  ;;  %v10184_v58 = vcombine.high %v187_v50, %v191_v51  ;;  %v10312_v60 = vcombine.high %v315_v52, %v319_v53  ;;  %v179_v61 = vld [vmem:[%s13348_s5 + $0x300] sm:$0xff]  ;;  %v10311_v3 = vcombine.low %v315_v52, %v319_v53  ;;  %v260_v51 = vld [vmem:[%s13348_s5 + $0x588] sm:$0xff] }
 0x135   :  { %3592 = vmatprep.subr.bf16.mxu1 %v10240_v62  ;;  %v183_v62 = vld [vmem:[%s13348_s5 + $0x320] sm:$0xff]  ;;  %v264_v52 = vld [vmem:[%s13348_s5 + $0x5a8] sm:$0xff] }
 0x136   :  { %3550 = vmatpush1.bf16.msra.mxu0 %v10111_v4  ;;  %v10176_v4 = vcombine.high %v179_v61, %v183_v62  ;;  %v10175_v10 = vcombine.low %v179_v61, %v183_v62  ;;  %v287_v27 = vld [vmem:[%s13348_s5 + $0x660] sm:$0xff]  ;;  %v12380_v53 = vld [vmem:[%s13343_s0 + $0x8] ss:$16 sps:$4 sm:$0xff]  }
 0x137   :  { %3551 = vmatprep.subr.bf16.mxu0 %v10104_v6  ;;  %v171_v6 = vld [vmem:[%s13348_s5 + $0x2c0] sm:$0xff]  ;;  %v10279_v38 = vcombine.low %v283_v26, %v287_v27  ;;  %v124_v61 = vld [vmem:[%s13348_s5 + $0x148] sm:$0xff] }
 0x138   :  { %3593 = vmatpush1.bf16.msra.mxu1 %v10239_v5  ;;  %v10304_v5 = vcombine.high %v307_v63, %v311_v0  ;;  %v275_v34 = vld [vmem:[%s13348_s5 + $0x600] sm:$0xff]  ;;  %v128_v62 = vld [vmem:[%s13348_s5 + $0x168] sm:$0xff] }
 0x139   :  { %3594 = vmatprep.subr.bf16.mxu1 %v10232_v7  ;;  %v175_v7 = vld [vmem:[%s13348_s5 + $0x2e0] sm:$0xff]  ;;  %v252_v0 = vld [vmem:[%s13348_s5 + $0x548] sm:$0xff] }
 0x13a   :  { %3552 = vmatpush1.bf16.msra.mxu0 %v10103_v13  ;;  %v10168_v13 = vcombine.high %v171_v6, %v175_v7  ;;  %v10167_v20 = vcombine.low %v171_v6, %v175_v7  ;;  %v279_v35 = vld [vmem:[%s13348_s5 + $0x620] sm:$0xff]  ;;  %v10257_v7 = vcombine.low %v260_v51, %v264_v52 }
 0x13b   :  { %3553 = vmatprep.subr.bf16.mxu0 %v10096_v16  ;;  %v163_v16 = vld [vmem:[%s13348_s5 + $0x280] sm:$0xff]  ;;  %v10271_v59 = vcombine.low %v275_v34, %v279_v35 }
 0x13c   :  { %3595 = vmatpush1.bf16.msra.mxu1 %v10231_v14  ;;  %v10296_v14 = vcombine.high %v299_v8, %v303_v9  ;;  %v12369_v50 = vld [vmem:[%s13343_s0] ss:$16 sps:$4 sm:$0xff]   ;;  %v10122_v8 = vcombine.high %v124_v61, %v128_v62 }
 0x13d   :  { %3596 = vmatprep.subr.bf16.mxu1 %v10224_v17  ;;  %v167_v17 = vld [vmem:[%s13348_s5 + $0x2a0] sm:$0xff] }
 0x13e   :  { %3554 = vmatpush1.bf16.msra.mxu0 %v10095_v22  ;;  %v10160_v22 = vcombine.high %v163_v16, %v167_v17  ;;  %v10159_v28 = vcombine.low %v163_v16, %v167_v17  ;;  %v244_v17 = vld [vmem:[%s13348_s5 + $0x508] sm:$0xff] }
 0x13f   :  { %3555 = vmatprep.subr.bf16.mxu0 %v10088_v24  ;;  %v155_v24 = vld [vmem:[%s13348_s5 + $0x240] sm:$0xff] }
 0x140   :  { %3597 = vmatpush1.bf16.msra.mxu1 %v10223_v23  ;;  %v10288_v23 = vcombine.high %v291_v18, %v295_v19  ;;  %v248_v18 = vld [vmem:[%s13348_s5 + $0x528] sm:$0xff] }
 0x141   :  { %3598 = vmatprep.subr.bf16.mxu1 %v10216_v25  ;;  %v159_v25 = vld [vmem:[%s13348_s5 + $0x260] sm:$0xff] }
 0x142   :  { %3556 = vmatpush1.bf16.msra.mxu0 %v10087_v30  ;;  %v10152_v30 = vcombine.high %v155_v24, %v159_v25  ;;  %v10151_v37 = vcombine.low %v155_v24, %v159_v25 }
 0x143   :  { %3557 = vmatprep.subr.bf16.mxu0 %v10080_v32  ;;  %v147_v32 = vld [vmem:[%s13348_s5 + $0x200] sm:$0xff] }
 0x144   :  { %3599 = vmatpush1.bf16.msra.mxu1 %v10215_v31  ;;  %v10280_v31 = vcombine.high %v283_v26, %v287_v27  ;;  %v10242_v26 = vcombine.high %v244_v17, %v248_v18  ;;  %v108_v27 = vld [vmem:[%s13348_s5 + $0xc8] sm:$0xff] }
 0x145   :  { %3600 = vmatprep.subr.bf16.mxu1 %v10208_v33  ;;  %v151_v33 = vld [vmem:[%s13348_s5 + $0x220] sm:$0xff] }
 0x146   :  { %3558 = vmatpush1.bf16.msra.mxu0 %v10079_v39  ;;  %v10144_v39 = vcombine.high %v147_v32, %v151_v33  ;;  %v10143_v44 = vcombine.low %v147_v32, %v151_v33  ;;  %v10241_v33 = vcombine.low %v244_v17, %v248_v18  ;;  %v328_v17 = vld [vmem:[%s13348_s5 + $0x7a8] sm:$0xff] }
 0x147   :  { %3559 = vmatprep.subr.bf16.mxu0 %v10200_v15  ;;  %v140_v15 = vld [vmem:[%s13348_s5 + $0x1c8] sm:$0xff] }
 0x148   :  { %3601 = vmatpush1.bf16.msra.mxu1 %v10207_v12  ;;  %v10272_v12 = vcombine.high %v275_v34, %v279_v35 }
 0x149   :  { %3602 = vmatprep.subr.bf16.mxu1 %v10328_v41  ;;  %v144_v41 = vld [vmem:[%s13348_s5 + $0x1e8] sm:$0xff] }
 0x14a   :  { %3560 = vmatpush2.bf16.msra.mxu0 %v10199_v45  ;;  %v10138_v45 = vcombine.high %v140_v15, %v144_v41 }
 0x14b   :  { %3561 = vmatprep.subr.bf16.mxu0 %v10192_v47  ;;  %v132_v47 = vld [vmem:[%s13348_s5 + $0x188] sm:$0xff] }
 0x14c   :  { %3603 = vmatpush2.bf16.msra.mxu1 %v10327_v46  ;;  %v10266_v46 = vcombine.high %v268_v42, %v272_v56 }
 0x14d   :  { %3604 = vmatprep.subr.bf16.mxu1 %v10320_v48  ;;  %v136_v48 = vld [vmem:[%s13348_s5 + $0x1a8] sm:$0xff] }
 0x14e   :  { %3562 = vmatpush2.bf16.msra.mxu0 %v10191_v54  ;;  %v10137_v54 = vcombine.low %v140_v15, %v144_v41 }
 0x14f   :  { %3563 = vmatprep.subr.bf16.mxu0 %v10184_v58  ;;  %v10130_v58 = vcombine.high %v132_v47, %v136_v48 }
 0x150   :  { %3605 = vmatpush2.bf16.msra.mxu1 %v10319_v57  ;;  %v10265_v57 = vcombine.low %v268_v42, %v272_v56 }
 0x151   :  { %3606 = vmatprep.subr.bf16.mxu1 %v10312_v60  ;;  %v10258_v60 = vcombine.high %v260_v51, %v264_v52 }
 0x152   :  { %3564 = vmatpush2.bf16.msra.mxu0 %v10183_v2  ;;  %v256_v2 = vld [vmem:[%s13348_s5 + $0x568] sm:$0xff] }
 0x153   :  { %3565 = vmatprep.subr.bf16.mxu0 %v10176_v4  ;;  %v10129_v4 = vcombine.low %v132_v47, %v136_v48 }
 0x154   :  { %3607 = vmatpush2.bf16.msra.mxu1 %v10311_v3 }
 0x155   :  { %3608 = vmatprep.subr.bf16.mxu1 %v10304_v5 }
 0x156   :  { %3566 = vmatpush2.bf16.msra.mxu0 %v10175_v10  ;;  %v10250_v10 = vcombine.high %v252_v0, %v256_v2 }
 0x157   :  { %3567 = vmatprep.subr.bf16.mxu0 %v10168_v13  ;;  %v120_v13 = vld [vmem:[%s13348_s5 + $0x128] sm:$0xff] }
 0x158   :  { %3609 = vmatpush2.bf16.msra.mxu1 %v10303_v11  ;;  %v116_v11 = vld [vmem:[%s13348_s5 + $0x108] sm:$0xff] }
 0x159   :  { %3610 = vmatprep.subr.bf16.mxu1 %v10296_v14  ;;  %v10114_v24 = vcombine.high %v116_v11, %v120_v13  ;;  %v10113_v32 = vcombine.low %v116_v11, %v120_v13  ;;  %v196_v11 = vld [vmem:[%s13348_s5 + $0x388] sm:$0xff] }
 0x15a   :  { %3568 = vmatpush2.bf16.msra.mxu0 %v10167_v20  ;;  %v10121_v20 = vcombine.low %v124_v61, %v128_v62  ;;  %v200_v13 = vld [vmem:[%s13348_s5 + $0x3a8] sm:$0xff] }
 0x15b   :  { %3569 = vmatprep.subr.bf16.mxu0 %v10160_v22 }
 0x15c   :  { %3611 = vmatpush2.bf16.msra.mxu1 %v10295_v21 }
 0x15d   :  { %3612 = vmatprep.subr.bf16.mxu1 %v10288_v23  ;;  %v10249_v23 = vcombine.low %v252_v0, %v256_v2  ;;  %v204_v2 = vld [vmem:[%s13348_s5 + $0x3c8] sm:$0xff] }
 0x15e   :  { %3570 = vmatpush2.bf16.msra.mxu0 %v10159_v28  ;;  %v112_v28 = vld [vmem:[%s13348_s5 + $0xe8] sm:$0xff] }
 0x15f   :  { %3571 = vmatprep.subr.bf16.mxu0 %v10152_v30  ;;  %v236_v30 = vld [vmem:[%s13348_s5 + $0x4c8] sm:$0xff]  ;;  %v10106_v34 = vcombine.high %v108_v27, %v112_v28  ;;  %v10105_v15 = vcombine.low %v108_v27, %v112_v28  ;;  %v10193_v27 = vcombine.low %v196_v11, %v200_v13 }
 0x160   :  { %3613 = vmatpush2.bf16.msra.mxu1 %v10287_v29 }
 0x161   :  { %3614 = vmatprep.subr.bf16.mxu1 %v10280_v31  ;;  %v240_v31 = vld [vmem:[%s13348_s5 + $0x4e8] sm:$0xff] }
 0x162   :  { %3572 = vmatpush2.bf16.msra.mxu0 %v10151_v37  ;;  %v10234_v35 = vcombine.high %v236_v30, %v240_v31  ;;  %v100_v37 = vld [vmem:[%s13348_s5 + $0x88] sm:$0xff]  ;;  %v10233_v41 = vcombine.low %v236_v30, %v240_v31 }
 0x163   :  { %3573 = vmatprep.subr.bf16.mxu0 %v10144_v39  ;;  %v228_v39 = vld [vmem:[%s13348_s5 + $0x488] sm:$0xff] }
 0x164   :  { %3615 = vmatpush2.bf16.msra.mxu1 %v10279_v38  ;;  %v104_v38 = vld [vmem:[%s13348_s5 + $0xa8] sm:$0xff] }
 0x165   :  { %3616 = vmatprep.subr.bf16.mxu1 %v10272_v12  ;;  %v232_v12 = vld [vmem:[%s13348_s5 + $0x4a8] sm:$0xff]  ;;  %v10098_v42 = vcombine.high %v100_v37, %v104_v38  ;;  %v10097_v47 = vcombine.low %v100_v37, %v104_v38 }
 0x166   :  { %3574 = vmatpush2.bf16.msra.mxu0 %v10143_v44  ;;  %v10226_v56 = vcombine.high %v228_v39, %v232_v12  ;;  %v92_v44 = vld [vmem:[%s13348_s5 + $0x48] sm:$0xff]  ;;  %v10225_v48 = vcombine.low %v228_v39, %v232_v12 }
 0x167   :  { %3629 = vmatprep.subr.bf16.mxu0 %v10138_v45  ;;  %v220_v45 = vld [vmem:[%s13348_s5 + $0x448] sm:$0xff] }
 0x168   :  { %3617 = vmatpush2.bf16.msra.mxu1 %v10271_v59  ;;  %v96_v59 = vld [vmem:[%s13348_s5 + $0x68] sm:$0xff] }
 0x169   :  { %3672 = vmatprep.subr.bf16.mxu1 %v10266_v46  ;;  %v2019_v63 = vpop.f32.mrf.mxu0  ;;  %3576 = vmatmul.mubr.bf16.vlgmr.msra.gmra.mxu0 %v12369_v50  ;;  %v224_v46 = vld [vmem:[%s13348_s5 + $0x468] sm:$0xff]  ;;  %v10090_v51 = vcombine.high %v92_v44, %v96_v59  ;;  %v10089_v61 = vcombine.low %v92_v44, %v96_v59 }
 0x16a   :  { %3630 = vmatpush1.bf16.msra.mxu0 %v10137_v54  ;;  %3661 = vmatprep.mubr.bf16.mxu0 %v12163_v36  ;;  %v10218_v52 = vcombine.high %v220_v45, %v224_v46  ;;  %v84_v54 = vld [vmem:[%s13348_s5 + $0x8] sm:$0xff]  ;;  %v10217_v62 = vcombine.low %v220_v45, %v224_v46 }
 0x16b   :  { %v2062_v3 = vpop.f32.mrf.mxu1  ;;  %3619 = vmatmul.mubr.bf16.vlgmr.msra.gmra.mxu1 %v12380_v53  ;;  %v2021_v6 = vpop.f32.mrf.mxu0  ;;  %3631 = vmatprep.subr.bf16.mxu0 %v10130_v58  ;;  %v212_v58 = vld [vmem:[%s13348_s5 + $0x408] sm:$0xff] }
 0x16c   :  { %v12396_v5 = vadd.f32 %v2062_v3, %v2019_v63  ;;  %3673 = vmatpush1.bf16.msra.mxu1 %v10265_v57  ;;  %3704 = vmatprep.mubr.bf16.mxu1 %v12177_v40  ;;  %v88_v57 = vld [vmem:[%s13348_s5 + $0x28] sm:$0xff] }
 0x16d   :  { %v2064_v9 = vpop.f32.mrf.mxu1  ;;  %3674 = vmatprep.subr.bf16.mxu1 %v10258_v60  ;;  %v2023_v16 = vpop.f32.mrf.mxu0  ;;  %v216_v60 = vld [vmem:[%s13348_s5 + $0x428] sm:$0xff]  ;;  %v10082_v63 = vcombine.high %v84_v54, %v88_v57 }
 0x16e   :  { %v12405_v14 = vadd.f32 %v2064_v9, %v2021_v6  ;;  %3632 = vmatpush1.bf16.msra.mxu0 %v10129_v4  ;;  %v10210_v0 = vcombine.high %v212_v58, %v216_v60  ;;  %v208_v3 = vld [vmem:[%s13348_s5 + $0x3e8] sm:$0xff] }
 0x16f   :  { %v2066_v19 = vpop.f32.mrf.mxu1  ;;  %v2025_v22 = vpop.f32.mrf.mxu0  ;;  %3633 = vmatprep.subr.bf16.mxu0 %v10122_v8  ;;  %v332_v4 = vld [vmem:[%s13348_s5 + $0x7c8] sm:$0xff]  ;;  %v10209_v8 = vcombine.low %v212_v58, %v216_v60  ;;  %v10202_v9 = vcombine.high %v204_v2, %v208_v3  ;;  %v10201_v18 = vcombine.low %v204_v2, %v208_v3 }
 0x170   :  { %v12414_v21 = vadd.f32 %v2066_v19, %v2023_v16  ;;  %3675 = vmatpush1.bf16.msra.mxu1 %v10257_v7  ;;  %v336_v6 = vld [vmem:[%s13348_s5 + $0x7e8] sm:$0xff]  ;;  %v10081_v7 = vcombine.low %v84_v54, %v88_v57 }
 0x171   :  { %v2068_v25 = vpop.f32.mrf.mxu1  ;;  %3676 = vmatprep.subr.bf16.mxu1 %v10250_v10  ;;  %v10330_v10 = vcombine.high %v332_v4, %v336_v6  ;;  %v324_v16 = vld [vmem:[%s13348_s5 + $0x788] sm:$0xff]  ;;  %v10329_v19 = vcombine.low %v332_v4, %v336_v6 }
 0x172   :  { %v12422_v29 = vadd.f32 %v2068_v25, %v2025_v22  ;;  %3634 = vmatpush1.bf16.msra.mxu0 %v10121_v20  ;;  %v10194_v20 = vcombine.high %v196_v11, %v200_v13  ;;  %v10322_v22 = vcombine.high %v324_v16, %v328_v17  ;;  %v316_v25 = vld [vmem:[%s13348_s5 + $0x748] sm:$0xff]  ;;  %v10321_v28 = vcombine.low %v324_v16, %v328_v17 }
 0x173   :  { %3635 = vmatprep.subr.bf16.mxu0 %v10114_v24  ;;  %v192_v24 = vld [vmem:[%s13348_s5 + $0x368] sm:$0xff] }
 0x174   :  { %3677 = vmatpush1.bf16.msra.mxu1 %v10249_v23  ;;  %v188_v23 = vld [vmem:[%s13348_s5 + $0x348] sm:$0xff] }
 0x175   :  { %3678 = vmatprep.subr.bf16.mxu1 %v10242_v26  ;;  %v320_v26 = vld [vmem:[%s13348_s5 + $0x768] sm:$0xff]  ;;  %v10186_v30 = vcombine.high %v188_v23, %v192_v24  ;;  %v10185_v37 = vcombine.low %v188_v23, %v192_v24 }
 0x176   :  { %3636 = vmatpush1.bf16.msra.mxu0 %v10113_v32  ;;  %v10314_v31 = vcombine.high %v316_v25, %v320_v26  ;;  %v180_v32 = vld [vmem:[%s13348_s5 + $0x308] sm:$0xff]  ;;  %v10313_v38 = vcombine.low %v316_v25, %v320_v26 }
 0x177   :  { %3637 = vmatprep.subr.bf16.mxu0 %v10106_v34  ;;  %v308_v34 = vld [vmem:[%s13348_s5 + $0x708] sm:$0xff] }
 0x178   :  { %3679 = vmatpush1.bf16.msra.mxu1 %v10241_v33  ;;  %v184_v33 = vld [vmem:[%s13348_s5 + $0x328] sm:$0xff] }
 0x179   :  { %3680 = vmatprep.subr.bf16.mxu1 %v10234_v35  ;;  %v312_v35 = vld [vmem:[%s13348_s5 + $0x728] sm:$0xff]  ;;  %v10178_v39 = vcombine.high %v180_v32, %v184_v33  ;;  %v10177_v44 = vcombine.low %v180_v32, %v184_v33 }
 0x17a   :  { %3638 = vmatpush1.bf16.msra.mxu0 %v10105_v15  ;;  %v10306_v12 = vcombine.high %v308_v34, %v312_v35  ;;  %v172_v15 = vld [vmem:[%s13348_s5 + $0x2c8] sm:$0xff]  ;;  %v10305_v59 = vcombine.low %v308_v34, %v312_v35 }
 0x17b   :  { %3639 = vmatprep.subr.bf16.mxu0 %v10098_v42  ;;  %v300_v42 = vld [vmem:[%s13348_s5 + $0x6c8] sm:$0xff] }
 0x17c   :  { %3681 = vmatpush1.bf16.msra.mxu1 %v10233_v41  ;;  %v176_v41 = vld [vmem:[%s13348_s5 + $0x2e8] sm:$0xff] }
 0x17d   :  { %3682 = vmatprep.subr.bf16.mxu1 %v10226_v56  ;;  %v304_v56 = vld [vmem:[%s13348_s5 + $0x6e8] sm:$0xff]  ;;  %v10170_v45 = vcombine.high %v172_v15, %v176_v41  ;;  %v10169_v54 = vcombine.low %v172_v15, %v176_v41  ;;  %v257_v15 = vld [vmem:[%s13348_s5 + $0x570] sm:$0xff] }
 0x17e   :  { %3640 = vmatpush1.bf16.msra.mxu0 %v10097_v47  ;;  %v10298_v46 = vcombine.high %v300_v42, %v304_v56  ;;  %v164_v47 = vld [vmem:[%s13348_s5 + $0x288] sm:$0xff]  ;;  %v10297_v57 = vcombine.low %v300_v42, %v304_v56 }
 0x17f   :  { %3641 = vmatprep.subr.bf16.mxu0 %v10090_v51  ;;  %v292_v51 = vld [vmem:[%s13348_s5 + $0x688] sm:$0xff] }
 0x180   :  { %3683 = vmatpush1.bf16.msra.mxu1 %v10225_v48  ;;  %v168_v48 = vld [vmem:[%s13348_s5 + $0x2a8] sm:$0xff] }
 0x181   :  { %3684 = vmatprep.subr.bf16.mxu1 %v10218_v52  ;;  %v296_v52 = vld [vmem:[%s13348_s5 + $0x6a8] sm:$0xff]  ;;  %v10162_v58 = vcombine.high %v164_v47, %v168_v48  ;;  %v10161_v2 = vcombine.low %v164_v47, %v168_v48  ;;  %v117_v48 = vld [vmem:[%s13348_s5 + $0x110] sm:$0xff] }
 0x182   :  { %3642 = vmatpush1.bf16.msra.mxu0 %v10089_v61  ;;  %v10290_v60 = vcombine.high %v292_v51, %v296_v52  ;;  %v156_v61 = vld [vmem:[%s13348_s5 + $0x248] sm:$0xff]  ;;  %v10289_v3 = vcombine.low %v292_v51, %v296_v52  ;;  %v121_v51 = vld [vmem:[%s13348_s5 + $0x130] sm:$0xff] }
 0x183   :  { %3643 = vmatprep.subr.bf16.mxu0 %v10082_v63  ;;  %v284_v63 = vld [vmem:[%s13348_s5 + $0x648] sm:$0xff] }
 0x184   :  { %3685 = vmatpush1.bf16.msra.mxu1 %v10217_v62  ;;  %v160_v62 = vld [vmem:[%s13348_s5 + $0x268] sm:$0xff] }
 0x185   :  { %3686 = vmatprep.subr.bf16.mxu1 %v10210_v0  ;;  %v288_v0 = vld [vmem:[%s13348_s5 + $0x668] sm:$0xff]  ;;  %v10154_v4 = vcombine.high %v156_v61, %v160_v62  ;;  %v10153_v11 = vcombine.low %v156_v61, %v160_v62 }
 0x186   :  { %3644 = vmatpush1.bf16.msra.mxu0 %v10081_v7  ;;  %v10282_v6 = vcombine.high %v284_v63, %v288_v0  ;;  %v148_v7 = vld [vmem:[%s13348_s5 + $0x208] sm:$0xff]  ;;  %v10281_v13 = vcombine.low %v284_v63, %v288_v0  ;;  %v10116_v0 = vcombine.high %v117_v48, %v121_v51 }
 0x187   :  { %3645 = vmatprep.subr.bf16.mxu0 %v10202_v9  ;;  %v276_v9 = vld [vmem:[%s13348_s5 + $0x608] sm:$0xff] }
 0x188   :  { %3687 = vmatpush1.bf16.msra.mxu1 %v10209_v8  ;;  %v152_v8 = vld [vmem:[%s13348_s5 + $0x228] sm:$0xff] }
 0x189   :  { %3688 = vmatprep.subr.bf16.mxu1 %v10330_v10  ;;  %v280_v10 = vld [vmem:[%s13348_s5 + $0x628] sm:$0xff]  ;;  %v10146_v16 = vcombine.high %v148_v7, %v152_v8  ;;  %v10145_v23 = vcombine.low %v148_v7, %v152_v8  ;;  %v237_v7 = vld [vmem:[%s13348_s5 + $0x4d0] sm:$0xff] }
 0x18a   :  { %3646 = vmatpush2.bf16.msra.mxu0 %v10201_v18  ;;  %v10274_v17 = vcombine.high %v276_v9, %v280_v10  ;;  %v141_v18 = vld [vmem:[%s13348_s5 + $0x1d0] sm:$0xff]  ;;  %v10273_v24 = vcombine.low %v276_v9, %v280_v10  ;;  %v10115_v9 = vcombine.low %v117_v48, %v121_v51 }
 0x18b   :  { %3647 = vmatprep.subr.bf16.mxu0 %v10194_v20  ;;  %v269_v20 = vld [vmem:[%s13348_s5 + $0x5d0] sm:$0xff] }
 0x18c   :  { %3689 = vmatpush2.bf16.msra.mxu1 %v10329_v19  ;;  %v145_v19 = vld [vmem:[%s13348_s5 + $0x1f0] sm:$0xff] }
 0x18d   :  { %3690 = vmatprep.subr.bf16.mxu1 %v10322_v22  ;;  %v273_v22 = vld [vmem:[%s13348_s5 + $0x5f0] sm:$0xff]  ;;  %v10140_v25 = vcombine.high %v141_v18, %v145_v19  ;;  %v10139_v32 = vcombine.low %v141_v18, %v145_v19 }
 0x18e   :  { %3648 = vmatpush2.bf16.msra.mxu0 %v10193_v27  ;;  %v10268_v26 = vcombine.high %v269_v20, %v273_v22  ;;  %v133_v27 = vld [vmem:[%s13348_s5 + $0x190] sm:$0xff]  ;;  %v10267_v33 = vcombine.low %v269_v20, %v273_v22 }
 0x18f   :  { %3649 = vmatprep.subr.bf16.mxu0 %v10186_v30  ;;  %v261_v30 = vld [vmem:[%s13348_s5 + $0x590] sm:$0xff] }
 0x190   :  { %3691 = vmatpush2.bf16.msra.mxu1 %v10321_v28  ;;  %v137_v28 = vld [vmem:[%s13348_s5 + $0x1b0] sm:$0xff] }
 0x191   :  { %3692 = vmatprep.subr.bf16.mxu1 %v10314_v31  ;;  %v265_v31 = vld [vmem:[%s13348_s5 + $0x5b0] sm:$0xff]  ;;  %v10132_v34 = vcombine.high %v133_v27, %v137_v28  ;;  %v10131_v42 = vcombine.low %v133_v27, %v137_v28 }
 0x192   :  { %3650 = vmatpush2.bf16.msra.mxu0 %v10185_v37  ;;  %v10260_v35 = vcombine.high %v261_v30, %v265_v31  ;;  %v125_v37 = vld [vmem:[%s13348_s5 + $0x150] sm:$0xff] }
 0x193   :  { %3651 = vmatprep.subr.bf16.mxu0 %v10178_v39  ;;  %v241_v8 = vld [vmem:[%s13348_s5 + $0x4f0] sm:$0xff] }
 0x194   :  { %3693 = vmatpush2.bf16.msra.mxu1 %v10313_v38  ;;  %v129_v38 = vld [vmem:[%s13348_s5 + $0x170] sm:$0xff]  ;;  %v10235_v22 = vcombine.low %v237_v7, %v241_v8 }
 0x195   :  { %3694 = vmatprep.subr.bf16.mxu1 %v10306_v12  ;;  %v253_v12 = vld [vmem:[%s13348_s5 + $0x550] sm:$0xff]  ;;  %v10123_v61 = vcombine.low %v125_v37, %v129_v38 }
 0x196   :  { %3652 = vmatpush2.bf16.msra.mxu0 %v10177_v44  ;;  %v10252_v47 = vcombine.high %v253_v12, %v257_v15  ;;  %v10251_v63 = vcombine.low %v253_v12, %v257_v15  ;;  %v229_v18 = vld [vmem:[%s13348_s5 + $0x490] sm:$0xff] }
 0x197   :  { %3653 = vmatprep.subr.bf16.mxu0 %v10170_v45  ;;  %v10124_v45 = vcombine.high %v125_v37, %v129_v38  ;;  %v233_v19 = vld [vmem:[%s13348_s5 + $0x4b0] sm:$0xff] }
 0x198   :  { %3695 = vmatpush2.bf16.msra.mxu1 %v10305_v59  ;;  %v10259_v59 = vcombine.low %v261_v30, %v265_v31  ;;  %v221_v27 = vld [vmem:[%s13348_s5 + $0x450] sm:$0xff]  ;;  %v10227_v31 = vcombine.low %v229_v18, %v233_v19 }
 0x199   :  { %3696 = vmatprep.subr.bf16.mxu1 %v10298_v46  ;;  %v225_v28 = vld [vmem:[%s13348_s5 + $0x470] sm:$0xff] }
 0x19a   :  { %3654 = vmatpush2.bf16.msra.mxu0 %v10169_v54  ;;  %v213_v37 = vld [vmem:[%s13348_s5 + $0x410] sm:$0xff]  ;;  %v10219_v12 = vcombine.low %v221_v27, %v225_v28 }
 0x19b   :  { %3655 = vmatprep.subr.bf16.mxu0 %v10162_v58  ;;  %v249_v58 = vld [vmem:[%s13348_s5 + $0x530] sm:$0xff] }
 0x19c   :  { %3697 = vmatpush2.bf16.msra.mxu1 %v10297_v57  ;;  %v245_v57 = vld [vmem:[%s13348_s5 + $0x510] sm:$0xff] }
 0x19d   :  { %3698 = vmatprep.subr.bf16.mxu1 %v10290_v60  ;;  %v10243_v10 = vcombine.low %v245_v57, %v249_v58  ;;  %v217_v38 = vld [vmem:[%s13348_s5 + $0x430] sm:$0xff] }
 0x19e   :  { %3656 = vmatpush2.bf16.msra.mxu0 %v10161_v2 }
 0x19f   :  { %3657 = vmatprep.subr.bf16.mxu0 %v10154_v4  ;;  %v109_v4 = vld [vmem:[%s13348_s5 + $0xd0] sm:$0xff] }
 0x1a0   :  { %3699 = vmatpush2.bf16.msra.mxu1 %v10289_v3  ;;  %v10244_v3 = vcombine.high %v245_v57, %v249_v58  ;;  %v201_v57 = vld [vmem:[%s13348_s5 + $0x3b0] sm:$0xff] }
 0x1a1   :  { %3700 = vmatprep.subr.bf16.mxu1 %v10282_v6  ;;  %v325_v58 = vld [vmem:[%s13348_s5 + $0x790] sm:$0xff] }
 0x1a2   :  { %3658 = vmatpush2.bf16.msra.mxu0 %v10153_v11 }
 0x1a3   :  { %3659 = vmatprep.subr.bf16.mxu0 %v10146_v16  ;;  %v101_v16 = vld [vmem:[%s13348_s5 + $0x90] sm:$0xff] }
 0x1a4   :  { %3701 = vmatpush2.bf16.msra.mxu1 %v10281_v13  ;;  %v10236_v13 = vcombine.high %v237_v7, %v241_v8 }
 0x1a5   :  { %3702 = vmatprep.subr.bf16.mxu1 %v10274_v17  ;;  %v105_v17 = vld [vmem:[%s13348_s5 + $0xb0] sm:$0xff] }
 0x1a6   :  { %3660 = vmatpush2.bf16.msra.mxu0 %v10145_v23  ;;  %v10100_v23 = vcombine.high %v101_v16, %v105_v17  ;;  %v10099_v30 = vcombine.low %v101_v16, %v105_v17  ;;  %v309_v16 = vld [vmem:[%s13348_s5 + $0x710] sm:$0xff] }
 0x1a7   :  { %3715 = vmatprep.subr.bf16.mxu0 %v10140_v25  ;;  %v93_v25 = vld [vmem:[%s13348_s5 + $0x50] sm:$0xff] }
 0x1a8   :  { %3703 = vmatpush2.bf16.msra.mxu1 %v10273_v24  ;;  %v10228_v24 = vcombine.high %v229_v18, %v233_v19  ;;  %v313_v17 = vld [vmem:[%s13348_s5 + $0x730] sm:$0xff] }
 0x1a9   :  { %3758 = vmatprep.subr.bf16.mxu1 %v10268_v26  ;;  %v2105_v39 = vpop.f32.mrf.mxu0  ;;  %3662 = vmatmul.mubr.bf16.vlgmr.msra.gmra.mxu0 %v12369_v50  ;;  %v97_v26 = vld [vmem:[%s13348_s5 + $0x70] sm:$0xff] }
 0x1aa   :  { %3716 = vmatpush1.bf16.msra.mxu0 %v10139_v32  ;;  %3747 = vmatprep.mubr.bf16.mxu0 %v12163_v36  ;;  %v10092_v32 = vcombine.high %v93_v25, %v97_v26 }
 0x1ab   :  { %v2148_v41 = vpop.f32.mrf.mxu1  ;;  %3705 = vmatmul.mubr.bf16.vlgmr.msra.gmra.mxu1 %v12380_v53  ;;  %v2107_v44 = vpop.f32.mrf.mxu0  ;;  %3717 = vmatprep.subr.bf16.mxu0 %v10132_v34  ;;  %v85_v34 = vld [vmem:[%s13348_s5 + $0x10] sm:$0xff] }
 0x1ac   :  { %v12600_v56 = vadd.f32 %v2148_v41, %v2105_v39  ;;  %3759 = vmatpush1.bf16.msra.mxu1 %v10267_v33  ;;  %3790 = vmatprep.mubr.bf16.mxu1 %v12177_v40  ;;  %v113_v40 = vld [vmem:[%s13348_s5 + $0xf0] sm:$0xff]  ;;  %v10220_v33 = vcombine.high %v221_v27, %v225_v28  ;;  %v10091_v39 = vcombine.low %v93_v25, %v97_v26 }
 0x1ad   :  { %v2150_v46 = vpop.f32.mrf.mxu1  ;;  %3760 = vmatprep.subr.bf16.mxu1 %v10260_v35  ;;  %v2109_v54 = vpop.f32.mrf.mxu0  ;;  %v10108_v11 = vcombine.high %v109_v4, %v113_v40  ;;  %v10107_v20 = vcombine.low %v109_v4, %v113_v40  ;;  %v89_v35 = vld [vmem:[%s13348_s5 + $0x30] sm:$0xff]  ;;  %v10212_v41 = vcombine.high %v213_v37, %v217_v38  ;;  %v10307_v28 = vcombine.low %v309_v16, %v313_v17 }
 0x1ae   :  { %v12609_v52 = vadd.f32 %v2150_v46, %v2107_v44  ;;  %3718 = vmatpush1.bf16.msra.mxu0 %v10131_v42  ;;  %v10084_v15 = vcombine.high %v85_v34, %v89_v35  ;;  %v205_v42 = vld [vmem:[%s13348_s5 + $0x3d0] sm:$0xff]  ;;  %v10083_v46 = vcombine.low %v85_v34, %v89_v35 }
 0x1af   :  { %v2152_v60 = vpop.f32.mrf.mxu1  ;;  %v2111_v36 = vpop.f32.mrf.mxu0  ;;  %3719 = vmatprep.subr.bf16.mxu0 %v10124_v45  ;;  %v209_v44 = vld [vmem:[%s13348_s5 + $0x3f0] sm:$0xff] }
 0x1b0   :  { %v12618_v62 = vadd.f32 %v2152_v60, %v2109_v54  ;;  %3761 = vmatpush1.bf16.msra.mxu1 %v10259_v59  ;;  %v333_v59 = vld [vmem:[%s13348_s5 + $0x7d0] sm:$0xff]  ;;  %v10204_v48 = vcombine.high %v205_v42, %v209_v44 }
 0x1b1   :  { %v2154_v2 = vpop.f32.mrf.mxu1  ;;  %3762 = vmatprep.subr.bf16.mxu1 %v10252_v47  ;;  %v337_v45 = vld [vmem:[%s13348_s5 + $0x7f0] sm:$0xff]  ;;  %v10211_v47 = vcombine.low %v213_v37, %v217_v38 }
 0x1b2   :  { %v12626_v6 = vadd.f32 %v2154_v2, %v2111_v36  ;;  %3720 = vmatpush1.bf16.msra.mxu0 %v10123_v61  ;;  %v10332_v51 = vcombine.high %v333_v59, %v337_v45  ;;  %v197_v54 = vld [vmem:[%s13348_s5 + $0x390] sm:$0xff]  ;;  %v10203_v61 = vcombine.low %v205_v42, %v209_v44  ;;  %v10331_v36 = vcombine.low %v333_v59, %v337_v45 }
 0x1b3   :  { %3721 = vmatprep.subr.bf16.mxu0 %v10116_v0  ;;  %v329_v60 = vld [vmem:[%s13348_s5 + $0x7b0] sm:$0xff]  ;;  %v10195_v7 = vcombine.low %v197_v54, %v201_v57 }
 0x1b4   :  { %3763 = vmatpush1.bf16.msra.mxu1 %v10251_v63  ;;  %v10196_v63 = vcombine.high %v197_v54, %v201_v57  ;;  %v10324_v0 = vcombine.high %v325_v58, %v329_v60  ;;  %v189_v2 = vld [vmem:[%s13348_s5 + $0x350] sm:$0xff]  ;;  %v10323_v8 = vcombine.low %v325_v58, %v329_v60 }
 0x1b5   :  { %3764 = vmatprep.subr.bf16.mxu1 %v10244_v3  ;;  %v193_v3 = vld [vmem:[%s13348_s5 + $0x370] sm:$0xff] }
 0x1b6   :  { %3722 = vmatpush1.bf16.msra.mxu0 %v10115_v9  ;;  %v317_v4 = vld [vmem:[%s13348_s5 + $0x750] sm:$0xff]  ;;  %v10188_v9 = vcombine.high %v189_v2, %v193_v3  ;;  %v10187_v18 = vcombine.low %v189_v2, %v193_v3  ;;  %v270_v2 = vld [vmem:[%s13348_s5 + $0x5d8] sm:$0xff] }
 0x1b7   :  { %3723 = vmatprep.subr.bf16.mxu0 %v10108_v11  ;;  %v321_v40 = vld [vmem:[%s13348_s5 + $0x770] sm:$0xff]  ;;  %v274_v3 = vld [vmem:[%s13348_s5 + $0x5f8] sm:$0xff] }
 0x1b8   :  { %3765 = vmatpush1.bf16.msra.mxu1 %v10243_v10  ;;  %v10316_v10 = vcombine.high %v317_v4, %v321_v40  ;;  %v181_v11 = vld [vmem:[%s13348_s5 + $0x310] sm:$0xff]  ;;  %v10315_v19 = vcombine.low %v317_v4, %v321_v40 }
 0x1b9   :  { %3766 = vmatprep.subr.bf16.mxu1 %v10236_v13  ;;  %v185_v13 = vld [vmem:[%s13348_s5 + $0x330] sm:$0xff] }
 0x1ba   :  { %3724 = vmatpush1.bf16.msra.mxu0 %v10107_v20  ;;  %v10180_v20 = vcombine.high %v181_v11, %v185_v13  ;;  %v301_v25 = vld [vmem:[%s13348_s5 + $0x6d0] sm:$0xff]  ;;  %v10179_v27 = vcombine.low %v181_v11, %v185_v13  ;;  %v262_v11 = vld [vmem:[%s13348_s5 + $0x598] sm:$0xff] }
 0x1bb   :  { %3725 = vmatprep.subr.bf16.mxu0 %v10100_v23  ;;  %v173_v23 = vld [vmem:[%s13348_s5 + $0x2d0] sm:$0xff]  ;;  %v266_v13 = vld [vmem:[%s13348_s5 + $0x5b8] sm:$0xff] }
 0x1bc   :  { %3767 = vmatpush1.bf16.msra.mxu1 %v10235_v22  ;;  %v10308_v22 = vcombine.high %v309_v16, %v313_v17  ;;  %v305_v26 = vld [vmem:[%s13348_s5 + $0x6f0] sm:$0xff]  ;;  %v10269_v17 = vcombine.low %v270_v2, %v274_v3 }
 0x1bd   :  { %3768 = vmatprep.subr.bf16.mxu1 %v10228_v24  ;;  %v177_v24 = vld [vmem:[%s13348_s5 + $0x2f0] sm:$0xff]  ;;  %v10299_v38 = vcombine.low %v301_v25, %v305_v26 }
 0x1be   :  { %3726 = vmatpush1.bf16.msra.mxu0 %v10099_v30  ;;  %v10172_v30 = vcombine.high %v173_v23, %v177_v24  ;;  %v293_v34 = vld [vmem:[%s13348_s5 + $0x690] sm:$0xff]  ;;  %v10171_v37 = vcombine.low %v173_v23, %v177_v24  ;;  %v254_v24 = vld [vmem:[%s13348_s5 + $0x558] sm:$0xff] }
 0x1bf   :  { %3727 = vmatprep.subr.bf16.mxu0 %v10092_v32  ;;  %v165_v32 = vld [vmem:[%s13348_s5 + $0x290] sm:$0xff] }
 0x1c0   :  { %3769 = vmatpush1.bf16.msra.mxu1 %v10227_v31  ;;  %v10300_v31 = vcombine.high %v301_v25, %v305_v26  ;;  %v297_v35 = vld [vmem:[%s13348_s5 + $0x6b0] sm:$0xff]  ;;  %v258_v25 = vld [vmem:[%s13348_s5 + $0x578] sm:$0xff] }
 0x1c1   :  { %3770 = vmatprep.subr.bf16.mxu1 %v10220_v33  ;;  %v169_v33 = vld [vmem:[%s13348_s5 + $0x2b0] sm:$0xff]  ;;  %v10291_v45 = vcombine.low %v293_v34, %v297_v35 }
 0x1c2   :  { %3728 = vmatpush1.bf16.msra.mxu0 %v10091_v39  ;;  %v10164_v39 = vcombine.high %v165_v32, %v169_v33  ;;  %v285_v42 = vld [vmem:[%s13348_s5 + $0x650] sm:$0xff]  ;;  %v10163_v59 = vcombine.low %v165_v32, %v169_v33  ;;  %v10254_v33 = vcombine.high %v254_v24, %v258_v25 }
 0x1c3   :  { %3729 = vmatprep.subr.bf16.mxu0 %v10084_v15  ;;  %v157_v15 = vld [vmem:[%s13348_s5 + $0x250] sm:$0xff] }
 0x1c4   :  { %3771 = vmatpush1.bf16.msra.mxu1 %v10219_v12  ;;  %v10292_v12 = vcombine.high %v293_v34, %v297_v35  ;;  %v289_v44 = vld [vmem:[%s13348_s5 + $0x670] sm:$0xff]  ;;  %v118_v34 = vld [vmem:[%s13348_s5 + $0x118] sm:$0xff] }
 0x1c5   :  { %3772 = vmatprep.subr.bf16.mxu1 %v10212_v41  ;;  %v161_v41 = vld [vmem:[%s13348_s5 + $0x270] sm:$0xff]  ;;  %v10283_v60 = vcombine.low %v285_v42, %v289_v44 }
 0x1c6   :  { %3730 = vmatpush1.bf16.msra.mxu0 %v10083_v46  ;;  %v10156_v46 = vcombine.high %v157_v15, %v161_v41  ;;  %v277_v54 = vld [vmem:[%s13348_s5 + $0x610] sm:$0xff]  ;;  %v10155_v58 = vcombine.low %v157_v15, %v161_v41  ;;  %v11171_v15 = vld [vmem:[%s13343_s0 + $0xc] ss:$16 sps:$4 sm:$0xff]  }
 0x1c7   :  { %3731 = vmatprep.subr.bf16.mxu0 %v10204_v48  ;;  %v149_v48 = vld [vmem:[%s13348_s5 + $0x210] sm:$0xff] }
 0x1c8   :  { %3773 = vmatpush1.bf16.msra.mxu1 %v10211_v47  ;;  %v10284_v47 = vcombine.high %v285_v42, %v289_v44  ;;  %v281_v57 = vld [vmem:[%s13348_s5 + $0x630] sm:$0xff] }
 0x1c9   :  { %3774 = vmatprep.subr.bf16.mxu1 %v10332_v51  ;;  %v153_v51 = vld [vmem:[%s13348_s5 + $0x230] sm:$0xff]  ;;  %v10275_v40 = vcombine.low %v277_v54, %v281_v57 }
 0x1ca   :  { %3732 = vmatpush2.bf16.msra.mxu0 %v10203_v61  ;;  %v10148_v61 = vcombine.high %v149_v48, %v153_v51  ;;  %v10147_v4 = vcombine.low %v149_v48, %v153_v51  ;;  %v11170_v35 = vld [vmem:[%s13343_s0 + $0x4] ss:$16 sps:$4 sm:$0xff]   ;;  %v110_v51 = vld [vmem:[%s13348_s5 + $0xd8] sm:$0xff] }
 0x1cb   :  { %3733 = vmatprep.subr.bf16.mxu0 %v10196_v63  ;;  %v142_v63 = vld [vmem:[%s13348_s5 + $0x1d8] sm:$0xff] }
 0x1cc   :  { %3775 = vmatpush2.bf16.msra.mxu1 %v10331_v36  ;;  %v10276_v36 = vcombine.high %v277_v54, %v281_v57  ;;  %v114_v54 = vld [vmem:[%s13348_s5 + $0xf8] sm:$0xff] }
 0x1cd   :  { %3776 = vmatprep.subr.bf16.mxu1 %v10324_v0  ;;  %v146_v0 = vld [vmem:[%s13348_s5 + $0x1f8] sm:$0xff] }
 0x1ce   :  { %3734 = vmatpush2.bf16.msra.mxu0 %v10195_v7  ;;  %v10142_v7 = vcombine.high %v142_v63, %v146_v0  ;;  %v10141_v16 = vcombine.low %v142_v63, %v146_v0  ;;  %v10110_v63 = vcombine.high %v110_v51, %v114_v54 }
 0x1cf   :  { %3735 = vmatprep.subr.bf16.mxu0 %v10188_v9  ;;  %v134_v9 = vld [vmem:[%s13348_s5 + $0x198] sm:$0xff] }
 0x1d0   :  { %3777 = vmatpush2.bf16.msra.mxu1 %v10323_v8  ;;  %v10270_v8 = vcombine.high %v270_v2, %v274_v3  ;;  %v102_v2 = vld [vmem:[%s13348_s5 + $0x98] sm:$0xff] }
 0x1d1   :  { %3778 = vmatprep.subr.bf16.mxu1 %v10316_v10  ;;  %v138_v10 = vld [vmem:[%s13348_s5 + $0x1b8] sm:$0xff] }
 0x1d2   :  { %3736 = vmatpush2.bf16.msra.mxu0 %v10187_v18  ;;  %v10134_v18 = vcombine.high %v134_v9, %v138_v10  ;;  %v106_v3 = vld [vmem:[%s13348_s5 + $0xb8] sm:$0xff] }
 0x1d3   :  { %3737 = vmatprep.subr.bf16.mxu0 %v10180_v20  ;;  %v126_v20 = vld [vmem:[%s13348_s5 + $0x158] sm:$0xff] }
 0x1d4   :  { %3779 = vmatpush2.bf16.msra.mxu1 %v10315_v19  ;;  %v10262_v19 = vcombine.high %v262_v11, %v266_v13 }
 0x1d5   :  { %3780 = vmatprep.subr.bf16.mxu1 %v10308_v22  ;;  %v130_v22 = vld [vmem:[%s13348_s5 + $0x178] sm:$0xff] }
 0x1d6   :  { %3738 = vmatpush2.bf16.msra.mxu0 %v10179_v27  ;;  %v10133_v27 = vcombine.low %v134_v9, %v138_v10  ;;  %v10125_v42 = vcombine.low %v126_v20, %v130_v22  ;;  %v10102_v9 = vcombine.high %v102_v2, %v106_v3 }
 0x1d7   :  { %3739 = vmatprep.subr.bf16.mxu0 %v10172_v30 }
 0x1d8   :  { %3781 = vmatpush2.bf16.msra.mxu1 %v10307_v28 }
 0x1d9   :  { %3782 = vmatprep.subr.bf16.mxu1 %v10300_v31  ;;  %v10261_v31 = vcombine.low %v262_v11, %v266_v13  ;;  %v94_v11 = vld [vmem:[%s13348_s5 + $0x58] sm:$0xff] }
 0x1da   :  { %3740 = vmatpush2.bf16.msra.mxu0 %v10171_v37  ;;  %v98_v13 = vld [vmem:[%s13348_s5 + $0x78] sm:$0xff] }
 0x1db   :  { %3741 = vmatprep.subr.bf16.mxu0 %v10164_v39  ;;  %v246_v39 = vld [vmem:[%s13348_s5 + $0x518] sm:$0xff] }
 0x1dc   :  { %3783 = vmatpush2.bf16.msra.mxu1 %v10299_v38 }
 0x1dd   :  { %3784 = vmatprep.subr.bf16.mxu1 %v10292_v12  ;;  %v250_v12 = vld [vmem:[%s13348_s5 + $0x538] sm:$0xff] }
 0x1de   :  { %3742 = vmatpush2.bf16.msra.mxu0 %v10163_v59  ;;  %v10246_v48 = vcombine.high %v246_v39, %v250_v12 }
 0x1df   :  { %3743 = vmatprep.subr.bf16.mxu0 %v10156_v46 }
 0x1e0   :  { %3785 = vmatpush2.bf16.msra.mxu1 %v10291_v45  ;;  %v10253_v45 = vcombine.low %v254_v24, %v258_v25  ;;  %v90_v24 = vld [vmem:[%s13348_s5 + $0x38] sm:$0xff] }
 0x1e1   :  { %3786 = vmatprep.subr.bf16.mxu1 %v10284_v47  ;;  %v214_v25 = vld [vmem:[%s13348_s5 + $0x418] sm:$0xff] }
 0x1e2   :  { %3744 = vmatpush2.bf16.msra.mxu0 %v10155_v58  ;;  %v238_v58 = vld [vmem:[%s13348_s5 + $0x4d8] sm:$0xff] }
 0x1e3   :  { %3745 = vmatprep.subr.bf16.mxu0 %v10148_v61 }
 0x1e4   :  { %3787 = vmatpush2.bf16.msra.mxu1 %v10283_v60  ;;  %v242_v60 = vld [vmem:[%s13348_s5 + $0x4f8] sm:$0xff] }
 0x1e5   :  { %3788 = vmatprep.subr.bf16.mxu1 %v10276_v36  ;;  %v10245_v36 = vcombine.low %v246_v39, %v250_v12  ;;  %v10238_v0 = vcombine.high %v238_v58, %v242_v60 }
 0x1e6   :  { %3746 = vmatpush2.bf16.msra.mxu0 %v10147_v4  ;;  %v230_v4 = vld [vmem:[%s13348_s5 + $0x498] sm:$0xff] }
 0x1e7   :  { %3801 = vmatprep.subr.bf16.mxu0 %v10142_v7  ;;  %v10109_v7 = vcombine.low %v110_v51, %v114_v54  ;;  %v190_v51 = vld [vmem:[%s13348_s5 + $0x358] sm:$0xff] }
 0x1e8   :  { %3789 = vmatpush2.bf16.msra.mxu1 %v10275_v40  ;;  %v234_v40 = vld [vmem:[%s13348_s5 + $0x4b8] sm:$0xff] }
 0x1e9   :  { %3844 = vmatprep.subr.bf16.mxu1 %v10270_v8  ;;  %v2191_v23 = vpop.f32.mrf.mxu0  ;;  %3748 = vmatmul.mubr.bf16.vlgmr.msra.gmra.mxu0 %v12369_v50  ;;  %v10126_v50 = vcombine.high %v126_v20, %v130_v22  ;;  %v10237_v8 = vcombine.low %v238_v58, %v242_v60  ;;  %v10230_v10 = vcombine.high %v230_v4, %v234_v40  ;;  %v194_v54 = vld [vmem:[%s13348_s5 + $0x378] sm:$0xff] }
 0x1ea   :  { %3802 = vmatpush1.bf16.msra.mxu0 %v10141_v16  ;;  %3833 = vmatprep.mubr.bf16.mxu0 %v11170_v35  ;;  %v222_v16 = vld [vmem:[%s13348_s5 + $0x458] sm:$0xff]  ;;  %v10094_v20 = vcombine.high %v94_v11, %v98_v13 }
 0x1eb   :  { %v2234_v26 = vpop.f32.mrf.mxu1  ;;  %3791 = vmatmul.mubr.bf16.vlgmr.msra.gmra.mxu1 %v12380_v53  ;;  %v2193_v30 = vpop.f32.mrf.mxu0  ;;  %3803 = vmatprep.subr.bf16.mxu0 %v10134_v18  ;;  %v122_v53 = vld [vmem:[%s13348_s5 + $0x138] sm:$0xff]  ;;  %v10101_v18 = vcombine.low %v102_v2, %v106_v3 }
 0x1ec   :  { %v12804_v28 = vadd.f32 %v2234_v26, %v2191_v23  ;;  %3845 = vmatpush1.bf16.msra.mxu1 %v10269_v17  ;;  %3876 = vmatprep.mubr.bf16.mxu1 %v11171_v15  ;;  %v10118_v46 = vcombine.high %v118_v34, %v122_v53  ;;  %v10117_v61 = vcombine.low %v118_v34, %v122_v53  ;;  %v226_v17 = vld [vmem:[%s13348_s5 + $0x478] sm:$0xff] }
 0x1ed   :  { %v2236_v32 = vpop.f32.mrf.mxu1  ;;  %3846 = vmatprep.subr.bf16.mxu1 %v10262_v19  ;;  %v2195_v38 = vpop.f32.mrf.mxu0  ;;  %v10229_v19 = vcombine.low %v230_v4, %v234_v40  ;;  %v10222_v22 = vcombine.high %v222_v16, %v226_v17  ;;  %v86_v23 = vld [vmem:[%s13348_s5 + $0x18] sm:$0xff] }
 0x1ee   :  { %v12815_v37 = vadd.f32 %v2236_v32, %v2193_v30  ;;  %3804 = vmatpush1.bf16.msra.mxu0 %v10133_v27  ;;  %v218_v26 = vld [vmem:[%s13348_s5 + $0x438] sm:$0xff]  ;;  %v10093_v27 = vcombine.low %v94_v11, %v98_v13  ;;  %v10221_v30 = vcombine.low %v222_v16, %v226_v17  ;;  %v10085_v35 = vcombine.low %v86_v23, %v90_v24 }
 0x1ef   :  { %v2238_v41 = vpop.f32.mrf.mxu1  ;;  %v2197_v59 = vpop.f32.mrf.mxu0  ;;  %3805 = vmatprep.subr.bf16.mxu0 %v10126_v50  ;;  %v10214_v50 = vcombine.high %v214_v25, %v218_v26  ;;  %v206_v32 = vld [vmem:[%s13348_s5 + $0x3d8] sm:$0xff] }
 0x1f0   :  { %v12826_v44 = vadd.f32 %v2238_v41, %v2195_v38  ;;  %3847 = vmatpush1.bf16.msra.mxu1 %v10261_v31  ;;  %v10086_v31 = vcombine.high %v86_v23, %v90_v24  ;;  %v334_v34 = vld [vmem:[%s13348_s5 + $0x7d8] sm:$0xff]  ;;  %v10213_v38 = vcombine.low %v214_v25, %v218_v26 }
 0x1f1   :  { %v2240_v47 = vpop.f32.mrf.mxu1  ;;  %3848 = vmatprep.subr.bf16.mxu1 %v10254_v33  ;;  %v210_v33 = vld [vmem:[%s13348_s5 + $0x3f8] sm:$0xff] }
 0x1f2   :  { %v12834_v57 = vadd.f32 %v2240_v47, %v2197_v59  ;;  %3806 = vmatpush1.bf16.msra.mxu0 %v10125_v42  ;;  %v338_v53 = vld [vmem:[%s13348_s5 + $0x7f8] sm:$0xff]  ;;  %v10206_v39 = vcombine.high %v206_v32, %v210_v33 }
 0x1f3   :  { %3807 = vmatprep.subr.bf16.mxu0 %v10118_v46  ;;  %v10334_v12 = vcombine.high %v334_v34, %v338_v53  ;;  %v198_v15 = vld [vmem:[%s13348_s5 + $0x398] sm:$0xff]  ;;  %v10333_v46 = vcombine.low %v334_v34, %v338_v53 }
 0x1f4   :  { %3849 = vmatpush1.bf16.msra.mxu1 %v10253_v45  ;;  %v202_v41 = vld [vmem:[%s13348_s5 + $0x3b8] sm:$0xff]  ;;  %v10205_v45 = vcombine.low %v206_v32, %v210_v33 }
 0x1f5   :  { %3850 = vmatprep.subr.bf16.mxu1 %v10246_v48  ;;  %v326_v42 = vld [vmem:[%s13348_s5 + $0x798] sm:$0xff]  ;;  %v10198_v47 = vcombine.high %v198_v15, %v202_v41 }
 0x1f6   :  { %3808 = vmatpush1.bf16.msra.mxu0 %v10117_v61  ;;  %v330_v59 = vld [vmem:[%s13348_s5 + $0x7b8] sm:$0xff]  ;;  %v10197_v61 = vcombine.low %v198_v15, %v202_v41 }
 0x1f7   :  { %3809 = vmatprep.subr.bf16.mxu0 %v10110_v63  ;;  %v10326_v48 = vcombine.high %v326_v42, %v330_v59  ;;  %v318_v58 = vld [vmem:[%s13348_s5 + $0x758] sm:$0xff]  ;;  %v10190_v63 = vcombine.high %v190_v51, %v194_v54 }
 0x1f8   :  { %3851 = vmatpush1.bf16.msra.mxu1 %v10245_v36  ;;  %v322_v60 = vld [vmem:[%s13348_s5 + $0x778] sm:$0xff]  ;;  %v10325_v36 = vcombine.low %v326_v42, %v330_v59 }
 0x1f9   :  { %3852 = vmatprep.subr.bf16.mxu1 %v10238_v0  ;;  %v10318_v0 = vcombine.high %v318_v58, %v322_v60  ;;  %v182_v2 = vld [vmem:[%s13348_s5 + $0x318] sm:$0xff] }
 0x1fa   :  { %3810 = vmatpush1.bf16.msra.mxu0 %v10109_v7  ;;  %v186_v3 = vld [vmem:[%s13348_s5 + $0x338] sm:$0xff]  ;;  %v10189_v7 = vcombine.low %v190_v51, %v194_v54  ;;  %v3947_v51 = vld [vmem:[#allocation2 + $0x1c0] sm:$0xff] }
 0x1fb   :  { %3811 = vmatprep.subr.bf16.mxu0 %v10102_v9  ;;  %v310_v4 = vld [vmem:[%s13348_s5 + $0x718] sm:$0xff]  ;;  %v10182_v9 = vcombine.high %v182_v2, %v186_v3  ;;  %v3951_v54 = vld [vmem:[#allocation2 + $0x1e0] sm:$0xff] }
 0x1fc   :  { %3853 = vmatpush1.bf16.msra.mxu1 %v10237_v8  ;;  %v314_v40 = vld [vmem:[%s13348_s5 + $0x738] sm:$0xff]  ;;  %v10317_v8 = vcombine.low %v318_v58, %v322_v60  ;;  %v4075_v58 = vld [vmem:[#allocation2 + $0x5c0] sm:$0xff] }
 0x1fd   :  { %3854 = vmatprep.subr.bf16.mxu1 %v10230_v10  ;;  %v10310_v10 = vcombine.high %v310_v4, %v314_v40  ;;  %v174_v11 = vld [vmem:[%s13348_s5 + $0x2d8] sm:$0xff]  ;;  %v4079_v60 = vld [vmem:[#allocation2 + $0x5e0] sm:$0xff] }
 0x1fe   :  { %3812 = vmatpush1.bf16.msra.mxu0 %v10101_v18  ;;  %v178_v13 = vld [vmem:[%s13348_s5 + $0x2f8] sm:$0xff]  ;;  %v10181_v18 = vcombine.low %v182_v2, %v186_v3  ;;  %v3939_v2 = vld [vmem:[#allocation2 + $0x180] sm:$0xff] }
 0x1ff   :  { %3813 = vmatprep.subr.bf16.mxu0 %v10094_v20  ;;  %v302_v16 = vld [vmem:[%s13348_s5 + $0x6d8] sm:$0xff]  ;;  %v10174_v20 = vcombine.high %v174_v11, %v178_v13  ;;  %v3943_v3 = vld [vmem:[#allocation2 + $0x1a0] sm:$0xff] }
 0x200   :  { %3855 = vmatpush1.bf16.msra.mxu1 %v10229_v19  ;;  %v306_v17 = vld [vmem:[%s13348_s5 + $0x6f8] sm:$0xff]  ;;  %v10309_v19 = vcombine.low %v310_v4, %v314_v40  ;;  %v4067_v4 = vld [vmem:[#allocation2 + $0x580] sm:$0xff] }
 0x201   :  { %3856 = vmatprep.subr.bf16.mxu1 %v10222_v22  ;;  %v10302_v22 = vcombine.high %v302_v16, %v306_v17  ;;  %v166_v23 = vld [vmem:[%s13348_s5 + $0x298] sm:$0xff]  ;;  %v4071_v40 = vld [vmem:[#allocation2 + $0x5a0] sm:$0xff] }
 0x202   :  { %3814 = vmatpush1.bf16.msra.mxu0 %v10093_v27  ;;  %v170_v24 = vld [vmem:[%s13348_s5 + $0x2b8] sm:$0xff]  ;;  %v10173_v27 = vcombine.low %v174_v11, %v178_v13  ;;  %v3931_v11 = vld [vmem:[#allocation2 + $0x140] sm:$0xff] }
 0x203   :  { %3815 = vmatprep.subr.bf16.mxu0 %v10086_v31  ;;  %v294_v25 = vld [vmem:[%s13348_s5 + $0x698] sm:$0xff]  ;;  %v10166_v31 = vcombine.high %v166_v23, %v170_v24  ;;  %v3935_v13 = vld [vmem:[#allocation2 + $0x160] sm:$0xff] }
 0x204   :  { %3857 = vmatpush1.bf16.msra.mxu1 %v10221_v30  ;;  %v298_v26 = vld [vmem:[%s13348_s5 + $0x6b8] sm:$0xff]  ;;  %v10301_v30 = vcombine.low %v302_v16, %v306_v17  ;;  %v12977_v16 = vld [vmem:[%s13345_s2 + $0x4] ss:$16 sps:$4 sm:$0xff]  }
 0x205   :  { %3858 = vmatprep.subr.bf16.mxu1 %v10214_v50  ;;  %v10294_v50 = vcombine.high %v294_v25, %v298_v26  ;;  %v158_v32 = vld [vmem:[%s13348_s5 + $0x258] sm:$0xff] }
 0x206   :  { %3816 = vmatpush1.bf16.msra.mxu0 %v10085_v35  ;;  %v162_v33 = vld [vmem:[%s13348_s5 + $0x278] sm:$0xff]  ;;  %v10165_v35 = vcombine.low %v166_v23, %v170_v24 }
 0x207   :  { %3817 = vmatprep.subr.bf16.mxu0 %v10206_v39  ;;  %v286_v34 = vld [vmem:[%s13348_s5 + $0x658] sm:$0xff]  ;;  %v10158_v39 = vcombine.high %v158_v32, %v162_v33 }
 0x208   :  { %3859 = vmatpush1.bf16.msra.mxu1 %v10213_v38  ;;  %v290_v53 = vld [vmem:[%s13348_s5 + $0x678] sm:$0xff]  ;;  %v10293_v38 = vcombine.low %v294_v25, %v298_v26  ;;  %v10387_v26 = vcombine.low %v3939_v2, %v3943_v3 }
 0x209   :  { %3860 = vmatprep.subr.bf16.mxu1 %v10334_v12  ;;  %v10286_v12 = vcombine.high %v286_v34, %v290_v53  ;;  %v150_v15 = vld [vmem:[%s13348_s5 + $0x218] sm:$0xff] }
 0x20a   :  { %3818 = vmatpush2.bf16.msra.mxu0 %v10205_v45  ;;  %v154_v41 = vld [vmem:[%s13348_s5 + $0x238] sm:$0xff]  ;;  %v10157_v45 = vcombine.low %v158_v32, %v162_v33 }
 0x20b   :  { %3819 = vmatprep.subr.bf16.mxu0 %v10198_v47  ;;  %v278_v42 = vld [vmem:[%s13348_s5 + $0x618] sm:$0xff]  ;;  %v10150_v47 = vcombine.high %v150_v15, %v154_v41 }
 0x20c   :  { %3861 = vmatpush2.bf16.msra.mxu1 %v10333_v46  ;;  %v282_v59 = vld [vmem:[%s13348_s5 + $0x638] sm:$0xff]  ;;  %v10285_v46 = vcombine.low %v286_v34, %v290_v53  ;;  %v3923_v34 = vld [vmem:[#allocation2 + $0x100] sm:$0xff] }
 0x20d   :  { %3862 = vmatprep.subr.bf16.mxu1 %v10326_v48  ;;  %v10278_v48 = vcombine.high %v278_v42, %v282_v59  ;;  %v11173_v25 = vld [vmem:[%s13343_s0 + $0x8] ss:$16 sps:$4 sm:$0xff]   ;;  %v3927_v53 = vld [vmem:[#allocation2 + $0x120] sm:$0xff] }
 0x20e   :  { %3820 = vmatpush2.bf16.msra.mxu0 %v10197_v61  ;;  %v10149_v61 = vcombine.low %v150_v15, %v154_v41 }
 0x20f   :  { %3821 = vmatprep.subr.bf16.mxu0 %v10190_v63  ;;  %v10396_v63 = vcombine.high %v3947_v51, %v3951_v54 }
 0x210   :  { %3863 = vmatpush2.bf16.msra.mxu1 %v10325_v36  ;;  %v10277_v36 = vcombine.low %v278_v42, %v282_v59  ;;  %v10379_v42 = vcombine.low %v3931_v11, %v3935_v13 }
 0x211   :  { %3864 = vmatprep.subr.bf16.mxu1 %v10318_v0  ;;  %v10524_v0 = vcombine.high %v4075_v58, %v4079_v60 }
 0x212   :  { %3822 = vmatpush2.bf16.msra.mxu0 %v10189_v7  ;;  %v10395_v7 = vcombine.low %v3947_v51, %v3951_v54  ;;  %v3915_v51 = vld [vmem:[#allocation2 + $0xc0] sm:$0xff] }
 0x213   :  { %3823 = vmatprep.subr.bf16.mxu0 %v10182_v9  ;;  %v10388_v9 = vcombine.high %v3939_v2, %v3943_v3  ;;  %v3919_v54 = vld [vmem:[#allocation2 + $0xe0] sm:$0xff] }
 0x214   :  { %3865 = vmatpush2.bf16.msra.mxu1 %v10317_v8  ;;  %v10523_v8 = vcombine.low %v4075_v58, %v4079_v60  ;;  %v4043_v60 = vld [vmem:[#allocation2 + $0x4c0] sm:$0xff] }
 0x215   :  { %3866 = vmatprep.subr.bf16.mxu1 %v10310_v10  ;;  %v10516_v10 = vcombine.high %v4067_v4, %v4071_v40  ;;  %v3907_v3 = vld [vmem:[#allocation2 + $0x80] sm:$0xff] }
 0x216   :  { %3824 = vmatpush2.bf16.msra.mxu0 %v10181_v18  ;;  %v11172_v18 = vld [vmem:[%s13343_s0] ss:$16 sps:$4 sm:$0xff]  }
 0x217   :  { %3825 = vmatprep.subr.bf16.mxu0 %v10174_v20  ;;  %v4063_v20 = vld [vmem:[#allocation2 + $0x560] sm:$0xff] }
 0x218   :  { %3867 = vmatpush2.bf16.msra.mxu1 %v10309_v19  ;;  %v4059_v19 = vld [vmem:[#allocation2 + $0x540] sm:$0xff] }
 0x219   :  { %3868 = vmatprep.subr.bf16.mxu1 %v10302_v22  ;;  %v12985_v22 = vld [vmem:[%s13345_s2 + $0xc] ss:$16 sps:$4 sm:$0xff]   ;;  %v10507_v59 = vcombine.low %v4059_v19, %v4063_v20 }
 0x21a   :  { %3826 = vmatpush2.bf16.msra.mxu0 %v10173_v27 }
 0x21b   :  { %3827 = vmatprep.subr.bf16.mxu0 %v10166_v31  ;;  %v10380_v31 = vcombine.high %v3931_v11, %v3935_v13  ;;  %v3899_v11 = vld [vmem:[#allocation2 + $0x40] sm:$0xff] }
 0x21c   :  { %3869 = vmatpush2.bf16.msra.mxu1 %v10301_v30  ;;  %v10515_v30 = vcombine.low %v4067_v4, %v4071_v40  ;;  %v3911_v4 = vld [vmem:[#allocation2 + $0xa0] sm:$0xff] }
 0x21d   :  { %3870 = vmatprep.subr.bf16.mxu1 %v10294_v50  ;;  %v4039_v40 = vld [vmem:[#allocation2 + $0x4a0] sm:$0xff] }
 0x21e   :  { %3828 = vmatpush2.bf16.msra.mxu0 %v10165_v35  ;;  %v3903_v13 = vld [vmem:[#allocation2 + $0x60] sm:$0xff] }
 0x21f   :  { %3829 = vmatprep.subr.bf16.mxu0 %v10158_v39  ;;  %v4055_v39 = vld [vmem:[#allocation2 + $0x520] sm:$0xff] }
 0x220   :  { %3871 = vmatpush2.bf16.msra.mxu1 %v10293_v38  ;;  %v4051_v38 = vld [vmem:[#allocation2 + $0x500] sm:$0xff] }
 0x221   :  { %3872 = vmatprep.subr.bf16.mxu1 %v10286_v12 }
 0x222   :  { %3830 = vmatpush2.bf16.msra.mxu0 %v10157_v45  ;;  %v10372_v45 = vcombine.high %v3923_v34, %v3927_v53 }
 0x223   :  { %3831 = vmatprep.subr.bf16.mxu0 %v10150_v47 }
 0x224   :  { %3873 = vmatpush2.bf16.msra.mxu1 %v10285_v46 }
 0x225   :  { %3874 = vmatprep.subr.bf16.mxu1 %v10278_v48  ;;  %v10500_v48 = vcombine.high %v4051_v38, %v4055_v39 }
 0x226   :  { %3832 = vmatpush2.bf16.msra.mxu0 %v10149_v61  ;;  %v4047_v61 = vld [vmem:[#allocation2 + $0x4e0] sm:$0xff] }
 0x227   :  { %5447 = vmatprep.subr.bf16.mxu0 %v10396_v63  ;;  %v10499_v63 = vcombine.low %v4051_v38, %v4055_v39  ;;  %v10492_v2 = vcombine.high %v4043_v60, %v4047_v61  ;;  %v4143_v38 = vld [vmem:[#allocation2 + $0x7e0] sm:$0xff] }
 0x228   :  { %3875 = vmatpush2.bf16.msra.mxu1 %v10277_v36  ;;  %v10371_v36 = vcombine.low %v3923_v34, %v3927_v53  ;;  %v4011_v34 = vld [vmem:[#allocation2 + $0x3c0] sm:$0xff] }
 0x229   :  { %5490 = vmatprep.subr.bf16.mxu1 %v10524_v0  ;;  %v3577_v17 = vpop.f32.mrf.mxu0  ;;  %3834 = vmatmul.mubr.bf16.vlgmr.msra.gmra.mxu0 %v11172_v18  ;;  %v10364_v0 = vcombine.high %v3915_v51, %v3919_v54  ;;  %v4031_v18 = vld [vmem:[#allocation2 + $0x460] sm:$0xff] }
 0x22a   :  { %v3578_v23 = vadd.f32 %v3577_v17, %v12182_v43  ;;  %5448 = vmatpush1.bf16.msra.mxu0 %v10395_v7  ;;  %v10508_v43 = vcombine.high %v4059_v19, %v4063_v20  ;;  %5479 = vmatprep.mubr.bf16.mxu0 %v12977_v16  ;;  %v10363_v7 = vcombine.low %v3915_v51, %v3919_v54  ;;  %v4027_v17 = vld [vmem:[#allocation2 + $0x440] sm:$0xff] }
 0x22b   :  { %v3620_v24 = vpop.f32.mrf.mxu1  ;;  %3877 = vmatmul.mubr.bf16.vlgmr.msra.gmra.mxu1 %v11173_v25  ;;  %v3579_v27 = vpop.f32.mrf.mxu0  ;;  %5449 = vmatprep.subr.bf16.mxu0 %v10388_v9  ;;  %v10356_v9 = vcombine.high %v3907_v3, %v3911_v4  ;;  %v10355_v19 = vcombine.low %v3907_v3, %v3911_v4  ;;  %v3891_v25 = vld [vmem:[#allocation2] sm:$0xff] }
 0x22c   :  { %5491 = vmatpush1.bf16.msra.mxu1 %v10523_v8  ;;  %v12991_v50 = vadd.f32 %v3620_v24, %v3578_v23  ;;  %v3580_v32 = vadd.f32 %v3579_v27, %v12191_v49  ;;  %5522 = vmatprep.mubr.bf16.mxu1 %v12985_v22  ;;  %v10491_v8 = vcombine.low %v4043_v60, %v4047_v61  ;;  %v4019_v27 = vld [vmem:[#allocation2 + $0x400] sm:$0xff] }
 0x22d   :  { %v3622_v33 = vpop.f32.mrf.mxu1  ;;  %5492 = vmatprep.subr.bf16.mxu1 %v10516_v10  ;;  %v3581_v35 = vpop.f32.mrf.mxu0  ;;  %v10348_v23 = vcombine.high %v3899_v11, %v3903_v13  ;;  %v10476_v24 = vcombine.high %v4027_v17, %v4031_v18  ;;  %v4015_v53 = vld [vmem:[#allocation2 + $0x3e0] sm:$0xff] }
 0x22e   :  { %v12996_v12 = vadd.f32 %v3622_v33, %v3580_v32  ;;  %v3582_v15 = vadd.f32 %v3581_v35, %v12200_v55  ;;  %5450 = vmatpush1.bf16.msra.mxu0 %v10387_v26  ;;  %v3895_v26 = vld [vmem:[#allocation2 + $0x20] sm:$0xff]  ;;  %v10475_v32 = vcombine.low %v4027_v17, %v4031_v18 }
 0x22f   :  { %v3624_v41 = vpop.f32.mrf.mxu1  ;;  %v3583_v49 = vpop.f32.mrf.mxu0  ;;  %5451 = vmatprep.subr.bf16.mxu0 %v10380_v31  ;;  %v10347_v31 = vcombine.low %v3899_v11, %v3903_v13  ;;  %v10340_v33 = vcombine.high %v3891_v25, %v3895_v26  ;;  %v4139_v35 = vld [vmem:[#allocation2 + $0x7c0] sm:$0xff]  ;;  %v10339_v39 = vcombine.low %v3891_v25, %v3895_v26 }
 0x230   :  { %5493 = vmatpush1.bf16.msra.mxu1 %v10515_v30  ;;  %v12999_v46 = vadd.f32 %v3624_v41, %v3582_v15  ;;  %v3584_v47 = vadd.f32 %v3583_v49, %v12208_v1  ;;  %v4035_v1 = vld [vmem:[#allocation2 + $0x480] sm:$0xff]  ;;  %v10460_v41 = vcombine.high %v4011_v34, %v4015_v53  ;;  %v10587_v51 = vcombine.low %v4139_v35, %v4143_v38 }
 0x231   :  { %5494 = vmatprep.subr.bf16.mxu1 %v10508_v43  ;;  %v3626_v58 = vpop.f32.mrf.mxu1  ;;  %v10484_v10 = vcombine.high %v4035_v1, %v4039_v40  ;;  %v10483_v20 = vcombine.low %v4035_v1, %v4039_v40  ;;  %v4023_v30 = vld [vmem:[#allocation2 + $0x420] sm:$0xff] }
 0x232   :  { %v13002_v55 = vadd.f32 %v3626_v58, %v3584_v47  ;;  %5452 = vmatpush1.bf16.msra.mxu0 %v10379_v42  ;;  %v10468_v43 = vcombine.high %v4019_v27, %v4023_v30  ;;  %v10467_v15 = vcombine.low %v4019_v27, %v4023_v30  ;;  %v10588_v42 = vcombine.high %v4139_v35, %v4143_v38  ;;  %v4003_v49 = vld [vmem:[#allocation2 + $0x380] sm:$0xff] }
 0x233   :  { %5453 = vmatprep.subr.bf16.mxu0 %v10372_v45  ;;  %v4131_v45 = vld [vmem:[#allocation2 + $0x780] sm:$0xff] }
 0x234   :  { %5495 = vmatpush1.bf16.msra.mxu1 %v10507_v59  ;;  %v4007_v59 = vld [vmem:[#allocation2 + $0x3a0] sm:$0xff] }
 0x235   :  { %5496 = vmatprep.subr.bf16.mxu1 %v10500_v48  ;;  %v4135_v47 = vld [vmem:[#allocation2 + $0x7a0] sm:$0xff]  ;;  %v10459_v48 = vcombine.low %v4011_v34, %v4015_v53  ;;  %v10452_v54 = vcombine.high %v4003_v49, %v4007_v59 }
 0x236   :  { %5454 = vmatpush1.bf16.msra.mxu0 %v10371_v36  ;;  %v10580_v58 = vcombine.high %v4131_v45, %v4135_v47  ;;  %v3995_v60 = vld [vmem:[#allocation2 + $0x340] sm:$0xff] }
 0x237   :  { %5455 = vmatprep.subr.bf16.mxu0 %v10364_v0  ;;  %v3999_v61 = vld [vmem:[#allocation2 + $0x360] sm:$0xff]  ;;  %v10451_v0 = vcombine.low %v4003_v49, %v4007_v59 }
 0x238   :  { %5497 = vmatpush1.bf16.msra.mxu1 %v10499_v63  ;;  %v4123_v36 = vld [vmem:[#allocation2 + $0x740] sm:$0xff]  ;;  %v10444_v3 = vcombine.high %v3995_v60, %v3999_v61 }
 0x239   :  { %5498 = vmatprep.subr.bf16.mxu1 %v10492_v2  ;;  %v4127_v63 = vld [vmem:[#allocation2 + $0x760] sm:$0xff]  ;;  %v10579_v2 = vcombine.low %v4131_v45, %v4135_v47 }
 0x23a   :  { %5456 = vmatpush1.bf16.msra.mxu0 %v10363_v7  ;;  %v10572_v4 = vcombine.high %v4123_v36, %v4127_v63  ;;  %v3987_v1 = vld [vmem:[#allocation2 + $0x300] sm:$0xff] }
 0x23b   :  { %5457 = vmatprep.subr.bf16.mxu0 %v10356_v9  ;;  %v3991_v40 = vld [vmem:[#allocation2 + $0x320] sm:$0xff]  ;;  %v10443_v9 = vcombine.low %v3995_v60, %v3999_v61 }
 0x23c   :  { %5499 = vmatpush1.bf16.msra.mxu1 %v10491_v8  ;;  %v4115_v7 = vld [vmem:[#allocation2 + $0x700] sm:$0xff]  ;;  %v10436_v11 = vcombine.high %v3987_v1, %v3991_v40 }
 0x23d   :  { %5500 = vmatprep.subr.bf16.mxu1 %v10484_v10  ;;  %v4119_v8 = vld [vmem:[#allocation2 + $0x720] sm:$0xff]  ;;  %v10571_v10 = vcombine.low %v4123_v36, %v4127_v63  ;;  %v3948_v36 = vld [vmem:[#allocation2 + $0x1c8] sm:$0xff] }
 0x23e   :  { %5458 = vmatpush1.bf16.msra.mxu0 %v10355_v19  ;;  %v10564_v13 = vcombine.high %v4115_v7, %v4119_v8  ;;  %v3979_v17 = vld [vmem:[#allocation2 + $0x2c0] sm:$0xff]  ;;  %v3952_v63 = vld [vmem:[#allocation2 + $0x1e8] sm:$0xff] }
 0x23f   :  { %5459 = vmatprep.subr.bf16.mxu0 %v10348_v23  ;;  %v3983_v18 = vld [vmem:[#allocation2 + $0x2e0] sm:$0xff]  ;;  %v10435_v23 = vcombine.low %v3987_v1, %v3991_v40  ;;  %v10398_v1 = vcombine.high %v3948_v36, %v3952_v63 }
 0x240   :  { %5501 = vmatpush1.bf16.msra.mxu1 %v10483_v20  ;;  %v4107_v19 = vld [vmem:[#allocation2 + $0x6c0] sm:$0xff]  ;;  %v10428_v25 = vcombine.high %v3979_v17, %v3983_v18 }
 0x241   :  { %5502 = vmatprep.subr.bf16.mxu1 %v10476_v24  ;;  %v4111_v20 = vld [vmem:[#allocation2 + $0x6e0] sm:$0xff]  ;;  %v10563_v24 = vcombine.low %v4115_v7, %v4119_v8  ;;  %v3940_v7 = vld [vmem:[#allocation2 + $0x188] sm:$0xff] }
 0x242   :  { %5460 = vmatpush1.bf16.msra.mxu0 %v10347_v31  ;;  %v10556_v26 = vcombine.high %v4107_v19, %v4111_v20  ;;  %v3971_v27 = vld [vmem:[#allocation2 + $0x280] sm:$0xff]  ;;  %v3944_v8 = vld [vmem:[#allocation2 + $0x1a8] sm:$0xff] }
 0x243   :  { %5461 = vmatprep.subr.bf16.mxu0 %v10340_v33  ;;  %v3975_v30 = vld [vmem:[#allocation2 + $0x2a0] sm:$0xff]  ;;  %v10427_v33 = vcombine.low %v3979_v17, %v3983_v18  ;;  %v10397_v17 = vcombine.low %v3948_v36, %v3952_v63  ;;  %v3916_v36 = vld [vmem:[#allocation2 + $0xc8] sm:$0xff] }
 0x244   :  { %5503 = vmatpush1.bf16.msra.mxu1 %v10475_v32  ;;  %v4099_v31 = vld [vmem:[#allocation2 + $0x680] sm:$0xff]  ;;  %v10420_v34 = vcombine.high %v3971_v27, %v3975_v30  ;;  %v3920_v63 = vld [vmem:[#allocation2 + $0xe8] sm:$0xff] }
 0x245   :  { %5504 = vmatprep.subr.bf16.mxu1 %v10468_v43  ;;  %v4103_v32 = vld [vmem:[#allocation2 + $0x6a0] sm:$0xff]  ;;  %v10555_v43 = vcombine.low %v4107_v19, %v4111_v20  ;;  %v10390_v19 = vcombine.high %v3940_v7, %v3944_v8 }
 0x246   :  { %5462 = vmatpush1.bf16.msra.mxu0 %v10339_v39  ;;  %v10548_v53 = vcombine.high %v4099_v31, %v4103_v32  ;;  %v3963_v35 = vld [vmem:[#allocation2 + $0x240] sm:$0xff] }
 0x247   :  { %5463 = vmatprep.subr.bf16.mxu0 %v10460_v41  ;;  %v3967_v38 = vld [vmem:[#allocation2 + $0x260] sm:$0xff]  ;;  %v10419_v41 = vcombine.low %v3971_v27, %v3975_v30  ;;  %v4064_v27 = vld [vmem:[#allocation2 + $0x568] sm:$0xff] }
 0x248   :  { %5505 = vmatpush1.bf16.msra.mxu1 %v10467_v15  ;;  %v4091_v39 = vld [vmem:[#allocation2 + $0x640] sm:$0xff]  ;;  %v10412_v49 = vcombine.high %v3963_v35, %v3967_v38 }
 0x249   :  { %5506 = vmatprep.subr.bf16.mxu1 %v10588_v42  ;;  %v4095_v15 = vld [vmem:[#allocation2 + $0x660] sm:$0xff]  ;;  %v10547_v42 = vcombine.low %v4099_v31, %v4103_v32  ;;  %v10389_v32 = vcombine.low %v3940_v7, %v3944_v8  ;;  %v3908_v8 = vld [vmem:[#allocation2 + $0x88] sm:$0xff] }
 0x24a   :  { %5464 = vmatpush2.bf16.msra.mxu0 %v10459_v48  ;;  %v10540_v59 = vcombine.high %v4091_v39, %v4095_v15  ;;  %v3955_v45 = vld [vmem:[#allocation2 + $0x200] sm:$0xff] }
 0x24b   :  { %5465 = vmatprep.subr.bf16.mxu0 %v10452_v54  ;;  %v3959_v47 = vld [vmem:[#allocation2 + $0x220] sm:$0xff]  ;;  %v10411_v54 = vcombine.low %v3963_v35, %v3967_v38 }
 0x24c   :  { %5507 = vmatpush2.bf16.msra.mxu1 %v10587_v51  ;;  %v4083_v48 = vld [vmem:[#allocation2 + $0x600] sm:$0xff]  ;;  %v10404_v60 = vcombine.high %v3955_v45, %v3959_v47 }
 0x24d   :  { %5508 = vmatprep.subr.bf16.mxu1 %v10580_v58  ;;  %v4087_v51 = vld [vmem:[#allocation2 + $0x620] sm:$0xff]  ;;  %v10539_v58 = vcombine.low %v4091_v39, %v4095_v15  ;;  %v3924_v15 = vld [vmem:[#allocation2 + $0x108] sm:$0xff] }
 0x24e   :  { %5466 = vmatpush2.bf16.msra.mxu0 %v10451_v0  ;;  %v10532_v61 = vcombine.high %v4083_v48, %v4087_v51  ;;  %v4076_v0 = vld [vmem:[#allocation2 + $0x5c8] sm:$0xff] }
 0x24f   :  { %5467 = vmatprep.subr.bf16.mxu0 %v10444_v3  ;;  %v10403_v3 = vcombine.low %v3955_v45, %v3959_v47 }
 0x250   :  { %5509 = vmatpush2.bf16.msra.mxu1 %v10579_v2  ;;  %v4080_v2 = vld [vmem:[#allocation2 + $0x5e8] sm:$0xff] }
 0x251   :  { %5510 = vmatprep.subr.bf16.mxu1 %v10572_v4  ;;  %v10531_v4 = vcombine.low %v4083_v48, %v4087_v51  ;;  %v10526_v40 = vcombine.high %v4076_v0, %v4080_v2  ;;  %v10525_v18 = vcombine.low %v4076_v0, %v4080_v2  ;;  %v4044_v2 = vld [vmem:[#allocation2 + $0x4c8] sm:$0xff] }
 0x252   :  { %5468 = vmatpush2.bf16.msra.mxu0 %v10443_v9  ;;  %v13007_v9 = vld [vmem:[%s13345_s2] ss:$16 sps:$4 sm:$0xff]  }
 0x253   :  { %5469 = vmatprep.subr.bf16.mxu0 %v10436_v11  ;;  %v4072_v11 = vld [vmem:[#allocation2 + $0x5a8] sm:$0xff] }
 0x254   :  { %5511 = vmatpush2.bf16.msra.mxu1 %v10571_v10  ;;  %v4068_v10 = vld [vmem:[#allocation2 + $0x588] sm:$0xff] }
 0x255   :  { %5512 = vmatprep.subr.bf16.mxu1 %v10564_v13  ;;  %v13012_v13 = vld [vmem:[%s13345_s2 + $0x8] ss:$16 sps:$4 sm:$0xff]   ;;  %v10518_v20 = vcombine.high %v4068_v10, %v4072_v11 }
 0x256   :  { %5470 = vmatpush2.bf16.msra.mxu0 %v10435_v23  ;;  %v3932_v23 = vld [vmem:[#allocation2 + $0x148] sm:$0xff] }
 0x257   :  { %5471 = vmatprep.subr.bf16.mxu0 %v10428_v25 }
 0x258   :  { %5513 = vmatpush2.bf16.msra.mxu1 %v10563_v24  ;;  %v3936_v24 = vld [vmem:[#allocation2 + $0x168] sm:$0xff] }
 0x259   :  { %5514 = vmatprep.subr.bf16.mxu1 %v10556_v26  ;;  %v4060_v26 = vld [vmem:[#allocation2 + $0x548] sm:$0xff]  ;;  %v10381_v48 = vcombine.low %v3932_v23, %v3936_v24 }
 0x25a   :  { %5472 = vmatpush2.bf16.msra.mxu0 %v10427_v33  ;;  %v10510_v39 = vcombine.high %v4060_v26, %v4064_v27  ;;  %v10509_v51 = vcombine.low %v4060_v26, %v4064_v27  ;;  %v4032_v26 = vld [vmem:[#allocation2 + $0x468] sm:$0xff] }
 0x25b   :  { %5473 = vmatprep.subr.bf16.mxu0 %v10420_v34  ;;  %v10382_v34 = vcombine.high %v3932_v23, %v3936_v24  ;;  %v3900_v23 = vld [vmem:[#allocation2 + $0x48] sm:$0xff] }
 0x25c   :  { %5515 = vmatpush2.bf16.msra.mxu1 %v10555_v43  ;;  %v10517_v43 = vcombine.low %v4068_v10, %v4072_v11  ;;  %v3912_v10 = vld [vmem:[#allocation2 + $0xa8] sm:$0xff] }
 0x25d   :  { %5516 = vmatprep.subr.bf16.mxu1 %v10548_v53  ;;  %v4040_v11 = vld [vmem:[#allocation2 + $0x4a8] sm:$0xff]  ;;  %v10357_v27 = vcombine.low %v3908_v8, %v3912_v10 }
 0x25e   :  { %5474 = vmatpush2.bf16.msra.mxu0 %v10419_v41  ;;  %v3928_v41 = vld [vmem:[#allocation2 + $0x128] sm:$0xff] }
 0x25f   :  { %5475 = vmatprep.subr.bf16.mxu0 %v10412_v49  ;;  %v4056_v49 = vld [vmem:[#allocation2 + $0x528] sm:$0xff] }
 0x260   :  { %5517 = vmatpush2.bf16.msra.mxu1 %v10547_v42  ;;  %v4052_v42 = vld [vmem:[#allocation2 + $0x508] sm:$0xff] }
 0x261   :  { %5518 = vmatprep.subr.bf16.mxu1 %v10540_v59  ;;  %v3904_v24 = vld [vmem:[#allocation2 + $0x68] sm:$0xff] }
 0x262   :  { %5476 = vmatpush2.bf16.msra.mxu0 %v10411_v54  ;;  %v10374_v54 = vcombine.high %v3924_v15, %v3928_v41 }
 0x263   :  { %5477 = vmatprep.subr.bf16.mxu0 %v10404_v60 }
 0x264   :  { %5519 = vmatpush2.bf16.msra.mxu1 %v10539_v58 }
 0x265   :  { %5520 = vmatprep.subr.bf16.mxu1 %v10532_v61  ;;  %v10502_v61 = vcombine.high %v4052_v42, %v4056_v49 }
 0x266   :  { %5478 = vmatpush2.bf16.msra.mxu0 %v10403_v3  ;;  %v4048_v3 = vld [vmem:[#allocation2 + $0x4e8] sm:$0xff] }
 0x267   :  { %5533 = vmatprep.subr.bf16.mxu0 %v10398_v1  ;;  %v10501_v1 = vcombine.low %v4052_v42, %v4056_v49  ;;  %v10494_v7 = vcombine.high %v4044_v2, %v4048_v3  ;;  %v4016_v42 = vld [vmem:[#allocation2 + $0x3e8] sm:$0xff] }
 0x268   :  { %5521 = vmatpush2.bf16.msra.mxu1 %v10531_v4  ;;  %v10373_v4 = vcombine.low %v3924_v15, %v3928_v41  ;;  %v4140_v49 = vld [vmem:[#allocation2 + $0x7c8] sm:$0xff] }
 0x269   :  { %5576 = vmatprep.subr.bf16.mxu1 %v10526_v40  ;;  %v3663_v25 = vpop.f32.mrf.mxu0  ;;  %5480 = vmatmul.mubr.bf16.vlgmr.msra.gmra.mxu0 %v13007_v9  ;;  %v10366_v40 = vcombine.high %v3916_v36, %v3920_v63 }
 0x26a   :  { %v3664_v30 = vadd.f32 %v3663_v25, %v12396_v5  ;;  %5534 = vmatpush1.bf16.msra.mxu0 %v10397_v17  ;;  %5565 = vmatprep.mubr.bf16.mxu0 %v12977_v16  ;;  %v10365_v17 = vcombine.low %v3916_v36, %v3920_v63  ;;  %v4028_v25 = vld [vmem:[#allocation2 + $0x448] sm:$0xff] }
 0x26b   :  { %v3706_v31 = vpop.f32.mrf.mxu1  ;;  %5523 = vmatmul.mubr.bf16.vlgmr.msra.gmra.mxu1 %v13012_v13  ;;  %v3665_v33 = vpop.f32.mrf.mxu0  ;;  %5535 = vmatprep.subr.bf16.mxu0 %v10390_v19  ;;  %v10358_v19 = vcombine.high %v3908_v8, %v3912_v10  ;;  %v4136_v36 = vld [vmem:[#allocation2 + $0x7a8] sm:$0xff] }
 0x26c   :  { %5577 = vmatpush1.bf16.msra.mxu1 %v10525_v18  ;;  %v13017_v53 = vadd.f32 %v3706_v31, %v3664_v30  ;;  %v3666_v35 = vadd.f32 %v3665_v33, %v12405_v14  ;;  %5608 = vmatprep.mubr.bf16.mxu1 %v12985_v22  ;;  %v10493_v18 = vcombine.low %v4044_v2, %v4048_v3  ;;  %v3892_v33 = vld [vmem:[#allocation2 + $0x8] sm:$0xff] }
 0x26d   :  { %v3708_v38 = vpop.f32.mrf.mxu1  ;;  %5578 = vmatprep.subr.bf16.mxu1 %v10518_v20  ;;  %v3667_v5 = vpop.f32.mrf.mxu0  ;;  %v10350_v31 = vcombine.high %v3900_v23, %v3904_v24 }
 0x26e   :  { %v13022_v59 = vadd.f32 %v3708_v38, %v3666_v35  ;;  %v3668_v45 = vadd.f32 %v3667_v5, %v12414_v21  ;;  %5536 = vmatpush1.bf16.msra.mxu0 %v10389_v32  ;;  %v10478_v32 = vcombine.high %v4028_v25, %v4032_v26  ;;  %v4024_v35 = vld [vmem:[#allocation2 + $0x428] sm:$0xff]  ;;  %v10349_v38 = vcombine.low %v3900_v23, %v3904_v24 }
 0x26f   :  { %v3710_v47 = vpop.f32.mrf.mxu1  ;;  %v3669_v14 = vpop.f32.mrf.mxu0  ;;  %5537 = vmatprep.subr.bf16.mxu0 %v10382_v34  ;;  %v4020_v34 = vld [vmem:[#allocation2 + $0x408] sm:$0xff] }
 0x270   :  { %5579 = vmatpush1.bf16.msra.mxu1 %v10517_v43  ;;  %v13025_v58 = vadd.f32 %v3710_v47, %v3668_v45  ;;  %v3670_v60 = vadd.f32 %v3669_v14, %v12422_v29  ;;  %v4036_v29 = vld [vmem:[#allocation2 + $0x488] sm:$0xff]  ;;  %v10470_v41 = vcombine.high %v4020_v34, %v4024_v35 }
 0x271   :  { %5580 = vmatprep.subr.bf16.mxu1 %v10510_v39  ;;  %v3712_v0 = vpop.f32.mrf.mxu1  ;;  %v10486_v20 = vcombine.high %v4036_v29, %v4040_v11  ;;  %v10485_v30 = vcombine.low %v4036_v29, %v4040_v11  ;;  %v3896_v43 = vld [vmem:[#allocation2 + $0x28] sm:$0xff]  ;;  %v10477_v39 = vcombine.low %v4028_v25, %v4032_v26 }
 0x272   :  { %v13028_v21 = vadd.f32 %v3712_v0, %v3670_v60  ;;  %5538 = vmatpush1.bf16.msra.mxu0 %v10381_v48  ;;  %v10342_v15 = vcombine.high %v3892_v33, %v3896_v43  ;;  %v4012_v5 = vld [vmem:[#allocation2 + $0x3c8] sm:$0xff]  ;;  %v10341_v47 = vcombine.low %v3892_v33, %v3896_v43  ;;  %v10469_v48 = vcombine.low %v4020_v34, %v4024_v35 }
 0x273   :  { %5539 = vmatprep.subr.bf16.mxu0 %v10374_v54  ;;  %v4144_v45 = vld [vmem:[#allocation2 + $0x7e8] sm:$0xff]  ;;  %v10462_v14 = vcombine.high %v4012_v5, %v4016_v42  ;;  %v10461_v63 = vcombine.low %v4012_v5, %v4016_v42 }
 0x274   :  { %5581 = vmatpush1.bf16.msra.mxu1 %v10509_v51  ;;  %v10590_v51 = vcombine.high %v4140_v49, %v4144_v45  ;;  %v4004_v54 = vld [vmem:[#allocation2 + $0x388] sm:$0xff]  ;;  %v10589_v0 = vcombine.low %v4140_v49, %v4144_v45 }
 0x275   :  { %5582 = vmatprep.subr.bf16.mxu1 %v10502_v61  ;;  %v4008_v60 = vld [vmem:[#allocation2 + $0x3a8] sm:$0xff] }
 0x276   :  { %5540 = vmatpush1.bf16.msra.mxu0 %v10373_v4  ;;  %v4132_v61 = vld [vmem:[#allocation2 + $0x788] sm:$0xff]  ;;  %v10454_v2 = vcombine.high %v4004_v54, %v4008_v60  ;;  %v10453_v8 = vcombine.low %v4004_v54, %v4008_v60 }
 0x277   :  { %5541 = vmatprep.subr.bf16.mxu0 %v10366_v40  ;;  %v10582_v3 = vcombine.high %v4132_v61, %v4136_v36  ;;  %v3996_v4 = vld [vmem:[#allocation2 + $0x348] sm:$0xff]  ;;  %v10581_v10 = vcombine.low %v4132_v61, %v4136_v36 }
 0x278   :  { %5583 = vmatpush1.bf16.msra.mxu1 %v10501_v1  ;;  %v4000_v1 = vld [vmem:[#allocation2 + $0x368] sm:$0xff] }
 0x279   :  { %5584 = vmatprep.subr.bf16.mxu1 %v10494_v7  ;;  %v4124_v40 = vld [vmem:[#allocation2 + $0x748] sm:$0xff]  ;;  %v10446_v29 = vcombine.high %v3996_v4, %v4000_v1  ;;  %v10445_v23 = vcombine.low %v3996_v4, %v4000_v1 }
 0x27a   :  { %5542 = vmatpush1.bf16.msra.mxu0 %v10365_v17  ;;  %v4128_v7 = vld [vmem:[#allocation2 + $0x768] sm:$0xff] }
 0x27b   :  { %5543 = vmatprep.subr.bf16.mxu0 %v10358_v19  ;;  %v10574_v11 = vcombine.high %v4124_v40, %v4128_v7  ;;  %v3988_v17 = vld [vmem:[#allocation2 + $0x308] sm:$0xff]  ;;  %v10573_v24 = vcombine.low %v4124_v40, %v4128_v7 }
 0x27c   :  { %5585 = vmatpush1.bf16.msra.mxu1 %v10493_v18  ;;  %v3992_v18 = vld [vmem:[#allocation2 + $0x328] sm:$0xff] }
 0x27d   :  { %5586 = vmatprep.subr.bf16.mxu1 %v10486_v20  ;;  %v4116_v19 = vld [vmem:[#allocation2 + $0x708] sm:$0xff]  ;;  %v10438_v25 = vcombine.high %v3988_v17, %v3992_v18  ;;  %v10437_v33 = vcombine.low %v3988_v17, %v3992_v18 }
 0x27e   :  { %5544 = vmatpush1.bf16.msra.mxu0 %v10357_v27  ;;  %v4120_v20 = vld [vmem:[#allocation2 + $0x728] sm:$0xff] }
 0x27f   :  { %5545 = vmatprep.subr.bf16.mxu0 %v10350_v31  ;;  %v10566_v26 = vcombine.high %v4116_v19, %v4120_v20  ;;  %v3980_v27 = vld [vmem:[#allocation2 + $0x2c8] sm:$0xff]  ;;  %v10565_v43 = vcombine.low %v4116_v19, %v4120_v20 }
 0x280   :  { %5587 = vmatpush1.bf16.msra.mxu1 %v10485_v30  ;;  %v3984_v30 = vld [vmem:[#allocation2 + $0x2e8] sm:$0xff] }
 0x281   :  { %5588 = vmatprep.subr.bf16.mxu1 %v10478_v32  ;;  %v4108_v31 = vld [vmem:[#allocation2 + $0x6c8] sm:$0xff]  ;;  %v10430_v34 = vcombine.high %v3980_v27, %v3984_v30  ;;  %v10429_v5 = vcombine.low %v3980_v27, %v3984_v30 }
 0x282   :  { %5546 = vmatpush1.bf16.msra.mxu0 %v10349_v38  ;;  %v4112_v32 = vld [vmem:[#allocation2 + $0x6e8] sm:$0xff] }
 0x283   :  { %5547 = vmatprep.subr.bf16.mxu0 %v10342_v15  ;;  %v10558_v35 = vcombine.high %v4108_v31, %v4112_v32  ;;  %v3972_v38 = vld [vmem:[#allocation2 + $0x288] sm:$0xff]  ;;  %v10557_v42 = vcombine.low %v4108_v31, %v4112_v32 }
 0x284   :  { %5589 = vmatpush1.bf16.msra.mxu1 %v10477_v39  ;;  %v3976_v39 = vld [vmem:[#allocation2 + $0x2a8] sm:$0xff] }
 0x285   :  { %5590 = vmatprep.subr.bf16.mxu1 %v10470_v41  ;;  %v4100_v15 = vld [vmem:[#allocation2 + $0x688] sm:$0xff]  ;;  %v10422_v49 = vcombine.high %v3972_v38, %v3976_v39  ;;  %v10421_v54 = vcombine.low %v3972_v38, %v3976_v39  ;;  %v4065_v38 = vld [vmem:[#allocation2 + $0x570] sm:$0xff] }
 0x286   :  { %5548 = vmatpush1.bf16.msra.mxu0 %v10341_v47  ;;  %v4104_v41 = vld [vmem:[#allocation2 + $0x6a8] sm:$0xff] }
 0x287   :  { %5549 = vmatprep.subr.bf16.mxu0 %v10462_v14  ;;  %v10550_v45 = vcombine.high %v4100_v15, %v4104_v41  ;;  %v3964_v47 = vld [vmem:[#allocation2 + $0x248] sm:$0xff]  ;;  %v10549_v60 = vcombine.low %v4100_v15, %v4104_v41 }
 0x288   :  { %5591 = vmatpush1.bf16.msra.mxu1 %v10469_v48  ;;  %v3968_v48 = vld [vmem:[#allocation2 + $0x268] sm:$0xff] }
 0x289   :  { %5592 = vmatprep.subr.bf16.mxu1 %v10590_v51  ;;  %v4092_v14 = vld [vmem:[#allocation2 + $0x648] sm:$0xff]  ;;  %v10414_v61 = vcombine.high %v3964_v47, %v3968_v48  ;;  %v10413_v4 = vcombine.low %v3964_v47, %v3968_v48 }
 0x28a   :  { %5550 = vmatpush2.bf16.msra.mxu0 %v10461_v63  ;;  %v4096_v51 = vld [vmem:[#allocation2 + $0x668] sm:$0xff] }
 0x28b   :  { %5551 = vmatprep.subr.bf16.mxu0 %v10454_v2  ;;  %v10542_v36 = vcombine.high %v4092_v14, %v4096_v51  ;;  %v3956_v63 = vld [vmem:[#allocation2 + $0x208] sm:$0xff]  ;;  %v10541_v1 = vcombine.low %v4092_v14, %v4096_v51  ;;  %v3925_v51 = vld [vmem:[#allocation2 + $0x110] sm:$0xff] }
 0x28c   :  { %5593 = vmatpush2.bf16.msra.mxu1 %v10589_v0  ;;  %v3960_v0 = vld [vmem:[#allocation2 + $0x228] sm:$0xff] }
 0x28d   :  { %5594 = vmatprep.subr.bf16.mxu1 %v10582_v3  ;;  %v4084_v2 = vld [vmem:[#allocation2 + $0x608] sm:$0xff]  ;;  %v10406_v40 = vcombine.high %v3956_v63, %v3960_v0  ;;  %v10405_v17 = vcombine.low %v3956_v63, %v3960_v0 }
 0x28e   :  { %5552 = vmatpush2.bf16.msra.mxu0 %v10453_v8  ;;  %v4088_v3 = vld [vmem:[#allocation2 + $0x628] sm:$0xff]  ;;  %v3949_v8 = vld [vmem:[#allocation2 + $0x1d0] sm:$0xff] }
 0x28f   :  { %5553 = vmatprep.subr.bf16.mxu0 %v10446_v29  ;;  %v10534_v7 = vcombine.high %v4084_v2, %v4088_v3  ;;  %v4077_v29 = vld [vmem:[#allocation2 + $0x5d0] sm:$0xff]  ;;  %v10533_v18 = vcombine.low %v4084_v2, %v4088_v3 }
 0x290   :  { %5595 = vmatpush2.bf16.msra.mxu1 %v10581_v10  ;;  %v3953_v10 = vld [vmem:[#allocation2 + $0x1f0] sm:$0xff] }
 0x291   :  { %5596 = vmatprep.subr.bf16.mxu1 %v10574_v11  ;;  %v4081_v11 = vld [vmem:[#allocation2 + $0x5f0] sm:$0xff]  ;;  %v10400_v19 = vcombine.high %v3949_v8, %v3953_v10  ;;  %v10399_v27 = vcombine.low %v3949_v8, %v3953_v10 }
 0x292   :  { %5554 = vmatpush2.bf16.msra.mxu0 %v10445_v23  ;;  %v10528_v20 = vcombine.high %v4077_v29, %v4081_v11  ;;  %v3941_v23 = vld [vmem:[#allocation2 + $0x190] sm:$0xff]  ;;  %v10527_v30 = vcombine.low %v4077_v29, %v4081_v11 }
 0x293   :  { %5555 = vmatprep.subr.bf16.mxu0 %v10438_v25  ;;  %v4069_v25 = vld [vmem:[#allocation2 + $0x590] sm:$0xff] }
 0x294   :  { %5597 = vmatpush2.bf16.msra.mxu1 %v10573_v24  ;;  %v3945_v24 = vld [vmem:[#allocation2 + $0x1b0] sm:$0xff] }
 0x295   :  { %5598 = vmatprep.subr.bf16.mxu1 %v10566_v26  ;;  %v4073_v26 = vld [vmem:[#allocation2 + $0x5b0] sm:$0xff]  ;;  %v10392_v31 = vcombine.high %v3941_v23, %v3945_v24  ;;  %v10391_v41 = vcombine.low %v3941_v23, %v3945_v24 }
 0x296   :  { %5556 = vmatpush2.bf16.msra.mxu0 %v10437_v33  ;;  %v10520_v32 = vcombine.high %v4069_v25, %v4073_v26  ;;  %v3933_v33 = vld [vmem:[#allocation2 + $0x150] sm:$0xff] }
 0x297   :  { %5557 = vmatprep.subr.bf16.mxu0 %v10430_v34  ;;  %v4045_v10 = vld [vmem:[#allocation2 + $0x4d0] sm:$0xff] }
 0x298   :  { %5599 = vmatpush2.bf16.msra.mxu1 %v10565_v43  ;;  %v3937_v43 = vld [vmem:[#allocation2 + $0x170] sm:$0xff] }
 0x299   :  { %5600 = vmatprep.subr.bf16.mxu1 %v10558_v35  ;;  %v4061_v35 = vld [vmem:[#allocation2 + $0x550] sm:$0xff]  ;;  %v10383_v2 = vcombine.low %v3933_v33, %v3937_v43 }
 0x29a   :  { %5558 = vmatpush2.bf16.msra.mxu0 %v10429_v5  ;;  %v10512_v14 = vcombine.high %v4061_v35, %v4065_v38  ;;  %v10511_v3 = vcombine.low %v4061_v35, %v4065_v38  ;;  %v4049_v29 = vld [vmem:[#allocation2 + $0x4f0] sm:$0xff] }
 0x29b   :  { %5559 = vmatprep.subr.bf16.mxu0 %v10422_v49  ;;  %v10384_v49 = vcombine.high %v3933_v33, %v3937_v43  ;;  %v3913_v23 = vld [vmem:[#allocation2 + $0xb0] sm:$0xff] }
 0x29c   :  { %5601 = vmatpush2.bf16.msra.mxu1 %v10557_v42  ;;  %v10519_v42 = vcombine.low %v4069_v25, %v4073_v26  ;;  %v4041_v24 = vld [vmem:[#allocation2 + $0x4b0] sm:$0xff]  ;;  %v10495_v26 = vcombine.low %v4045_v10, %v4049_v29 }
 0x29d   :  { %5602 = vmatprep.subr.bf16.mxu1 %v10550_v45  ;;  %v4029_v33 = vld [vmem:[#allocation2 + $0x450] sm:$0xff] }
 0x29e   :  { %5560 = vmatpush2.bf16.msra.mxu0 %v10421_v54  ;;  %v3929_v54 = vld [vmem:[#allocation2 + $0x130] sm:$0xff] }
 0x29f   :  { %5561 = vmatprep.subr.bf16.mxu0 %v10414_v61  ;;  %v4057_v61 = vld [vmem:[#allocation2 + $0x530] sm:$0xff]  ;;  %v10375_v11 = vcombine.low %v3925_v51, %v3929_v54 }
 0x2a0   :  { %5603 = vmatpush2.bf16.msra.mxu1 %v10549_v60  ;;  %v4053_v60 = vld [vmem:[#allocation2 + $0x510] sm:$0xff] }
 0x2a1   :  { %5604 = vmatprep.subr.bf16.mxu1 %v10542_v36  ;;  %v4033_v43 = vld [vmem:[#allocation2 + $0x470] sm:$0xff] }
 0x2a2   :  { %5562 = vmatpush2.bf16.msra.mxu0 %v10413_v4  ;;  %v10376_v4 = vcombine.high %v3925_v51, %v3929_v54  ;;  %v4013_v51 = vld [vmem:[#allocation2 + $0x3d0] sm:$0xff] }
 0x2a3   :  { %5563 = vmatprep.subr.bf16.mxu0 %v10406_v40  ;;  %v10504_v40 = vcombine.high %v4053_v60, %v4057_v61  ;;  %v4017_v54 = vld [vmem:[#allocation2 + $0x3f0] sm:$0xff] }
 0x2a4   :  { %5605 = vmatpush2.bf16.msra.mxu1 %v10541_v1 }
 0x2a5   :  { %5606 = vmatprep.subr.bf16.mxu1 %v10534_v7  ;;  %v3917_v7 = vld [vmem:[#allocation2 + $0xd0] sm:$0xff] }
 0x2a6   :  { %5564 = vmatpush2.bf16.msra.mxu0 %v10405_v17  ;;  %v10503_v17 = vcombine.low %v4053_v60, %v4057_v61  ;;  %v4145_v60 = vld [vmem:[#allocation2 + $0x7f0] sm:$0xff] }
 0x2a7   :  { %5619 = vmatprep.subr.bf16.mxu0 %v10400_v19  ;;  %v10496_v19 = vcombine.high %v4045_v10, %v4049_v29  ;;  %v3997_v10 = vld [vmem:[#allocation2 + $0x350] sm:$0xff] }
 0x2a8   :  { %5607 = vmatpush2.bf16.msra.mxu1 %v10533_v18  ;;  %v4001_v29 = vld [vmem:[#allocation2 + $0x370] sm:$0xff] }
 0x2a9   :  { %5662 = vmatprep.subr.bf16.mxu1 %v10528_v20  ;;  %v3749_v34 = vpop.f32.mrf.mxu0  ;;  %5566 = vmatmul.mubr.bf16.vlgmr.msra.gmra.mxu0 %v13007_v9  ;;  %v3909_v20 = vld [vmem:[#allocation2 + $0x90] sm:$0xff] }
 0x2aa   :  { %v3750_v39 = vadd.f32 %v3749_v34, %v12600_v56  ;;  %5620 = vmatpush1.bf16.msra.mxu0 %v10399_v27  ;;  %5651 = vmatprep.mubr.bf16.mxu0 %v12977_v16  ;;  %v10360_v27 = vcombine.high %v3909_v20, %v3913_v23  ;;  %v10359_v34 = vcombine.low %v3909_v20, %v3913_v23 }
 0x2ab   :  { %v3792_v15 = vpop.f32.mrf.mxu1  ;;  %5609 = vmatmul.mubr.bf16.vlgmr.msra.gmra.mxu1 %v13012_v13  ;;  %v3751_v5 = vpop.f32.mrf.mxu0  ;;  %5621 = vmatprep.subr.bf16.mxu0 %v10392_v31  ;;  %v3901_v31 = vld [vmem:[#allocation2 + $0x50] sm:$0xff]  ;;  %v10448_v20 = vcombine.high %v3997_v10, %v4001_v29 }
 0x2ac   :  { %5663 = vmatpush1.bf16.msra.mxu1 %v10527_v30  ;;  %v13033_v45 = vadd.f32 %v3792_v15, %v3750_v39  ;;  %v3752_v47 = vadd.f32 %v3751_v5, %v12609_v52  ;;  %5694 = vmatprep.mubr.bf16.mxu1 %v12985_v22  ;;  %v3921_v22 = vld [vmem:[#allocation2 + $0xf0] sm:$0xff]  ;;  %v10480_v39 = vcombine.high %v4029_v33, %v4033_v43 }
 0x2ad   :  { %v3794_v48 = vpop.f32.mrf.mxu1  ;;  %5664 = vmatprep.subr.bf16.mxu1 %v10520_v32  ;;  %v3753_v56 = vpop.f32.mrf.mxu0  ;;  %v10368_v18 = vcombine.high %v3917_v7, %v3921_v22  ;;  %v10367_v25 = vcombine.low %v3917_v7, %v3921_v22  ;;  %v3905_v32 = vld [vmem:[#allocation2 + $0x70] sm:$0xff] }
 0x2ae   :  { %v13038_v36 = vadd.f32 %v3794_v48, %v3752_v47  ;;  %v3754_v63 = vadd.f32 %v3753_v56, %v12618_v62  ;;  %5622 = vmatpush1.bf16.msra.mxu0 %v10391_v41  ;;  %v10352_v38 = vcombine.high %v3901_v31, %v3905_v32  ;;  %v3893_v15 = vld [vmem:[#allocation2 + $0x10] sm:$0xff]  ;;  %v10479_v47 = vcombine.low %v4029_v33, %v4033_v43 }
 0x2af   :  { %v3796_v0 = vpop.f32.mrf.mxu1  ;;  %v3755_v52 = vpop.f32.mrf.mxu0  ;;  %5623 = vmatprep.subr.bf16.mxu0 %v10384_v49  ;;  %v3897_v41 = vld [vmem:[#allocation2 + $0x30] sm:$0xff]  ;;  %v10351_v49 = vcombine.low %v3901_v31, %v3905_v32 }
 0x2b0   :  { %5665 = vmatpush1.bf16.msra.mxu1 %v10519_v42  ;;  %v13041_v1 = vadd.f32 %v3796_v0, %v3754_v63  ;;  %v3756_v16 = vadd.f32 %v3755_v52, %v12626_v6  ;;  %v4037_v6 = vld [vmem:[#allocation2 + $0x490] sm:$0xff]  ;;  %v10344_v48 = vcombine.high %v3893_v15, %v3897_v41  ;;  %v10343_v61 = vcombine.low %v3893_v15, %v3897_v41 }
 0x2b1   :  { %5666 = vmatprep.subr.bf16.mxu1 %v10512_v14  ;;  %v3798_v8 = vpop.f32.mrf.mxu1  ;;  %v10488_v30 = vcombine.high %v4037_v6, %v4041_v24  ;;  %v10487_v35 = vcombine.low %v4037_v6, %v4041_v24  ;;  %v4021_v5 = vld [vmem:[#allocation2 + $0x410] sm:$0xff]  ;;  %v10464_v0 = vcombine.high %v4013_v51, %v4017_v54 }
 0x2b2   :  { %v13044_v62 = vadd.f32 %v3798_v8, %v3756_v16  ;;  %5624 = vmatpush1.bf16.msra.mxu0 %v10383_v2  ;;  %v4025_v42 = vld [vmem:[#allocation2 + $0x430] sm:$0xff] }
 0x2b3   :  { %5625 = vmatprep.subr.bf16.mxu0 %v10376_v4  ;;  %v10472_v14 = vcombine.high %v4021_v5, %v4025_v42  ;;  %v4141_v56 = vld [vmem:[#allocation2 + $0x7d0] sm:$0xff]  ;;  %v10471_v63 = vcombine.low %v4021_v5, %v4025_v42 }
 0x2b4   :  { %5667 = vmatpush1.bf16.msra.mxu1 %v10511_v3  ;;  %v10592_v2 = vcombine.high %v4141_v56, %v4145_v60  ;;  %v4005_v52 = vld [vmem:[#allocation2 + $0x390] sm:$0xff]  ;;  %v10591_v7 = vcombine.low %v4141_v56, %v4145_v60 }
 0x2b5   :  { %5668 = vmatprep.subr.bf16.mxu1 %v10504_v40  ;;  %v4009_v3 = vld [vmem:[#allocation2 + $0x3b0] sm:$0xff]  ;;  %v10463_v40 = vcombine.low %v4013_v51, %v4017_v54 }
 0x2b6   :  { %5626 = vmatpush1.bf16.msra.mxu0 %v10375_v11  ;;  %v4133_v4 = vld [vmem:[#allocation2 + $0x790] sm:$0xff]  ;;  %v10456_v22 = vcombine.high %v4005_v52, %v4009_v3 }
 0x2b7   :  { %5627 = vmatprep.subr.bf16.mxu0 %v10368_v18  ;;  %v4137_v16 = vld [vmem:[#allocation2 + $0x7b0] sm:$0xff]  ;;  %v10455_v18 = vcombine.low %v4005_v52, %v4009_v3 }
 0x2b8   :  { %5669 = vmatpush1.bf16.msra.mxu1 %v10503_v17  ;;  %v10584_v8 = vcombine.high %v4133_v4, %v4137_v16  ;;  %v4125_v11 = vld [vmem:[#allocation2 + $0x750] sm:$0xff] }
 0x2b9   :  { %5670 = vmatprep.subr.bf16.mxu1 %v10496_v19  ;;  %v4129_v17 = vld [vmem:[#allocation2 + $0x770] sm:$0xff]  ;;  %v10583_v19 = vcombine.low %v4133_v4, %v4137_v16 }
 0x2ba   :  { %5628 = vmatpush1.bf16.msra.mxu0 %v10367_v25  ;;  %v10576_v23 = vcombine.high %v4125_v11, %v4129_v17  ;;  %v3989_v6 = vld [vmem:[#allocation2 + $0x310] sm:$0xff] }
 0x2bb   :  { %5629 = vmatprep.subr.bf16.mxu0 %v10360_v27  ;;  %v3993_v24 = vld [vmem:[#allocation2 + $0x330] sm:$0xff]  ;;  %v10447_v27 = vcombine.low %v3997_v10, %v4001_v29 }
 0x2bc   :  { %5671 = vmatpush1.bf16.msra.mxu1 %v10495_v26  ;;  %v4117_v25 = vld [vmem:[#allocation2 + $0x710] sm:$0xff]  ;;  %v10440_v31 = vcombine.high %v3989_v6, %v3993_v24 }
 0x2bd   :  { %5672 = vmatprep.subr.bf16.mxu1 %v10488_v30  ;;  %v4121_v26 = vld [vmem:[#allocation2 + $0x730] sm:$0xff]  ;;  %v10575_v30 = vcombine.low %v4125_v11, %v4129_v17  ;;  %v3950_v11 = vld [vmem:[#allocation2 + $0x1d8] sm:$0xff] }
 0x2be   :  { %5630 = vmatpush1.bf16.msra.mxu0 %v10359_v34  ;;  %v10568_v32 = vcombine.high %v4117_v25, %v4121_v26  ;;  %v3981_v33 = vld [vmem:[#allocation2 + $0x2d0] sm:$0xff]  ;;  %v3954_v17 = vld [vmem:[#allocation2 + $0x1f8] sm:$0xff] }
 0x2bf   :  { %5631 = vmatprep.subr.bf16.mxu0 %v10352_v38  ;;  %v3985_v43 = vld [vmem:[#allocation2 + $0x2f0] sm:$0xff]  ;;  %v10439_v38 = vcombine.low %v3989_v6, %v3993_v24  ;;  %v10402_v6 = vcombine.high %v3950_v11, %v3954_v17 }
 0x2c0   :  { %5673 = vmatpush1.bf16.msra.mxu1 %v10487_v35  ;;  %v4109_v34 = vld [vmem:[#allocation2 + $0x6d0] sm:$0xff]  ;;  %v10432_v15 = vcombine.high %v3981_v33, %v3985_v43 }
 0x2c1   :  { %5674 = vmatprep.subr.bf16.mxu1 %v10480_v39  ;;  %v4113_v35 = vld [vmem:[#allocation2 + $0x6f0] sm:$0xff]  ;;  %v10567_v39 = vcombine.low %v4117_v25, %v4121_v26  ;;  %v3942_v25 = vld [vmem:[#allocation2 + $0x198] sm:$0xff] }
 0x2c2   :  { %5632 = vmatpush1.bf16.msra.mxu0 %v10351_v49  ;;  %v10560_v41 = vcombine.high %v4109_v34, %v4113_v35  ;;  %v3973_v5 = vld [vmem:[#allocation2 + $0x290] sm:$0xff]  ;;  %v3946_v26 = vld [vmem:[#allocation2 + $0x1b8] sm:$0xff] }
 0x2c3   :  { %5633 = vmatprep.subr.bf16.mxu0 %v10344_v48  ;;  %v3977_v42 = vld [vmem:[#allocation2 + $0x2b0] sm:$0xff]  ;;  %v10431_v48 = vcombine.low %v3981_v33, %v3985_v43  ;;  %v10394_v33 = vcombine.high %v3942_v25, %v3946_v26 }
 0x2c4   :  { %5675 = vmatpush1.bf16.msra.mxu1 %v10479_v47  ;;  %v4101_v49 = vld [vmem:[#allocation2 + $0x690] sm:$0xff]  ;;  %v10424_v51 = vcombine.high %v3973_v5, %v3977_v42 }
 0x2c5   :  { %5676 = vmatprep.subr.bf16.mxu1 %v10472_v14  ;;  %v4105_v47 = vld [vmem:[#allocation2 + $0x6b0] sm:$0xff]  ;;  %v10559_v14 = vcombine.low %v4109_v34, %v4113_v35  ;;  %v3934_v34 = vld [vmem:[#allocation2 + $0x158] sm:$0xff] }
 0x2c6   :  { %5634 = vmatpush1.bf16.msra.mxu0 %v10343_v61  ;;  %v10552_v54 = vcombine.high %v4101_v49, %v4105_v47  ;;  %v3965_v56 = vld [vmem:[#allocation2 + $0x250] sm:$0xff]  ;;  %v3938_v35 = vld [vmem:[#allocation2 + $0x178] sm:$0xff] }
 0x2c7   :  { %5635 = vmatprep.subr.bf16.mxu0 %v10464_v0  ;;  %v3969_v60 = vld [vmem:[#allocation2 + $0x270] sm:$0xff]  ;;  %v10423_v0 = vcombine.low %v3973_v5, %v3977_v42  ;;  %v10393_v42 = vcombine.low %v3942_v25, %v3946_v26  ;;  %v3914_v25 = vld [vmem:[#allocation2 + $0xb8] sm:$0xff] }
 0x2c8   :  { %5677 = vmatpush1.bf16.msra.mxu1 %v10471_v63  ;;  %v4093_v61 = vld [vmem:[#allocation2 + $0x650] sm:$0xff]  ;;  %v10416_v52 = vcombine.high %v3965_v56, %v3969_v60  ;;  %v4042_v26 = vld [vmem:[#allocation2 + $0x4b8] sm:$0xff] }
 0x2c9   :  { %5678 = vmatprep.subr.bf16.mxu1 %v10592_v2  ;;  %v4097_v63 = vld [vmem:[#allocation2 + $0x670] sm:$0xff]  ;;  %v10551_v2 = vcombine.low %v4101_v49, %v4105_v47 }
 0x2ca   :  { %5636 = vmatpush2.bf16.msra.mxu0 %v10463_v40  ;;  %v10544_v3 = vcombine.high %v4093_v61, %v4097_v63  ;;  %v3957_v4 = vld [vmem:[#allocation2 + $0x210] sm:$0xff] }
 0x2cb   :  { %5637 = vmatprep.subr.bf16.mxu0 %v10456_v22  ;;  %v3961_v16 = vld [vmem:[#allocation2 + $0x230] sm:$0xff]  ;;  %v10415_v22 = vcombine.low %v3965_v56, %v3969_v60  ;;  %v3926_v56 = vld [vmem:[#allocation2 + $0x118] sm:$0xff] }
 0x2cc   :  { %5679 = vmatpush2.bf16.msra.mxu1 %v10591_v7  ;;  %v4085_v40 = vld [vmem:[#allocation2 + $0x610] sm:$0xff]  ;;  %v10408_v10 = vcombine.high %v3957_v4, %v3961_v16  ;;  %v3930_v60 = vld [vmem:[#allocation2 + $0x138] sm:$0xff] }
 0x2cd   :  { %5680 = vmatprep.subr.bf16.mxu1 %v10584_v8  ;;  %v4089_v7 = vld [vmem:[#allocation2 + $0x630] sm:$0xff]  ;;  %v10543_v8 = vcombine.low %v4093_v61, %v4097_v63  ;;  %v4054_v61 = vld [vmem:[#allocation2 + $0x518] sm:$0xff] }
 0x2ce   :  { %5638 = vmatpush2.bf16.msra.mxu0 %v10455_v18  ;;  %v10536_v29 = vcombine.high %v4085_v40, %v4089_v7  ;;  %v4078_v18 = vld [vmem:[#allocation2 + $0x5d8] sm:$0xff] }
 0x2cf   :  { %5639 = vmatprep.subr.bf16.mxu0 %v10448_v20  ;;  %v10407_v20 = vcombine.low %v3957_v4, %v3961_v16  ;;  %v4058_v63 = vld [vmem:[#allocation2 + $0x538] sm:$0xff] }
 0x2d0   :  { %5681 = vmatpush2.bf16.msra.mxu1 %v10583_v19  ;;  %v4082_v19 = vld [vmem:[#allocation2 + $0x5f8] sm:$0xff] }
 0x2d1   :  { %5682 = vmatprep.subr.bf16.mxu1 %v10576_v23  ;;  %v10535_v23 = vcombine.low %v4085_v40, %v4089_v7  ;;  %v10530_v24 = vcombine.high %v4078_v18, %v4082_v19  ;;  %v10378_v40 = vcombine.high %v3926_v56, %v3930_v60 }
 0x2d2   :  { %5640 = vmatpush2.bf16.msra.mxu0 %v10447_v27  ;;  %v4070_v27 = vld [vmem:[#allocation2 + $0x598] sm:$0xff] }
 0x2d3   :  { %5641 = vmatprep.subr.bf16.mxu0 %v10440_v31  ;;  %v10401_v31 = vcombine.low %v3950_v11, %v3954_v17  ;;  %v4046_v17 = vld [vmem:[#allocation2 + $0x4d8] sm:$0xff] }
 0x2d4   :  { %5683 = vmatpush2.bf16.msra.mxu1 %v10575_v30  ;;  %v4074_v30 = vld [vmem:[#allocation2 + $0x5b8] sm:$0xff] }
 0x2d5   :  { %5684 = vmatprep.subr.bf16.mxu1 %v10568_v32  ;;  %v10529_v32 = vcombine.low %v4078_v18, %v4082_v19  ;;  %v10522_v43 = vcombine.high %v4070_v27, %v4074_v30  ;;  %v10521_v47 = vcombine.low %v4070_v27, %v4074_v30  ;;  %v4050_v18 = vld [vmem:[#allocation2 + $0x4f8] sm:$0xff]  ;;  %v10377_v19 = vcombine.low %v3926_v56, %v3930_v60 }
 0x2d6   :  { %5642 = vmatpush2.bf16.msra.mxu0 %v10439_v38  ;;  %v10497_v30 = vcombine.low %v4046_v17, %v4050_v18  ;;  %v4014_v56 = vld [vmem:[#allocation2 + $0x3d8] sm:$0xff] }
 0x2d7   :  { %5643 = vmatprep.subr.bf16.mxu0 %v10432_v15  ;;  %v4066_v15 = vld [vmem:[#allocation2 + $0x578] sm:$0xff] }
 0x2d8   :  { %5685 = vmatpush2.bf16.msra.mxu1 %v10567_v39  ;;  %v4062_v39 = vld [vmem:[#allocation2 + $0x558] sm:$0xff] }
 0x2d9   :  { %5686 = vmatprep.subr.bf16.mxu1 %v10560_v41  ;;  %v10513_v16 = vcombine.low %v4062_v39, %v4066_v15  ;;  %v4018_v60 = vld [vmem:[#allocation2 + $0x3f8] sm:$0xff] }
 0x2da   :  { %5644 = vmatpush2.bf16.msra.mxu0 %v10431_v48  ;;  %v10386_v48 = vcombine.high %v3934_v34, %v3938_v35 }
 0x2db   :  { %5645 = vmatprep.subr.bf16.mxu0 %v10424_v51 }
 0x2dc   :  { %5687 = vmatpush2.bf16.msra.mxu1 %v10559_v14 }
 0x2dd   :  { %5688 = vmatprep.subr.bf16.mxu1 %v10552_v54 }
 0x2de   :  { %5646 = vmatpush2.bf16.msra.mxu0 %v10423_v0  ;;  %v11175_v0 = vld [vmem:[%s13345_s2 + $0xc] ss:$16 sps:$4 sm:$0xff]  }
 0x2df   :  { %5647 = vmatprep.subr.bf16.mxu0 %v10416_v52 }
 0x2e0   :  { %5689 = vmatpush2.bf16.msra.mxu1 %v10551_v2 }
 0x2e1   :  { %5690 = vmatprep.subr.bf16.mxu1 %v10544_v3  ;;  %v10385_v3 = vcombine.low %v3934_v34, %v3938_v35  ;;  %v4030_v34 = vld [vmem:[#allocation2 + $0x458] sm:$0xff] }
 0x2e2   :  { %5648 = vmatpush2.bf16.msra.mxu0 %v10415_v22  ;;  %v4034_v35 = vld [vmem:[#allocation2 + $0x478] sm:$0xff] }
 0x2e3   :  { %5649 = vmatprep.subr.bf16.mxu0 %v10408_v10  ;;  %v3918_v10 = vld [vmem:[#allocation2 + $0xd8] sm:$0xff] }
 0x2e4   :  { %5691 = vmatpush2.bf16.msra.mxu1 %v10543_v8  ;;  %v10506_v8 = vcombine.high %v4054_v61, %v4058_v63 }
 0x2e5   :  { %5692 = vmatprep.subr.bf16.mxu1 %v10536_v29  ;;  %v3922_v29 = vld [vmem:[#allocation2 + $0xf8] sm:$0xff] }
 0x2e6   :  { %5650 = vmatpush2.bf16.msra.mxu0 %v10407_v20  ;;  %v10505_v20 = vcombine.low %v4054_v61, %v4058_v63  ;;  %v10369_v27 = vcombine.low %v3918_v10, %v3922_v29 }
 0x2e7   :  { %5705 = vmatprep.subr.bf16.mxu0 %v10402_v6  ;;  %v10498_v6 = vcombine.high %v4046_v17, %v4050_v18  ;;  %v4126_v17 = vld [vmem:[#allocation2 + $0x758] sm:$0xff] }
 0x2e8   :  { %5693 = vmatpush2.bf16.msra.mxu1 %v10535_v23  ;;  %v10370_v23 = vcombine.high %v3918_v10, %v3922_v29  ;;  %v3998_v29 = vld [vmem:[#allocation2 + $0x358] sm:$0xff] }
 0x2e9   :  { %5748 = vmatprep.subr.bf16.mxu1 %v10530_v24  ;;  %v3835_v38 = vpop.f32.mrf.mxu0  ;;  %5652 = vmatmul.mubr.bf16.vlgmr.msra.gmra.mxu0 %v13007_v9  ;;  %v10514_v9 = vcombine.high %v4062_v39, %v4066_v15  ;;  %v3910_v24 = vld [vmem:[#allocation2 + $0x98] sm:$0xff] }
 0x2ea   :  { %v3836_v41 = vadd.f32 %v3835_v38, %v12804_v28  ;;  %5706 = vmatpush1.bf16.msra.mxu0 %v10401_v31  ;;  %v11174_v28 = vld [vmem:[%s13345_s2 + $0x4] ss:$16 sps:$4 sm:$0xff]   ;;  %v10362_v31 = vcombine.high %v3910_v24, %v3914_v25  ;;  %v10361_v38 = vcombine.low %v3910_v24, %v3914_v25  ;;  %v4130_v18 = vld [vmem:[#allocation2 + $0x778] sm:$0xff] }
 0x2eb   :  { %v3878_v5 = vpop.f32.mrf.mxu1  ;;  %5695 = vmatmul.mubr.bf16.vlgmr.msra.gmra.mxu1 %v13012_v13  ;;  %v3837_v49 = vpop.f32.mrf.mxu0  ;;  %5707 = vmatprep.subr.bf16.mxu0 %v10394_v33  ;;  %v3902_v33 = vld [vmem:[#allocation2 + $0x58] sm:$0xff] }
 0x2ec   :  { %5749 = vmatpush1.bf16.msra.mxu1 %v10529_v32  ;;  %v13049_v14 = vadd.f32 %v3878_v5, %v3836_v41  ;;  %v3838_v51 = vadd.f32 %v3837_v49, %v12815_v37  ;;  %5737 = vmatprep.mubr.bf16.mxu0 %v11174_v28  ;;  %v10482_v41 = vcombine.high %v4030_v34, %v4034_v35  ;;  %v3894_v5 = vld [vmem:[#allocation2 + $0x18] sm:$0xff] }
 0x2ed   :  { %v3880_v54 = vpop.f32.mrf.mxu1  ;;  %5750 = vmatprep.subr.bf16.mxu1 %v10522_v43  ;;  %v3839_v13 = vpop.f32.mrf.mxu0  ;;  %5780 = vmatprep.mubr.bf16.mxu1 %v11175_v0  ;;  %v3906_v43 = vld [vmem:[#allocation2 + $0x78] sm:$0xff]  ;;  %v10466_v0 = vcombine.high %v4014_v56, %v4018_v60 }
 0x2ee   :  { %v13058_v2 = vadd.f32 %v3880_v54, %v3838_v51  ;;  %v3840_v37 = vadd.f32 %v3839_v13, %v12826_v44  ;;  %5708 = vmatpush1.bf16.msra.mxu0 %v10393_v42  ;;  %v10354_v15 = vcombine.high %v3902_v33, %v3906_v43  ;;  %v3898_v42 = vld [vmem:[#allocation2 + $0x38] sm:$0xff]  ;;  %v10481_v51 = vcombine.low %v4030_v34, %v4034_v35 }
 0x2ef   :  { %v3882_v52 = vpop.f32.mrf.mxu1  ;;  %v3841_v4 = vpop.f32.mrf.mxu0  ;;  %5709 = vmatprep.subr.bf16.mxu0 %v10386_v48  ;;  %v4022_v49 = vld [vmem:[#allocation2 + $0x418] sm:$0xff]  ;;  %v10353_v48 = vcombine.low %v3902_v33, %v3906_v43  ;;  %v10346_v54 = vcombine.high %v3894_v5, %v3898_v42  ;;  %v10345_v61 = vcombine.low %v3894_v5, %v3898_v42 }
 0x2f0   :  { %5751 = vmatpush1.bf16.msra.mxu1 %v10521_v47  ;;  %v13061_v7 = vadd.f32 %v3882_v52, %v3840_v37  ;;  %v3842_v22 = vadd.f32 %v3841_v4, %v12834_v57  ;;  %v4038_v57 = vld [vmem:[#allocation2 + $0x498] sm:$0xff] }
 0x2f1   :  { %5752 = vmatprep.subr.bf16.mxu1 %v10514_v9  ;;  %v3884_v11 = vpop.f32.mrf.mxu1  ;;  %v10490_v32 = vcombine.high %v4038_v57, %v4042_v26  ;;  %v10489_v39 = vcombine.low %v4038_v57, %v4042_v26  ;;  %v4026_v47 = vld [vmem:[#allocation2 + $0x438] sm:$0xff] }
 0x2f2   :  { %v13064_v44 = vadd.f32 %v3884_v11, %v3842_v22  ;;  %5710 = vmatpush1.bf16.msra.mxu0 %v10385_v3  ;;  %v10474_v9 = vcombine.high %v4022_v49, %v4026_v47  ;;  %v4142_v28 = vld [vmem:[#allocation2 + $0x7d8] sm:$0xff]  ;;  %v10473_v63 = vcombine.low %v4022_v49, %v4026_v47 }
 0x2f3   :  { %5711 = vmatprep.subr.bf16.mxu0 %v10378_v40  ;;  %v4146_v13 = vld [vmem:[#allocation2 + $0x7f8] sm:$0xff]  ;;  %v10465_v40 = vcombine.low %v4014_v56, %v4018_v60 }
 0x2f4   :  { %5753 = vmatpush1.bf16.msra.mxu1 %v10513_v16  ;;  %v10594_v37 = vcombine.high %v4142_v28, %v4146_v13  ;;  %v4006_v52 = vld [vmem:[#allocation2 + $0x398] sm:$0xff]  ;;  %v10593_v22 = vcombine.low %v4142_v28, %v4146_v13 }
 0x2f5   :  { %5754 = vmatprep.subr.bf16.mxu1 %v10506_v8  ;;  %v4010_v3 = vld [vmem:[#allocation2 + $0x3b8] sm:$0xff] }
 0x2f6   :  { %5712 = vmatpush1.bf16.msra.mxu0 %v10377_v19  ;;  %v4134_v4 = vld [vmem:[#allocation2 + $0x798] sm:$0xff]  ;;  %v10458_v8 = vcombine.high %v4006_v52, %v4010_v3  ;;  %v10457_v19 = vcombine.low %v4006_v52, %v4010_v3 }
 0x2f7   :  { %5713 = vmatprep.subr.bf16.mxu0 %v10370_v23  ;;  %v4138_v16 = vld [vmem:[#allocation2 + $0x7b8] sm:$0xff] }
 0x2f8   :  { %5755 = vmatpush1.bf16.msra.mxu1 %v10505_v20  ;;  %v10586_v10 = vcombine.high %v4134_v4, %v4138_v16  ;;  %v4002_v11 = vld [vmem:[#allocation2 + $0x378] sm:$0xff]  ;;  %v10585_v20 = vcombine.low %v4134_v4, %v4138_v16 }
 0x2f9   :  { %5756 = vmatprep.subr.bf16.mxu1 %v10498_v6  ;;  %v10450_v23 = vcombine.high %v3998_v29, %v4002_v11  ;;  %v10578_v6 = vcombine.high %v4126_v17, %v4130_v18  ;;  %v3990_v24 = vld [vmem:[#allocation2 + $0x318] sm:$0xff] }
 0x2fa   :  { %5714 = vmatpush1.bf16.msra.mxu0 %v10369_v27  ;;  %v3994_v25 = vld [vmem:[#allocation2 + $0x338] sm:$0xff]  ;;  %v10449_v27 = vcombine.low %v3998_v29, %v4002_v11  ;;  %v5867_v29 = vld [vmem:[#allocation4 + $0x1c0] sm:$0xff] }
 0x2fb   :  { %5715 = vmatprep.subr.bf16.mxu0 %v10362_v31  ;;  %v4118_v57 = vld [vmem:[#allocation2 + $0x718] sm:$0xff]  ;;  %v10442_v31 = vcombine.high %v3990_v24, %v3994_v25  ;;  %v5871_v11 = vld [vmem:[#allocation4 + $0x1e0] sm:$0xff] }
 0x2fc   :  { %5757 = vmatpush1.bf16.msra.mxu1 %v10497_v30  ;;  %v4122_v26 = vld [vmem:[#allocation2 + $0x738] sm:$0xff]  ;;  %v10577_v30 = vcombine.low %v4126_v17, %v4130_v18  ;;  %v5995_v17 = vld [vmem:[#allocation4 + $0x5c0] sm:$0xff] }
 0x2fd   :  { %5758 = vmatprep.subr.bf16.mxu1 %v10490_v32  ;;  %v10570_v32 = vcombine.high %v4118_v57, %v4122_v26  ;;  %v3982_v33 = vld [vmem:[#allocation2 + $0x2d8] sm:$0xff]  ;;  %v5999_v18 = vld [vmem:[#allocation4 + $0x5e0] sm:$0xff] }
 0x2fe   :  { %5716 = vmatpush1.bf16.msra.mxu0 %v10361_v38  ;;  %v3986_v43 = vld [vmem:[#allocation2 + $0x2f8] sm:$0xff]  ;;  %v10441_v38 = vcombine.low %v3990_v24, %v3994_v25  ;;  %v5859_v24 = vld [vmem:[#allocation4 + $0x180] sm:$0xff] }
 0x2ff   :  { %5717 = vmatprep.subr.bf16.mxu0 %v10354_v15  ;;  %v4110_v34 = vld [vmem:[#allocation2 + $0x6d8] sm:$0xff]  ;;  %v10434_v15 = vcombine.high %v3982_v33, %v3986_v43  ;;  %v5863_v25 = vld [vmem:[#allocation4 + $0x1a0] sm:$0xff] }
 0x300   :  { %5759 = vmatpush1.bf16.msra.mxu1 %v10489_v39  ;;  %v4114_v35 = vld [vmem:[#allocation2 + $0x6f8] sm:$0xff]  ;;  %v10569_v39 = vcombine.low %v4118_v57, %v4122_v26  ;;  %v5987_v57 = vld [vmem:[#allocation4 + $0x580] sm:$0xff] }
 0x301   :  { %5760 = vmatprep.subr.bf16.mxu1 %v10482_v41  ;;  %v10562_v41 = vcombine.high %v4110_v34, %v4114_v35  ;;  %v3974_v5 = vld [vmem:[#allocation2 + $0x298] sm:$0xff]  ;;  %v5991_v26 = vld [vmem:[#allocation4 + $0x5a0] sm:$0xff] }
 0x302   :  { %5718 = vmatpush1.bf16.msra.mxu0 %v10353_v48  ;;  %v3978_v42 = vld [vmem:[#allocation2 + $0x2b8] sm:$0xff]  ;;  %v10433_v48 = vcombine.low %v3982_v33, %v3986_v43  ;;  %v5851_v33 = vld [vmem:[#allocation4 + $0x140] sm:$0xff] }
 0x303   :  { %5719 = vmatprep.subr.bf16.mxu0 %v10346_v54  ;;  %v4102_v49 = vld [vmem:[#allocation2 + $0x698] sm:$0xff]  ;;  %v10426_v54 = vcombine.high %v3974_v5, %v3978_v42  ;;  %v5855_v43 = vld [vmem:[#allocation4 + $0x160] sm:$0xff] }
 0x304   :  { %5761 = vmatpush1.bf16.msra.mxu1 %v10481_v51  ;;  %v4106_v47 = vld [vmem:[#allocation2 + $0x6b8] sm:$0xff]  ;;  %v10561_v51 = vcombine.low %v4110_v34, %v4114_v35  ;;  %v13069_v34 = vld [vmem:[%s13346_s3 + $0x4] ss:$16 sps:$4 sm:$0xff]   ;;  %v11176_v35 = vld [vmem:[%s13345_s2] ss:$16 sps:$4 sm:$0xff]  }
 0x305   :  { %5762 = vmatprep.subr.bf16.mxu1 %v10474_v9  ;;  %v10554_v9 = vcombine.high %v4102_v49, %v4106_v47  ;;  %v3966_v56 = vld [vmem:[#allocation2 + $0x258] sm:$0xff] }
 0x306   :  { %5720 = vmatpush1.bf16.msra.mxu0 %v10345_v61  ;;  %v3970_v60 = vld [vmem:[#allocation2 + $0x278] sm:$0xff]  ;;  %v10425_v61 = vcombine.low %v3974_v5, %v3978_v42  ;;  %v10647_v5 = vcombine.low %v5859_v24, %v5863_v25  ;;  %v10775_v42 = vcombine.low %v5987_v57, %v5991_v26 }
 0x307   :  { %5721 = vmatprep.subr.bf16.mxu0 %v10466_v0  ;;  %v4094_v28 = vld [vmem:[#allocation2 + $0x658] sm:$0xff]  ;;  %v10418_v0 = vcombine.high %v3966_v56, %v3970_v60 }
 0x308   :  { %5763 = vmatpush1.bf16.msra.mxu1 %v10473_v63  ;;  %v4098_v13 = vld [vmem:[#allocation2 + $0x678] sm:$0xff]  ;;  %v10553_v63 = vcombine.low %v4102_v49, %v4106_v47  ;;  %v10640_v49 = vcombine.high %v5851_v33, %v5855_v43 }
 0x309   :  { %5764 = vmatprep.subr.bf16.mxu1 %v10594_v37  ;;  %v10546_v37 = vcombine.high %v4094_v28, %v4098_v13  ;;  %v3958_v52 = vld [vmem:[#allocation2 + $0x218] sm:$0xff] }
 0x30a   :  { %5722 = vmatpush2.bf16.msra.mxu0 %v10465_v40  ;;  %v3962_v3 = vld [vmem:[#allocation2 + $0x238] sm:$0xff]  ;;  %v10417_v40 = vcombine.low %v3966_v56, %v3970_v60  ;;  %v10639_v56 = vcombine.low %v5851_v33, %v5855_v43 }
 0x30b   :  { %5723 = vmatprep.subr.bf16.mxu0 %v10458_v8  ;;  %v4086_v4 = vld [vmem:[#allocation2 + $0x618] sm:$0xff]  ;;  %v10410_v8 = vcombine.high %v3958_v52, %v3962_v3 }
 0x30c   :  { %5765 = vmatpush2.bf16.msra.mxu1 %v10593_v22  ;;  %v4090_v16 = vld [vmem:[#allocation2 + $0x638] sm:$0xff]  ;;  %v10545_v22 = vcombine.low %v4094_v28, %v4098_v13 }
 0x30d   :  { %5766 = vmatprep.subr.bf16.mxu1 %v10586_v10  ;;  %v10538_v10 = vcombine.high %v4086_v4, %v4090_v16 }
 0x30e   :  { %5724 = vmatpush2.bf16.msra.mxu0 %v10457_v19  ;;  %v10409_v19 = vcombine.low %v3958_v52, %v3962_v3 }
 0x30f   :  { %5725 = vmatprep.subr.bf16.mxu0 %v10450_v23  ;;  %v10656_v23 = vcombine.high %v5867_v29, %v5871_v11 }
 0x310   :  { %5767 = vmatpush2.bf16.msra.mxu1 %v10585_v20  ;;  %v10537_v20 = vcombine.low %v4086_v4, %v4090_v16 }
 0x311   :  { %5768 = vmatprep.subr.bf16.mxu1 %v10578_v6  ;;  %v10784_v6 = vcombine.high %v5995_v17, %v5999_v18 }
 0x312   :  { %5726 = vmatpush2.bf16.msra.mxu0 %v10449_v27  ;;  %v10655_v27 = vcombine.low %v5867_v29, %v5871_v11 }
 0x313   :  { %5727 = vmatprep.subr.bf16.mxu0 %v10442_v31  ;;  %v10648_v31 = vcombine.high %v5859_v24, %v5863_v25 }
 0x314   :  { %5769 = vmatpush2.bf16.msra.mxu1 %v10577_v30  ;;  %v10783_v30 = vcombine.low %v5995_v17, %v5999_v18 }
 0x315   :  { %5770 = vmatprep.subr.bf16.mxu1 %v10570_v32  ;;  %v10776_v32 = vcombine.high %v5987_v57, %v5991_v26 }
 0x316   :  { %5728 = vmatpush2.bf16.msra.mxu0 %v10441_v38  ;;  %v5979_v38 = vld [vmem:[#allocation4 + $0x540] sm:$0xff] }
 0x317   :  { %5729 = vmatprep.subr.bf16.mxu0 %v10434_v15  ;;  %v13077_v15 = vld [vmem:[%s13346_s3 + $0xc] ss:$16 sps:$4 sm:$0xff]  }
 0x318   :  { %5771 = vmatpush2.bf16.msra.mxu1 %v10569_v39  ;;  %v5983_v39 = vld [vmem:[#allocation4 + $0x560] sm:$0xff] }
 0x319   :  { %5772 = vmatprep.subr.bf16.mxu1 %v10562_v41  ;;  %v11177_v41 = vld [vmem:[%s13345_s2 + $0x8] ss:$16 sps:$4 sm:$0xff]   ;;  %v10768_v47 = vcombine.high %v5979_v38, %v5983_v39  ;;  %v10767_v60 = vcombine.low %v5979_v38, %v5983_v39  ;;  %v5931_v39 = vld [vmem:[#allocation4 + $0x3c0] sm:$0xff] }
 0x31a   :  { %5730 = vmatpush2.bf16.msra.mxu0 %v10433_v48  ;;  %v5843_v48 = vld [vmem:[#allocation4 + $0x100] sm:$0xff] }
 0x31b   :  { %5731 = vmatprep.subr.bf16.mxu0 %v10426_v54  ;;  %v5971_v54 = vld [vmem:[#allocation4 + $0x500] sm:$0xff] }
 0x31c   :  { %5773 = vmatpush2.bf16.msra.mxu1 %v10561_v51  ;;  %v5847_v51 = vld [vmem:[#allocation4 + $0x120] sm:$0xff] }
 0x31d   :  { %5774 = vmatprep.subr.bf16.mxu1 %v10554_v9  ;;  %v5975_v9 = vld [vmem:[#allocation4 + $0x520] sm:$0xff]  ;;  %v10632_v28 = vcombine.high %v5843_v48, %v5847_v51  ;;  %v10631_v52 = vcombine.low %v5843_v48, %v5847_v51 }
 0x31e   :  { %5732 = vmatpush2.bf16.msra.mxu0 %v10425_v61  ;;  %v10760_v13 = vcombine.high %v5971_v54, %v5975_v9  ;;  %v5835_v61 = vld [vmem:[#allocation4 + $0xc0] sm:$0xff]  ;;  %v10759_v3 = vcombine.low %v5971_v54, %v5975_v9 }
 0x31f   :  { %5733 = vmatprep.subr.bf16.mxu0 %v10418_v0  ;;  %v5963_v0 = vld [vmem:[#allocation4 + $0x4c0] sm:$0xff] }
 0x320   :  { %5775 = vmatpush2.bf16.msra.mxu1 %v10553_v63  ;;  %v5839_v63 = vld [vmem:[#allocation4 + $0xe0] sm:$0xff] }
 0x321   :  { %5776 = vmatprep.subr.bf16.mxu1 %v10546_v37  ;;  %v5967_v37 = vld [vmem:[#allocation4 + $0x4e0] sm:$0xff]  ;;  %v10624_v4 = vcombine.high %v5835_v61, %v5839_v63  ;;  %v10623_v29 = vcombine.low %v5835_v61, %v5839_v63 }
 0x322   :  { %5734 = vmatpush2.bf16.msra.mxu0 %v10417_v40  ;;  %v10752_v16 = vcombine.high %v5963_v0, %v5967_v37  ;;  %v5827_v40 = vld [vmem:[#allocation4 + $0x80] sm:$0xff]  ;;  %v10751_v11 = vcombine.low %v5963_v0, %v5967_v37 }
 0x323   :  { %5735 = vmatprep.subr.bf16.mxu0 %v10410_v8  ;;  %v5955_v8 = vld [vmem:[#allocation4 + $0x480] sm:$0xff] }
 0x324   :  { %5777 = vmatpush2.bf16.msra.mxu1 %v10545_v22  ;;  %v5831_v22 = vld [vmem:[#allocation4 + $0xa0] sm:$0xff] }
 0x325   :  { %5778 = vmatprep.subr.bf16.mxu1 %v10538_v10  ;;  %v5959_v10 = vld [vmem:[#allocation4 + $0x4a0] sm:$0xff]  ;;  %v10616_v17 = vcombine.high %v5827_v40, %v5831_v22  ;;  %v10615_v24 = vcombine.low %v5827_v40, %v5831_v22 }
 0x326   :  { %5736 = vmatpush2.bf16.msra.mxu0 %v10409_v19  ;;  %v10744_v18 = vcombine.high %v5955_v8, %v5959_v10  ;;  %v5819_v19 = vld [vmem:[#allocation4 + $0x40] sm:$0xff]  ;;  %v10743_v25 = vcombine.low %v5955_v8, %v5959_v10 }
 0x327   :  { %7367 = vmatprep.subr.bf16.mxu0 %v10656_v23  ;;  %v5947_v23 = vld [vmem:[#allocation4 + $0x440] sm:$0xff] }
 0x328   :  { %5779 = vmatpush2.bf16.msra.mxu1 %v10537_v20  ;;  %v5823_v20 = vld [vmem:[#allocation4 + $0x60] sm:$0xff] }
 0x329   :  { %7410 = vmatprep.subr.bf16.mxu1 %v10784_v6  ;;  %5738 = vmatmul.mubr.bf16.vlgmr.msra.gmra.mxu0 %v11176_v35  ;;  %v5951_v6 = vld [vmem:[#allocation4 + $0x460] sm:$0xff]  ;;  %v10608_v57 = vcombine.high %v5819_v19, %v5823_v20  ;;  %v10607_v33 = vcombine.low %v5819_v19, %v5823_v20 }
 0x32a   :  { %7368 = vmatpush1.bf16.msra.mxu0 %v10655_v27  ;;  %7399 = vmatprep.mubr.bf16.mxu0 %v13069_v34  ;;  %v10736_v26 = vcombine.high %v5947_v23, %v5951_v6  ;;  %v5811_v27 = vld [vmem:[#allocation4] sm:$0xff]  ;;  %v10735_v43 = vcombine.low %v5947_v23, %v5951_v6 }
 0x32b   :  { %5781 = vmatmul.mubr.bf16.vlgmr.msra.gmra.mxu1 %v11177_v41  ;;  %7369 = vmatprep.subr.bf16.mxu0 %v10648_v31  ;;  %v5939_v31 = vld [vmem:[#allocation4 + $0x400] sm:$0xff] }
 0x32c   :  { %7411 = vmatpush1.bf16.msra.mxu1 %v10783_v30  ;;  %7442 = vmatprep.mubr.bf16.mxu1 %v13077_v15  ;;  %v5815_v30 = vld [vmem:[#allocation4 + $0x20] sm:$0xff] }
 0x32d   :  { %7412 = vmatprep.subr.bf16.mxu1 %v10776_v32  ;;  %v5943_v32 = vld [vmem:[#allocation4 + $0x420] sm:$0xff]  ;;  %v10600_v35 = vcombine.high %v5811_v27, %v5815_v30 }
 0x32e   :  { %7370 = vmatpush1.bf16.msra.mxu0 %v10647_v5  ;;  %v10728_v38 = vcombine.high %v5939_v31, %v5943_v32  ;;  %v5935_v41 = vld [vmem:[#allocation4 + $0x3e0] sm:$0xff] }
 0x32f   :  { %7371 = vmatprep.subr.bf16.mxu0 %v10640_v49  ;;  %v6059_v5 = vld [vmem:[#allocation4 + $0x7c0] sm:$0xff]  ;;  %v10599_v49 = vcombine.low %v5811_v27, %v5815_v30  ;;  %v10720_v48 = vcombine.high %v5931_v39, %v5935_v41 }
 0x330   :  { %7413 = vmatpush1.bf16.msra.mxu1 %v10775_v42  ;;  %v6063_v42 = vld [vmem:[#allocation4 + $0x7e0] sm:$0xff] }
 0x331   :  { %7414 = vmatprep.subr.bf16.mxu1 %v10768_v47  ;;  %v10727_v47 = vcombine.low %v5939_v31, %v5943_v32  ;;  %v10848_v51 = vcombine.high %v6059_v5, %v6063_v42  ;;  %v5923_v54 = vld [vmem:[#allocation4 + $0x380] sm:$0xff] }
 0x332   :  { %7372 = vmatpush1.bf16.msra.mxu0 %v10639_v56  ;;  %v5927_v9 = vld [vmem:[#allocation4 + $0x3a0] sm:$0xff] }
 0x333   :  { %7373 = vmatprep.subr.bf16.mxu0 %v10632_v28  ;;  %v6051_v56 = vld [vmem:[#allocation4 + $0x780] sm:$0xff]  ;;  %v10719_v28 = vcombine.low %v5931_v39, %v5935_v41  ;;  %v10712_v61 = vcombine.high %v5923_v54, %v5927_v9 }
 0x334   :  { %7415 = vmatpush1.bf16.msra.mxu1 %v10767_v60  ;;  %v6055_v60 = vld [vmem:[#allocation4 + $0x7a0] sm:$0xff] }
 0x335   :  { %7416 = vmatprep.subr.bf16.mxu1 %v10760_v13  ;;  %v10847_v13 = vcombine.low %v6059_v5, %v6063_v42  ;;  %v10840_v63 = vcombine.high %v6051_v56, %v6055_v60  ;;  %v5915_v0 = vld [vmem:[#allocation4 + $0x340] sm:$0xff] }
 0x336   :  { %7374 = vmatpush1.bf16.msra.mxu0 %v10631_v52  ;;  %v5919_v37 = vld [vmem:[#allocation4 + $0x360] sm:$0xff] }
 0x337   :  { %7375 = vmatprep.subr.bf16.mxu0 %v10624_v4  ;;  %v6043_v52 = vld [vmem:[#allocation4 + $0x740] sm:$0xff]  ;;  %v10711_v4 = vcombine.low %v5923_v54, %v5927_v9  ;;  %v10704_v40 = vcombine.high %v5915_v0, %v5919_v37 }
 0x338   :  { %7417 = vmatpush1.bf16.msra.mxu1 %v10759_v3  ;;  %v6047_v3 = vld [vmem:[#allocation4 + $0x760] sm:$0xff] }
 0x339   :  { %7418 = vmatprep.subr.bf16.mxu1 %v10752_v16  ;;  %v10839_v16 = vcombine.low %v6051_v56, %v6055_v60  ;;  %v10832_v22 = vcombine.high %v6043_v52, %v6047_v3  ;;  %v5907_v8 = vld [vmem:[#allocation4 + $0x300] sm:$0xff]  ;;  %v13086_v56 = vpop.f32.mrf.mxu1 }
 0x33a   :  { %7376 = vmatpush1.bf16.msra.mxu0 %v10623_v29  ;;  %v5911_v10 = vld [vmem:[#allocation4 + $0x320] sm:$0xff] }
 0x33b   :  { %7377 = vmatprep.subr.bf16.mxu0 %v10616_v17  ;;  %v6035_v29 = vld [vmem:[#allocation4 + $0x700] sm:$0xff]  ;;  %v10703_v17 = vcombine.low %v5915_v0, %v5919_v37  ;;  %v10696_v19 = vcombine.high %v5907_v8, %v5911_v10 }
 0x33c   :  { %7419 = vmatpush1.bf16.msra.mxu1 %v10751_v11  ;;  %v6039_v11 = vld [vmem:[#allocation4 + $0x720] sm:$0xff] }
 0x33d   :  { %7420 = vmatprep.subr.bf16.mxu1 %v10744_v18  ;;  %v10831_v18 = vcombine.low %v6043_v52, %v6047_v3  ;;  %v10824_v20 = vcombine.high %v6035_v29, %v6039_v11  ;;  %v5899_v23 = vld [vmem:[#allocation4 + $0x2c0] sm:$0xff] }
 0x33e   :  { %7378 = vmatpush1.bf16.msra.mxu0 %v10615_v24  ;;  %v5903_v6 = vld [vmem:[#allocation4 + $0x2e0] sm:$0xff] }
 0x33f   :  { %7379 = vmatprep.subr.bf16.mxu0 %v10608_v57  ;;  %v6027_v24 = vld [vmem:[#allocation4 + $0x6c0] sm:$0xff]  ;;  %v10695_v57 = vcombine.low %v5907_v8, %v5911_v10  ;;  %v10688_v27 = vcombine.high %v5899_v23, %v5903_v6  ;;  %v5996_v8 = vld [vmem:[#allocation4 + $0x5c8] sm:$0xff] }
 0x340   :  { %7421 = vmatpush1.bf16.msra.mxu1 %v10743_v25  ;;  %v6031_v25 = vld [vmem:[#allocation4 + $0x6e0] sm:$0xff]  ;;  %v6000_v10 = vld [vmem:[#allocation4 + $0x5e8] sm:$0xff] }
 0x341   :  { %7422 = vmatprep.subr.bf16.mxu1 %v10736_v26  ;;  %v10823_v26 = vcombine.low %v6035_v29, %v6039_v11  ;;  %v10816_v30 = vcombine.high %v6027_v24, %v6031_v25  ;;  %v5891_v31 = vld [vmem:[#allocation4 + $0x280] sm:$0xff] }
 0x342   :  { %7380 = vmatpush1.bf16.msra.mxu0 %v10607_v33  ;;  %v5895_v32 = vld [vmem:[#allocation4 + $0x2a0] sm:$0xff] }
 0x343   :  { %7381 = vmatprep.subr.bf16.mxu0 %v10600_v35  ;;  %v6019_v33 = vld [vmem:[#allocation4 + $0x680] sm:$0xff]  ;;  %v10687_v35 = vcombine.low %v5899_v23, %v5903_v6  ;;  %v10680_v39 = vcombine.high %v5891_v31, %v5895_v32  ;;  %v5860_v23 = vld [vmem:[#allocation4 + $0x188] sm:$0xff] }
 0x344   :  { %7423 = vmatpush1.bf16.msra.mxu1 %v10735_v43  ;;  %v6023_v43 = vld [vmem:[#allocation4 + $0x6a0] sm:$0xff]  ;;  %v5864_v6 = vld [vmem:[#allocation4 + $0x1a8] sm:$0xff] }
 0x345   :  { %7424 = vmatprep.subr.bf16.mxu1 %v10728_v38  ;;  %v10815_v38 = vcombine.low %v6027_v24, %v6031_v25  ;;  %v10808_v41 = vcombine.high %v6019_v33, %v6023_v43  ;;  %v5883_v5 = vld [vmem:[#allocation4 + $0x240] sm:$0xff]  ;;  %v10807_v54 = vcombine.low %v6019_v33, %v6023_v43  ;;  %v5988_v25 = vld [vmem:[#allocation4 + $0x588] sm:$0xff] }
 0x346   :  { %7382 = vmatpush1.bf16.msra.mxu0 %v10599_v49  ;;  %v5887_v42 = vld [vmem:[#allocation4 + $0x260] sm:$0xff] }
 0x347   :  { %7383 = vmatprep.subr.bf16.mxu0 %v10720_v48  ;;  %v6011_v49 = vld [vmem:[#allocation4 + $0x640] sm:$0xff]  ;;  %v10679_v48 = vcombine.low %v5891_v31, %v5895_v32  ;;  %v10672_v9 = vcombine.high %v5883_v5, %v5887_v42  ;;  %v10671_v0 = vcombine.low %v5883_v5, %v5887_v42  ;;  %v10785_v31 = vcombine.low %v5996_v8, %v6000_v10  ;;  %v5984_v5 = vld [vmem:[#allocation4 + $0x568] sm:$0xff] }
 0x348   :  { %7425 = vmatpush1.bf16.msra.mxu1 %v10727_v47  ;;  %v6015_v47 = vld [vmem:[#allocation4 + $0x660] sm:$0xff]  ;;  %v10650_v32 = vcombine.high %v5860_v23, %v5864_v6 }
 0x349   :  { %7426 = vmatprep.subr.bf16.mxu1 %v10848_v51  ;;  %v13084_v51 = vpop.f32.mrf.mxu0  ;;  %v10800_v60 = vcombine.high %v6011_v49, %v6015_v47  ;;  %v10799_v52 = vcombine.low %v6011_v49, %v6015_v47  ;;  %v13099_v24 = vld [vmem:[%s13346_s3] ss:$16 sps:$4 sm:$0xff]   ;;  %v10649_v49 = vcombine.low %v5860_v23, %v5864_v6  ;;  %v5836_v23 = vld [vmem:[#allocation4 + $0xc8] sm:$0xff] }
 0x34a   :  { %7384 = vmatpush2.bf16.msra.mxu0 %v10719_v28  ;;  %v5875_v28 = vld [vmem:[#allocation4 + $0x200] sm:$0xff]  ;;  %v5840_v6 = vld [vmem:[#allocation4 + $0xe8] sm:$0xff] }
 0x34b   :  { %7385 = vmatprep.subr.bf16.mxu0 %v10712_v61  ;;  %v6003_v61 = vld [vmem:[#allocation4 + $0x600] sm:$0xff]  ;;  %v13088_v37 = vpop.f32.mrf.mxu0 }
 0x34c   :  { %7427 = vmatpush2.bf16.msra.mxu1 %v10847_v13  ;;  %v5879_v13 = vld [vmem:[#allocation4 + $0x220] sm:$0xff] }
 0x34d   :  { %7428 = vmatprep.subr.bf16.mxu1 %v10840_v63  ;;  %v6007_v63 = vld [vmem:[#allocation4 + $0x620] sm:$0xff]  ;;  %v10664_v3 = vcombine.high %v5875_v28, %v5879_v13  ;;  %v10663_v29 = vcombine.low %v5875_v28, %v5879_v13  ;;  %v13092_v11 = vpop.f32.mrf.mxu0  ;;  %v5844_v13 = vld [vmem:[#allocation4 + $0x108] sm:$0xff] }
 0x34e   :  { %7386 = vmatpush2.bf16.msra.mxu0 %v10711_v4  ;;  %v13090_v4 = vpop.f32.mrf.mxu1 }
 0x34f   :  { %7387 = vmatprep.subr.bf16.mxu0 %v10704_v40  ;;  %v5868_v40 = vld [vmem:[#allocation4 + $0x1c8] sm:$0xff] }
 0x350   :  { %7429 = vmatpush2.bf16.msra.mxu1 %v10839_v16  ;;  %v10792_v16 = vcombine.high %v6003_v61, %v6007_v63 }
 0x351   :  { %7430 = vmatprep.subr.bf16.mxu1 %v10832_v22  ;;  %v5872_v22 = vld [vmem:[#allocation4 + $0x1e8] sm:$0xff] }
 0x352   :  { %7388 = vmatpush2.bf16.msra.mxu0 %v10703_v17  ;;  %v10791_v17 = vcombine.low %v6003_v61, %v6007_v63  ;;  %v5848_v61 = vld [vmem:[#allocation4 + $0x128] sm:$0xff] }
 0x353   :  { %7389 = vmatprep.subr.bf16.mxu0 %v10696_v19  ;;  %v13094_v19 = vpop.f32.mrf.mxu1 }
 0x354   :  { %7431 = vmatpush2.bf16.msra.mxu1 %v10831_v18  ;;  %v10658_v18 = vcombine.high %v5868_v40, %v5872_v22 }
 0x355   :  { %7432 = vmatprep.subr.bf16.mxu1 %v10824_v20  ;;  %v10786_v20 = vcombine.high %v5996_v8, %v6000_v10  ;;  %v13108_v33 = vpop.f32.mrf.mxu1 }
 0x356   :  { %7390 = vmatpush2.bf16.msra.mxu0 %v10695_v57  ;;  %v5992_v57 = vld [vmem:[#allocation4 + $0x5a8] sm:$0xff] }
 0x357   :  { %7391 = vmatprep.subr.bf16.mxu0 %v10688_v27  ;;  %v10657_v27 = vcombine.low %v5868_v40, %v5872_v22  ;;  %v10778_v43 = vcombine.high %v5988_v25, %v5992_v57 }
 0x358   :  { %7433 = vmatpush2.bf16.msra.mxu1 %v10823_v26  ;;  %v13104_v26 = vld [vmem:[%s13346_s3 + $0x8] ss:$16 sps:$4 sm:$0xff]  }
 0x359   :  { %7434 = vmatprep.subr.bf16.mxu1 %v10816_v30  ;;  %v13106_v30 = vpop.f32.mrf.mxu0 }
 0x35a   :  { %7392 = vmatpush2.bf16.msra.mxu0 %v10687_v35  ;;  %v5852_v35 = vld [vmem:[#allocation4 + $0x148] sm:$0xff] }
 0x35b   :  { %7393 = vmatprep.subr.bf16.mxu0 %v10680_v39 }
 0x35c   :  { %7435 = vmatpush2.bf16.msra.mxu1 %v10815_v38  ;;  %v5856_v38 = vld [vmem:[#allocation4 + $0x168] sm:$0xff] }
 0x35d   :  { %7436 = vmatprep.subr.bf16.mxu1 %v10808_v41  ;;  %v5980_v41 = vld [vmem:[#allocation4 + $0x548] sm:$0xff]  ;;  %v10641_v22 = vcombine.low %v5852_v35, %v5856_v38 }
 0x35e   :  { %7394 = vmatpush2.bf16.msra.mxu0 %v10679_v48  ;;  %v10770_v28 = vcombine.high %v5980_v41, %v5984_v5  ;;  %v10769_v8 = vcombine.low %v5980_v41, %v5984_v5  ;;  %v5832_v41 = vld [vmem:[#allocation4 + $0xa8] sm:$0xff] }
 0x35f   :  { %7395 = vmatprep.subr.bf16.mxu0 %v10672_v9  ;;  %v10642_v9 = vcombine.high %v5852_v35, %v5856_v38  ;;  %v10626_v35 = vcombine.high %v5836_v23, %v5840_v6  ;;  %v5956_v5 = vld [vmem:[#allocation4 + $0x488] sm:$0xff] }
 0x360   :  { %7437 = vmatpush2.bf16.msra.mxu1 %v10807_v54  ;;  %v10777_v54 = vcombine.low %v5988_v25, %v5992_v57 }
 0x361   :  { %7438 = vmatprep.subr.bf16.mxu1 %v10800_v60 }
 0x362   :  { %7396 = vmatpush2.bf16.msra.mxu0 %v10671_v0 }
 0x363   :  { %7397 = vmatprep.subr.bf16.mxu0 %v10664_v3  ;;  %v5972_v3 = vld [vmem:[#allocation4 + $0x508] sm:$0xff] }
 0x364   :  { %7439 = vmatpush2.bf16.msra.mxu1 %v10799_v52 }
 0x365   :  { %7440 = vmatprep.subr.bf16.mxu1 %v10792_v16  ;;  %v5976_v16 = vld [vmem:[#allocation4 + $0x528] sm:$0xff] }
 0x366   :  { %7398 = vmatpush2.bf16.msra.mxu0 %v10663_v29 }
 0x367   :  { %7453 = vmatprep.subr.bf16.mxu0 %v10658_v18  ;;  %v10634_v18 = vcombine.high %v5844_v13, %v5848_v61 }
 0x368   :  { %7441 = vmatpush2.bf16.msra.mxu1 %v10791_v17 }
 0x369   :  { %7496 = vmatprep.subr.bf16.mxu1 %v10786_v20  ;;  %v5567_v39 = vpop.f32.mrf.mxu0  ;;  %7400 = vmatmul.mubr.bf16.vlgmr.msra.gmra.mxu0 %v13099_v24  ;;  %v10762_v20 = vcombine.high %v5972_v3, %v5976_v16 }
 0x36a   :  { %7454 = vmatpush1.bf16.msra.mxu0 %v10657_v27  ;;  %7485 = vmatprep.mubr.bf16.mxu0 %v13069_v34  ;;  %v5964_v27 = vld [vmem:[#allocation4 + $0x4c8] sm:$0xff] }
 0x36b   :  { %v5610_v42 = vpop.f32.mrf.mxu1  ;;  %7443 = vmatmul.mubr.bf16.vlgmr.msra.gmra.mxu1 %v13104_v26  ;;  %v5569_v48 = vpop.f32.mrf.mxu0  ;;  %7455 = vmatprep.subr.bf16.mxu0 %v10650_v32  ;;  %v10633_v32 = vcombine.low %v5844_v13, %v5848_v61 }
 0x36c   :  { %v5611_v47 = vadd.f32 %v5610_v42, %v5567_v39  ;;  %7497 = vmatpush1.bf16.msra.mxu1 %v10785_v31  ;;  %7528 = vmatprep.mubr.bf16.mxu1 %v13077_v15  ;;  %v5968_v31 = vld [vmem:[#allocation4 + $0x4e8] sm:$0xff] }
 0x36d   :  { %v5612_v60 = vpop.f32.mrf.mxu1  ;;  %7498 = vmatprep.subr.bf16.mxu1 %v10778_v43  ;;  %v5571_v52 = vpop.f32.mrf.mxu0  ;;  %v10761_v43 = vcombine.low %v5972_v3, %v5976_v16  ;;  %v10754_v38 = vcombine.high %v5964_v27, %v5968_v31  ;;  %v5828_v39 = vld [vmem:[#allocation4 + $0x88] sm:$0xff] }
 0x36e   :  { %v13114_v63 = vadd.f32 %v5611_v47, %v13017_v53  ;;  %v5613_v0 = vadd.f32 %v5612_v60, %v5569_v48  ;;  %7456 = vmatpush1.bf16.msra.mxu0 %v10649_v49  ;;  %v5960_v42 = vld [vmem:[#allocation4 + $0x4a8] sm:$0xff]  ;;  %v10753_v49 = vcombine.low %v5964_v27, %v5968_v31  ;;  %v10618_v47 = vcombine.high %v5828_v39, %v5832_v41 }
 0x36f   :  { %v5614_v40 = vpop.f32.mrf.mxu1  ;;  %v5573_v17 = vpop.f32.mrf.mxu0  ;;  %7457 = vmatprep.subr.bf16.mxu0 %v10642_v9  ;;  %v10746_v48 = vcombine.high %v5956_v5, %v5960_v42  ;;  %v5948_v9 = vld [vmem:[#allocation4 + $0x448] sm:$0xff]  ;;  %v10745_v13 = vcombine.low %v5956_v5, %v5960_v42 }
 0x370   :  { %v13118_v10 = vadd.f32 %v5613_v0, %v13022_v59  ;;  %v5615_v29 = vadd.f32 %v5614_v40, %v5571_v52  ;;  %7499 = vmatpush1.bf16.msra.mxu1 %v10777_v54  ;;  %v5824_v54 = vld [vmem:[#allocation4 + $0x68] sm:$0xff] }
 0x371   :  { %v5616_v53 = vpop.f32.mrf.mxu1  ;;  %7500 = vmatprep.subr.bf16.mxu1 %v10770_v28  ;;  %v5952_v60 = vld [vmem:[#allocation4 + $0x468] sm:$0xff]  ;;  %v10617_v28 = vcombine.low %v5828_v39, %v5832_v41 }
 0x372   :  { %v13121_v25 = vadd.f32 %v5615_v29, %v13025_v58  ;;  %v5617_v57 = vadd.f32 %v5616_v53, %v5573_v17  ;;  %7458 = vmatpush1.bf16.msra.mxu0 %v10641_v22  ;;  %v10625_v58 = vcombine.low %v5836_v23, %v5840_v6  ;;  %v10738_v0 = vcombine.high %v5948_v9, %v5952_v60  ;;  %v5812_v52 = vld [vmem:[#allocation4 + $0x8] sm:$0xff] }
 0x373   :  { %7459 = vmatprep.subr.bf16.mxu0 %v10634_v18  ;;  %v5816_v3 = vld [vmem:[#allocation4 + $0x28] sm:$0xff] }
 0x374   :  { %v13124_v59 = vadd.f32 %v5617_v57, %v13028_v21  ;;  %7501 = vmatpush1.bf16.msra.mxu1 %v10769_v8  ;;  %v5820_v21 = vld [vmem:[#allocation4 + $0x48] sm:$0xff]  ;;  %v10737_v8 = vcombine.low %v5948_v9, %v5952_v60  ;;  %v10602_v29 = vcombine.high %v5812_v52, %v5816_v3  ;;  %v10601_v6 = vcombine.low %v5812_v52, %v5816_v3 }
 0x375   :  { %7502 = vmatprep.subr.bf16.mxu1 %v10762_v20  ;;  %v10610_v61 = vcombine.high %v5820_v21, %v5824_v54  ;;  %v5940_v16 = vld [vmem:[#allocation4 + $0x408] sm:$0xff]  ;;  %v10609_v22 = vcombine.low %v5820_v21, %v5824_v54 }
 0x376   :  { %7460 = vmatpush1.bf16.msra.mxu0 %v10633_v32  ;;  %v5944_v40 = vld [vmem:[#allocation4 + $0x428] sm:$0xff] }
 0x377   :  { %7461 = vmatprep.subr.bf16.mxu0 %v10626_v35  ;;  %v10730_v17 = vcombine.high %v5940_v16, %v5944_v40  ;;  %v5932_v18 = vld [vmem:[#allocation4 + $0x3c8] sm:$0xff]  ;;  %v10729_v57 = vcombine.low %v5940_v16, %v5944_v40 }
 0x378   :  { %7503 = vmatpush1.bf16.msra.mxu1 %v10761_v43  ;;  %v5936_v53 = vld [vmem:[#allocation4 + $0x3e8] sm:$0xff] }
 0x379   :  { %7504 = vmatprep.subr.bf16.mxu1 %v10754_v38  ;;  %v6060_v20 = vld [vmem:[#allocation4 + $0x7c8] sm:$0xff]  ;;  %v10722_v27 = vcombine.high %v5932_v18, %v5936_v53  ;;  %v10721_v39 = vcombine.low %v5932_v18, %v5936_v53 }
 0x37a   :  { %7462 = vmatpush1.bf16.msra.mxu0 %v10625_v58  ;;  %v6064_v23 = vld [vmem:[#allocation4 + $0x7e8] sm:$0xff] }
 0x37b   :  { %7463 = vmatprep.subr.bf16.mxu0 %v10618_v47  ;;  %v10850_v31 = vcombine.high %v6060_v20, %v6064_v23  ;;  %v5924_v32 = vld [vmem:[#allocation4 + $0x388] sm:$0xff]  ;;  %v10849_v41 = vcombine.low %v6060_v20, %v6064_v23 }
 0x37c   :  { %7505 = vmatpush1.bf16.msra.mxu1 %v10753_v49  ;;  %v5928_v43 = vld [vmem:[#allocation4 + $0x3a8] sm:$0xff] }
 0x37d   :  { %7506 = vmatprep.subr.bf16.mxu1 %v10746_v48  ;;  %v6052_v35 = vld [vmem:[#allocation4 + $0x788] sm:$0xff]  ;;  %v10714_v5 = vcombine.high %v5924_v32, %v5928_v43  ;;  %v10713_v21 = vcombine.low %v5924_v32, %v5928_v43 }
 0x37e   :  { %7464 = vmatpush1.bf16.msra.mxu0 %v10617_v28  ;;  %v6056_v38 = vld [vmem:[#allocation4 + $0x7a8] sm:$0xff] }
 0x37f   :  { %7465 = vmatprep.subr.bf16.mxu0 %v10610_v61  ;;  %v10842_v42 = vcombine.high %v6052_v35, %v6056_v38  ;;  %v5916_v58 = vld [vmem:[#allocation4 + $0x348] sm:$0xff]  ;;  %v10841_v54 = vcombine.low %v6052_v35, %v6056_v38 }
 0x380   :  { %7507 = vmatpush1.bf16.msra.mxu1 %v10745_v13  ;;  %v5920_v49 = vld [vmem:[#allocation4 + $0x368] sm:$0xff] }
 0x381   :  { %7508 = vmatprep.subr.bf16.mxu1 %v10738_v0  ;;  %v6044_v47 = vld [vmem:[#allocation4 + $0x748] sm:$0xff]  ;;  %v10706_v9 = vcombine.high %v5916_v58, %v5920_v49  ;;  %v10705_v52 = vcombine.low %v5916_v58, %v5920_v49 }
 0x382   :  { %7466 = vmatpush1.bf16.msra.mxu0 %v10609_v22  ;;  %v6048_v48 = vld [vmem:[#allocation4 + $0x768] sm:$0xff] }
 0x383   :  { %7467 = vmatprep.subr.bf16.mxu0 %v10602_v29  ;;  %v10834_v60 = vcombine.high %v6044_v47, %v6048_v48  ;;  %v5908_v28 = vld [vmem:[#allocation4 + $0x308] sm:$0xff]  ;;  %v10833_v3 = vcombine.low %v6044_v47, %v6048_v48 }
 0x384   :  { %7509 = vmatpush1.bf16.msra.mxu1 %v10737_v8  ;;  %v5912_v13 = vld [vmem:[#allocation4 + $0x328] sm:$0xff] }
 0x385   :  { %7510 = vmatprep.subr.bf16.mxu1 %v10730_v17  ;;  %v6036_v61 = vld [vmem:[#allocation4 + $0x708] sm:$0xff]  ;;  %v10698_v16 = vcombine.high %v5908_v28, %v5912_v13  ;;  %v10697_v18 = vcombine.low %v5908_v28, %v5912_v13 }
 0x386   :  { %7468 = vmatpush1.bf16.msra.mxu0 %v10601_v6  ;;  %v6040_v0 = vld [vmem:[#allocation4 + $0x728] sm:$0xff] }
 0x387   :  { %7469 = vmatprep.subr.bf16.mxu0 %v10722_v27  ;;  %v10826_v40 = vcombine.high %v6036_v61, %v6040_v0  ;;  %v5900_v22 = vld [vmem:[#allocation4 + $0x2c8] sm:$0xff]  ;;  %v10825_v53 = vcombine.low %v6036_v61, %v6040_v0 }
 0x388   :  { %7511 = vmatpush1.bf16.msra.mxu1 %v10729_v57  ;;  %v5904_v8 = vld [vmem:[#allocation4 + $0x2e8] sm:$0xff] }
 0x389   :  { %7512 = vmatprep.subr.bf16.mxu1 %v10850_v31  ;;  %v6028_v29 = vld [vmem:[#allocation4 + $0x6c8] sm:$0xff]  ;;  %v10690_v20 = vcombine.high %v5900_v22, %v5904_v8  ;;  %v10689_v32 = vcombine.low %v5900_v22, %v5904_v8 }
 0x38a   :  { %7470 = vmatpush2.bf16.msra.mxu0 %v10721_v39  ;;  %v6032_v17 = vld [vmem:[#allocation4 + $0x6e8] sm:$0xff] }
 0x38b   :  { %7471 = vmatprep.subr.bf16.mxu0 %v10714_v5  ;;  %v10818_v23 = vcombine.high %v6028_v29, %v6032_v17  ;;  %v5892_v6 = vld [vmem:[#allocation4 + $0x288] sm:$0xff]  ;;  %v10817_v43 = vcombine.low %v6028_v29, %v6032_v17 }
 0x38c   :  { %7513 = vmatpush2.bf16.msra.mxu1 %v10849_v41  ;;  %v5896_v57 = vld [vmem:[#allocation4 + $0x2a8] sm:$0xff] }
 0x38d   :  { %7514 = vmatprep.subr.bf16.mxu1 %v10842_v42  ;;  %v6020_v27 = vld [vmem:[#allocation4 + $0x688] sm:$0xff]  ;;  %v10682_v35 = vcombine.high %v5892_v6, %v5896_v57  ;;  %v10681_v58 = vcombine.low %v5892_v6, %v5896_v57 }
 0x38e   :  { %7472 = vmatpush2.bf16.msra.mxu0 %v10713_v21  ;;  %v6024_v31 = vld [vmem:[#allocation4 + $0x6a8] sm:$0xff] }
 0x38f   :  { %7473 = vmatprep.subr.bf16.mxu0 %v10706_v9  ;;  %v10810_v38 = vcombine.high %v6020_v27, %v6024_v31  ;;  %v5884_v39 = vld [vmem:[#allocation4 + $0x248] sm:$0xff]  ;;  %v10809_v49 = vcombine.low %v6020_v27, %v6024_v31 }
 0x390   :  { %7515 = vmatpush2.bf16.msra.mxu1 %v10841_v54  ;;  %v5888_v41 = vld [vmem:[#allocation4 + $0x268] sm:$0xff] }
 0x391   :  { %7516 = vmatprep.subr.bf16.mxu1 %v10834_v60  ;;  %v6012_v5 = vld [vmem:[#allocation4 + $0x648] sm:$0xff]  ;;  %v10674_v47 = vcombine.high %v5884_v39, %v5888_v41  ;;  %v10673_v28 = vcombine.low %v5884_v39, %v5888_v41  ;;  %v5985_v39 = vld [vmem:[#allocation4 + $0x570] sm:$0xff] }
 0x392   :  { %7474 = vmatpush2.bf16.msra.mxu0 %v10705_v52  ;;  %v6016_v42 = vld [vmem:[#allocation4 + $0x668] sm:$0xff]  ;;  %v5869_v52 = vld [vmem:[#allocation4 + $0x1d0] sm:$0xff] }
 0x393   :  { %7475 = vmatprep.subr.bf16.mxu0 %v10698_v16  ;;  %v10802_v48 = vcombine.high %v6012_v5, %v6016_v42  ;;  %v5876_v21 = vld [vmem:[#allocation4 + $0x208] sm:$0xff]  ;;  %v10801_v13 = vcombine.low %v6012_v5, %v6016_v42  ;;  %v5997_v16 = vld [vmem:[#allocation4 + $0x5d0] sm:$0xff] }
 0x394   :  { %7517 = vmatpush2.bf16.msra.mxu1 %v10833_v3  ;;  %v5880_v54 = vld [vmem:[#allocation4 + $0x228] sm:$0xff]  ;;  %v5873_v3 = vld [vmem:[#allocation4 + $0x1f0] sm:$0xff] }
 0x395   :  { %7518 = vmatprep.subr.bf16.mxu1 %v10826_v40  ;;  %v6004_v9 = vld [vmem:[#allocation4 + $0x608] sm:$0xff]  ;;  %v10666_v61 = vcombine.high %v5876_v21, %v5880_v54  ;;  %v6001_v40 = vld [vmem:[#allocation4 + $0x5f0] sm:$0xff]  ;;  %v10665_v22 = vcombine.low %v5876_v21, %v5880_v54  ;;  %v10660_v29 = vcombine.high %v5869_v52, %v5873_v3  ;;  %v10659_v6 = vcombine.low %v5869_v52, %v5873_v3 }
 0x396   :  { %7476 = vmatpush2.bf16.msra.mxu0 %v10697_v18  ;;  %v6008_v60 = vld [vmem:[#allocation4 + $0x628] sm:$0xff]  ;;  %v10788_v17 = vcombine.high %v5997_v16, %v6001_v40  ;;  %v5861_v18 = vld [vmem:[#allocation4 + $0x190] sm:$0xff]  ;;  %v10787_v57 = vcombine.low %v5997_v16, %v6001_v40 }
 0x397   :  { %7477 = vmatprep.subr.bf16.mxu0 %v10690_v20  ;;  %v10794_v0 = vcombine.high %v6004_v9, %v6008_v60  ;;  %v10793_v8 = vcombine.low %v6004_v9, %v6008_v60  ;;  %v5989_v20 = vld [vmem:[#allocation4 + $0x590] sm:$0xff] }
 0x398   :  { %7519 = vmatpush2.bf16.msra.mxu1 %v10825_v53  ;;  %v5865_v53 = vld [vmem:[#allocation4 + $0x1b0] sm:$0xff] }
 0x399   :  { %7520 = vmatprep.subr.bf16.mxu1 %v10818_v23  ;;  %v5993_v23 = vld [vmem:[#allocation4 + $0x5b0] sm:$0xff]  ;;  %v10652_v27 = vcombine.high %v5861_v18, %v5865_v53  ;;  %v10651_v5 = vcombine.low %v5861_v18, %v5865_v53 }
 0x39a   :  { %7478 = vmatpush2.bf16.msra.mxu0 %v10689_v32  ;;  %v10780_v31 = vcombine.high %v5989_v20, %v5993_v23  ;;  %v5853_v32 = vld [vmem:[#allocation4 + $0x150] sm:$0xff] }
 0x39b   :  { %7479 = vmatprep.subr.bf16.mxu0 %v10682_v35  ;;  %v5845_v54 = vld [vmem:[#allocation4 + $0x110] sm:$0xff] }
 0x39c   :  { %7521 = vmatpush2.bf16.msra.mxu1 %v10817_v43  ;;  %v5857_v43 = vld [vmem:[#allocation4 + $0x170] sm:$0xff] }
 0x39d   :  { %7522 = vmatprep.subr.bf16.mxu1 %v10810_v38  ;;  %v5981_v38 = vld [vmem:[#allocation4 + $0x550] sm:$0xff]  ;;  %v10643_v3 = vcombine.low %v5853_v32, %v5857_v43 }
 0x39e   :  { %7480 = vmatpush2.bf16.msra.mxu0 %v10681_v58  ;;  %v10772_v21 = vcombine.high %v5981_v38, %v5985_v39  ;;  %v5849_v9 = vld [vmem:[#allocation4 + $0x130] sm:$0xff]  ;;  %v10771_v16 = vcombine.low %v5981_v38, %v5985_v39 }
 0x39f   :  { %7481 = vmatprep.subr.bf16.mxu0 %v10674_v47  ;;  %v10644_v47 = vcombine.high %v5853_v32, %v5857_v43  ;;  %v5841_v18 = vld [vmem:[#allocation4 + $0xf0] sm:$0xff] }
 0x3a0   :  { %7523 = vmatpush2.bf16.msra.mxu1 %v10809_v49  ;;  %v10779_v49 = vcombine.low %v5989_v20, %v5993_v23  ;;  %v5965_v20 = vld [vmem:[#allocation4 + $0x4d0] sm:$0xff] }
 0x3a1   :  { %7524 = vmatprep.subr.bf16.mxu1 %v10802_v48  ;;  %v5969_v23 = vld [vmem:[#allocation4 + $0x4f0] sm:$0xff] }
 0x3a2   :  { %7482 = vmatpush2.bf16.msra.mxu0 %v10673_v28  ;;  %v5829_v32 = vld [vmem:[#allocation4 + $0x90] sm:$0xff]  ;;  %v10755_v39 = vcombine.low %v5965_v20, %v5969_v23 }
 0x3a3   :  { %7483 = vmatprep.subr.bf16.mxu0 %v10666_v61  ;;  %v5973_v61 = vld [vmem:[#allocation4 + $0x510] sm:$0xff] }
 0x3a4   :  { %7525 = vmatpush2.bf16.msra.mxu1 %v10801_v13  ;;  %v5833_v43 = vld [vmem:[#allocation4 + $0xb0] sm:$0xff] }
 0x3a5   :  { %7526 = vmatprep.subr.bf16.mxu1 %v10794_v0  ;;  %v5977_v0 = vld [vmem:[#allocation4 + $0x530] sm:$0xff] }
 0x3a6   :  { %7484 = vmatpush2.bf16.msra.mxu0 %v10665_v22  ;;  %v5961_v38 = vld [vmem:[#allocation4 + $0x4b0] sm:$0xff] }
 0x3a7   :  { %7539 = vmatprep.subr.bf16.mxu0 %v10660_v29  ;;  %v10764_v29 = vcombine.high %v5973_v61, %v5977_v0 }
 0x3a8   :  { %7527 = vmatpush2.bf16.msra.mxu1 %v10793_v8 }
 0x3a9   :  { %7582 = vmatprep.subr.bf16.mxu1 %v10788_v17  ;;  %v5653_v35 = vpop.f32.mrf.mxu0  ;;  %7486 = vmatmul.mubr.bf16.vlgmr.msra.gmra.mxu0 %v13099_v24  ;;  %v5837_v17 = vld [vmem:[#allocation4 + $0xd0] sm:$0xff] }
 0x3aa   :  { %7540 = vmatpush1.bf16.msra.mxu0 %v10659_v6  ;;  %7571 = vmatprep.mubr.bf16.mxu0 %v13069_v34  ;;  %v10636_v34 = vcombine.high %v5845_v54, %v5849_v9  ;;  %v10635_v6 = vcombine.low %v5845_v54, %v5849_v9  ;;  %v5813_v9 = vld [vmem:[#allocation4 + $0x10] sm:$0xff] }
 0x3ab   :  { %v5696_v41 = vpop.f32.mrf.mxu1  ;;  %7529 = vmatmul.mubr.bf16.vlgmr.msra.gmra.mxu1 %v13104_v26  ;;  %v5655_v58 = vpop.f32.mrf.mxu0  ;;  %7541 = vmatprep.subr.bf16.mxu0 %v10652_v27  ;;  %v10628_v27 = vcombine.high %v5837_v17, %v5841_v18 }
 0x3ac   :  { %v5697_v42 = vadd.f32 %v5696_v41, %v5653_v35  ;;  %7583 = vmatpush1.bf16.msra.mxu1 %v10787_v57  ;;  %7614 = vmatprep.mubr.bf16.mxu1 %v13077_v15  ;;  %v10763_v57 = vcombine.low %v5973_v61, %v5977_v0  ;;  %v5957_v35 = vld [vmem:[#allocation4 + $0x490] sm:$0xff]  ;;  %v10620_v41 = vcombine.high %v5829_v32, %v5833_v43 }
 0x3ad   :  { %v5698_v48 = vpop.f32.mrf.mxu1  ;;  %7584 = vmatprep.subr.bf16.mxu1 %v10780_v31  ;;  %v5657_v13 = vpop.f32.mrf.mxu0  ;;  %v10756_v31 = vcombine.high %v5965_v20, %v5969_v23  ;;  %v5945_v61 = vld [vmem:[#allocation4 + $0x430] sm:$0xff] }
 0x3ae   :  { %v13130_v60 = vadd.f32 %v5697_v42, %v13033_v45  ;;  %v5699_v28 = vadd.f32 %v5698_v48, %v5655_v58  ;;  %7542 = vmatpush1.bf16.msra.mxu0 %v10651_v5  ;;  %v10748_v5 = vcombine.high %v5957_v35, %v5961_v38  ;;  %v5825_v42 = vld [vmem:[#allocation4 + $0x70] sm:$0xff]  ;;  %v10747_v48 = vcombine.low %v5957_v35, %v5961_v38 }
 0x3af   :  { %v5700_v52 = vpop.f32.mrf.mxu1  ;;  %v5659_v8 = vpop.f32.mrf.mxu0  ;;  %7543 = vmatprep.subr.bf16.mxu0 %v10644_v47  ;;  %v5949_v58 = vld [vmem:[#allocation4 + $0x450] sm:$0xff]  ;;  %v10619_v47 = vcombine.low %v5829_v32, %v5833_v43 }
 0x3b0   :  { %v13134_v40 = vadd.f32 %v5699_v28, %v13038_v36  ;;  %v5701_v22 = vadd.f32 %v5700_v52, %v5657_v13  ;;  %7585 = vmatpush1.bf16.msra.mxu1 %v10779_v49  ;;  %v5953_v49 = vld [vmem:[#allocation4 + $0x470] sm:$0xff] }
 0x3b1   :  { %v5702_v45 = vpop.f32.mrf.mxu1  ;;  %7586 = vmatprep.subr.bf16.mxu1 %v10772_v21  ;;  %v10740_v54 = vcombine.high %v5949_v58, %v5953_v49  ;;  %v5817_v28 = vld [vmem:[#allocation4 + $0x30] sm:$0xff]  ;;  %v10739_v52 = vcombine.low %v5949_v58, %v5953_v49 }
 0x3b2   :  { %v13137_v53 = vadd.f32 %v5701_v22, %v13041_v1  ;;  %v5703_v15 = vadd.f32 %v5702_v45, %v5659_v8  ;;  %7544 = vmatpush1.bf16.msra.mxu0 %v10643_v3  ;;  %v10627_v1 = vcombine.low %v5837_v17, %v5841_v18  ;;  %v5941_v13 = vld [vmem:[#allocation4 + $0x410] sm:$0xff]  ;;  %v10604_v3 = vcombine.high %v5813_v9, %v5817_v28 }
 0x3b3   :  { %7545 = vmatprep.subr.bf16.mxu0 %v10636_v34  ;;  %v5933_v22 = vld [vmem:[#allocation4 + $0x3d0] sm:$0xff]  ;;  %v10731_v17 = vcombine.low %v5941_v13, %v5945_v61 }
 0x3b4   :  { %v13140_v36 = vadd.f32 %v5703_v15, %v13044_v62  ;;  %7587 = vmatpush1.bf16.msra.mxu1 %v10771_v16  ;;  %v5821_v62 = vld [vmem:[#allocation4 + $0x50] sm:$0xff]  ;;  %v10732_v16 = vcombine.high %v5941_v13, %v5945_v61 }
 0x3b5   :  { %7588 = vmatprep.subr.bf16.mxu1 %v10764_v29  ;;  %v10612_v21 = vcombine.high %v5821_v62, %v5825_v42  ;;  %v10611_v0 = vcombine.low %v5821_v62, %v5825_v42  ;;  %v5937_v8 = vld [vmem:[#allocation4 + $0x3f0] sm:$0xff]  ;;  %v10603_v29 = vcombine.low %v5813_v9, %v5817_v28 }
 0x3b6   :  { %7546 = vmatpush1.bf16.msra.mxu0 %v10635_v6  ;;  %v6061_v34 = vld [vmem:[#allocation4 + $0x7d0] sm:$0xff]  ;;  %v10724_v18 = vcombine.high %v5933_v22, %v5937_v8 }
 0x3b7   :  { %7547 = vmatprep.subr.bf16.mxu0 %v10628_v27  ;;  %v6065_v45 = vld [vmem:[#allocation4 + $0x7f0] sm:$0xff]  ;;  %v10723_v27 = vcombine.low %v5933_v22, %v5937_v8 }
 0x3b8   :  { %7589 = vmatpush1.bf16.msra.mxu1 %v10763_v57  ;;  %v10852_v15 = vcombine.high %v6061_v34, %v6065_v45  ;;  %v5925_v20 = vld [vmem:[#allocation4 + $0x390] sm:$0xff] }
 0x3b9   :  { %7590 = vmatprep.subr.bf16.mxu1 %v10756_v31  ;;  %v5929_v23 = vld [vmem:[#allocation4 + $0x3b0] sm:$0xff]  ;;  %v10851_v31 = vcombine.low %v6061_v34, %v6065_v45 }
 0x3ba   :  { %7548 = vmatpush1.bf16.msra.mxu0 %v10627_v1  ;;  %v6053_v6 = vld [vmem:[#allocation4 + $0x790] sm:$0xff]  ;;  %v10716_v32 = vcombine.high %v5925_v20, %v5929_v23 }
 0x3bb   :  { %7549 = vmatprep.subr.bf16.mxu0 %v10620_v41  ;;  %v6057_v57 = vld [vmem:[#allocation4 + $0x7b0] sm:$0xff]  ;;  %v10715_v41 = vcombine.low %v5925_v20, %v5929_v23 }
 0x3bc   :  { %7591 = vmatpush1.bf16.msra.mxu1 %v10755_v39  ;;  %v10844_v43 = vcombine.high %v6053_v6, %v6057_v57  ;;  %v5917_v35 = vld [vmem:[#allocation4 + $0x350] sm:$0xff] }
 0x3bd   :  { %7592 = vmatprep.subr.bf16.mxu1 %v10748_v5  ;;  %v5921_v38 = vld [vmem:[#allocation4 + $0x370] sm:$0xff]  ;;  %v10843_v5 = vcombine.low %v6053_v6, %v6057_v57 }
 0x3be   :  { %7550 = vmatpush1.bf16.msra.mxu0 %v10619_v47  ;;  %v6045_v1 = vld [vmem:[#allocation4 + $0x750] sm:$0xff]  ;;  %v10708_v62 = vcombine.high %v5917_v35, %v5921_v38 }
 0x3bf   :  { %7551 = vmatprep.subr.bf16.mxu0 %v10612_v21  ;;  %v6049_v39 = vld [vmem:[#allocation4 + $0x770] sm:$0xff]  ;;  %v10707_v21 = vcombine.low %v5917_v35, %v5921_v38 }
 0x3c0   :  { %7593 = vmatpush1.bf16.msra.mxu1 %v10747_v48  ;;  %v10836_v42 = vcombine.high %v6045_v1, %v6049_v39  ;;  %v5909_v58 = vld [vmem:[#allocation4 + $0x310] sm:$0xff] }
 0x3c1   :  { %7594 = vmatprep.subr.bf16.mxu1 %v10740_v54  ;;  %v5913_v49 = vld [vmem:[#allocation4 + $0x330] sm:$0xff]  ;;  %v10835_v54 = vcombine.low %v6045_v1, %v6049_v39 }
 0x3c2   :  { %7552 = vmatpush1.bf16.msra.mxu0 %v10611_v0  ;;  %v6037_v47 = vld [vmem:[#allocation4 + $0x710] sm:$0xff]  ;;  %v10700_v9 = vcombine.high %v5909_v58, %v5913_v49 }
 0x3c3   :  { %7553 = vmatprep.subr.bf16.mxu0 %v10604_v3  ;;  %v6041_v48 = vld [vmem:[#allocation4 + $0x730] sm:$0xff]  ;;  %v10699_v3 = vcombine.low %v5909_v58, %v5913_v49 }
 0x3c4   :  { %7595 = vmatpush1.bf16.msra.mxu1 %v10739_v52  ;;  %v10828_v28 = vcombine.high %v6037_v47, %v6041_v48  ;;  %v5901_v13 = vld [vmem:[#allocation4 + $0x2d0] sm:$0xff] }
 0x3c5   :  { %7596 = vmatprep.subr.bf16.mxu1 %v10732_v16  ;;  %v5905_v61 = vld [vmem:[#allocation4 + $0x2f0] sm:$0xff]  ;;  %v10827_v16 = vcombine.low %v6037_v47, %v6041_v48  ;;  %v5870_v47 = vld [vmem:[#allocation4 + $0x1d8] sm:$0xff] }
 0x3c6   :  { %7554 = vmatpush1.bf16.msra.mxu0 %v10603_v29  ;;  %v6029_v0 = vld [vmem:[#allocation4 + $0x6d0] sm:$0xff]  ;;  %v10692_v22 = vcombine.high %v5901_v13, %v5905_v61  ;;  %v5874_v48 = vld [vmem:[#allocation4 + $0x1f8] sm:$0xff] }
 0x3c7   :  { %7555 = vmatprep.subr.bf16.mxu0 %v10724_v18  ;;  %v6033_v52 = vld [vmem:[#allocation4 + $0x6f0] sm:$0xff]  ;;  %v10691_v18 = vcombine.low %v5901_v13, %v5905_v61  ;;  %v10662_v13 = vcombine.high %v5870_v47, %v5874_v48 }
 0x3c8   :  { %7597 = vmatpush1.bf16.msra.mxu1 %v10731_v17  ;;  %v10820_v8 = vcombine.high %v6029_v0, %v6033_v52  ;;  %v5893_v34 = vld [vmem:[#allocation4 + $0x290] sm:$0xff] }
 0x3c9   :  { %7598 = vmatprep.subr.bf16.mxu1 %v10852_v15  ;;  %v5897_v45 = vld [vmem:[#allocation4 + $0x2b0] sm:$0xff]  ;;  %v10819_v15 = vcombine.low %v6029_v0, %v6033_v52  ;;  %v5862_v0 = vld [vmem:[#allocation4 + $0x198] sm:$0xff] }
 0x3ca   :  { %7556 = vmatpush2.bf16.msra.mxu0 %v10723_v27  ;;  %v6021_v29 = vld [vmem:[#allocation4 + $0x690] sm:$0xff]  ;;  %v10684_v20 = vcombine.high %v5893_v34, %v5897_v45  ;;  %v5866_v52 = vld [vmem:[#allocation4 + $0x1b8] sm:$0xff] }
 0x3cb   :  { %7557 = vmatprep.subr.bf16.mxu0 %v10716_v32  ;;  %v6025_v17 = vld [vmem:[#allocation4 + $0x6b0] sm:$0xff]  ;;  %v10683_v32 = vcombine.low %v5893_v34, %v5897_v45  ;;  %v10654_v34 = vcombine.high %v5862_v0, %v5866_v52 }
 0x3cc   :  { %7599 = vmatpush2.bf16.msra.mxu1 %v10851_v31  ;;  %v10812_v23 = vcombine.high %v6021_v29, %v6025_v17  ;;  %v5885_v6 = vld [vmem:[#allocation4 + $0x250] sm:$0xff] }
 0x3cd   :  { %7600 = vmatprep.subr.bf16.mxu1 %v10844_v43  ;;  %v5889_v57 = vld [vmem:[#allocation4 + $0x270] sm:$0xff]  ;;  %v10811_v43 = vcombine.low %v6021_v29, %v6025_v17  ;;  %v5854_v29 = vld [vmem:[#allocation4 + $0x158] sm:$0xff] }
 0x3ce   :  { %7558 = vmatpush2.bf16.msra.mxu0 %v10715_v41  ;;  %v6013_v27 = vld [vmem:[#allocation4 + $0x650] sm:$0xff]  ;;  %v10676_v35 = vcombine.high %v5885_v6, %v5889_v57  ;;  %v5858_v17 = vld [vmem:[#allocation4 + $0x178] sm:$0xff] }
 0x3cf   :  { %7559 = vmatprep.subr.bf16.mxu0 %v10708_v62  ;;  %v6017_v31 = vld [vmem:[#allocation4 + $0x670] sm:$0xff]  ;;  %v10675_v62 = vcombine.low %v5885_v6, %v5889_v57  ;;  %v10653_v6 = vcombine.low %v5862_v0, %v5866_v52 }
 0x3d0   :  { %7601 = vmatpush2.bf16.msra.mxu1 %v10843_v5  ;;  %v10804_v38 = vcombine.high %v6013_v27, %v6017_v31  ;;  %v5877_v1 = vld [vmem:[#allocation4 + $0x210] sm:$0xff] }
 0x3d1   :  { %7602 = vmatprep.subr.bf16.mxu1 %v10836_v42  ;;  %v5881_v39 = vld [vmem:[#allocation4 + $0x230] sm:$0xff]  ;;  %v10803_v42 = vcombine.low %v6013_v27, %v6017_v31 }
 0x3d2   :  { %7560 = vmatpush2.bf16.msra.mxu0 %v10707_v21  ;;  %v6005_v41 = vld [vmem:[#allocation4 + $0x610] sm:$0xff]  ;;  %v10668_v58 = vcombine.high %v5877_v1, %v5881_v39  ;;  %v5998_v21 = vld [vmem:[#allocation4 + $0x5d8] sm:$0xff] }
 0x3d3   :  { %7561 = vmatprep.subr.bf16.mxu0 %v10700_v9  ;;  %v6009_v5 = vld [vmem:[#allocation4 + $0x630] sm:$0xff]  ;;  %v10667_v9 = vcombine.low %v5877_v1, %v5881_v39  ;;  %v5850_v1 = vld [vmem:[#allocation4 + $0x138] sm:$0xff] }
 0x3d4   :  { %7603 = vmatpush2.bf16.msra.mxu1 %v10835_v54  ;;  %v10796_v49 = vcombine.high %v6005_v41, %v6009_v5  ;;  %v6002_v54 = vld [vmem:[#allocation4 + $0x5f8] sm:$0xff] }
 0x3d5   :  { %7604 = vmatprep.subr.bf16.mxu1 %v10828_v28  ;;  %v10795_v28 = vcombine.low %v6005_v41, %v6009_v5  ;;  %v10790_v61 = vcombine.high %v5998_v21, %v6002_v54  ;;  %v5974_v5 = vld [vmem:[#allocation4 + $0x518] sm:$0xff] }
 0x3d6   :  { %7562 = vmatpush2.bf16.msra.mxu0 %v10699_v3  ;;  %v5990_v3 = vld [vmem:[#allocation4 + $0x598] sm:$0xff] }
 0x3d7   :  { %7563 = vmatprep.subr.bf16.mxu0 %v10692_v22  ;;  %v10661_v22 = vcombine.low %v5870_v47, %v5874_v48 }
 0x3d8   :  { %7605 = vmatpush2.bf16.msra.mxu1 %v10827_v16  ;;  %v5994_v16 = vld [vmem:[#allocation4 + $0x5b8] sm:$0xff] }
 0x3d9   :  { %7606 = vmatprep.subr.bf16.mxu1 %v10820_v8  ;;  %v10789_v8 = vcombine.low %v5998_v21, %v6002_v54  ;;  %v10782_v45 = vcombine.high %v5990_v3, %v5994_v16  ;;  %v10781_v31 = vcombine.low %v5990_v3, %v5994_v16  ;;  %v5966_v3 = vld [vmem:[#allocation4 + $0x4d8] sm:$0xff] }
 0x3da   :  { %7564 = vmatpush2.bf16.msra.mxu0 %v10691_v18  ;;  %v5970_v16 = vld [vmem:[#allocation4 + $0x4f8] sm:$0xff] }
 0x3db   :  { %7565 = vmatprep.subr.bf16.mxu0 %v10684_v20  ;;  %v5986_v20 = vld [vmem:[#allocation4 + $0x578] sm:$0xff] }
 0x3dc   :  { %7607 = vmatpush2.bf16.msra.mxu1 %v10819_v15  ;;  %v5982_v15 = vld [vmem:[#allocation4 + $0x558] sm:$0xff] }
 0x3dd   :  { %7608 = vmatprep.subr.bf16.mxu1 %v10812_v23  ;;  %v10773_v47 = vcombine.low %v5982_v15, %v5986_v20 }
 0x3de   :  { %7566 = vmatpush2.bf16.msra.mxu0 %v10683_v32  ;;  %v10646_v32 = vcombine.high %v5854_v29, %v5858_v17 }
 0x3df   :  { %7567 = vmatprep.subr.bf16.mxu0 %v10676_v35  ;;  %v10774_v35 = vcombine.high %v5982_v15, %v5986_v20  ;;  %v5962_v15 = vld [vmem:[#allocation4 + $0x4b8] sm:$0xff]  ;;  %v10757_v20 = vcombine.low %v5966_v3, %v5970_v16 }
 0x3e0   :  { %7609 = vmatpush2.bf16.msra.mxu1 %v10811_v43 }
 0x3e1   :  { %7610 = vmatprep.subr.bf16.mxu1 %v10804_v38  ;;  %v5846_v38 = vld [vmem:[#allocation4 + $0x118] sm:$0xff] }
 0x3e2   :  { %7568 = vmatpush2.bf16.msra.mxu0 %v10675_v62  ;;  %v5978_v62 = vld [vmem:[#allocation4 + $0x538] sm:$0xff]  ;;  %v10638_v54 = vcombine.high %v5846_v38, %v5850_v1 }
 0x3e3   :  { %7569 = vmatprep.subr.bf16.mxu0 %v10668_v58 }
 0x3e4   :  { %7611 = vmatpush2.bf16.msra.mxu1 %v10803_v42  ;;  %v11179_v42 = vld [vmem:[%s13346_s3 + $0xc] ss:$16 sps:$4 sm:$0xff]  }
 0x3e5   :  { %7612 = vmatprep.subr.bf16.mxu1 %v10796_v49  ;;  %v10645_v49 = vcombine.low %v5854_v29, %v5858_v17  ;;  %v5830_v29 = vld [vmem:[#allocation4 + $0x98] sm:$0xff] }
 0x3e6   :  { %7570 = vmatpush2.bf16.msra.mxu0 %v10667_v9  ;;  %v5834_v17 = vld [vmem:[#allocation4 + $0xb8] sm:$0xff] }
 0x3e7   :  { %7625 = vmatprep.subr.bf16.mxu0 %v10662_v13  ;;  %v5838_v13 = vld [vmem:[#allocation4 + $0xd8] sm:$0xff] }
 0x3e8   :  { %7613 = vmatpush2.bf16.msra.mxu1 %v10795_v28  ;;  %v10766_v28 = vcombine.high %v5974_v5, %v5978_v62 }
 0x3e9   :  { %7668 = vmatprep.subr.bf16.mxu1 %v10790_v61  ;;  %v5739_v18 = vpop.f32.mrf.mxu0  ;;  %7572 = vmatmul.mubr.bf16.vlgmr.msra.gmra.mxu0 %v13099_v24  ;;  %v11178_v24 = vld [vmem:[%s13346_s3 + $0x4] ss:$16 sps:$4 sm:$0xff]   ;;  %v5842_v61 = vld [vmem:[#allocation4 + $0xf8] sm:$0xff] }
 0x3ea   :  { %7626 = vmatpush1.bf16.msra.mxu0 %v10661_v22  ;;  %7657 = vmatprep.mubr.bf16.mxu0 %v11178_v24  ;;  %v10637_v22 = vcombine.low %v5846_v38, %v5850_v1  ;;  %v5814_v1 = vld [vmem:[#allocation4 + $0x18] sm:$0xff] }
 0x3eb   :  { %v5782_v23 = vpop.f32.mrf.mxu1  ;;  %7615 = vmatmul.mubr.bf16.vlgmr.msra.gmra.mxu1 %v13104_v26  ;;  %v5741_v27 = vpop.f32.mrf.mxu0  ;;  %7627 = vmatprep.subr.bf16.mxu0 %v10654_v34  ;;  %v10630_v34 = vcombine.high %v5838_v13, %v5842_v61  ;;  %v5818_v24 = vld [vmem:[#allocation4 + $0x38] sm:$0xff] }
 0x3ec   :  { %v5783_v57 = vadd.f32 %v5782_v23, %v5739_v18  ;;  %7669 = vmatpush1.bf16.msra.mxu1 %v10789_v8  ;;  %7700 = vmatprep.mubr.bf16.mxu1 %v11179_v42  ;;  %v10765_v8 = vcombine.low %v5974_v5, %v5978_v62  ;;  %v5958_v18 = vld [vmem:[#allocation4 + $0x498] sm:$0xff]  ;;  %v10622_v23 = vcombine.high %v5830_v29, %v5834_v17 }
 0x3ed   :  { %v5784_v43 = vpop.f32.mrf.mxu1  ;;  %7670 = vmatprep.subr.bf16.mxu1 %v10782_v45  ;;  %v5743_v41 = vpop.f32.mrf.mxu0  ;;  %v10758_v45 = vcombine.high %v5966_v3, %v5970_v16  ;;  %v10606_v42 = vcombine.high %v5814_v1, %v5818_v24  ;;  %v6054_v3 = vld [vmem:[#allocation4 + $0x798] sm:$0xff] }
 0x3ee   :  { %v13148_v26 = vadd.f32 %v5783_v57, %v13049_v14  ;;  %v5785_v39 = vadd.f32 %v5784_v43, %v5741_v27  ;;  %7628 = vmatpush1.bf16.msra.mxu0 %v10653_v6  ;;  %v10750_v6 = vcombine.high %v5958_v18, %v5962_v15  ;;  %v5826_v57 = vld [vmem:[#allocation4 + $0x78] sm:$0xff]  ;;  %v10749_v43 = vcombine.low %v5958_v18, %v5962_v15 }
 0x3ef   :  { %v5786_v58 = vpop.f32.mrf.mxu1  ;;  %v5745_v14 = vpop.f32.mrf.mxu0  ;;  %7629 = vmatprep.subr.bf16.mxu0 %v10646_v32  ;;  %v5950_v27 = vld [vmem:[#allocation4 + $0x458] sm:$0xff]  ;;  %v10621_v32 = vcombine.low %v5830_v29, %v5834_v17 }
 0x3f0   :  { %v13154_v48 = vadd.f32 %v5785_v39, %v13058_v2  ;;  %v5787_v21 = vadd.f32 %v5786_v58, %v5743_v41  ;;  %7671 = vmatpush1.bf16.msra.mxu1 %v10781_v31  ;;  %v5954_v31 = vld [vmem:[#allocation4 + $0x478] sm:$0xff] }
 0x3f1   :  { %v5788_v9 = vpop.f32.mrf.mxu1  ;;  %7672 = vmatprep.subr.bf16.mxu1 %v10774_v35  ;;  %v10742_v38 = vcombine.high %v5950_v27, %v5954_v31  ;;  %v5942_v39 = vld [vmem:[#allocation4 + $0x418] sm:$0xff]  ;;  %v10741_v62 = vcombine.low %v5950_v27, %v5954_v31 }
 0x3f2   :  { %v13157_v0 = vadd.f32 %v5787_v21, %v13061_v7  ;;  %v5789_v52 = vadd.f32 %v5788_v9, %v5745_v14  ;;  %7630 = vmatpush1.bf16.msra.mxu0 %v10645_v49  ;;  %v10629_v7 = vcombine.low %v5838_v13, %v5842_v61  ;;  %v5946_v41 = vld [vmem:[#allocation4 + $0x438] sm:$0xff] }
 0x3f3   :  { %7631 = vmatprep.subr.bf16.mxu0 %v10638_v54  ;;  %v10734_v58 = vcombine.high %v5942_v39, %v5946_v41  ;;  %v5934_v49 = vld [vmem:[#allocation4 + $0x3d8] sm:$0xff]  ;;  %v10605_v54 = vcombine.low %v5814_v1, %v5818_v24  ;;  %v10733_v9 = vcombine.low %v5942_v39, %v5946_v41 }
 0x3f4   :  { %v13160_v2 = vadd.f32 %v5789_v52, %v13064_v44  ;;  %7673 = vmatpush1.bf16.msra.mxu1 %v10773_v47  ;;  %v5822_v44 = vld [vmem:[#allocation4 + $0x58] sm:$0xff] }
 0x3f5   :  { %7674 = vmatprep.subr.bf16.mxu1 %v10766_v28  ;;  %v10614_v35 = vcombine.high %v5822_v44, %v5826_v57  ;;  %v10613_v5 = vcombine.low %v5822_v44, %v5826_v57  ;;  %v5938_v47 = vld [vmem:[#allocation4 + $0x3f8] sm:$0xff] }
 0x3f6   :  { %7632 = vmatpush1.bf16.msra.mxu0 %v10637_v22  ;;  %v6062_v21 = vld [vmem:[#allocation4 + $0x7d8] sm:$0xff]  ;;  %v10726_v28 = vcombine.high %v5934_v49, %v5938_v47  ;;  %v10725_v22 = vcombine.low %v5934_v49, %v5938_v47 }
 0x3f7   :  { %7633 = vmatprep.subr.bf16.mxu0 %v10630_v34  ;;  %v6066_v14 = vld [vmem:[#allocation4 + $0x7f8] sm:$0xff] }
 0x3f8   :  { %7675 = vmatpush1.bf16.msra.mxu1 %v10765_v8  ;;  %v10854_v13 = vcombine.high %v6062_v21, %v6066_v14  ;;  %v5926_v61 = vld [vmem:[#allocation4 + $0x398] sm:$0xff]  ;;  %v10853_v8 = vcombine.low %v6062_v21, %v6066_v14 }
 0x3f9   :  { %7676 = vmatprep.subr.bf16.mxu1 %v10758_v45  ;;  %v5930_v52 = vld [vmem:[#allocation4 + $0x3b8] sm:$0xff] }
 0x3fa   :  { %7634 = vmatpush1.bf16.msra.mxu0 %v10629_v7  ;;  %v6058_v16 = vld [vmem:[#allocation4 + $0x7b8] sm:$0xff]  ;;  %v10718_v34 = vcombine.high %v5926_v61, %v5930_v52  ;;  %v10717_v7 = vcombine.low %v5926_v61, %v5930_v52 }
 0x3fb   :  { %7635 = vmatprep.subr.bf16.mxu0 %v10622_v23  ;;  %v10846_v45 = vcombine.high %v6054_v3, %v6058_v16  ;;  %v5918_v29 = vld [vmem:[#allocation4 + $0x358] sm:$0xff] }
 0x3fc   :  { %7677 = vmatpush1.bf16.msra.mxu1 %v10757_v20  ;;  %v5922_v17 = vld [vmem:[#allocation4 + $0x378] sm:$0xff]  ;;  %v10845_v20 = vcombine.low %v6054_v3, %v6058_v16 }
 0x3fd   :  { %7678 = vmatprep.subr.bf16.mxu1 %v10750_v6  ;;  %v6046_v18 = vld [vmem:[#allocation4 + $0x758] sm:$0xff]  ;;  %v10710_v23 = vcombine.high %v5918_v29, %v5922_v17 }
 0x3fe   :  { %7636 = vmatpush1.bf16.msra.mxu0 %v10621_v32  ;;  %v6050_v15 = vld [vmem:[#allocation4 + $0x778] sm:$0xff]  ;;  %v10709_v32 = vcombine.low %v5918_v29, %v5922_v17 }
 0x3ff   :  { %7637 = vmatprep.subr.bf16.mxu0 %v10614_v35  ;;  %v10838_v6 = vcombine.high %v6046_v18, %v6050_v15  ;;  %v5910_v44 = vld [vmem:[#allocation4 + $0x318] sm:$0xff] }
 0x400   :  { %7679 = vmatpush1.bf16.msra.mxu1 %v10749_v43  ;;  %v5914_v57 = vld [vmem:[#allocation4 + $0x338] sm:$0xff]  ;;  %v10837_v43 = vcombine.low %v6046_v18, %v6050_v15 }
 0x401   :  { %7680 = vmatprep.subr.bf16.mxu1 %v10742_v38  ;;  %v6038_v27 = vld [vmem:[#allocation4 + $0x718] sm:$0xff]  ;;  %v10702_v35 = vcombine.high %v5910_v44, %v5914_v57 }
 0x402   :  { %7638 = vmatpush1.bf16.msra.mxu0 %v10613_v5  ;;  %v6042_v31 = vld [vmem:[#allocation4 + $0x738] sm:$0xff]  ;;  %v10701_v5 = vcombine.low %v5910_v44, %v5914_v57  ;;  %v7787_v44 = vld [vmem:[#allocation6 + $0x1c0] sm:$0xff] }
 0x403   :  { %7639 = vmatprep.subr.bf16.mxu0 %v10606_v42  ;;  %v10830_v38 = vcombine.high %v6038_v27, %v6042_v31  ;;  %v5902_v1 = vld [vmem:[#allocation4 + $0x2d8] sm:$0xff]  ;;  %v7791_v57 = vld [vmem:[#allocation6 + $0x1e0] sm:$0xff] }
 0x404   :  { %7681 = vmatpush1.bf16.msra.mxu1 %v10741_v62  ;;  %v5906_v24 = vld [vmem:[#allocation4 + $0x2f8] sm:$0xff]  ;;  %v10829_v62 = vcombine.low %v6038_v27, %v6042_v31  ;;  %v7915_v27 = vld [vmem:[#allocation6 + $0x5c0] sm:$0xff] }
 0x405   :  { %7682 = vmatprep.subr.bf16.mxu1 %v10734_v58  ;;  %v6030_v39 = vld [vmem:[#allocation4 + $0x6d8] sm:$0xff]  ;;  %v10694_v42 = vcombine.high %v5902_v1, %v5906_v24  ;;  %v7919_v31 = vld [vmem:[#allocation6 + $0x5e0] sm:$0xff] }
 0x406   :  { %7640 = vmatpush1.bf16.msra.mxu0 %v10605_v54  ;;  %v6034_v41 = vld [vmem:[#allocation4 + $0x6f8] sm:$0xff]  ;;  %v10693_v54 = vcombine.low %v5902_v1, %v5906_v24  ;;  %v7779_v1 = vld [vmem:[#allocation6 + $0x180] sm:$0xff] }
 0x407   :  { %7641 = vmatprep.subr.bf16.mxu0 %v10726_v28  ;;  %v10822_v58 = vcombine.high %v6030_v39, %v6034_v41  ;;  %v5894_v49 = vld [vmem:[#allocation4 + $0x298] sm:$0xff]  ;;  %v7783_v24 = vld [vmem:[#allocation6 + $0x1a0] sm:$0xff] }
 0x408   :  { %7683 = vmatpush1.bf16.msra.mxu1 %v10733_v9  ;;  %v5898_v47 = vld [vmem:[#allocation4 + $0x2b8] sm:$0xff]  ;;  %v10821_v9 = vcombine.low %v6030_v39, %v6034_v41  ;;  %v7907_v39 = vld [vmem:[#allocation6 + $0x580] sm:$0xff] }
 0x409   :  { %7684 = vmatprep.subr.bf16.mxu1 %v10854_v13  ;;  %v6022_v21 = vld [vmem:[#allocation4 + $0x698] sm:$0xff]  ;;  %v10686_v28 = vcombine.high %v5894_v49, %v5898_v47  ;;  %v7911_v41 = vld [vmem:[#allocation6 + $0x5a0] sm:$0xff] }
 0x40a   :  { %7642 = vmatpush2.bf16.msra.mxu0 %v10725_v22  ;;  %v6026_v14 = vld [vmem:[#allocation4 + $0x6b8] sm:$0xff]  ;;  %v10685_v22 = vcombine.low %v5894_v49, %v5898_v47  ;;  %v7771_v49 = vld [vmem:[#allocation6 + $0x140] sm:$0xff] }
 0x40b   :  { %7643 = vmatprep.subr.bf16.mxu0 %v10718_v34  ;;  %v10814_v13 = vcombine.high %v6022_v21, %v6026_v14  ;;  %v5886_v61 = vld [vmem:[#allocation4 + $0x258] sm:$0xff]  ;;  %v7775_v47 = vld [vmem:[#allocation6 + $0x160] sm:$0xff] }
 0x40c   :  { %7685 = vmatpush2.bf16.msra.mxu1 %v10853_v8  ;;  %v5890_v52 = vld [vmem:[#allocation4 + $0x278] sm:$0xff]  ;;  %v10813_v8 = vcombine.low %v6022_v21, %v6026_v14  ;;  %v13165_v21 = vld [vmem:[%s13347_s4 + $0x4] ss:$16 sps:$4 sm:$0xff]   ;;  %v11180_v14 = vld [vmem:[%s13346_s3] ss:$16 sps:$4 sm:$0xff]  }
 0x40d   :  { %7686 = vmatprep.subr.bf16.mxu1 %v10846_v45  ;;  %v6014_v3 = vld [vmem:[#allocation4 + $0x658] sm:$0xff]  ;;  %v10678_v34 = vcombine.high %v5886_v61, %v5890_v52 }
 0x40e   :  { %7644 = vmatpush2.bf16.msra.mxu0 %v10717_v7  ;;  %v6018_v16 = vld [vmem:[#allocation4 + $0x678] sm:$0xff]  ;;  %v10677_v7 = vcombine.low %v5886_v61, %v5890_v52  ;;  %v10907_v61 = vcombine.low %v7779_v1, %v7783_v24  ;;  %v11035_v52 = vcombine.low %v7907_v39, %v7911_v41 }
 0x40f   :  { %7645 = vmatprep.subr.bf16.mxu0 %v10710_v23  ;;  %v10806_v45 = vcombine.high %v6014_v3, %v6018_v16  ;;  %v5878_v29 = vld [vmem:[#allocation4 + $0x218] sm:$0xff] }
 0x410   :  { %7687 = vmatpush2.bf16.msra.mxu1 %v10845_v20  ;;  %v5882_v17 = vld [vmem:[#allocation4 + $0x238] sm:$0xff]  ;;  %v10805_v20 = vcombine.low %v6014_v3, %v6018_v16  ;;  %v10900_v3 = vcombine.high %v7771_v49, %v7775_v47 }
 0x411   :  { %7688 = vmatprep.subr.bf16.mxu1 %v10838_v6  ;;  %v6006_v18 = vld [vmem:[#allocation4 + $0x618] sm:$0xff]  ;;  %v10670_v23 = vcombine.high %v5878_v29, %v5882_v17 }
 0x412   :  { %7646 = vmatpush2.bf16.msra.mxu0 %v10709_v32  ;;  %v6010_v15 = vld [vmem:[#allocation4 + $0x638] sm:$0xff]  ;;  %v10669_v32 = vcombine.low %v5878_v29, %v5882_v17  ;;  %v10899_v29 = vcombine.low %v7771_v49, %v7775_v47 }
 0x413   :  { %7647 = vmatprep.subr.bf16.mxu0 %v10702_v35  ;;  %v10798_v6 = vcombine.high %v6006_v18, %v6010_v15  ;;  %v10916_v35 = vcombine.high %v7787_v44, %v7791_v57 }
 0x414   :  { %7689 = vmatpush2.bf16.msra.mxu1 %v10837_v43  ;;  %v10797_v43 = vcombine.low %v6006_v18, %v6010_v15 }
 0x415   :  { %7690 = vmatprep.subr.bf16.mxu1 %v10830_v38  ;;  %v11044_v38 = vcombine.high %v7915_v27, %v7919_v31 }
 0x416   :  { %7648 = vmatpush2.bf16.msra.mxu0 %v10701_v5  ;;  %v10915_v5 = vcombine.low %v7787_v44, %v7791_v57 }
 0x417   :  { %7649 = vmatprep.subr.bf16.mxu0 %v10694_v42  ;;  %v10908_v42 = vcombine.high %v7779_v1, %v7783_v24 }
 0x418   :  { %7691 = vmatpush2.bf16.msra.mxu1 %v10829_v62  ;;  %v11043_v62 = vcombine.low %v7915_v27, %v7919_v31 }
 0x419   :  { %7692 = vmatprep.subr.bf16.mxu1 %v10822_v58  ;;  %v11036_v58 = vcombine.high %v7907_v39, %v7911_v41 }
 0x41a   :  { %7650 = vmatpush2.bf16.msra.mxu0 %v10693_v54  ;;  %v7899_v54 = vld [vmem:[#allocation6 + $0x540] sm:$0xff] }
 0x41b   :  { %7651 = vmatprep.subr.bf16.mxu0 %v10686_v28  ;;  %v13173_v28 = vld [vmem:[%s13347_s4 + $0xc] ss:$16 sps:$4 sm:$0xff]  }
 0x41c   :  { %7693 = vmatpush2.bf16.msra.mxu1 %v10821_v9  ;;  %v7903_v9 = vld [vmem:[#allocation6 + $0x560] sm:$0xff] }
 0x41d   :  { %7694 = vmatprep.subr.bf16.mxu1 %v10814_v13  ;;  %v11181_v13 = vld [vmem:[%s13346_s3 + $0x8] ss:$16 sps:$4 sm:$0xff]   ;;  %v11028_v16 = vcombine.high %v7899_v54, %v7903_v9  ;;  %v11027_v17 = vcombine.low %v7899_v54, %v7903_v9  ;;  %v7731_v9 = vld [vmem:[#allocation6] sm:$0xff] }
 0x41e   :  { %7652 = vmatpush2.bf16.msra.mxu0 %v10685_v22  ;;  %v7763_v22 = vld [vmem:[#allocation6 + $0x100] sm:$0xff] }
 0x41f   :  { %7653 = vmatprep.subr.bf16.mxu0 %v10678_v34  ;;  %v7891_v34 = vld [vmem:[#allocation6 + $0x500] sm:$0xff] }
 0x420   :  { %7695 = vmatpush2.bf16.msra.mxu1 %v10813_v8  ;;  %v7767_v8 = vld [vmem:[#allocation6 + $0x120] sm:$0xff] }
 0x421   :  { %7696 = vmatprep.subr.bf16.mxu1 %v10806_v45  ;;  %v7895_v45 = vld [vmem:[#allocation6 + $0x520] sm:$0xff]  ;;  %v10892_v18 = vcombine.high %v7763_v22, %v7767_v8  ;;  %v10891_v44 = vcombine.low %v7763_v22, %v7767_v8 }
 0x422   :  { %7654 = vmatpush2.bf16.msra.mxu0 %v10677_v7  ;;  %v11020_v15 = vcombine.high %v7891_v34, %v7895_v45  ;;  %v7755_v7 = vld [vmem:[#allocation6 + $0xc0] sm:$0xff]  ;;  %v11019_v57 = vcombine.low %v7891_v34, %v7895_v45 }
 0x423   :  { %7655 = vmatprep.subr.bf16.mxu0 %v10670_v23  ;;  %v7883_v23 = vld [vmem:[#allocation6 + $0x4c0] sm:$0xff] }
 0x424   :  { %7697 = vmatpush2.bf16.msra.mxu1 %v10805_v20  ;;  %v7759_v20 = vld [vmem:[#allocation6 + $0xe0] sm:$0xff] }
 0x425   :  { %7698 = vmatprep.subr.bf16.mxu1 %v10798_v6  ;;  %v7887_v6 = vld [vmem:[#allocation6 + $0x4e0] sm:$0xff]  ;;  %v10884_v27 = vcombine.high %v7755_v7, %v7759_v20  ;;  %v10883_v1 = vcombine.low %v7755_v7, %v7759_v20 }
 0x426   :  { %7656 = vmatpush2.bf16.msra.mxu0 %v10669_v32  ;;  %v11012_v31 = vcombine.high %v7883_v23, %v7887_v6  ;;  %v7747_v32 = vld [vmem:[#allocation6 + $0x80] sm:$0xff]  ;;  %v11011_v24 = vcombine.low %v7883_v23, %v7887_v6 }
 0x427   :  { %9287 = vmatprep.subr.bf16.mxu0 %v10916_v35  ;;  %v7875_v35 = vld [vmem:[#allocation6 + $0x480] sm:$0xff] }
 0x428   :  { %7699 = vmatpush2.bf16.msra.mxu1 %v10797_v43  ;;  %v7751_v43 = vld [vmem:[#allocation6 + $0xa0] sm:$0xff] }
 0x429   :  { %9330 = vmatprep.subr.bf16.mxu1 %v11044_v38  ;;  %7658 = vmatmul.mubr.bf16.vlgmr.msra.gmra.mxu0 %v11180_v14  ;;  %v7879_v38 = vld [vmem:[#allocation6 + $0x4a0] sm:$0xff]  ;;  %v10876_v39 = vcombine.high %v7747_v32, %v7751_v43  ;;  %v10875_v49 = vcombine.low %v7747_v32, %v7751_v43 }
 0x42a   :  { %9288 = vmatpush1.bf16.msra.mxu0 %v10915_v5  ;;  %9319 = vmatprep.mubr.bf16.mxu0 %v13165_v21  ;;  %v11004_v41 = vcombine.high %v7875_v35, %v7879_v38  ;;  %v7739_v5 = vld [vmem:[#allocation6 + $0x40] sm:$0xff]  ;;  %v11003_v47 = vcombine.low %v7875_v35, %v7879_v38 }
 0x42b   :  { %7701 = vmatmul.mubr.bf16.vlgmr.msra.gmra.mxu1 %v11181_v13  ;;  %9289 = vmatprep.subr.bf16.mxu0 %v10908_v42  ;;  %v7867_v42 = vld [vmem:[#allocation6 + $0x440] sm:$0xff] }
 0x42c   :  { %9331 = vmatpush1.bf16.msra.mxu1 %v11043_v62  ;;  %9362 = vmatprep.mubr.bf16.mxu1 %v13173_v28  ;;  %v7743_v62 = vld [vmem:[#allocation6 + $0x60] sm:$0xff] }
 0x42d   :  { %9332 = vmatprep.subr.bf16.mxu1 %v11036_v58  ;;  %v7871_v58 = vld [vmem:[#allocation6 + $0x460] sm:$0xff]  ;;  %v10868_v14 = vcombine.high %v7739_v5, %v7743_v62 }
 0x42e   :  { %9290 = vmatpush1.bf16.msra.mxu0 %v10907_v61  ;;  %v10996_v54 = vcombine.high %v7867_v42, %v7871_v58  ;;  %v7735_v13 = vld [vmem:[#allocation6 + $0x20] sm:$0xff] }
 0x42f   :  { %9291 = vmatprep.subr.bf16.mxu0 %v10900_v3  ;;  %v7859_v61 = vld [vmem:[#allocation6 + $0x400] sm:$0xff]  ;;  %v10867_v3 = vcombine.low %v7739_v5, %v7743_v62  ;;  %v10860_v22 = vcombine.high %v7731_v9, %v7735_v13 }
 0x430   :  { %9333 = vmatpush1.bf16.msra.mxu1 %v11035_v52  ;;  %v7863_v52 = vld [vmem:[#allocation6 + $0x420] sm:$0xff] }
 0x431   :  { %9334 = vmatprep.subr.bf16.mxu1 %v11028_v16  ;;  %v10995_v16 = vcombine.low %v7867_v42, %v7871_v58  ;;  %v10988_v8 = vcombine.high %v7859_v61, %v7863_v52  ;;  %v7851_v34 = vld [vmem:[#allocation6 + $0x3c0] sm:$0xff] }
 0x432   :  { %9292 = vmatpush1.bf16.msra.mxu0 %v10899_v29  ;;  %v7855_v45 = vld [vmem:[#allocation6 + $0x3e0] sm:$0xff] }
 0x433   :  { %9293 = vmatprep.subr.bf16.mxu0 %v10892_v18  ;;  %v7979_v29 = vld [vmem:[#allocation6 + $0x7c0] sm:$0xff]  ;;  %v10859_v18 = vcombine.low %v7731_v9, %v7735_v13  ;;  %v10980_v7 = vcombine.high %v7851_v34, %v7855_v45 }
 0x434   :  { %9335 = vmatpush1.bf16.msra.mxu1 %v11027_v17  ;;  %v7983_v17 = vld [vmem:[#allocation6 + $0x7e0] sm:$0xff] }
 0x435   :  { %9336 = vmatprep.subr.bf16.mxu1 %v11020_v15  ;;  %v10987_v15 = vcombine.low %v7859_v61, %v7863_v52  ;;  %v11108_v20 = vcombine.high %v7979_v29, %v7983_v17  ;;  %v7843_v23 = vld [vmem:[#allocation6 + $0x380] sm:$0xff] }
 0x436   :  { %9294 = vmatpush1.bf16.msra.mxu0 %v10891_v44  ;;  %v7847_v6 = vld [vmem:[#allocation6 + $0x3a0] sm:$0xff] }
 0x437   :  { %9295 = vmatprep.subr.bf16.mxu0 %v10884_v27  ;;  %v7971_v44 = vld [vmem:[#allocation6 + $0x780] sm:$0xff]  ;;  %v10979_v27 = vcombine.low %v7851_v34, %v7855_v45  ;;  %v10972_v32 = vcombine.high %v7843_v23, %v7847_v6 }
 0x438   :  { %9337 = vmatpush1.bf16.msra.mxu1 %v11019_v57  ;;  %v7975_v57 = vld [vmem:[#allocation6 + $0x7a0] sm:$0xff] }
 0x439   :  { %9338 = vmatprep.subr.bf16.mxu1 %v11012_v31  ;;  %v11107_v31 = vcombine.low %v7979_v29, %v7983_v17  ;;  %v11100_v43 = vcombine.high %v7971_v44, %v7975_v57  ;;  %v7835_v35 = vld [vmem:[#allocation6 + $0x340] sm:$0xff] }
 0x43a   :  { %9296 = vmatpush1.bf16.msra.mxu0 %v10883_v1  ;;  %v7839_v38 = vld [vmem:[#allocation6 + $0x360] sm:$0xff] }
 0x43b   :  { %9297 = vmatprep.subr.bf16.mxu0 %v10876_v39  ;;  %v7963_v1 = vld [vmem:[#allocation6 + $0x740] sm:$0xff]  ;;  %v10971_v39 = vcombine.low %v7843_v23, %v7847_v6  ;;  %v10964_v5 = vcombine.high %v7835_v35, %v7839_v38 }
 0x43c   :  { %9339 = vmatpush1.bf16.msra.mxu1 %v11011_v24  ;;  %v7967_v24 = vld [vmem:[#allocation6 + $0x760] sm:$0xff] }
 0x43d   :  { %9340 = vmatprep.subr.bf16.mxu1 %v11004_v41  ;;  %v11099_v41 = vcombine.low %v7971_v44, %v7975_v57  ;;  %v11092_v62 = vcombine.high %v7963_v1, %v7967_v24  ;;  %v7827_v42 = vld [vmem:[#allocation6 + $0x300] sm:$0xff] }
 0x43e   :  { %9298 = vmatpush1.bf16.msra.mxu0 %v10875_v49  ;;  %v7831_v58 = vld [vmem:[#allocation6 + $0x320] sm:$0xff] }
 0x43f   :  { %9299 = vmatprep.subr.bf16.mxu0 %v10868_v14  ;;  %v7955_v49 = vld [vmem:[#allocation6 + $0x700] sm:$0xff]  ;;  %v10963_v14 = vcombine.low %v7835_v35, %v7839_v38  ;;  %v10956_v9 = vcombine.high %v7827_v42, %v7831_v58 }
 0x440   :  { %9341 = vmatpush1.bf16.msra.mxu1 %v11003_v47  ;;  %v7959_v47 = vld [vmem:[#allocation6 + $0x720] sm:$0xff] }
 0x441   :  { %9342 = vmatprep.subr.bf16.mxu1 %v10996_v54  ;;  %v11091_v54 = vcombine.low %v7963_v1, %v7967_v24  ;;  %v11084_v13 = vcombine.high %v7955_v49, %v7959_v47  ;;  %v7819_v61 = vld [vmem:[#allocation6 + $0x2c0] sm:$0xff]  ;;  %v13182_v1 = vpop.f32.mrf.mxu1 }
 0x442   :  { %9300 = vmatpush1.bf16.msra.mxu0 %v10867_v3  ;;  %v7823_v52 = vld [vmem:[#allocation6 + $0x2e0] sm:$0xff] }
 0x443   :  { %9301 = vmatprep.subr.bf16.mxu0 %v10860_v22  ;;  %v7947_v3 = vld [vmem:[#allocation6 + $0x6c0] sm:$0xff]  ;;  %v10955_v22 = vcombine.low %v7827_v42, %v7831_v58  ;;  %v10948_v34 = vcombine.high %v7819_v61, %v7823_v52 }
 0x444   :  { %9343 = vmatpush1.bf16.msra.mxu1 %v10995_v16  ;;  %v7951_v16 = vld [vmem:[#allocation6 + $0x6e0] sm:$0xff] }
 0x445   :  { %9344 = vmatprep.subr.bf16.mxu1 %v10988_v8  ;;  %v11083_v8 = vcombine.low %v7955_v49, %v7959_v47  ;;  %v11076_v45 = vcombine.high %v7947_v3, %v7951_v16  ;;  %v7811_v29 = vld [vmem:[#allocation6 + $0x280] sm:$0xff] }
 0x446   :  { %9302 = vmatpush1.bf16.msra.mxu0 %v10859_v18  ;;  %v7815_v17 = vld [vmem:[#allocation6 + $0x2a0] sm:$0xff] }
 0x447   :  { %9303 = vmatprep.subr.bf16.mxu0 %v10980_v7  ;;  %v7939_v18 = vld [vmem:[#allocation6 + $0x680] sm:$0xff]  ;;  %v10947_v7 = vcombine.low %v7819_v61, %v7823_v52  ;;  %v10940_v23 = vcombine.high %v7811_v29, %v7815_v17  ;;  %v7916_v61 = vld [vmem:[#allocation6 + $0x5c8] sm:$0xff] }
 0x448   :  { %9345 = vmatpush1.bf16.msra.mxu1 %v10987_v15  ;;  %v7943_v15 = vld [vmem:[#allocation6 + $0x6a0] sm:$0xff]  ;;  %v7920_v52 = vld [vmem:[#allocation6 + $0x5e8] sm:$0xff] }
 0x449   :  { %9346 = vmatprep.subr.bf16.mxu1 %v11108_v20  ;;  %v11075_v20 = vcombine.low %v7947_v3, %v7951_v16  ;;  %v11068_v6 = vcombine.high %v7939_v18, %v7943_v15  ;;  %v7803_v44 = vld [vmem:[#allocation6 + $0x240] sm:$0xff]  ;;  %v11067_v35 = vcombine.low %v7939_v18, %v7943_v15  ;;  %v7908_v15 = vld [vmem:[#allocation6 + $0x588] sm:$0xff] }
 0x44a   :  { %9304 = vmatpush2.bf16.msra.mxu0 %v10979_v27  ;;  %v7807_v57 = vld [vmem:[#allocation6 + $0x260] sm:$0xff] }
 0x44b   :  { %9305 = vmatprep.subr.bf16.mxu0 %v10972_v32  ;;  %v7931_v27 = vld [vmem:[#allocation6 + $0x640] sm:$0xff]  ;;  %v10939_v32 = vcombine.low %v7811_v29, %v7815_v17  ;;  %v10932_v38 = vcombine.high %v7803_v44, %v7807_v57  ;;  %v10931_v42 = vcombine.low %v7803_v44, %v7807_v57  ;;  %v7780_v29 = vld [vmem:[#allocation6 + $0x188] sm:$0xff]  ;;  %v11045_v44 = vcombine.low %v7916_v61, %v7920_v52 }
 0x44c   :  { %9347 = vmatpush2.bf16.msra.mxu1 %v11107_v31  ;;  %v7935_v31 = vld [vmem:[#allocation6 + $0x660] sm:$0xff]  ;;  %v7784_v17 = vld [vmem:[#allocation6 + $0x1a8] sm:$0xff] }
 0x44d   :  { %9348 = vmatprep.subr.bf16.mxu1 %v11100_v43  ;;  %v13180_v43 = vpop.f32.mrf.mxu0  ;;  %v11060_v24 = vcombine.high %v7931_v27, %v7935_v31  ;;  %v11059_v49 = vcombine.low %v7931_v27, %v7935_v31  ;;  %v13195_v18 = vld [vmem:[%s13347_s4] ss:$16 sps:$4 sm:$0xff]   ;;  %v10910_v57 = vcombine.high %v7780_v29, %v7784_v17 }
 0x44e   :  { %9306 = vmatpush2.bf16.msra.mxu0 %v10971_v39  ;;  %v7795_v39 = vld [vmem:[#allocation6 + $0x200] sm:$0xff] }
 0x44f   :  { %9307 = vmatprep.subr.bf16.mxu0 %v10964_v5  ;;  %v7923_v5 = vld [vmem:[#allocation6 + $0x600] sm:$0xff]  ;;  %v13184_v58 = vpop.f32.mrf.mxu0 }
 0x450   :  { %9349 = vmatpush2.bf16.msra.mxu1 %v11099_v41  ;;  %v7799_v41 = vld [vmem:[#allocation6 + $0x220] sm:$0xff] }
 0x451   :  { %9350 = vmatprep.subr.bf16.mxu1 %v11092_v62  ;;  %v7927_v62 = vld [vmem:[#allocation6 + $0x620] sm:$0xff]  ;;  %v10924_v47 = vcombine.high %v7795_v39, %v7799_v41  ;;  %v10923_v3 = vcombine.low %v7795_v39, %v7799_v41  ;;  %v13188_v16 = vpop.f32.mrf.mxu0  ;;  %v7904_v39 = vld [vmem:[#allocation6 + $0x568] sm:$0xff] }
 0x452   :  { %9308 = vmatpush2.bf16.msra.mxu0 %v10963_v14  ;;  %v13186_v14 = vpop.f32.mrf.mxu1 }
 0x453   :  { %9309 = vmatprep.subr.bf16.mxu0 %v10956_v9  ;;  %v7788_v9 = vld [vmem:[#allocation6 + $0x1c8] sm:$0xff] }
 0x454   :  { %9351 = vmatpush2.bf16.msra.mxu1 %v11091_v54  ;;  %v11052_v54 = vcombine.high %v7923_v5, %v7927_v62 }
 0x455   :  { %9352 = vmatprep.subr.bf16.mxu1 %v11084_v13  ;;  %v7792_v13 = vld [vmem:[#allocation6 + $0x1e8] sm:$0xff] }
 0x456   :  { %9310 = vmatpush2.bf16.msra.mxu0 %v10955_v22  ;;  %v11051_v22 = vcombine.low %v7923_v5, %v7927_v62  ;;  %v10909_v5 = vcombine.low %v7780_v29, %v7784_v17 }
 0x457   :  { %9311 = vmatprep.subr.bf16.mxu0 %v10948_v34  ;;  %v13190_v34 = vpop.f32.mrf.mxu1 }
 0x458   :  { %9353 = vmatpush2.bf16.msra.mxu1 %v11083_v8  ;;  %v10918_v8 = vcombine.high %v7788_v9, %v7792_v13 }
 0x459   :  { %9354 = vmatprep.subr.bf16.mxu1 %v11076_v45  ;;  %v11046_v45 = vcombine.high %v7916_v61, %v7920_v52  ;;  %v13204_v27 = vpop.f32.mrf.mxu1  ;;  %v7768_v61 = vld [vmem:[#allocation6 + $0x128] sm:$0xff] }
 0x45a   :  { %9312 = vmatpush2.bf16.msra.mxu0 %v10947_v7  ;;  %v7912_v7 = vld [vmem:[#allocation6 + $0x5a8] sm:$0xff] }
 0x45b   :  { %9313 = vmatprep.subr.bf16.mxu0 %v10940_v23  ;;  %v10917_v23 = vcombine.low %v7788_v9, %v7792_v13  ;;  %v11038_v31 = vcombine.high %v7908_v15, %v7912_v7  ;;  %v7764_v13 = vld [vmem:[#allocation6 + $0x108] sm:$0xff] }
 0x45c   :  { %9355 = vmatpush2.bf16.msra.mxu1 %v11075_v20  ;;  %v13200_v20 = vld [vmem:[%s13347_s4 + $0x8] ss:$16 sps:$4 sm:$0xff]  }
 0x45d   :  { %9356 = vmatprep.subr.bf16.mxu1 %v11068_v6  ;;  %v13202_v6 = vpop.f32.mrf.mxu0 }
 0x45e   :  { %9314 = vmatpush2.bf16.msra.mxu0 %v10939_v32  ;;  %v7772_v32 = vld [vmem:[#allocation6 + $0x148] sm:$0xff] }
 0x45f   :  { %9315 = vmatprep.subr.bf16.mxu0 %v10932_v38 }
 0x460   :  { %9357 = vmatpush2.bf16.msra.mxu1 %v11067_v35  ;;  %v7776_v35 = vld [vmem:[#allocation6 + $0x168] sm:$0xff] }
 0x461   :  { %9358 = vmatprep.subr.bf16.mxu1 %v11060_v24  ;;  %v7900_v24 = vld [vmem:[#allocation6 + $0x548] sm:$0xff]  ;;  %v10901_v17 = vcombine.low %v7772_v32, %v7776_v35 }
 0x462   :  { %9316 = vmatpush2.bf16.msra.mxu0 %v10931_v42  ;;  %v11030_v9 = vcombine.high %v7900_v24, %v7904_v39 }
 0x463   :  { %9317 = vmatprep.subr.bf16.mxu0 %v10924_v47  ;;  %v10902_v47 = vcombine.high %v7772_v32, %v7776_v35  ;;  %v7888_v32 = vld [vmem:[#allocation6 + $0x4e8] sm:$0xff]  ;;  %v10893_v35 = vcombine.low %v7764_v13, %v7768_v61 }
 0x464   :  { %9359 = vmatpush2.bf16.msra.mxu1 %v11059_v49  ;;  %v11037_v49 = vcombine.low %v7908_v15, %v7912_v7  ;;  %v11029_v15 = vcombine.low %v7900_v24, %v7904_v39 }
 0x465   :  { %9360 = vmatprep.subr.bf16.mxu1 %v11052_v54 }
 0x466   :  { %9318 = vmatpush2.bf16.msra.mxu0 %v10923_v3 }
 0x467   :  { %9373 = vmatprep.subr.bf16.mxu0 %v10918_v8  ;;  %v7892_v8 = vld [vmem:[#allocation6 + $0x508] sm:$0xff] }
 0x468   :  { %9361 = vmatpush2.bf16.msra.mxu1 %v11051_v22 }
 0x469   :  { %9416 = vmatprep.subr.bf16.mxu1 %v11046_v45  ;;  %v7487_v38 = vpop.f32.mrf.mxu0  ;;  %9320 = vmatmul.mubr.bf16.vlgmr.msra.gmra.mxu0 %v13195_v18  ;;  %v7896_v45 = vld [vmem:[#allocation6 + $0x528] sm:$0xff] }
 0x46a   :  { %9374 = vmatpush1.bf16.msra.mxu0 %v10917_v23  ;;  %9405 = vmatprep.mubr.bf16.mxu0 %v13165_v21  ;;  %v11021_v24 = vcombine.low %v7892_v8, %v7896_v45 }
 0x46b   :  { %v7530_v41 = vpop.f32.mrf.mxu1  ;;  %9363 = vmatmul.mubr.bf16.vlgmr.msra.gmra.mxu1 %v13200_v20  ;;  %v7489_v42 = vpop.f32.mrf.mxu0  ;;  %9375 = vmatprep.subr.bf16.mxu0 %v10910_v57  ;;  %v10894_v57 = vcombine.high %v7764_v13, %v7768_v61  ;;  %v7744_v61 = vld [vmem:[#allocation6 + $0x68] sm:$0xff] }
 0x46c   :  { %v7531_v62 = vadd.f32 %v7530_v41, %v7487_v38  ;;  %9417 = vmatpush1.bf16.msra.mxu1 %v11045_v44  ;;  %9448 = vmatprep.mubr.bf16.mxu1 %v13173_v28  ;;  %v7756_v38 = vld [vmem:[#allocation6 + $0xc8] sm:$0xff] }
 0x46d   :  { %v7532_v54 = vpop.f32.mrf.mxu1  ;;  %9418 = vmatprep.subr.bf16.mxu1 %v11038_v31  ;;  %v7491_v22 = vpop.f32.mrf.mxu0  ;;  %v11022_v31 = vcombine.high %v7892_v8, %v7896_v45  ;;  %v7760_v41 = vld [vmem:[#allocation6 + $0xe8] sm:$0xff] }
 0x46e   :  { %v13210_v52 = vadd.f32 %v7531_v62, %v13114_v63  ;;  %v7533_v3 = vadd.f32 %v7532_v54, %v7489_v42  ;;  %9376 = vmatpush1.bf16.msra.mxu0 %v10909_v5  ;;  %v7884_v5 = vld [vmem:[#allocation6 + $0x4c8] sm:$0xff]  ;;  %v10886_v39 = vcombine.high %v7756_v38, %v7760_v41 }
 0x46f   :  { %v7534_v29 = vpop.f32.mrf.mxu1  ;;  %v7493_v44 = vpop.f32.mrf.mxu0  ;;  %9377 = vmatprep.subr.bf16.mxu0 %v10902_v47  ;;  %v7748_v47 = vld [vmem:[#allocation6 + $0x88] sm:$0xff] }
 0x470   :  { %v13214_v7 = vadd.f32 %v7533_v3, %v13118_v10  ;;  %v7535_v23 = vadd.f32 %v7534_v29, %v7491_v22  ;;  %9419 = vmatpush1.bf16.msra.mxu1 %v11037_v49  ;;  %v11014_v49 = vcombine.high %v7884_v5, %v7888_v32  ;;  %v7752_v54 = vld [vmem:[#allocation6 + $0xa8] sm:$0xff]  ;;  %v11013_v22 = vcombine.low %v7884_v5, %v7888_v32 }
 0x471   :  { %v7536_v63 = vpop.f32.mrf.mxu1  ;;  %9420 = vmatprep.subr.bf16.mxu1 %v11030_v9  ;;  %v7876_v9 = vld [vmem:[#allocation6 + $0x488] sm:$0xff]  ;;  %v10878_v29 = vcombine.high %v7748_v47, %v7752_v54  ;;  %v10877_v8 = vcombine.low %v7748_v47, %v7752_v54 }
 0x472   :  { %v13217_v62 = vadd.f32 %v7535_v23, %v13121_v25  ;;  %v7537_v42 = vadd.f32 %v7536_v63, %v7493_v44  ;;  %9378 = vmatpush1.bf16.msra.mxu0 %v10901_v17  ;;  %v7880_v3 = vld [vmem:[#allocation6 + $0x4a8] sm:$0xff]  ;;  %v10885_v25 = vcombine.low %v7756_v38, %v7760_v41 }
 0x473   :  { %9379 = vmatprep.subr.bf16.mxu0 %v10894_v57  ;;  %v11006_v13 = vcombine.high %v7876_v9, %v7880_v3  ;;  %v7868_v17 = vld [vmem:[#allocation6 + $0x448] sm:$0xff]  ;;  %v11005_v45 = vcombine.low %v7876_v9, %v7880_v3 }
 0x474   :  { %v13220_v10 = vadd.f32 %v7537_v42, %v13124_v59  ;;  %9421 = vmatpush1.bf16.msra.mxu1 %v11029_v15  ;;  %v7740_v59 = vld [vmem:[#allocation6 + $0x48] sm:$0xff] }
 0x475   :  { %9422 = vmatprep.subr.bf16.mxu1 %v11022_v31  ;;  %v7872_v15 = vld [vmem:[#allocation6 + $0x468] sm:$0xff]  ;;  %v10870_v23 = vcombine.high %v7740_v59, %v7744_v61  ;;  %v10869_v41 = vcombine.low %v7740_v59, %v7744_v61 }
 0x476   :  { %9380 = vmatpush1.bf16.msra.mxu0 %v10893_v35  ;;  %v10998_v44 = vcombine.high %v7868_v17, %v7872_v15  ;;  %v7732_v57 = vld [vmem:[#allocation6 + $0x8] sm:$0xff]  ;;  %v10997_v42 = vcombine.low %v7868_v17, %v7872_v15 }
 0x477   :  { %9381 = vmatprep.subr.bf16.mxu0 %v10886_v39  ;;  %v7736_v63 = vld [vmem:[#allocation6 + $0x28] sm:$0xff] }
 0x478   :  { %9423 = vmatpush1.bf16.msra.mxu1 %v11021_v24  ;;  %v7860_v31 = vld [vmem:[#allocation6 + $0x408] sm:$0xff]  ;;  %v10862_v5 = vcombine.high %v7732_v57, %v7736_v63  ;;  %v10861_v47 = vcombine.low %v7732_v57, %v7736_v63 }
 0x479   :  { %9424 = vmatprep.subr.bf16.mxu1 %v11014_v49  ;;  %v7864_v38 = vld [vmem:[#allocation6 + $0x428] sm:$0xff] }
 0x47a   :  { %9382 = vmatpush1.bf16.msra.mxu0 %v10885_v25  ;;  %v10990_v32 = vcombine.high %v7860_v31, %v7864_v38  ;;  %v7852_v35 = vld [vmem:[#allocation6 + $0x3c8] sm:$0xff]  ;;  %v10989_v54 = vcombine.low %v7860_v31, %v7864_v38 }
 0x47b   :  { %9383 = vmatprep.subr.bf16.mxu0 %v10878_v29  ;;  %v7856_v24 = vld [vmem:[#allocation6 + $0x3e8] sm:$0xff] }
 0x47c   :  { %9425 = vmatpush1.bf16.msra.mxu1 %v11013_v22  ;;  %v7980_v39 = vld [vmem:[#allocation6 + $0x7c8] sm:$0xff]  ;;  %v10982_v9 = vcombine.high %v7852_v35, %v7856_v24  ;;  %v10981_v59 = vcombine.low %v7852_v35, %v7856_v24 }
 0x47d   :  { %9426 = vmatprep.subr.bf16.mxu1 %v11006_v13  ;;  %v7984_v49 = vld [vmem:[#allocation6 + $0x7e8] sm:$0xff] }
 0x47e   :  { %9384 = vmatpush1.bf16.msra.mxu0 %v10877_v8  ;;  %v11110_v3 = vcombine.high %v7980_v39, %v7984_v49  ;;  %v7844_v25 = vld [vmem:[#allocation6 + $0x388] sm:$0xff]  ;;  %v11109_v61 = vcombine.low %v7980_v39, %v7984_v49 }
 0x47f   :  { %9385 = vmatprep.subr.bf16.mxu0 %v10870_v23  ;;  %v7848_v22 = vld [vmem:[#allocation6 + $0x3a8] sm:$0xff] }
 0x480   :  { %9427 = vmatpush1.bf16.msra.mxu1 %v11005_v45  ;;  %v7972_v29 = vld [vmem:[#allocation6 + $0x788] sm:$0xff]  ;;  %v10974_v17 = vcombine.high %v7844_v25, %v7848_v22  ;;  %v10973_v57 = vcombine.low %v7844_v25, %v7848_v22 }
 0x481   :  { %9428 = vmatprep.subr.bf16.mxu1 %v10998_v44  ;;  %v7976_v13 = vld [vmem:[#allocation6 + $0x7a8] sm:$0xff] }
 0x482   :  { %9386 = vmatpush1.bf16.msra.mxu0 %v10869_v41  ;;  %v11102_v15 = vcombine.high %v7972_v29, %v7976_v13  ;;  %v7836_v8 = vld [vmem:[#allocation6 + $0x348] sm:$0xff]  ;;  %v11101_v63 = vcombine.low %v7972_v29, %v7976_v13 }
 0x483   :  { %9387 = vmatprep.subr.bf16.mxu0 %v10862_v5  ;;  %v7840_v45 = vld [vmem:[#allocation6 + $0x368] sm:$0xff] }
 0x484   :  { %9429 = vmatpush1.bf16.msra.mxu1 %v10997_v42  ;;  %v7964_v23 = vld [vmem:[#allocation6 + $0x748] sm:$0xff]  ;;  %v10966_v31 = vcombine.high %v7836_v8, %v7840_v45  ;;  %v10965_v35 = vcombine.low %v7836_v8, %v7840_v45 }
 0x485   :  { %9430 = vmatprep.subr.bf16.mxu1 %v10990_v32  ;;  %v7968_v44 = vld [vmem:[#allocation6 + $0x768] sm:$0xff] }
 0x486   :  { %9388 = vmatpush1.bf16.msra.mxu0 %v10861_v47  ;;  %v11094_v38 = vcombine.high %v7964_v23, %v7968_v44  ;;  %v7828_v41 = vld [vmem:[#allocation6 + $0x308] sm:$0xff]  ;;  %v11093_v24 = vcombine.low %v7964_v23, %v7968_v44 }
 0x487   :  { %9389 = vmatprep.subr.bf16.mxu0 %v10982_v9  ;;  %v7832_v42 = vld [vmem:[#allocation6 + $0x328] sm:$0xff] }
 0x488   :  { %9431 = vmatpush1.bf16.msra.mxu1 %v10989_v54  ;;  %v7956_v5 = vld [vmem:[#allocation6 + $0x708] sm:$0xff]  ;;  %v10958_v39 = vcombine.high %v7828_v41, %v7832_v42  ;;  %v10957_v25 = vcombine.low %v7828_v41, %v7832_v42 }
 0x489   :  { %9432 = vmatprep.subr.bf16.mxu1 %v11110_v3  ;;  %v7960_v32 = vld [vmem:[#allocation6 + $0x728] sm:$0xff] }
 0x48a   :  { %9390 = vmatpush2.bf16.msra.mxu0 %v10981_v59  ;;  %v11086_v49 = vcombine.high %v7956_v5, %v7960_v32  ;;  %v7820_v47 = vld [vmem:[#allocation6 + $0x2c8] sm:$0xff]  ;;  %v11085_v22 = vcombine.low %v7956_v5, %v7960_v32 }
 0x48b   :  { %9391 = vmatprep.subr.bf16.mxu0 %v10974_v17  ;;  %v7824_v54 = vld [vmem:[#allocation6 + $0x2e8] sm:$0xff] }
 0x48c   :  { %9433 = vmatpush2.bf16.msra.mxu1 %v11109_v61  ;;  %v7948_v9 = vld [vmem:[#allocation6 + $0x6c8] sm:$0xff]  ;;  %v10950_v29 = vcombine.high %v7820_v47, %v7824_v54  ;;  %v10949_v8 = vcombine.low %v7820_v47, %v7824_v54 }
 0x48d   :  { %9434 = vmatprep.subr.bf16.mxu1 %v11102_v15  ;;  %v7952_v3 = vld [vmem:[#allocation6 + $0x6e8] sm:$0xff] }
 0x48e   :  { %9392 = vmatpush2.bf16.msra.mxu0 %v10973_v57  ;;  %v11078_v13 = vcombine.high %v7948_v9, %v7952_v3  ;;  %v7812_v59 = vld [vmem:[#allocation6 + $0x288] sm:$0xff]  ;;  %v11077_v45 = vcombine.low %v7948_v9, %v7952_v3 }
 0x48f   :  { %9393 = vmatprep.subr.bf16.mxu0 %v10966_v31  ;;  %v7816_v61 = vld [vmem:[#allocation6 + $0x2a8] sm:$0xff] }
 0x490   :  { %9435 = vmatpush2.bf16.msra.mxu1 %v11101_v63  ;;  %v7940_v17 = vld [vmem:[#allocation6 + $0x688] sm:$0xff]  ;;  %v10942_v23 = vcombine.high %v7812_v59, %v7816_v61  ;;  %v10941_v41 = vcombine.low %v7812_v59, %v7816_v61 }
 0x491   :  { %9436 = vmatprep.subr.bf16.mxu1 %v11094_v38  ;;  %v7944_v15 = vld [vmem:[#allocation6 + $0x6a8] sm:$0xff] }
 0x492   :  { %9394 = vmatpush2.bf16.msra.mxu0 %v10965_v35  ;;  %v11070_v44 = vcombine.high %v7940_v17, %v7944_v15  ;;  %v7804_v57 = vld [vmem:[#allocation6 + $0x248] sm:$0xff]  ;;  %v11069_v42 = vcombine.low %v7940_v17, %v7944_v15 }
 0x493   :  { %9395 = vmatprep.subr.bf16.mxu0 %v10958_v39  ;;  %v7808_v63 = vld [vmem:[#allocation6 + $0x268] sm:$0xff] }
 0x494   :  { %9437 = vmatpush2.bf16.msra.mxu1 %v11093_v24  ;;  %v7932_v31 = vld [vmem:[#allocation6 + $0x648] sm:$0xff]  ;;  %v10934_v5 = vcombine.high %v7804_v57, %v7808_v63  ;;  %v10933_v47 = vcombine.low %v7804_v57, %v7808_v63 }
 0x495   :  { %9438 = vmatprep.subr.bf16.mxu1 %v11086_v49  ;;  %v7936_v38 = vld [vmem:[#allocation6 + $0x668] sm:$0xff] }
 0x496   :  { %9396 = vmatpush2.bf16.msra.mxu0 %v10957_v25  ;;  %v11062_v32 = vcombine.high %v7932_v31, %v7936_v38  ;;  %v7796_v35 = vld [vmem:[#allocation6 + $0x208] sm:$0xff]  ;;  %v11061_v54 = vcombine.low %v7932_v31, %v7936_v38  ;;  %v7789_v25 = vld [vmem:[#allocation6 + $0x1d0] sm:$0xff] }
 0x497   :  { %9397 = vmatprep.subr.bf16.mxu0 %v10950_v29  ;;  %v7800_v24 = vld [vmem:[#allocation6 + $0x228] sm:$0xff]  ;;  %v7917_v29 = vld [vmem:[#allocation6 + $0x5d0] sm:$0xff] }
 0x498   :  { %9439 = vmatpush2.bf16.msra.mxu1 %v11085_v22  ;;  %v7924_v39 = vld [vmem:[#allocation6 + $0x608] sm:$0xff]  ;;  %v10926_v9 = vcombine.high %v7796_v35, %v7800_v24  ;;  %v7793_v22 = vld [vmem:[#allocation6 + $0x1f0] sm:$0xff]  ;;  %v10925_v59 = vcombine.low %v7796_v35, %v7800_v24 }
 0x499   :  { %9440 = vmatprep.subr.bf16.mxu1 %v11078_v13  ;;  %v7928_v49 = vld [vmem:[#allocation6 + $0x628] sm:$0xff]  ;;  %v7921_v13 = vld [vmem:[#allocation6 + $0x5f0] sm:$0xff]  ;;  %v10920_v17 = vcombine.high %v7789_v25, %v7793_v22  ;;  %v10919_v57 = vcombine.low %v7789_v25, %v7793_v22 }
 0x49a   :  { %9398 = vmatpush2.bf16.msra.mxu0 %v10949_v8  ;;  %v11054_v3 = vcombine.high %v7924_v39, %v7928_v49  ;;  %v11053_v61 = vcombine.low %v7924_v39, %v7928_v49  ;;  %v11048_v15 = vcombine.high %v7917_v29, %v7921_v13  ;;  %v7781_v8 = vld [vmem:[#allocation6 + $0x190] sm:$0xff]  ;;  %v11047_v63 = vcombine.low %v7917_v29, %v7921_v13 }
 0x49b   :  { %9399 = vmatprep.subr.bf16.mxu0 %v10942_v23  ;;  %v7909_v23 = vld [vmem:[#allocation6 + $0x590] sm:$0xff] }
 0x49c   :  { %9441 = vmatpush2.bf16.msra.mxu1 %v11077_v45  ;;  %v7785_v45 = vld [vmem:[#allocation6 + $0x1b0] sm:$0xff] }
 0x49d   :  { %9442 = vmatprep.subr.bf16.mxu1 %v11070_v44  ;;  %v7913_v44 = vld [vmem:[#allocation6 + $0x5b0] sm:$0xff]  ;;  %v10912_v31 = vcombine.high %v7781_v8, %v7785_v45  ;;  %v10911_v39 = vcombine.low %v7781_v8, %v7785_v45 }
 0x49e   :  { %9400 = vmatpush2.bf16.msra.mxu0 %v10941_v41  ;;  %v11040_v38 = vcombine.high %v7909_v23, %v7913_v44  ;;  %v7773_v41 = vld [vmem:[#allocation6 + $0x150] sm:$0xff] }
 0x49f   :  { %9401 = vmatprep.subr.bf16.mxu0 %v10934_v5  ;;  %v7905_v35 = vld [vmem:[#allocation6 + $0x570] sm:$0xff] }
 0x4a0   :  { %9443 = vmatpush2.bf16.msra.mxu1 %v11069_v42  ;;  %v7777_v42 = vld [vmem:[#allocation6 + $0x170] sm:$0xff] }
 0x4a1   :  { %9444 = vmatprep.subr.bf16.mxu1 %v11062_v32  ;;  %v7901_v32 = vld [vmem:[#allocation6 + $0x550] sm:$0xff]  ;;  %v10903_v45 = vcombine.low %v7773_v41, %v7777_v42 }
 0x4a2   :  { %9402 = vmatpush2.bf16.msra.mxu0 %v10933_v47  ;;  %v11032_v25 = vcombine.high %v7901_v32, %v7905_v35  ;;  %v7765_v22 = vld [vmem:[#allocation6 + $0x110] sm:$0xff] }
 0x4a3   :  { %9403 = vmatprep.subr.bf16.mxu0 %v10926_v9  ;;  %v10904_v9 = vcombine.high %v7773_v41, %v7777_v42  ;;  %v7769_v29 = vld [vmem:[#allocation6 + $0x130] sm:$0xff] }
 0x4a4   :  { %9445 = vmatpush2.bf16.msra.mxu1 %v11061_v54  ;;  %v11039_v54 = vcombine.low %v7909_v23, %v7913_v44  ;;  %v11031_v23 = vcombine.low %v7901_v32, %v7905_v35  ;;  %v7889_v41 = vld [vmem:[#allocation6 + $0x4f0] sm:$0xff]  ;;  %v10895_v42 = vcombine.low %v7765_v22, %v7769_v29 }
 0x4a5   :  { %9446 = vmatprep.subr.bf16.mxu1 %v11054_v3 }
 0x4a6   :  { %9404 = vmatpush2.bf16.msra.mxu0 %v10925_v59 }
 0x4a7   :  { %9459 = vmatprep.subr.bf16.mxu0 %v10920_v17  ;;  %v7893_v17 = vld [vmem:[#allocation6 + $0x510] sm:$0xff] }
 0x4a8   :  { %9447 = vmatpush2.bf16.msra.mxu1 %v11053_v61 }
 0x4a9   :  { %9502 = vmatprep.subr.bf16.mxu1 %v11048_v15  ;;  %v7573_v5 = vpop.f32.mrf.mxu0  ;;  %9406 = vmatmul.mubr.bf16.vlgmr.msra.gmra.mxu0 %v13195_v18  ;;  %v7897_v15 = vld [vmem:[#allocation6 + $0x530] sm:$0xff] }
 0x4aa   :  { %9460 = vmatpush1.bf16.msra.mxu0 %v10919_v57  ;;  %9491 = vmatprep.mubr.bf16.mxu0 %v13165_v21  ;;  %v10896_v21 = vcombine.high %v7765_v22, %v7769_v29  ;;  %v11023_v32 = vcombine.low %v7893_v17, %v7897_v15  ;;  %v7745_v29 = vld [vmem:[#allocation6 + $0x70] sm:$0xff] }
 0x4ab   :  { %v7616_v24 = vpop.f32.mrf.mxu1  ;;  %9449 = vmatmul.mubr.bf16.vlgmr.msra.gmra.mxu1 %v13200_v20  ;;  %v7575_v47 = vpop.f32.mrf.mxu0  ;;  %9461 = vmatprep.subr.bf16.mxu0 %v10912_v31  ;;  %v11024_v31 = vcombine.high %v7893_v17, %v7897_v15 }
 0x4ac   :  { %v7617_v49 = vadd.f32 %v7616_v24, %v7573_v5  ;;  %9503 = vmatpush1.bf16.msra.mxu1 %v11047_v63  ;;  %9534 = vmatprep.mubr.bf16.mxu1 %v13173_v28  ;;  %v7761_v5 = vld [vmem:[#allocation6 + $0xf0] sm:$0xff] }
 0x4ad   :  { %v7618_v3 = vpop.f32.mrf.mxu1  ;;  %9504 = vmatprep.subr.bf16.mxu1 %v11040_v38  ;;  %v7577_v61 = vpop.f32.mrf.mxu0  ;;  %v7757_v38 = vld [vmem:[#allocation6 + $0xd0] sm:$0xff] }
 0x4ae   :  { %v13226_v13 = vadd.f32 %v7617_v49, %v13130_v60  ;;  %v7619_v59 = vadd.f32 %v7618_v3, %v7575_v47  ;;  %9462 = vmatpush1.bf16.msra.mxu0 %v10911_v39  ;;  %v7885_v39 = vld [vmem:[#allocation6 + $0x4d0] sm:$0xff]  ;;  %v10888_v35 = vcombine.high %v7757_v38, %v7761_v5 }
 0x4af   :  { %v7620_v8 = vpop.f32.mrf.mxu1  ;;  %v7579_v63 = vpop.f32.mrf.mxu0  ;;  %9463 = vmatprep.subr.bf16.mxu0 %v10904_v9  ;;  %v11016_v49 = vcombine.high %v7885_v39, %v7889_v41  ;;  %v7749_v47 = vld [vmem:[#allocation6 + $0x90] sm:$0xff] }
 0x4b0   :  { %v13230_v44 = vadd.f32 %v7619_v59, %v13134_v40  ;;  %v7621_v57 = vadd.f32 %v7620_v8, %v7577_v61  ;;  %9505 = vmatpush1.bf16.msra.mxu1 %v11039_v54  ;;  %v7753_v54 = vld [vmem:[#allocation6 + $0xb0] sm:$0xff] }
 0x4b1   :  { %v7622_v60 = vpop.f32.mrf.mxu1  ;;  %9506 = vmatprep.subr.bf16.mxu1 %v11032_v25  ;;  %v7877_v9 = vld [vmem:[#allocation6 + $0x490] sm:$0xff]  ;;  %v11015_v25 = vcombine.low %v7885_v39, %v7889_v41  ;;  %v10880_v59 = vcombine.high %v7749_v47, %v7753_v54  ;;  %v10879_v17 = vcombine.low %v7749_v47, %v7753_v54 }
 0x4b2   :  { %v13233_v24 = vadd.f32 %v7621_v57, %v13137_v53  ;;  %v7623_v28 = vadd.f32 %v7622_v60, %v7579_v63  ;;  %9464 = vmatpush1.bf16.msra.mxu0 %v10903_v45  ;;  %v7881_v3 = vld [vmem:[#allocation6 + $0x4b0] sm:$0xff]  ;;  %v10887_v53 = vcombine.low %v7757_v38, %v7761_v5 }
 0x4b3   :  { %9465 = vmatprep.subr.bf16.mxu0 %v10896_v21  ;;  %v11008_v22 = vcombine.high %v7877_v9, %v7881_v3  ;;  %v7869_v61 = vld [vmem:[#allocation6 + $0x450] sm:$0xff]  ;;  %v11007_v15 = vcombine.low %v7877_v9, %v7881_v3 }
 0x4b4   :  { %v13236_v40 = vadd.f32 %v7623_v28, %v13140_v36  ;;  %9507 = vmatpush1.bf16.msra.mxu1 %v11031_v23  ;;  %v7741_v36 = vld [vmem:[#allocation6 + $0x50] sm:$0xff] }
 0x4b5   :  { %9508 = vmatprep.subr.bf16.mxu1 %v11024_v31  ;;  %v7873_v8 = vld [vmem:[#allocation6 + $0x470] sm:$0xff]  ;;  %v10872_v45 = vcombine.high %v7741_v36, %v7745_v29  ;;  %v10871_v31 = vcombine.low %v7741_v36, %v7745_v29 }
 0x4b6   :  { %9466 = vmatpush1.bf16.msra.mxu0 %v10895_v42  ;;  %v11000_v23 = vcombine.high %v7869_v61, %v7873_v8  ;;  %v7733_v57 = vld [vmem:[#allocation6 + $0x10] sm:$0xff]  ;;  %v10999_v38 = vcombine.low %v7869_v61, %v7873_v8 }
 0x4b7   :  { %9467 = vmatprep.subr.bf16.mxu0 %v10888_v35  ;;  %v7737_v63 = vld [vmem:[#allocation6 + $0x30] sm:$0xff] }
 0x4b8   :  { %9509 = vmatpush1.bf16.msra.mxu1 %v11023_v32  ;;  %v7861_v21 = vld [vmem:[#allocation6 + $0x410] sm:$0xff]  ;;  %v10864_v5 = vcombine.high %v7733_v57, %v7737_v63  ;;  %v10863_v35 = vcombine.low %v7733_v57, %v7737_v63 }
 0x4b9   :  { %9510 = vmatprep.subr.bf16.mxu1 %v11016_v49  ;;  %v7865_v60 = vld [vmem:[#allocation6 + $0x430] sm:$0xff] }
 0x4ba   :  { %9468 = vmatpush1.bf16.msra.mxu0 %v10887_v53  ;;  %v10992_v28 = vcombine.high %v7861_v21, %v7865_v60  ;;  %v7853_v39 = vld [vmem:[#allocation6 + $0x3d0] sm:$0xff]  ;;  %v10991_v49 = vcombine.low %v7861_v21, %v7865_v60 }
 0x4bb   :  { %9469 = vmatprep.subr.bf16.mxu0 %v10880_v59  ;;  %v7857_v41 = vld [vmem:[#allocation6 + $0x3f0] sm:$0xff] }
 0x4bc   :  { %9511 = vmatpush1.bf16.msra.mxu1 %v11015_v25  ;;  %v7981_v42 = vld [vmem:[#allocation6 + $0x7d0] sm:$0xff]  ;;  %v10984_v47 = vcombine.high %v7853_v39, %v7857_v41  ;;  %v10983_v59 = vcombine.low %v7853_v39, %v7857_v41 }
 0x4bd   :  { %9512 = vmatprep.subr.bf16.mxu1 %v11008_v22  ;;  %v7985_v32 = vld [vmem:[#allocation6 + $0x7f0] sm:$0xff] }
 0x4be   :  { %9470 = vmatpush1.bf16.msra.mxu0 %v10879_v17  ;;  %v11112_v54 = vcombine.high %v7981_v42, %v7985_v32  ;;  %v7845_v9 = vld [vmem:[#allocation6 + $0x390] sm:$0xff]  ;;  %v11111_v22 = vcombine.low %v7981_v42, %v7985_v32 }
 0x4bf   :  { %9471 = vmatprep.subr.bf16.mxu0 %v10872_v45  ;;  %v7849_v3 = vld [vmem:[#allocation6 + $0x3b0] sm:$0xff] }
 0x4c0   :  { %9513 = vmatpush1.bf16.msra.mxu1 %v11007_v15  ;;  %v7973_v53 = vld [vmem:[#allocation6 + $0x790] sm:$0xff]  ;;  %v10976_v36 = vcombine.high %v7845_v9, %v7849_v3  ;;  %v10975_v45 = vcombine.low %v7845_v9, %v7849_v3 }
 0x4c1   :  { %9514 = vmatprep.subr.bf16.mxu1 %v11000_v23  ;;  %v7977_v25 = vld [vmem:[#allocation6 + $0x7b0] sm:$0xff] }
 0x4c2   :  { %9472 = vmatpush1.bf16.msra.mxu0 %v10871_v31  ;;  %v11104_v29 = vcombine.high %v7973_v53, %v7977_v25  ;;  %v7837_v61 = vld [vmem:[#allocation6 + $0x350] sm:$0xff]  ;;  %v11103_v23 = vcombine.low %v7973_v53, %v7977_v25 }
 0x4c3   :  { %9473 = vmatprep.subr.bf16.mxu0 %v10864_v5  ;;  %v7841_v8 = vld [vmem:[#allocation6 + $0x370] sm:$0xff] }
 0x4c4   :  { %9515 = vmatpush1.bf16.msra.mxu1 %v10999_v38  ;;  %v7965_v17 = vld [vmem:[#allocation6 + $0x750] sm:$0xff]  ;;  %v10968_v57 = vcombine.high %v7837_v61, %v7841_v8  ;;  %v10967_v5 = vcombine.low %v7837_v61, %v7841_v8 }
 0x4c5   :  { %9516 = vmatprep.subr.bf16.mxu1 %v10992_v28  ;;  %v7969_v15 = vld [vmem:[#allocation6 + $0x770] sm:$0xff] }
 0x4c6   :  { %9474 = vmatpush1.bf16.msra.mxu0 %v10863_v35  ;;  %v11096_v63 = vcombine.high %v7965_v17, %v7969_v15  ;;  %v7829_v21 = vld [vmem:[#allocation6 + $0x310] sm:$0xff]  ;;  %v11095_v28 = vcombine.low %v7965_v17, %v7969_v15 }
 0x4c7   :  { %9475 = vmatprep.subr.bf16.mxu0 %v10984_v47  ;;  %v7833_v60 = vld [vmem:[#allocation6 + $0x330] sm:$0xff] }
 0x4c8   :  { %9517 = vmatpush1.bf16.msra.mxu1 %v10991_v49  ;;  %v7957_v31 = vld [vmem:[#allocation6 + $0x710] sm:$0xff]  ;;  %v10960_v39 = vcombine.high %v7829_v21, %v7833_v60  ;;  %v10959_v47 = vcombine.low %v7829_v21, %v7833_v60 }
 0x4c9   :  { %9518 = vmatprep.subr.bf16.mxu1 %v11112_v54  ;;  %v7961_v38 = vld [vmem:[#allocation6 + $0x730] sm:$0xff] }
 0x4ca   :  { %9476 = vmatpush2.bf16.msra.mxu0 %v10983_v59  ;;  %v11088_v41 = vcombine.high %v7957_v31, %v7961_v38  ;;  %v7821_v42 = vld [vmem:[#allocation6 + $0x2d0] sm:$0xff]  ;;  %v11087_v54 = vcombine.low %v7957_v31, %v7961_v38 }
 0x4cb   :  { %9477 = vmatprep.subr.bf16.mxu0 %v10976_v36  ;;  %v7825_v32 = vld [vmem:[#allocation6 + $0x2f0] sm:$0xff] }
 0x4cc   :  { %9519 = vmatpush2.bf16.msra.mxu1 %v11111_v22  ;;  %v7949_v35 = vld [vmem:[#allocation6 + $0x6d0] sm:$0xff]  ;;  %v10952_v9 = vcombine.high %v7821_v42, %v7825_v32  ;;  %v10951_v36 = vcombine.low %v7821_v42, %v7825_v32 }
 0x4cd   :  { %9520 = vmatprep.subr.bf16.mxu1 %v11104_v29  ;;  %v7953_v49 = vld [vmem:[#allocation6 + $0x6f0] sm:$0xff] }
 0x4ce   :  { %9478 = vmatpush2.bf16.msra.mxu0 %v10975_v45  ;;  %v11080_v3 = vcombine.high %v7949_v35, %v7953_v49  ;;  %v7813_v53 = vld [vmem:[#allocation6 + $0x290] sm:$0xff]  ;;  %v11079_v29 = vcombine.low %v7949_v35, %v7953_v49  ;;  %v7790_v35 = vld [vmem:[#allocation6 + $0x1d8] sm:$0xff] }
 0x4cf   :  { %9479 = vmatprep.subr.bf16.mxu0 %v10968_v57  ;;  %v7817_v25 = vld [vmem:[#allocation6 + $0x2b0] sm:$0xff]  ;;  %v7794_v49 = vld [vmem:[#allocation6 + $0x1f8] sm:$0xff] }
 0x4d0   :  { %9521 = vmatpush2.bf16.msra.mxu1 %v11103_v23  ;;  %v7941_v59 = vld [vmem:[#allocation6 + $0x690] sm:$0xff]  ;;  %v10944_v61 = vcombine.high %v7813_v53, %v7817_v25  ;;  %v10943_v57 = vcombine.low %v7813_v53, %v7817_v25  ;;  %v10922_v53 = vcombine.high %v7790_v35, %v7794_v49 }
 0x4d1   :  { %9522 = vmatprep.subr.bf16.mxu1 %v11096_v63  ;;  %v7945_v22 = vld [vmem:[#allocation6 + $0x6b0] sm:$0xff] }
 0x4d2   :  { %9480 = vmatpush2.bf16.msra.mxu0 %v10967_v5  ;;  %v11072_v8 = vcombine.high %v7941_v59, %v7945_v22  ;;  %v7805_v17 = vld [vmem:[#allocation6 + $0x250] sm:$0xff]  ;;  %v11071_v63 = vcombine.low %v7941_v59, %v7945_v22  ;;  %v7782_v59 = vld [vmem:[#allocation6 + $0x198] sm:$0xff] }
 0x4d3   :  { %9481 = vmatprep.subr.bf16.mxu0 %v10960_v39  ;;  %v7809_v15 = vld [vmem:[#allocation6 + $0x270] sm:$0xff]  ;;  %v7786_v22 = vld [vmem:[#allocation6 + $0x1b8] sm:$0xff] }
 0x4d4   :  { %9523 = vmatpush2.bf16.msra.mxu1 %v11095_v28  ;;  %v7933_v45 = vld [vmem:[#allocation6 + $0x650] sm:$0xff]  ;;  %v10936_v21 = vcombine.high %v7805_v17, %v7809_v15  ;;  %v10935_v39 = vcombine.low %v7805_v17, %v7809_v15  ;;  %v10914_v17 = vcombine.high %v7782_v59, %v7786_v22 }
 0x4d5   :  { %9524 = vmatprep.subr.bf16.mxu1 %v11088_v41  ;;  %v7937_v23 = vld [vmem:[#allocation6 + $0x670] sm:$0xff] }
 0x4d6   :  { %9482 = vmatpush2.bf16.msra.mxu0 %v10959_v47  ;;  %v11064_v60 = vcombine.high %v7933_v45, %v7937_v23  ;;  %v7797_v31 = vld [vmem:[#allocation6 + $0x210] sm:$0xff]  ;;  %v11063_v41 = vcombine.low %v7933_v45, %v7937_v23  ;;  %v7918_v47 = vld [vmem:[#allocation6 + $0x5d8] sm:$0xff] }
 0x4d7   :  { %9483 = vmatprep.subr.bf16.mxu0 %v10952_v9  ;;  %v7801_v38 = vld [vmem:[#allocation6 + $0x230] sm:$0xff]  ;;  %v7774_v45 = vld [vmem:[#allocation6 + $0x158] sm:$0xff] }
 0x4d8   :  { %9525 = vmatpush2.bf16.msra.mxu1 %v11087_v54  ;;  %v7925_v5 = vld [vmem:[#allocation6 + $0x610] sm:$0xff]  ;;  %v10928_v42 = vcombine.high %v7797_v31, %v7801_v38  ;;  %v7922_v54 = vld [vmem:[#allocation6 + $0x5f8] sm:$0xff]  ;;  %v10927_v9 = vcombine.low %v7797_v31, %v7801_v38  ;;  %v10913_v31 = vcombine.low %v7782_v59, %v7786_v22 }
 0x4d9   :  { %9526 = vmatprep.subr.bf16.mxu1 %v11080_v3  ;;  %v7929_v28 = vld [vmem:[#allocation6 + $0x630] sm:$0xff]  ;;  %v11050_v25 = vcombine.high %v7918_v47, %v7922_v54  ;;  %v7778_v23 = vld [vmem:[#allocation6 + $0x178] sm:$0xff] }
 0x4da   :  { %9484 = vmatpush2.bf16.msra.mxu0 %v10951_v36  ;;  %v11056_v32 = vcombine.high %v7925_v5, %v7929_v28  ;;  %v11055_v3 = vcombine.low %v7925_v5, %v7929_v28  ;;  %v7910_v36 = vld [vmem:[#allocation6 + $0x598] sm:$0xff] }
 0x4db   :  { %9485 = vmatprep.subr.bf16.mxu0 %v10944_v61  ;;  %v10921_v61 = vcombine.low %v7790_v35, %v7794_v49  ;;  %v7770_v35 = vld [vmem:[#allocation6 + $0x138] sm:$0xff] }
 0x4dc   :  { %9527 = vmatpush2.bf16.msra.mxu1 %v11079_v29  ;;  %v7914_v29 = vld [vmem:[#allocation6 + $0x5b8] sm:$0xff] }
 0x4dd   :  { %9528 = vmatprep.subr.bf16.mxu1 %v11072_v8  ;;  %v11049_v8 = vcombine.low %v7918_v47, %v7922_v54  ;;  %v11042_v15 = vcombine.high %v7910_v36, %v7914_v29  ;;  %v11041_v28 = vcombine.low %v7910_v36, %v7914_v29  ;;  %v7894_v54 = vld [vmem:[#allocation6 + $0x518] sm:$0xff] }
 0x4de   :  { %9486 = vmatpush2.bf16.msra.mxu0 %v10943_v57 }
 0x4df   :  { %9487 = vmatprep.subr.bf16.mxu0 %v10936_v21  ;;  %v7906_v21 = vld [vmem:[#allocation6 + $0x578] sm:$0xff] }
 0x4e0   :  { %9529 = vmatpush2.bf16.msra.mxu1 %v11071_v63  ;;  %v7902_v63 = vld [vmem:[#allocation6 + $0x558] sm:$0xff] }
 0x4e1   :  { %9530 = vmatprep.subr.bf16.mxu1 %v11064_v60  ;;  %v11033_v59 = vcombine.low %v7902_v63, %v7906_v21 }
 0x4e2   :  { %9488 = vmatpush2.bf16.msra.mxu0 %v10935_v39  ;;  %v10906_v39 = vcombine.high %v7774_v45, %v7778_v23 }
 0x4e3   :  { %9489 = vmatprep.subr.bf16.mxu0 %v10928_v42  ;;  %v11034_v42 = vcombine.high %v7902_v63, %v7906_v21 }
 0x4e4   :  { %9531 = vmatpush2.bf16.msra.mxu1 %v11063_v41 }
 0x4e5   :  { %9532 = vmatprep.subr.bf16.mxu1 %v11056_v32  ;;  %v7766_v32 = vld [vmem:[#allocation6 + $0x118] sm:$0xff] }
 0x4e6   :  { %9490 = vmatpush2.bf16.msra.mxu0 %v10927_v9  ;;  %v7898_v9 = vld [vmem:[#allocation6 + $0x538] sm:$0xff]  ;;  %v10898_v29 = vcombine.high %v7766_v32, %v7770_v35 }
 0x4e7   :  { %9545 = vmatprep.subr.bf16.mxu0 %v10922_v53  ;;  %v11025_v63 = vcombine.low %v7894_v54, %v7898_v9 }
 0x4e8   :  { %9533 = vmatpush2.bf16.msra.mxu1 %v11055_v3  ;;  %v11183_v3 = vld [vmem:[%s13347_s4 + $0xc] ss:$16 sps:$4 sm:$0xff]  }
 0x4e9   :  { %9588 = vmatprep.subr.bf16.mxu1 %v11050_v25  ;;  %v7659_v57 = vpop.f32.mrf.mxu0  ;;  %9492 = vmatmul.mubr.bf16.vlgmr.msra.gmra.mxu0 %v13195_v18  ;;  %v11182_v18 = vld [vmem:[%s13347_s4 + $0x4] ss:$16 sps:$4 sm:$0xff]   ;;  %v10905_v25 = vcombine.low %v7774_v45, %v7778_v23  ;;  %v7890_v45 = vld [vmem:[#allocation6 + $0x4f8] sm:$0xff]  ;;  %v10897_v23 = vcombine.low %v7766_v32, %v7770_v35 }
 0x4ea   :  { %9546 = vmatpush1.bf16.msra.mxu0 %v10921_v61  ;;  %9577 = vmatprep.mubr.bf16.mxu0 %v11182_v18  ;;  %v7746_v35 = vld [vmem:[#allocation6 + $0x78] sm:$0xff] }
 0x4eb   :  { %v7702_v60 = vpop.f32.mrf.mxu1  ;;  %9535 = vmatmul.mubr.bf16.vlgmr.msra.gmra.mxu1 %v13200_v20  ;;  %v7661_v5 = vpop.f32.mrf.mxu0  ;;  %9547 = vmatprep.subr.bf16.mxu0 %v10914_v17  ;;  %v7758_v17 = vld [vmem:[#allocation6 + $0xd8] sm:$0xff] }
 0x4ec   :  { %v7703_v38 = vadd.f32 %v7702_v60, %v7659_v57  ;;  %9589 = vmatpush1.bf16.msra.mxu1 %v11049_v8  ;;  %9620 = vmatprep.mubr.bf16.mxu1 %v11183_v3  ;;  %v11026_v8 = vcombine.high %v7894_v54, %v7898_v9 }
 0x4ed   :  { %v7704_v41 = vpop.f32.mrf.mxu1  ;;  %9590 = vmatprep.subr.bf16.mxu1 %v11042_v15  ;;  %v7663_v47 = vpop.f32.mrf.mxu0  ;;  %v7762_v15 = vld [vmem:[#allocation6 + $0xf8] sm:$0xff] }
 0x4ee   :  { %v13244_v20 = vadd.f32 %v7703_v38, %v13148_v26  ;;  %v7705_v49 = vadd.f32 %v7704_v41, %v7661_v5  ;;  %9548 = vmatpush1.bf16.msra.mxu0 %v10913_v31  ;;  %v7886_v31 = vld [vmem:[#allocation6 + $0x4d8] sm:$0xff]  ;;  %v10890_v21 = vcombine.high %v7758_v17, %v7762_v15 }
 0x4ef   :  { %v7706_v53 = vpop.f32.mrf.mxu1  ;;  %v7665_v26 = vpop.f32.mrf.mxu0  ;;  %9549 = vmatprep.subr.bf16.mxu0 %v10906_v39  ;;  %v11018_v38 = vcombine.high %v7886_v31, %v7890_v45  ;;  %v7750_v5 = vld [vmem:[#allocation6 + $0x98] sm:$0xff] }
 0x4f0   :  { %v13250_v22 = vadd.f32 %v7705_v49, %v13154_v48  ;;  %v7707_v36 = vadd.f32 %v7706_v53, %v7663_v47  ;;  %9591 = vmatpush1.bf16.msra.mxu1 %v11041_v28  ;;  %v7754_v28 = vld [vmem:[#allocation6 + $0xb8] sm:$0xff] }
 0x4f1   :  { %v7708_v61 = vpop.f32.mrf.mxu1  ;;  %9592 = vmatprep.subr.bf16.mxu1 %v11034_v42  ;;  %v7878_v39 = vld [vmem:[#allocation6 + $0x498] sm:$0xff]  ;;  %v11017_v42 = vcombine.low %v7886_v31, %v7890_v45  ;;  %v10882_v18 = vcombine.high %v7750_v5, %v7754_v28  ;;  %v10881_v54 = vcombine.low %v7750_v5, %v7754_v28 }
 0x4f2   :  { %v13253_v57 = vadd.f32 %v7707_v36, %v13157_v0  ;;  %v7709_v60 = vadd.f32 %v7708_v61, %v7665_v26  ;;  %9550 = vmatpush1.bf16.msra.mxu0 %v10905_v25  ;;  %v7882_v41 = vld [vmem:[#allocation6 + $0x4b8] sm:$0xff]  ;;  %v10889_v0 = vcombine.low %v7758_v17, %v7762_v15 }
 0x4f3   :  { %9551 = vmatprep.subr.bf16.mxu0 %v10898_v29  ;;  %v11010_v32 = vcombine.high %v7878_v39, %v7882_v41  ;;  %v7870_v49 = vld [vmem:[#allocation6 + $0x458] sm:$0xff]  ;;  %v11009_v9 = vcombine.low %v7878_v39, %v7882_v41 }
 0x4f4   :  { %v13256_v48 = vadd.f32 %v7709_v60, %v13160_v2  ;;  %9593 = vmatpush1.bf16.msra.mxu1 %v11033_v59  ;;  %v7742_v2 = vld [vmem:[#allocation6 + $0x58] sm:$0xff] }
 0x4f5   :  { %9594 = vmatprep.subr.bf16.mxu1 %v11026_v8  ;;  %v7874_v47 = vld [vmem:[#allocation6 + $0x478] sm:$0xff]  ;;  %v10874_v3 = vcombine.high %v7742_v2, %v7746_v35  ;;  %v10873_v29 = vcombine.low %v7742_v2, %v7746_v35 }
 0x4f6   :  { %9552 = vmatpush1.bf16.msra.mxu0 %v10897_v23  ;;  %v11002_v53 = vcombine.high %v7870_v49, %v7874_v47  ;;  %v7734_v25 = vld [vmem:[#allocation6 + $0x18] sm:$0xff]  ;;  %v11001_v61 = vcombine.low %v7870_v49, %v7874_v47 }
 0x4f7   :  { %9553 = vmatprep.subr.bf16.mxu0 %v10890_v21  ;;  %v7738_v59 = vld [vmem:[#allocation6 + $0x38] sm:$0xff] }
 0x4f8   :  { %9595 = vmatpush1.bf16.msra.mxu1 %v11025_v63  ;;  %v7862_v36 = vld [vmem:[#allocation6 + $0x418] sm:$0xff]  ;;  %v10866_v8 = vcombine.high %v7734_v25, %v7738_v59  ;;  %v10865_v23 = vcombine.low %v7734_v25, %v7738_v59 }
 0x4f9   :  { %9596 = vmatprep.subr.bf16.mxu1 %v11018_v38  ;;  %v7866_v26 = vld [vmem:[#allocation6 + $0x438] sm:$0xff] }
 0x4fa   :  { %9554 = vmatpush1.bf16.msra.mxu0 %v10889_v0  ;;  %v10994_v17 = vcombine.high %v7862_v36, %v7866_v26  ;;  %v7854_v15 = vld [vmem:[#allocation6 + $0x3d8] sm:$0xff]  ;;  %v10993_v63 = vcombine.low %v7862_v36, %v7866_v26 }
 0x4fb   :  { %9555 = vmatprep.subr.bf16.mxu0 %v10882_v18  ;;  %v7858_v60 = vld [vmem:[#allocation6 + $0x3f8] sm:$0xff] }
 0x4fc   :  { %9597 = vmatpush1.bf16.msra.mxu1 %v11017_v42  ;;  %v7982_v31 = vld [vmem:[#allocation6 + $0x7d8] sm:$0xff]  ;;  %v10986_v21 = vcombine.high %v7854_v15, %v7858_v60  ;;  %v10985_v0 = vcombine.low %v7854_v15, %v7858_v60 }
 0x4fd   :  { %9598 = vmatprep.subr.bf16.mxu1 %v11010_v32  ;;  %v7986_v45 = vld [vmem:[#allocation6 + $0x7f8] sm:$0xff] }
 0x4fe   :  { %9556 = vmatpush1.bf16.msra.mxu0 %v10881_v54  ;;  %v11114_v38 = vcombine.high %v7982_v31, %v7986_v45  ;;  %v7846_v5 = vld [vmem:[#allocation6 + $0x398] sm:$0xff]  ;;  %v11113_v42 = vcombine.low %v7982_v31, %v7986_v45 }
 0x4ff   :  { %9557 = vmatprep.subr.bf16.mxu0 %v10874_v3  ;;  %v7850_v28 = vld [vmem:[#allocation6 + $0x3b8] sm:$0xff] }
 0x500   :  { %9599 = vmatpush1.bf16.msra.mxu1 %v11009_v9  ;;  %v7974_v39 = vld [vmem:[#allocation6 + $0x798] sm:$0xff]  ;;  %v10978_v18 = vcombine.high %v7846_v5, %v7850_v28  ;;  %v10977_v54 = vcombine.low %v7846_v5, %v7850_v28 }
 0x501   :  { %9600 = vmatprep.subr.bf16.mxu1 %v11002_v53  ;;  %v7978_v41 = vld [vmem:[#allocation6 + $0x7b8] sm:$0xff] }
 0x502   :  { %9558 = vmatpush1.bf16.msra.mxu0 %v10873_v29  ;;  %v11106_v32 = vcombine.high %v7974_v39, %v7978_v41  ;;  %v7838_v2 = vld [vmem:[#allocation6 + $0x358] sm:$0xff]  ;;  %v11105_v9 = vcombine.low %v7974_v39, %v7978_v41 }
 0x503   :  { %9559 = vmatprep.subr.bf16.mxu0 %v10866_v8  ;;  %v7842_v35 = vld [vmem:[#allocation6 + $0x378] sm:$0xff] }
 0x504   :  { %9601 = vmatpush1.bf16.msra.mxu1 %v11001_v61  ;;  %v7966_v49 = vld [vmem:[#allocation6 + $0x758] sm:$0xff]  ;;  %v10970_v3 = vcombine.high %v7838_v2, %v7842_v35  ;;  %v10969_v29 = vcombine.low %v7838_v2, %v7842_v35 }
 0x505   :  { %9602 = vmatprep.subr.bf16.mxu1 %v10994_v17  ;;  %v7970_v47 = vld [vmem:[#allocation6 + $0x778] sm:$0xff] }
 0x506   :  { %9560 = vmatpush1.bf16.msra.mxu0 %v10865_v23  ;;  %v11098_v53 = vcombine.high %v7966_v49, %v7970_v47  ;;  %v7830_v25 = vld [vmem:[#allocation6 + $0x318] sm:$0xff]  ;;  %v11097_v61 = vcombine.low %v7966_v49, %v7970_v47 }
 0x507   :  { %9561 = vmatprep.subr.bf16.mxu0 %v10986_v21  ;;  %v7834_v59 = vld [vmem:[#allocation6 + $0x338] sm:$0xff] }
 0x508   :  { %9603 = vmatpush1.bf16.msra.mxu1 %v10993_v63  ;;  %v7958_v36 = vld [vmem:[#allocation6 + $0x718] sm:$0xff]  ;;  %v10962_v8 = vcombine.high %v7830_v25, %v7834_v59  ;;  %v10961_v23 = vcombine.low %v7830_v25, %v7834_v59 }
 0x509   :  { %9604 = vmatprep.subr.bf16.mxu1 %v11114_v38  ;;  %v7962_v26 = vld [vmem:[#allocation6 + $0x738] sm:$0xff] }
 0x50a   :  { %9562 = vmatpush2.bf16.msra.mxu0 %v10985_v0  ;;  %v11090_v17 = vcombine.high %v7958_v36, %v7962_v26  ;;  %v7822_v15 = vld [vmem:[#allocation6 + $0x2d8] sm:$0xff]  ;;  %v11089_v63 = vcombine.low %v7958_v36, %v7962_v26 }
 0x50b   :  { %9563 = vmatprep.subr.bf16.mxu0 %v10978_v18  ;;  %v7826_v60 = vld [vmem:[#allocation6 + $0x2f8] sm:$0xff] }
 0x50c   :  { %9605 = vmatpush2.bf16.msra.mxu1 %v11113_v42  ;;  %v7950_v31 = vld [vmem:[#allocation6 + $0x6d8] sm:$0xff]  ;;  %v10954_v21 = vcombine.high %v7822_v15, %v7826_v60  ;;  %v10953_v0 = vcombine.low %v7822_v15, %v7826_v60 }
 0x50d   :  { %9606 = vmatprep.subr.bf16.mxu1 %v11106_v32  ;;  %v7954_v45 = vld [vmem:[#allocation6 + $0x6f8] sm:$0xff] }
 0x50e   :  { %9564 = vmatpush2.bf16.msra.mxu0 %v10977_v54  ;;  %v11082_v38 = vcombine.high %v7950_v31, %v7954_v45  ;;  %v7814_v5 = vld [vmem:[#allocation6 + $0x298] sm:$0xff]  ;;  %v11081_v42 = vcombine.low %v7950_v31, %v7954_v45 }
 0x50f   :  { %9565 = vmatprep.subr.bf16.mxu0 %v10970_v3  ;;  %v7818_v28 = vld [vmem:[#allocation6 + $0x2b8] sm:$0xff] }
 0x510   :  { %9607 = vmatpush2.bf16.msra.mxu1 %v11105_v9  ;;  %v7942_v39 = vld [vmem:[#allocation6 + $0x698] sm:$0xff]  ;;  %v10946_v18 = vcombine.high %v7814_v5, %v7818_v28  ;;  %v10945_v54 = vcombine.low %v7814_v5, %v7818_v28  ;;  %v5529_v5 = vadd.f32 %v13094_v19, %v13092_v11  ;;  %v13272_v28 = vld [vmem:[%s13353_s10] sm:$0xff] }
 0x511   :  { %9608 = vmatprep.subr.bf16.mxu1 %v11098_v53  ;;  %v7946_v41 = vld [vmem:[#allocation6 + $0x6b8] sm:$0xff] }
 0x512   :  { %9566 = vmatpush2.bf16.msra.mxu0 %v10969_v29  ;;  %v11074_v32 = vcombine.high %v7942_v39, %v7946_v41  ;;  %v7806_v2 = vld [vmem:[#allocation6 + $0x258] sm:$0xff]  ;;  %v11073_v9 = vcombine.low %v7942_v39, %v7946_v41 }
 0x513   :  { %9567 = vmatprep.subr.bf16.mxu0 %v10962_v8  ;;  %v7810_v35 = vld [vmem:[#allocation6 + $0x278] sm:$0xff] }
 0x514   :  { %9609 = vmatpush2.bf16.msra.mxu1 %v11097_v61  ;;  %v7934_v49 = vld [vmem:[#allocation6 + $0x658] sm:$0xff]  ;;  %v10938_v3 = vcombine.high %v7806_v2, %v7810_v35  ;;  %v10937_v29 = vcombine.low %v7806_v2, %v7810_v35 }
 0x515   :  { %9610 = vmatprep.subr.bf16.mxu1 %v11090_v17  ;;  %v7938_v47 = vld [vmem:[#allocation6 + $0x678] sm:$0xff]  ;;  %v9649_v17 = vlaneseq }
 0x516   :  { %9568 = vmatpush2.bf16.msra.mxu0 %v10961_v23  ;;  %v11066_v53 = vcombine.high %v7934_v49, %v7938_v47  ;;  %v7798_v25 = vld [vmem:[#allocation6 + $0x218] sm:$0xff]  ;;  %v11065_v61 = vcombine.low %v7934_v49, %v7938_v47  ;;  %v5525_v23 = vadd.f32 %v13086_v56, %v13084_v51  ;;  %v7447_v56 = vadd.f32 %v13186_v14, %v13184_v58 }
 0x517   :  { %9569 = vmatprep.subr.bf16.mxu0 %v10954_v21  ;;  %v7802_v59 = vld [vmem:[#allocation6 + $0x238] sm:$0xff]  ;;  %v13258_v45 = vshrl.u32 %v9649_v17, 7  ;;  %v7445_v21 = vadd.f32 %v13182_v1, %v13180_v43  ;;  %v7449_v58 = vadd.f32 %v13190_v34, %v13188_v16  ;;  %v7451_v47 = vadd.f32 %v13204_v27, %v13202_v6 }
 0x518   :  { %9611 = vmatpush2.bf16.msra.mxu1 %v11089_v63  ;;  %v7926_v36 = vld [vmem:[#allocation6 + $0x618] sm:$0xff]  ;;  %v10930_v8 = vcombine.high %v7798_v25, %v7802_v59  ;;  %v10929_v60 = vcombine.low %v7798_v25, %v7802_v59  ;;  %v5527_v63 = vadd.f32 %v13090_v4, %v13088_v37  ;;  %v5791_v51 = vadd.f32 %v5525_v23, %v12991_v50  ;;  %v11184_v4 = vld [vmem:[%s13347_s4] ss:$16 sps:$4 sm:$0xff]  }
 0x519   :  { %9612 = vmatprep.subr.bf16.mxu1 %v11082_v38  ;;  %v7930_v26 = vld [vmem:[#allocation6 + $0x638] sm:$0xff]  ;;  %v9651_v38 = vsub.s32 0, %v13258_v45  ;;  %v9655_v43 = vsub.s32 1, %v13258_v45 }
 0x51a   :  { %9570 = vmatpush2.bf16.msra.mxu0 %v10953_v0  ;;  %v11058_v15 = vcombine.high %v7926_v36, %v7930_v26  ;;  %v11057_v31 = vcombine.low %v7926_v36, %v7930_v26  ;;  %v5792_v11 = vadd.f32 %v5527_v63, %v12996_v12  ;;  %v11185_v1 = vld [vmem:[%s13347_s4 + $0x8] ss:$16 sps:$4 sm:$0xff]   ;;  %v7711_v50 = vadd.f32 %v7445_v21, %v5791_v51 }
 0x51b   :  { %9571 = vmatprep.subr.bf16.mxu0 %v10946_v18  ;;  %v9652_v39 = vrot.slane %v13272_v28, %v9651_v38  ;;  %v5799_v0 = vadd.f32 %v5529_v5, %v12999_v46  ;;  %v9656_v35 = vrot.slane %v13272_v28, %v9655_v43  ;;  %v9659_v21 = vsub.s32 2, %v13258_v45 }
 0x51c   :  { %9613 = vmatpush2.bf16.msra.mxu1 %v11081_v42  ;;  %v5531_v42 = vadd.f32 %v13108_v33, %v13106_v30  ;;  %v7712_v18 = vadd.f32 %v7447_v56, %v5792_v11  ;;  %v9663_v5 = vsub.s32 3, %v13258_v45 }
 0x51d   :  { %9614 = vmatprep.subr.bf16.mxu1 %v11074_v32  ;;  %v7719_v34 = vadd.f32 %v7449_v58, %v5799_v0 }
 0x51e   :  { %9572 = vmatpush2.bf16.msra.mxu0 %v10945_v54  ;;  %v5800_v46 = vadd.f32 %v5531_v42, %v13002_v55 }
 0x51f   :  { %9573 = vmatprep.subr.bf16.mxu0 %v10938_v3 }
 0x520   :  { %9615 = vmatpush2.bf16.msra.mxu1 %v11073_v9  ;;  %v7720_v36 = vadd.f32 %v7451_v47, %v5800_v46 }
 0x521   :  { %9616 = vmatprep.subr.bf16.mxu1 %v11066_v53 }
 0x522   :  { %9574 = vmatpush2.bf16.msra.mxu0 %v10937_v29 }
 0x523   :  { %9575 = vmatprep.subr.bf16.mxu0 %v10930_v8 }
 0x524   :  { %9617 = vmatpush2.bf16.msra.mxu1 %v11065_v61 }
 0x525   :  { %9618 = vmatprep.subr.bf16.mxu1 %v11058_v15 }
 0x526   :  { %9576 = vmatpush2.bf16.msra.mxu0 %v10929_v60 }
 0x528   :  { %9619 = vmatpush2.bf16.msra.mxu1 %v11057_v31 }
 0x529   :  { %v9321_v37 = vpop.f32.mrf.mxu0  ;;  %9578 = vmatmul.mubr.bf16.vlgmr.msra.gmra.mxu0 %v11184_v4 }
 0x52b   :  { %v9364_v19 = vpop.f32.mrf.mxu1  ;;  %9621 = vmatmul.mubr.bf16.vlgmr.msra.gmra.mxu1 %v11185_v1  ;;  %v9323_v41 = vpop.f32.mrf.mxu0  ;;  %v9664_v1 = vrot.slane %v13272_v28, %v9663_v5 }
 0x52c   :  { %v9365_v14 = vadd.f32 %v9364_v19, %v9321_v37  ;;  %v9660_v37 = vrot.slane %v13272_v28, %v9659_v21 }
 0x52d   :  { %v9366_v12 = vpop.f32.mrf.mxu1  ;;  %v9325_v49 = vpop.f32.mrf.mxu0 }
 0x52e   :  { %v9631_v32 = vadd.f32 %v9365_v14, %v7711_v50  ;;  %v9367_v2 = vadd.f32 %v9366_v12, %v9323_v41 }
 0x52f   :  { %v9368_v16 = vpop.f32.mrf.mxu1  ;;  %v9327_v53 = vpop.f32.mrf.mxu0 }
 0x530   :  { %v9689_v54 = vadd.f32 %v9652_v39, %v9631_v32  ;;  %v9632_v9 = vadd.f32 %v9367_v2, %v7712_v18  ;;  %v9369_v3 = vadd.f32 %v9368_v16, %v9325_v49 }
 0x531   :  { %v9370_v25 = vpop.f32.mrf.mxu1 }
 0x532   :  { %v9721_v30 = vmul.f32 0.1, %v9689_v54  ;;  %v9690_v33 = vadd.f32 %v9656_v35, %v9632_v9  ;;  %v9639_v59 = vadd.f32 %v9369_v3, %v7719_v34  ;;  %vm9705_vm0 = vcmp.gt.f32.partialorder %v9689_v54, 0.0 }
 0x533   :  { %v9371_v26 = vadd.f32 %v9370_v25, %v9327_v53  ;;  %v9671_v25 = vsub.s32 5, %v13258_v45 }
 0x534   :  { %vm9706_vm1 = vcmp.gt.f32.partialorder %v9690_v33, 0.0  ;;  %v9722_v29 = vmul.f32 0.1, %v9690_v33  ;;  %v9697_v61 = vadd.f32 %v9652_v39, %v9639_v59  ;;  %v9737_v6 = vsel %vm9705_vm0, %v9689_v54, %v9721_v30 }
 0x535   :  { %v9640_v8 = vadd.f32 %v9371_v26, %v7720_v36 }
 0x536   :  { %v9738_v27 = vsel %vm9706_vm1, %v9690_v33, %v9722_v29  ;;  %v9729_v15 = vmul.f32 0.1, %v9697_v61  ;;  %vm9713_vm2 = vcmp.gt.f32.partialorder %v9697_v61, 0.0 }
 0x537   :  { %v11123_v17 = vpack.c.bf16 %v9738_v27, %v9737_v6  ;;  %v9698_v60 = vadd.f32 %v9656_v35, %v9640_v8  ;;  %v9672_v8 = vrot.slane %v13272_v28, %v9671_v25 }
 0x538   :  { %v9745_v31 = vsel %vm9713_vm2, %v9697_v61, %v9729_v15 }
 0x539   :  { %9801 = vst [vmem:[%s13354_s11] sm:$0xff] %v11123_v17  ;;  %vm9714_vm3 = vcmp.gt.f32.partialorder %v9698_v60, 0.0  ;;  %v9730_v55 = vmul.f32 0.1, %v9698_v60 }
 0x53b   :  { %v9746_v23 = vsel %vm9714_vm3, %v9698_v60, %v9730_v55 }
 0x53c   :  { %v11127_v63 = vpack.c.bf16 %v9746_v23, %v9745_v31 }
 0x53e   :  { %9805 = vst [vmem:[%s13354_s11 + $0x20] sm:$0xff] %v11127_v63 }
 0x569   :  { %v9407_v38 = vpop.f32.mrf.mxu0 }
 0x56b   :  { %v9450_v51 = vpop.f32.mrf.mxu1  ;;  %v9409_v4 = vpop.f32.mrf.mxu0 }
 0x56c   :  { %v9451_v56 = vadd.f32 %v9450_v51, %v9407_v38 }
 0x56d   :  { %v9452_v43 = vpop.f32.mrf.mxu1  ;;  %v9411_v50 = vpop.f32.mrf.mxu0 }
 0x56e   :  { %v9633_v11 = vadd.f32 %v9451_v56, %v13210_v52  ;;  %v9453_v19 = vadd.f32 %v9452_v43, %v9409_v4 }
 0x56f   :  { %v9454_v58 = vpop.f32.mrf.mxu1  ;;  %v9413_v0 = vpop.f32.mrf.mxu0 }
 0x570   :  { %v9691_v14 = vadd.f32 %v9660_v37, %v9633_v11  ;;  %v9634_v39 = vadd.f32 %v9453_v19, %v13214_v7  ;;  %v9455_v41 = vadd.f32 %v9454_v58, %v9411_v50  ;;  %v9679_v58 = vsub.s32 7, %v13258_v45 }
 0x571   :  { %v9456_v42 = vpop.f32.mrf.mxu1 }
 0x572   :  { %v9723_v12 = vmul.f32 0.1, %v9691_v14  ;;  %v9692_v18 = vadd.f32 %v9664_v1, %v9634_v39  ;;  %v9641_v32 = vadd.f32 %v9455_v41, %v13217_v62  ;;  %vm9707_vm4 = vcmp.gt.f32.partialorder %v9691_v14, 0.0 }
 0x573   :  { %v9457_v2 = vadd.f32 %v9456_v42, %v9413_v0 }
 0x574   :  { %vm9708_vm5 = vcmp.gt.f32.partialorder %v9692_v18, 0.0  ;;  %v9724_v35 = vmul.f32 0.1, %v9692_v18  ;;  %v9699_v52 = vadd.f32 %v9660_v37, %v9641_v32  ;;  %v9739_v47 = vsel %vm9707_vm4, %v9691_v14, %v9723_v12 }
 0x575   :  { %v9642_v49 = vadd.f32 %v9457_v2, %v13220_v10  ;;  %v9667_v10 = vsub.s32 4, %v13258_v45  ;;  %v9680_v32 = vrot.slane %v13272_v28, %v9679_v58 }
 0x576   :  { %v9740_v16 = vsel %vm9708_vm5, %v9692_v18, %v9724_v35  ;;  %v9731_v54 = vmul.f32 0.1, %v9699_v52  ;;  %vm9715_vm6 = vcmp.gt.f32.partialorder %v9699_v52, 0.0 }
 0x577   :  { %v11124_v34 = vpack.c.bf16 %v9740_v16, %v9739_v47  ;;  %v9700_v9 = vadd.f32 %v9664_v1, %v9642_v49  ;;  %v9668_v59 = vrot.slane %v13272_v28, %v9667_v10 }
 0x578   :  { %v9747_v62 = vsel %vm9715_vm6, %v9699_v52, %v9731_v54 }
 0x579   :  { %9802 = vst [vmem:[%s13354_s11 + $0x8] sm:$0xff] %v11124_v34  ;;  %vm9716_vm7 = vcmp.gt.f32.partialorder %v9700_v9, 0.0  ;;  %v9732_v7 = vmul.f32 0.1, %v9700_v9 }
 0x57b   :  { %v9748_v3 = vsel %vm9716_vm7, %v9700_v9, %v9732_v7 }
 0x57c   :  { %v11128_v53 = vpack.c.bf16 %v9748_v3, %v9747_v62 }
 0x57e   :  { %9806 = vst [vmem:[%s13354_s11 + $0x28] sm:$0xff] %v11128_v53 }
 0x5a9   :  { %v9493_v46 = vpop.f32.mrf.mxu0 }
 0x5ab   :  { %v9536_v30 = vpop.f32.mrf.mxu1  ;;  %v9495_v36 = vpop.f32.mrf.mxu0 }
 0x5ac   :  { %v9537_v33 = vadd.f32 %v9536_v30, %v9493_v46 }
 0x5ad   :  { %v9538_v26 = vpop.f32.mrf.mxu1  ;;  %v9497_v6 = vpop.f32.mrf.mxu0 }
 0x5ae   :  { %v9635_v29 = vadd.f32 %v9537_v33, %v13226_v13  ;;  %v9539_v61 = vadd.f32 %v9538_v26, %v9495_v36 }
 0x5af   :  { %v9540_v27 = vpop.f32.mrf.mxu1  ;;  %v9499_v55 = vpop.f32.mrf.mxu0 }
 0x5b0   :  { %v9693_v17 = vadd.f32 %v9668_v59, %v9635_v29  ;;  %v9636_v15 = vadd.f32 %v9539_v61, %v13230_v44  ;;  %v9541_v60 = vadd.f32 %v9540_v27, %v9497_v6 }
 0x5b1   :  { %v9542_v31 = vpop.f32.mrf.mxu1 }
 0x5b2   :  { %v9725_v23 = vmul.f32 0.1, %v9693_v17  ;;  %v9694_v63 = vadd.f32 %v9672_v8, %v9636_v15  ;;  %v9643_v21 = vadd.f32 %v9541_v60, %v13233_v24  ;;  %vm9709_vm8 = vcmp.gt.f32.partialorder %v9693_v17, 0.0 }
 0x5b3   :  { %v9543_v38 = vadd.f32 %v9542_v31, %v9499_v55 }
 0x5b4   :  { %vm9710_vm9 = vcmp.gt.f32.partialorder %v9694_v63, 0.0  ;;  %v9726_v5 = vmul.f32 0.1, %v9694_v63  ;;  %v9701_v13 = vadd.f32 %v9668_v59, %v9643_v21  ;;  %v9741_v56 = vsel %vm9709_vm8, %v9693_v17, %v9725_v23 }
 0x5b5   :  { %v9644_v51 = vadd.f32 %v9543_v38, %v13236_v40  ;;  %v9675_v40 = vsub.s32 6, %v13258_v45 }
 0x5b6   :  { %v9742_v37 = vsel %vm9710_vm9, %v9694_v63, %v9726_v5  ;;  %v9733_v43 = vmul.f32 0.1, %v9701_v13  ;;  %vm9717_vm10 = vcmp.gt.f32.partialorder %v9701_v13, 0.0 }
 0x5b7   :  { %v11125_v4 = vpack.c.bf16 %v9742_v37, %v9741_v56  ;;  %v9702_v11 = vadd.f32 %v9672_v8, %v9644_v51  ;;  %v9676_v41 = vrot.slane %v13272_v28, %v9675_v40 }
 0x5b8   :  { %v9749_v24 = vsel %vm9717_vm10, %v9701_v13, %v9733_v43 }
 0x5b9   :  { %9803 = vst [vmem:[%s13354_s11 + $0x10] sm:$0xff] %v11125_v4  ;;  %vm9718_vm11 = vcmp.gt.f32.partialorder %v9702_v11, 0.0  ;;  %v9734_v44 = vmul.f32 0.1, %v9702_v11 }
 0x5bb   :  { %v9750_v19 = vsel %vm9718_vm11, %v9702_v11, %v9734_v44 }
 0x5bc   :  { %v11129_v1 = vpack.c.bf16 %v9750_v19, %v9749_v24 }
 0x5be   :  { %9807 = vst [vmem:[%s13354_s11 + $0x30] sm:$0xff] %v11129_v1 }
 0x5e9   :  { %v9579_v50 = vpop.f32.mrf.mxu0 }
 0x5eb   :  { %v9622_v14 = vpop.f32.mrf.mxu1  ;;  %v9581_v0 = vpop.f32.mrf.mxu0 }
 0x5ec   :  { %v9623_v39 = vadd.f32 %v9622_v14, %v9579_v50 }
 0x5ed   :  { %v9624_v42 = vpop.f32.mrf.mxu1  ;;  %v9583_v2 = vpop.f32.mrf.mxu0 }
 0x5ee   :  { %v9637_v12 = vadd.f32 %v9623_v39, %v13244_v20  ;;  %v9625_v18 = vadd.f32 %v9624_v42, %v9581_v0 }
 0x5ef   :  { %v9626_v35 = vpop.f32.mrf.mxu1  ;;  %v9585_v16 = vpop.f32.mrf.mxu0 }
 0x5f0   :  { %v9695_v52 = vadd.f32 %v9676_v41, %v9637_v12  ;;  %v9638_v49 = vadd.f32 %v9625_v18, %v13250_v22  ;;  %v9627_v47 = vadd.f32 %v9626_v35, %v9583_v2 }
 0x5f1   :  { %v9628_v34 = vpop.f32.mrf.mxu1 }
 0x5f2   :  { %v9727_v45 = vmul.f32 0.1, %v9695_v52  ;;  %v9696_v54 = vadd.f32 %v9680_v32, %v9638_v49  ;;  %v9645_v9 = vadd.f32 %v9627_v47, %v13253_v57  ;;  %vm9711_vm12 = vcmp.gt.f32.partialorder %v9695_v52, 0.0 }
 0x5f3   :  { %v9629_v7 = vadd.f32 %v9628_v34, %v9585_v16 }
 0x5f4   :  { %vm9712_vm13 = vcmp.gt.f32.partialorder %v9696_v54, 0.0  ;;  %v9728_v62 = vmul.f32 0.1, %v9696_v54  ;;  %v9703_v20 = vadd.f32 %v9676_v41, %v9645_v9  ;;  %v9743_v28 = vsel %vm9711_vm12, %v9695_v52, %v9727_v45 }
 0x5f5   :  { %v9646_v3 = vadd.f32 %v9629_v7, %v13256_v48 }
 0x5f6   :  { %v9744_v53 = vsel %vm9712_vm13, %v9696_v54, %v9728_v62  ;;  %v9735_v46 = vmul.f32 0.1, %v9703_v20  ;;  %vm9719_vm14 = vcmp.gt.f32.partialorder %v9703_v20, 0.0 }
 0x5f7   :  { %v11126_v10 = vpack.c.bf16 %v9744_v53, %v9743_v28  ;;  %v9704_v25 = vadd.f32 %v9680_v32, %v9646_v3 }
 0x5f8   :  { %v9751_v57 = vsel %vm9719_vm14, %v9703_v20, %v9735_v46 }
 0x5f9   :  { %9804 = vst [vmem:[%s13354_s11 + $0x18] sm:$0xff] %v11126_v10  ;;  %vm9720_vm15 = vcmp.gt.f32.partialorder %v9704_v25, 0.0  ;;  %v9736_v22 = vmul.f32 0.1, %v9704_v25 }
 0x5fb   :  { %v9752_v30 = vsel %vm9720_vm15, %v9704_v25, %v9736_v22 }
 0x5fc   :  { %v11130_v33 = vpack.c.bf16 %v9752_v30, %v9751_v57 }
 0x5fe   :  { %9808 = vst [vmem:[%s13354_s11 + $0x38] sm:$0xff] %v11130_v33 }
 0x5ff   :  { %9813 = vsyncpa [#allocation3], 1 }
 0x600   :  { %9814 = vsyncpa [#allocation5], 1 }

</bundles_post_ra>
